<compile_context>
chip_gen: v5e
topology: v5e:2x2
jax: 0.10.0
libtpu: 0.0.40
codegen_flags: <defaults>
</compile_context>

<pallas_src>
import jax
import jax.numpy as jnp
from jax.experimental import pallas as pl
from jax.experimental.pallas import tpu as pltpu

BN_EPS = 1e-5
FEAT_DIM = 2048       # r3m feature width
PROP_DIM = 7
HIDDEN = 256
ACT_DIM = 7
PROP_PAD = 128        # lane-dense padding of the proprio axis
ACT_PAD = 128         # lane-dense padding of the action (output) axis


def _round_up(n, m):
    return ((n + m - 1) // m) * m


def _pad_to(a, axis, target):
    pad = target - a.shape[axis]
    if pad == 0:
        return a
    widths = [(0, 0)] * a.ndim
    widths[axis] = (0, pad)
    return jnp.pad(a, widths)


def _bc_kernel(x_ref, prop_ref, wr_ref, w1v_ref, w1p_ref, b1_ref, w2_ref, b2_ref,
               out_ref, acc_ref):
    """One (batch-tile, K-tile) grid step.

    Grid = (B_tiles, K_tiles).  K is the flattened-image reduction axis of the
    frozen r3m-stand-in projection ("arbitrary"); batch tiles are "parallel".
    """
    k = pl.program_id(1)

    @pl.when(k == 0)
    def _init():
        acc_ref[...] = jnp.zeros_like(acc_ref)

    # Frozen "r3m" stand-in projection: bf16 tiles, f32 accumulation on MXU.
    acc_ref[...] += jnp.dot(x_ref[...], wr_ref[...],
                            preferred_element_type=jnp.float32)

    @pl.when(k == pl.num_programs(1) - 1)
    def _finalize():
        feats = jnp.maximum(acc_ref[...], 0.0)                  # [TB, 2048]
        # BatchNorm1d(2055) (eval mode) has been folded into w1/b1 in
        # prepare_params, so the head is Linear -> ReLU -> Linear -> Tanh.
        h = (jnp.dot(feats.astype(jnp.bfloat16), w1v_ref[...],
                     preferred_element_type=jnp.float32)
             + jnp.dot(prop_ref[...], w1p_ref[...],
                       preferred_element_type=jnp.float32)
             + b1_ref[...])
        h = jnp.maximum(h, 0.0)                                 # ReLU  [TB, 256]
        y = jnp.dot(h.astype(jnp.bfloat16), w2_ref[...],
                    preferred_element_type=jnp.float32) + b2_ref[...]
        out_ref[...] = jnp.tanh(y)                              # Tanh  [TB, 128]


def prepare_params(params, in_dim):
    """One-time (per model) weight preprocessing.

    Folds eval-mode BatchNorm1d(2055) into Linear(2055,256), casts the
    streamed weights to bf16, and K-pads w_r3m once.  Hoisted out of the
    forward: at realistic in_dim the per-call f32->bf16 cast of w_r3m would
    cost ~2x the kernel's own HBM weight stream.
    """
    scale = params["bn_gamma"] * jax.lax.rsqrt(params["bn_var"] + BN_EPS)
    shift = params["bn_beta"] - params["bn_mean"] * scale
    w1 = params["w1"]                               # [2055, 256], stored [in, out]
    b1_fold = params["b1"] + shift @ w1             # [256]
    w1_fold = w1 * scale[:, None]

    # Large K tile to amortize grid-step overhead on the HBM-bound stream.
    TK = min(_round_up(in_dim, 128), 2048)
    Kp = _round_up(in_dim, TK)

    return dict(
        in_dim=in_dim, TK=TK, Kp=Kp,
        wr=_pad_to(params["w_r3m"], 0, Kp).astype(jnp.bfloat16),        # [Kp, 2048]
        w1_vis=w1_fold[:FEAT_DIM].astype(jnp.bfloat16),                 # [2048, 256]
        w1_prop=_pad_to(w1_fold[FEAT_DIM:], 0, PROP_PAD).astype(jnp.bfloat16),
        b1=b1_fold.reshape(1, HIDDEN).astype(jnp.float32),
        w2=_pad_to(params["w2"], 1, ACT_PAD).astype(jnp.bfloat16),      # [256, 128]
        b2=_pad_to(params["b2"].reshape(1, ACT_DIM), 1, ACT_PAD).astype(jnp.float32),
    )


def behavior_cloning_forward(x_nchw, proprio, prep):
    """x_nchw: [B, C, H, W] float32; proprio: [B, 7] float32 -> [B, 7] float32."""
    B = x_nchw.shape[0]
    x_flat = x_nchw.reshape(B, -1)                  # row-major NCHW flatten
    in_dim = x_flat.shape[1]
    assert in_dim == prep["in_dim"], "prepare_params was built for a different input size"
    TK, Kp = prep["TK"], prep["Kp"]

    # ---- batch tiling: fill the 256-wide MXU and cut weight re-streams ----
    if B >= 256:
        TB = 256
    elif B >= 128:
        TB = 128
    else:
        TB = _round_up(B, 16)                       # bf16 sublane tile is 16
    Bp = _round_up(B, TB)
    grid = (Bp // TB, Kp // TK)

    # ---- per-call activation prep only (weights are already bf16/padded) ----
    x_p = _pad_to(_pad_to(x_flat, 1, Kp), 0, Bp).astype(jnp.bfloat16)
    prop_p = _pad_to(_pad_to(proprio, 1, PROP_PAD), 0, Bp).astype(jnp.bfloat16)

    cost = pl.CostEstimate(
        flops=int(2 * Bp * (Kp * FEAT_DIM + FEAT_DIM * HIDDEN + HIDDEN * ACT_PAD)),
        transcendentals=int(Bp * ACT_PAD),
        bytes_accessed=int(
            (Bp // TB) * Kp * FEAT_DIM * 2          # w_r3m re-streamed per batch tile
            + Bp * Kp * 2 + Bp * PROP_PAD * 2 + Bp * ACT_PAD * 4
            + FEAT_DIM * HIDDEN * 2 + HIDDEN * ACT_PAD * 2),
    )

    out = pl.pallas_call(
        _bc_kernel,
        out_shape=jax.ShapeDtypeStruct((Bp, ACT_PAD), jnp.float32),
        grid_spec=pltpu.PrefetchScalarGridSpec(
            num_scalar_prefetch=0,
            grid=grid,
            in_specs=[
                pl.BlockSpec((TB, TK), lambda i, k: (i, k)),            # x
                pl.BlockSpec((TB, PROP_PAD), lambda i, k: (i, 0)),      # proprio
                pl.BlockSpec((TK, FEAT_DIM), lambda i, k: (k, 0)),      # w_r3m
                pl.BlockSpec((FEAT_DIM, HIDDEN), lambda i, k: (0, 0)),  # w1 (visual)
                pl.BlockSpec((PROP_PAD, HIDDEN), lambda i, k: (0, 0)),  # w1 (proprio)
                pl.BlockSpec((1, HIDDEN), lambda i, k: (0, 0)),         # b1
                pl.BlockSpec((HIDDEN, ACT_PAD), lambda i, k: (0, 0)),   # w2
                pl.BlockSpec((1, ACT_PAD), lambda i, k: (0, 0)),        # b2
            ],
            out_specs=pl.BlockSpec((TB, ACT_PAD), lambda i, k: (i, 0)),
            scratch_shapes=[pltpu.VMEM((TB, FEAT_DIM), jnp.float32)],
        ),
        compiler_params=pltpu.CompilerParams(
            dimension_semantics=("parallel", "arbitrary"),
            # TK=2048/TB=256 plan peaks ~25-30 MiB with double-buffered weight
            # tiles; 48 MiB leaves headroom yet stays inside v7x's 64 MiB VMEM.
            vmem_limit_bytes=48 * 1024 * 1024,
        ),
        cost_estimate=cost,
    )(x_p, prop_p, prep["wr"], prep["w1_vis"], prep["w1_prop"],
      prep["b1"], prep["w2"], prep["b2"])

    return out[:B, :ACT_DIM]


def make_params(key, in_dim):
    """Master f32 params matching the PyTorch module structure."""
    ks = jax.random.split(key, 9)
    total = FEAT_DIM + PROP_DIM
    # Frozen r3m stand-in projection.
    w_r3m = jax.random.normal(ks[0], (in_dim, FEAT_DIM), jnp.float32) / jnp.sqrt(in_dim)
    # BatchNorm1d(2055) running stats / affine (randomized so folding is tested).
    bn_gamma = 1.0 + 0.1 * jax.random.normal(ks[1], (total,), jnp.float32)
    bn_beta = 0.1 * jax.random.normal(ks[2], (total,), jnp.float32)
    bn_mean = 0.1 * jax.random.normal(ks[3], (total,), jnp.float32)
    bn_var = jax.random.uniform(ks[4], (total,), jnp.float32, minval=0.5, maxval=1.5)
    # Linear(2055, 256) stored as [in, out]; Linear(256, 7) as [in, out].
    w1 = jax.random.normal(ks[5], (total, HIDDEN), jnp.float32) / jnp.sqrt(total)
    b1 = 0.01 * jax.random.normal(ks[6], (HIDDEN,), jnp.float32)
    w2 = jax.random.normal(ks[7], (HIDDEN, ACT_DIM), jnp.float32) / jnp.sqrt(HIDDEN)
    b2 = 0.01 * jax.random.normal(ks[8], (ACT_DIM,), jnp.float32)
    return dict(w_r3m=w_r3m, bn_gamma=bn_gamma, bn_beta=bn_beta, bn_mean=bn_mean,
                bn_var=bn_var, w1=w1, b1=b1, w2=w2, b2=b2)


def reference_forward(x_nchw, proprio, params):
    """Pure-JAX f32 reference with the module-faithful (un-folded) math."""
    B = x_nchw.shape[0]
    feats = jnp.maximum(x_nchw.reshape(B, -1) @ params["w_r3m"], 0.0)
    comb = jnp.concatenate([feats, proprio], axis=1)
    nb = ((comb - params["bn_mean"]) * jax.lax.rsqrt(params["bn_var"] + BN_EPS)
          * params["bn_gamma"] + params["bn_beta"])
    h = jnp.maximum(nb @ params["w1"] + params["b1"], 0.0)
    return jnp.tanh(h @ params["w2"] + params["b2"])


if __name__ == "__main__":
    B, C, H, W = 2, 4, 16, 16
    key = jax.random.PRNGKey(0)
    kx, kp, kw = jax.random.split(key, 3)

    x = jax.random.normal(kx, (B, C, H, W), jnp.float32)          # NCHW image batch
    proprio = jax.random.normal(kp, (B, PROP_DIM), jnp.float32)   # proprioceptive data
    params = make_params(kw, C * H * W)

    # One-time weight preparation (BN fold + bf16 cast + K-pad), then forward.
    prep = prepare_params(params, C * H * W)
    out = jax.block_until_ready(behavior_cloning_forward(x, proprio, prep))
    ref = reference_forward(x, proprio, params)

    assert out.shape == (B, ACT_DIM)
    # bf16 weights/activations vs the f32 reference -> loosened tolerance.
    assert jnp.allclose(out, ref, atol=2e-2, rtol=2e-2), "mismatch vs pure-JAX reference"
    print("KERNEL_OK")
</pallas_src>

<mosaic_0001>
module attributes {stable_mosaic.version = 11 : i64} {
  func.func @_bc_kernel(%arg0: i32, %arg1: i32, %arg2: memref<16x1024xbf16, #tpu.memory_space<vmem>>, %arg3: memref<16x128xbf16, #tpu.memory_space<vmem>>, %arg4: memref<1024x2048xbf16, #tpu.memory_space<vmem>>, %arg5: memref<2048x256xbf16, #tpu.memory_space<vmem>>, %arg6: memref<128x256xbf16, #tpu.memory_space<vmem>>, %arg7: memref<1x256xf32, #tpu.memory_space<vmem>>, %arg8: memref<256x128xbf16, #tpu.memory_space<vmem>>, %arg9: memref<1x128xf32, #tpu.memory_space<vmem>>, %arg10: memref<16x128xf32, #tpu.memory_space<vmem>>, %arg11: memref<16x2048xf32, #tpu.memory_space<vmem>>) attributes {dimension_semantics = [#tpu.dimension_semantics<parallel>, #tpu.dimension_semantics<arbitrary>], iteration_bounds = array<i64: 1, 1>, scalar_prefetch = 0 : i64, scratch_operands = 1 : i64, tpu.core_type = #tpu.core_type<tc>, window_params = [{transform_indices = @transform_0, window_bounds = array<i64: 16, 1024>}, {transform_indices = @transform_1, window_bounds = array<i64: 16, 128>}, {transform_indices = @transform_2, window_bounds = array<i64: 1024, 2048>}, {pipeline_mode = #tpu.pipeline_mode<synchronous>, transform_indices = @transform_3, window_bounds = array<i64: 2048, 256>}, {pipeline_mode = #tpu.pipeline_mode<synchronous>, transform_indices = @transform_4, window_bounds = array<i64: 128, 256>}, {pipeline_mode = #tpu.pipeline_mode<synchronous>, transform_indices = @transform_5, window_bounds = array<i64: 1, 256>}, {pipeline_mode = #tpu.pipeline_mode<synchronous>, transform_indices = @transform_6, window_bounds = array<i64: 256, 128>}, {pipeline_mode = #tpu.pipeline_mode<synchronous>, transform_indices = @transform_7, window_bounds = array<i64: 1, 128>}, {transform_indices = @transform_8, window_bounds = array<i64: 16, 128>}]} {
    %c0_i32 = arith.constant 0 : i32
    %0 = arith.cmpi eq, %arg1, %c0_i32 : i32
    %1 = arith.extui %0 : i1 to i32
    %c0_i32_0 = arith.constant 0 : i32
    %2 = arith.cmpi ne, %1, %c0_i32_0 : i32
    scf.if %2 {
      %cst_10 = arith.constant 0.000000e+00 : f32
      %12 = vector.broadcast %cst_10 : f32 to vector<16x2048xf32>
      %c0_11 = arith.constant 0 : index
      %c0_12 = arith.constant 0 : index
      %13 = vector.load %arg11[%c0_11, %c0_12] : memref<16x2048xf32, #tpu.memory_space<vmem>>, vector<16x2048xf32>
      tpu.vector_store %arg11[%c0_11, %c0_12], %12 {strides = array<i32>} : memref<16x2048xf32, #tpu.memory_space<vmem>>, vector<16x2048xf32>,
    } else {
    }
    %c0 = arith.constant 0 : index
    %c0_1 = arith.constant 0 : index
    %3 = vector.load %arg11[%c0, %c0_1] : memref<16x2048xf32, #tpu.memory_space<vmem>>, vector<16x2048xf32>
    %c0_2 = arith.constant 0 : index
    %c0_3 = arith.constant 0 : index
    %4 = vector.load %arg2[%c0_2, %c0_3] : memref<16x1024xbf16, #tpu.memory_space<vmem>>, vector<16x1024xbf16>
    %c0_4 = arith.constant 0 : index
    %c0_5 = arith.constant 0 : index
    %5 = vector.load %arg4[%c0_4, %c0_5] : memref<1024x2048xbf16, #tpu.memory_space<vmem>>, vector<1024x2048xbf16>
    %cst = arith.constant dense<0.000000e+00> : vector<16x2048xf32>
    %6 = tpu.matmul %4, %5, %cst {dimension_numbers = #tpu.dot_dimension_numbers<[1], [0], [0], [1], [0, 0, 1, 1], [], []>} : vector<16x1024xbf16>, vector<1024x2048xbf16>, vector<16x2048xf32> -> vector<16x2048xf32>
    %7 = arith.addf %3, %6 : vector<16x2048xf32>
    %c0_6 = arith.constant 0 : index
    %c0_7 = arith.constant 0 : index
    %8 = vector.load %arg11[%c0_6, %c0_7] : memref<16x2048xf32, #tpu.memory_space<vmem>>, vector<16x2048xf32>
    tpu.vector_store %arg11[%c0_6, %c0_7], %7 {strides = array<i32>} : memref<16x2048xf32, #tpu.memory_space<vmem>>, vector<16x2048xf32>,
    %c0_i32_8 = arith.constant 0 : i32
    %9 = arith.cmpi eq, %arg1, %c0_i32_8 : i32
    %10 = arith.extui %9 : i1 to i32
    %c0_i32_9 = arith.constant 0 : i32
    %11 = arith.cmpi ne, %10, %c0_i32_9 : i32
    scf.if %11 {
      %c0_10 = arith.constant 0 : index
      %c0_11 = arith.constant 0 : index
      %12 = vector.load %arg11[%c0_10, %c0_11] : memref<16x2048xf32, #tpu.memory_space<vmem>>, vector<16x2048xf32>
      %cst_12 = arith.constant 0.000000e+00 : f32
      %13 = vector.broadcast %cst_12 : f32 to vector<16x2048xf32>
      %14 = arith.maximumf %12, %13 : vector<16x2048xf32>
      %15 = arith.truncf %14 : vector<16x2048xf32> to vector<16x2048xbf16>
      %c0_13 = arith.constant 0 : index
      %c0_14 = arith.constant 0 : index
      %16 = vector.load %arg5[%c0_13, %c0_14] : memref<2048x256xbf16, #tpu.memory_space<vmem>>, vector<2048x256xbf16>
      %cst_15 = arith.constant dense<0.000000e+00> : vector<16x256xf32>
      %17 = tpu.matmul %15, %16, %cst_15 {dimension_numbers = #tpu.dot_dimension_numbers<[1], [0], [0], [1], [0, 0, 1, 1], [], []>} : vector<16x2048xbf16>, vector<2048x256xbf16>, vector<16x256xf32> -> vector<16x256xf32>
      %c0_16 = arith.constant 0 : index
      %c0_17 = arith.constant 0 : index
      %18 = vector.load %arg3[%c0_16, %c0_17] : memref<16x128xbf16, #tpu.memory_space<vmem>>, vector<16x128xbf16>
      %c0_18 = arith.constant 0 : index
      %c0_19 = arith.constant 0 : index
      %19 = vector.load %arg6[%c0_18, %c0_19] : memref<128x256xbf16, #tpu.memory_space<vmem>>, vector<128x256xbf16>
      %cst_20 = arith.constant dense<0.000000e+00> : vector<16x256xf32>
      %20 = tpu.matmul %18, %19, %cst_20 {dimension_numbers = #tpu.dot_dimension_numbers<[1], [0], [0], [1], [0, 0, 1, 1], [], []>} : vector<16x128xbf16>, vector<128x256xbf16>, vector<16x256xf32> -> vector<16x256xf32>
      %21 = arith.addf %17, %20 : vector<16x256xf32>
      %c0_21 = arith.constant 0 : index
      %c0_22 = arith.constant 0 : index
      %22 = vector.load %arg7[%c0_21, %c0_22] : memref<1x256xf32, #tpu.memory_space<vmem>>, vector<1x256xf32>
      %23 = vector.broadcast %22 : vector<1x256xf32> to vector<16x256xf32>
      %24 = arith.addf %21, %23 : vector<16x256xf32>
      %cst_23 = arith.constant 0.000000e+00 : f32
      %25 = vector.broadcast %cst_23 : f32 to vector<16x256xf32>
      %26 = arith.maximumf %24, %25 : vector<16x256xf32>
      %27 = arith.truncf %26 : vector<16x256xf32> to vector<16x256xbf16>
      %c0_24 = arith.constant 0 : index
      %c0_25 = arith.constant 0 : index
      %28 = vector.load %arg8[%c0_24, %c0_25] : memref<256x128xbf16, #tpu.memory_space<vmem>>, vector<256x128xbf16>
      %cst_26 = arith.constant dense<0.000000e+00> : vector<16x128xf32>
      %29 = tpu.matmul %27, %28, %cst_26 {dimension_numbers = #tpu.dot_dimension_numbers<[1], [0], [0], [1], [0, 0, 1, 1], [], []>} : vector<16x256xbf16>, vector<256x128xbf16>, vector<16x128xf32> -> vector<16x128xf32>
      %c0_27 = arith.constant 0 : index
      %c0_28 = arith.constant 0 : index
      %30 = vector.load %arg9[%c0_27, %c0_28] : memref<1x128xf32, #tpu.memory_space<vmem>>, vector<1x128xf32>
      %31 = vector.broadcast %30 : vector<1x128xf32> to vector<16x128xf32>
      %32 = arith.addf %29, %31 : vector<16x128xf32>
      %33 = math.tanh %32 : vector<16x128xf32>
      %c0_29 = arith.constant 0 : index
      %c0_30 = arith.constant 0 : index
      %34 = vector.load %arg10[%c0_29, %c0_30] : memref<16x128xf32, #tpu.memory_space<vmem>>, vector<16x128xf32>
      tpu.vector_store %arg10[%c0_29, %c0_30], %33 {strides = array<i32>} : memref<16x128xf32, #tpu.memory_space<vmem>>, vector<16x128xf32>,
    } else {
    }
    return
  }
  func.func @transform_0(%arg0: i32, %arg1: i32) -> (i32, i32) {
    %c0_i32 = arith.constant 0 : i32
    return %arg0, %arg1 : i32, i32
  }
  func.func @transform_1(%arg0: i32, %arg1: i32) -> (i32, i32) {
    %c0_i32 = arith.constant 0 : i32
    %c0_i32_0 = arith.constant 0 : i32
    return %arg0, %c0_i32 : i32, i32
  }
  func.func @transform_2(%arg0: i32, %arg1: i32) -> (i32, i32) {
    %c0_i32 = arith.constant 0 : i32
    %c0_i32_0 = arith.constant 0 : i32
    return %arg1, %c0_i32 : i32, i32
  }
  func.func @transform_3(%arg0: i32, %arg1: i32) -> (i32, i32) {
    %c0_i32 = arith.constant 0 : i32
    %c0_i32_0 = arith.constant 0 : i32
    %c0_i32_1 = arith.constant 0 : i32
    return %c0_i32, %c0_i32_0 : i32, i32
  }
  func.func @transform_4(%arg0: i32, %arg1: i32) -> (i32, i32) {
    %c0_i32 = arith.constant 0 : i32
    %c0_i32_0 = arith.constant 0 : i32
    %c0_i32_1 = arith.constant 0 : i32
    return %c0_i32, %c0_i32_0 : i32, i32
  }
  func.func @transform_5(%arg0: i32, %arg1: i32) -> (i32, i32) {
    %c0_i32 = arith.constant 0 : i32
    %c0_i32_0 = arith.constant 0 : i32
    %c0_i32_1 = arith.constant 0 : i32
    return %c0_i32, %c0_i32_0 : i32, i32
  }
  func.func @transform_6(%arg0: i32, %arg1: i32) -> (i32, i32) {
    %c0_i32 = arith.constant 0 : i32
    %c0_i32_0 = arith.constant 0 : i32
    %c0_i32_1 = arith.constant 0 : i32
    return %c0_i32, %c0_i32_0 : i32, i32
  }
  func.func @transform_7(%arg0: i32, %arg1: i32) -> (i32, i32) {
    %c0_i32 = arith.constant 0 : i32
    %c0_i32_0 = arith.constant 0 : i32
    %c0_i32_1 = arith.constant 0 : i32
    return %c0_i32, %c0_i32_0 : i32, i32
  }
  func.func @transform_8(%arg0: i32, %arg1: i32) -> (i32, i32) {
    %c0_i32 = arith.constant 0 : i32
    %c0_i32_0 = arith.constant 0 : i32
    return %arg0, %c0_i32 : i32, i32
  }
}

</mosaic_0001>

<bundles_post_ra>
// kernel: tpu_custom_call.1
= control target key start
LH: loop header
LB: loop body
LE: loop exit
PB: predicated region body
PF: predicated region fallthrough
CT: control target
= control target key end

     0   :  { %13 = vsyncpa [#allocation4], 0  ;;  %s18407_s0 = inlined_call_operand.hbm [shape: bf16[16,1024], index: 0, kind: input, shape index: {}]   ;;  %s18408_s1 = inlined_call_operand.hbm [shape: bf16[16,128], index: 1, kind: input, shape index: {}]   ;;  %s18409_s2 = inlined_call_operand.hbm [shape: bf16[1024,2048], index: 2, kind: input, shape index: {}]   ;;  %s18410_s3 = inlined_call_operand.hbm [shape: bf16[2048,256], index: 3, kind: input, shape index: {}]   ;;  %s18411_s4 = inlined_call_operand.hbm [shape: bf16[128,256], index: 4, kind: input, shape index: {}]   ;;  %s18412_s5 = inlined_call_operand.hbm [shape: f32[1,256], index: 5, kind: input, shape index: {}]   ;;  %s18413_s6 = inlined_call_operand.hbm [shape: bf16[256,128], index: 6, kind: input, shape index: {}]   ;;  %s18414_s7 = inlined_call_operand.hbm [shape: f32[1,128], index: 7, kind: input, shape index: {}]   ;;  %s18415_s8 = inlined_call_operand.hbm [shape: f32[16,128], index: 8, kind: output, shape index: {}]  }
   0x1   :  { %14 = vsyncpa [#allocation7], 0 }
   0x2   :  { %15 = vsyncpa [#allocation10], 0 }
   0x3   :  { %16 = vsyncpa [#allocation13], 0 }
   0x4   :  { %17 = vsyncpa [#allocation16], 0  ;;  %s36_s29 = sshll.u32 %s18408_s1, 4  ;;  %s37_s29 = int_to_ptr.hbm [resolvable:$true] %s36_s29 }
   0x5   :  { %18 = vsyncpa [#allocation5], 0  ;;  %s17523_s30 = smov [#allocation6]   ;;  %s62_s12 = sshll.u32 %s18410_s3, 4  ;;  %s63_s12 = int_to_ptr.hbm [resolvable:$true] %s62_s12 }
   0x6   :  { %s38_s9 = sshll.u32 %s17523_s30, 4  ;;  %s17524_s13 = smov 64   ;;  %s39_s9 = int_to_ptr.vmem [resolvable:$true] %s38_s9 }
   0x7   :  { %s17525_s14 = smov 4   ;;  %s17526_s15 = smov [#allocation9]  }
   0x8   :  { %44 = dma.hbm_to_vmem [thread:$0]  %s37_s29, 128, %s39_s9, [#allocation7], %s17524_s13, %s17524_s13, %s17525_s14  }
   0x9   :  { %s64_s16 = sshll.u32 %s17526_s15, 4  ;;  %s17527_s1 = smov 128   ;;  %s65_s16 = int_to_ptr.vmem [resolvable:$true] %s64_s16 }
   0xa   :  { %s17528_s17 = smov 8   ;;  %s89_s3 = sshll.u32 %s18412_s5, 4  ;;  %s90_s3 = int_to_ptr.hbm [resolvable:$true] %s89_s3 }
   0xb   :  { %70 = dma.hbm_to_vmem [thread:$0]  %s63_s12, 32768, %s65_s16, [#allocation10], %s17527_s1, %s17527_s1, %s17528_s17  }
   0xc   :  { %s17529_s20 = smov [#allocation12]   ;;  %s23_s24 = sshll.u32 %s18407_s0, 4  ;;  %s24_s24 = int_to_ptr.hbm [resolvable:$true] %s23_s24 }
   0xd   :  { %s91_s21 = sshll.u32 %s17529_s20, 4  ;;  %s17530_s25 = smov [#allocation3]   ;;  %s92_s21 = int_to_ptr.vmem [resolvable:$true] %s91_s21 }
   0xe   :  { %94 = dma.hbm_to_vmem [thread:$0]  %s90_s3, 32, %s92_s21, [#allocation13]  }
   0xf   :  { %s25_s26 = sshll.u32 %s17530_s25, 4  ;;  %s17531_s27 = smov 512   ;;  %s26_s26 = int_to_ptr.vmem [resolvable:$true] %s25_s26 }
  0x10   :  { %s17532_s28 = smov 32   ;;  %s49_s5 = sshll.u32 %s18409_s2, 4  ;;  %s50_s5 = int_to_ptr.hbm [resolvable:$true] %s49_s5 }
  0x11   :  { %31 = dma.hbm_to_vmem [thread:$0]  %s24_s24, 1024, %s26_s26, [#allocation4], %s17531_s27, %s17531_s27, %s17532_s28  }
  0x12   :  { %s17533_s9 = smov [#allocation8]   ;;  %s17534_s11 = smov 1024  }
  0x13   :  { %s51_s10 = sshll.u32 %s17533_s9, 4  ;;  %s75_s15 = sshll.u32 %s18411_s4, 4  ;;  %s52_s10 = int_to_ptr.vmem [resolvable:$true] %s51_s10  ;;  %s76_s15 = int_to_ptr.hbm [resolvable:$true] %s75_s15 }
  0x14   :  { %57 = dma.hbm_to_vmem [thread:$0]  %s50_s5, 131072, %s52_s10, [#allocation7], %s17534_s11, %s17534_s11, %s17524_s13  }
  0x15   :  { %s17535_s16 = smov [#allocation11]   ;;  %s99_s20 = sshll.u32 %s18413_s6, 4  ;;  %s100_s20 = int_to_ptr.hbm [resolvable:$true] %s99_s20 }
  0x16   :  { %s77_s18 = sshll.u32 %s17535_s16, 4  ;;  %s17536_s2 = smov [#allocation14]   ;;  %s78_s18 = int_to_ptr.vmem [resolvable:$true] %s77_s18 }
  0x17   :  { %83 = dma.hbm_to_vmem [thread:$0]  %s76_s15, 2048, %s78_s18, [#allocation10], %s17527_s1, %s17527_s1, %s17528_s17  }
  0x18   :  { %s101_s21 = sshll.u32 %s17536_s2, 4  ;;  %s113_s24 = sshll.u32 %s18414_s7, 4  ;;  %s102_s21 = int_to_ptr.vmem [resolvable:$true] %s101_s21  ;;  %s114_s24 = int_to_ptr.hbm [resolvable:$true] %s113_s24 }
  0x19   :  { %107 = dma.hbm_to_vmem [thread:$0]  %s100_s20, 2048, %s102_s21, [#allocation13], %s17524_s13, %s17524_s13, %s17525_s14  }
  0x1a   :  { %s17537_s4 = smov [#allocation15]  }
  0x1b   :  { %s115_s25 = sshll.u32 %s17537_s4, 4  ;;  %s116_s25 = int_to_ptr.vmem [resolvable:$true] %s115_s25 }
  0x1c   :  { %118 = dma.hbm_to_vmem [thread:$0]  %s114_s24, 16, %s116_s25, [#allocation16]  }
  0x1d   :  { %17511 = dma.done.wait [#allocation4], 1024  }
  0x1e   :  { %17512 = vsyncadd [#allocation4], 4294966272 }
  0x1f   :  { %17513 = dma.done.wait [#allocation7], 131200  }
  0x20   :  { %17514 = vsyncadd [#allocation7], 4294836096 }
  0x21   :  { %17515 = dma.done.wait [#allocation10], 34816  }
  0x22   :  { %17516 = vsyncadd [#allocation10], 4294932480 }
  0x23   :  { %17517 = dma.done.wait [#allocation13], 2080  }
  0x24   :  { %17518 = vsyncadd [#allocation13], 4294965216 }
  0x25   :  { %17519 = dma.done.wait [#allocation16], 16  }
  0x26   :  { %17520 = vsyncadd [#allocation16], 4294967280  ;;  %v11151_v0 = vld [vmem:[#allocation8 + $0x380] sm:$0xf]  ;;  %s17538_s6 = smov [#allocation17]   ;;  %s10652_s26 = sshll.u32 %s18415_s8, 4  ;;  %s10653_s26 = int_to_ptr.hbm [resolvable:$true] %s10652_s26 }
  0x27   :  { %v16081_v1 = vld [vmem:[#allocation8 + $0x3bc] sm:$0xf0]  ;;  %s10650_s7 = sshll.u32 %s17538_s6, 4  ;;  %s10651_s7 = int_to_ptr.vmem [resolvable:$true] %s10650_s7 }
  0x28   :  { %v11663_v2 = vld [vmem:[#allocation8 + $0x780] sm:$0xf]  ;;  %v11152_v3 = vor.u32 %v16081_v1, %v11151_v0 }
  0x29   :  { %v16209_v4 = vld [vmem:[#allocation8 + $0x7bc] sm:$0xf0] }
  0x2a   :  { %v12175_v5 = vld [vmem:[#allocation8 + $0xb80] sm:$0xf]  ;;  %v11664_v7 = vor.u32 %v16209_v4, %v11663_v2  ;;  %6411 = vmatpush.bf16.msra.mxu0 %v11152_v3 }
  0x2b   :  { %v16337_v6 = vld [vmem:[#allocation8 + $0xbbc] sm:$0xf0] }
  0x2c   :  { %v12176_v8 = vor.u32 %v16337_v6, %v12175_v5  ;;  %v12687_v9 = vld [vmem:[#allocation8 + $0xf80] sm:$0xf]  ;;  %6425 = vmatpush.bf16.msra.mxu1 %v11664_v7 }
  0x2d   :  { %v16465_v10 = vld [vmem:[#allocation8 + $0xfbc] sm:$0xf0] }
  0x2e   :  { %v11087_v11 = vld [vmem:[#allocation8 + $0x300] sm:$0xf]  ;;  %v12688_v12 = vor.u32 %v16465_v10, %v12687_v9  ;;  %6439 = vmatpush.bf16.msra.mxu2 %v12176_v8 }
  0x2f   :  { %v16065_v13 = vld [vmem:[#allocation8 + $0x33c] sm:$0xf0] }
  0x30   :  { %v11599_v14 = vld [vmem:[#allocation8 + $0x700] sm:$0xf]  ;;  %v11088_v16 = vor.u32 %v16065_v13, %v11087_v11  ;;  %6453 = vmatpush.bf16.msra.mxu3 %v12688_v12 }
  0x31   :  { %v16193_v15 = vld [vmem:[#allocation8 + $0x73c] sm:$0xf0] }
  0x32   :  { %v11600_v17 = vor.u32 %v16193_v15, %v11599_v14  ;;  %v12111_v18 = vld [vmem:[#allocation8 + $0xb00] sm:$0xf]  ;;  %6412 = vmatpush.bf16.msra.mxu0 %v11088_v16 }
  0x33   :  { %v16321_v19 = vld [vmem:[#allocation8 + $0xb3c] sm:$0xf0] }
  0x34   :  { %v12623_v20 = vld [vmem:[#allocation8 + $0xf00] sm:$0xf]  ;;  %v12112_v21 = vor.u32 %v16321_v19, %v12111_v18  ;;  %6426 = vmatpush.bf16.msra.mxu1 %v11600_v17 }
  0x35   :  { %v16449_v22 = vld [vmem:[#allocation8 + $0xf3c] sm:$0xf0] }
  0x36   :  { %v11023_v23 = vld [vmem:[#allocation8 + $0x280] sm:$0xf]  ;;  %v12624_v25 = vor.u32 %v16449_v22, %v12623_v20  ;;  %6440 = vmatpush.bf16.msra.mxu2 %v12112_v21 }
  0x37   :  { %v16049_v24 = vld [vmem:[#allocation8 + $0x2bc] sm:$0xf0] }
  0x38   :  { %v11535_v26 = vld [vmem:[#allocation8 + $0x680] sm:$0xf]  ;;  %v11024_v29 = vor.u32 %v16049_v24, %v11023_v23  ;;  %6454 = vmatpush.bf16.msra.mxu3 %v12624_v25 }
  0x39   :  { %v16177_v27 = vld [vmem:[#allocation8 + $0x6bc] sm:$0xf0] }
  0x3a   :  { %v12047_v28 = vld [vmem:[#allocation8 + $0xa80] sm:$0xf]  ;;  %v11536_v33 = vor.u32 %v16177_v27, %v11535_v26  ;;  %6413 = vmatpush.bf16.msra.mxu0 %v11024_v29 }
  0x3b   :  { %v16305_v30 = vld [vmem:[#allocation8 + $0xabc] sm:$0xf0] }
  0x3c   :  { %v12559_v31 = vld [vmem:[#allocation8 + $0xe80] sm:$0xf]  ;;  %v12048_v34 = vor.u32 %v16305_v30, %v12047_v28  ;;  %6427 = vmatpush.bf16.msra.mxu1 %v11536_v33 }
  0x3d   :  { %v16433_v32 = vld [vmem:[#allocation8 + $0xebc] sm:$0xf0] }
  0x3e   :  { %v10959_v35 = vld [vmem:[#allocation8 + $0x200] sm:$0xf]  ;;  %v12560_v38 = vor.u32 %v16433_v32, %v12559_v31  ;;  %6441 = vmatpush.bf16.msra.mxu2 %v12048_v34 }
  0x3f   :  { %v16033_v36 = vld [vmem:[#allocation8 + $0x23c] sm:$0xf0] }
  0x40   :  { %v11471_v37 = vld [vmem:[#allocation8 + $0x600] sm:$0xf]  ;;  %v10960_v44 = vor.u32 %v16033_v36, %v10959_v35  ;;  %6455 = vmatpush.bf16.msra.mxu3 %v12560_v38 }
  0x41   :  { %v16161_v39 = vld [vmem:[#allocation8 + $0x63c] sm:$0xf0] }
  0x42   :  { %v11983_v40 = vld [vmem:[#allocation8 + $0xa00] sm:$0xf]  ;;  %v11472_v45 = vor.u32 %v16161_v39, %v11471_v37  ;;  %6414 = vmatpush.bf16.msra.mxu0 %v10960_v44 }
  0x43   :  { %v16289_v41 = vld [vmem:[#allocation8 + $0xa3c] sm:$0xf0] }
  0x44   :  { %v12495_v42 = vld [vmem:[#allocation8 + $0xe00] sm:$0xf]  ;;  %v11984_v46 = vor.u32 %v16289_v41, %v11983_v40  ;;  %6428 = vmatpush.bf16.msra.mxu1 %v11472_v45 }
  0x45   :  { %v16417_v43 = vld [vmem:[#allocation8 + $0xe3c] sm:$0xf0] }
  0x46   :  { %v10895_v47 = vld [vmem:[#allocation8 + $0x180] sm:$0xf]  ;;  %v12496_v50 = vor.u32 %v16417_v43, %v12495_v42  ;;  %6442 = vmatpush.bf16.msra.mxu2 %v11984_v46 }
  0x47   :  { %v16017_v48 = vld [vmem:[#allocation8 + $0x1bc] sm:$0xf0] }
  0x48   :  { %v11407_v49 = vld [vmem:[#allocation8 + $0x580] sm:$0xf]  ;;  %v10896_v56 = vor.u32 %v16017_v48, %v10895_v47  ;;  %6456 = vmatpush.bf16.msra.mxu3 %v12496_v50 }
  0x49   :  { %v16145_v51 = vld [vmem:[#allocation8 + $0x5bc] sm:$0xf0] }
  0x4a   :  { %v11919_v52 = vld [vmem:[#allocation8 + $0x980] sm:$0xf]  ;;  %v11408_v57 = vor.u32 %v16145_v51, %v11407_v49  ;;  %6415 = vmatpush.bf16.msra.mxu0 %v10896_v56 }
  0x4b   :  { %v16273_v53 = vld [vmem:[#allocation8 + $0x9bc] sm:$0xf0] }
  0x4c   :  { %v12431_v54 = vld [vmem:[#allocation8 + $0xd80] sm:$0xf]  ;;  %v11920_v58 = vor.u32 %v16273_v53, %v11919_v52  ;;  %6429 = vmatpush.bf16.msra.mxu1 %v11408_v57  ;;  %v10671_v52 = vld [vmem:[#allocation3] sm:$0xf] }
  0x4d   :  { %v16401_v55 = vld [vmem:[#allocation8 + $0xdbc] sm:$0xf0]  ;;  %v15957_v53 = vld [vmem:[#allocation3 + $0x1c] sm:$0xf0] }
  0x4e   :  { %v10831_v59 = vld [vmem:[#allocation8 + $0x100] sm:$0xf]  ;;  %v12432_v62 = vor.u32 %v16401_v55, %v12431_v54  ;;  %6443 = vmatpush.bf16.msra.mxu2 %v11920_v58  ;;  %v17621_v58 = vor.u32 %v15957_v53, %v10671_v52 }
  0x4f   :  { %v16001_v60 = vld [vmem:[#allocation8 + $0x13c] sm:$0xf0] }
  0x50   :  { %v11343_v61 = vld [vmem:[#allocation8 + $0x500] sm:$0xf]  ;;  %v10832_v4 = vor.u32 %v16001_v60, %v10831_v59  ;;  %6457 = vmatpush.bf16.msra.mxu3 %v12432_v62 }
  0x51   :  { %v16129_v63 = vld [vmem:[#allocation8 + $0x53c] sm:$0xf0] }
  0x52   :  { %v11855_v0 = vld [vmem:[#allocation8 + $0x900] sm:$0xf]  ;;  %v11344_v5 = vor.u32 %v16129_v63, %v11343_v61  ;;  %6416 = vmatpush.bf16.msra.mxu0 %v10832_v4 }
  0x53   :  { %v16257_v1 = vld [vmem:[#allocation8 + $0x93c] sm:$0xf0] }
  0x54   :  { %v12367_v2 = vld [vmem:[#allocation8 + $0xd00] sm:$0xf]  ;;  %v11856_v6 = vor.u32 %v16257_v1, %v11855_v0  ;;  %6430 = vmatpush.bf16.msra.mxu1 %v11344_v5 }
  0x55   :  { %v16385_v3 = vld [vmem:[#allocation8 + $0xd3c] sm:$0xf0] }
  0x56   :  { %v10767_v7 = vld [vmem:[#allocation8 + $0x80] sm:$0xf]  ;;  %v12368_v10 = vor.u32 %v16385_v3, %v12367_v2  ;;  %6444 = vmatpush.bf16.msra.mxu2 %v11856_v6  ;;  %v15953_v6 = vld [vmem:[#allocation3 + $0x4] sm:$0xf] }
  0x57   :  { %v15985_v8 = vld [vmem:[#allocation8 + $0xbc] sm:$0xf0] }
  0x58   :  { %v11279_v9 = vld [vmem:[#allocation8 + $0x480] sm:$0xf]  ;;  %v10768_v16 = vor.u32 %v15985_v8, %v10767_v7  ;;  %6458 = vmatpush.bf16.msra.mxu3 %v12368_v10  ;;  %v10673_v7 = vld [vmem:[#allocation3 + $0x20] sm:$0xf0]  ;;  %v15954_v8 = vld [vmem:[#allocation3 + $0xc] sm:$0xf] }
  0x59   :  { %v16113_v11 = vld [vmem:[#allocation8 + $0x4bc] sm:$0xf0]  ;;  %v17627_v10 = vor.u32 %v15953_v6, %v10673_v7 }
  0x5a   :  { %v11791_v12 = vld [vmem:[#allocation8 + $0x880] sm:$0xf]  ;;  %v11280_v19 = vor.u32 %v16113_v11, %v11279_v9  ;;  %6417 = vmatpush.bf16.msra.mxu0 %v10768_v16  ;;  %v10681_v11 = vld [vmem:[#allocation3 + $0x28] sm:$0xf0] }
  0x5b   :  { %v16241_v13 = vld [vmem:[#allocation8 + $0x8bc] sm:$0xf0] }
  0x5c   :  { %v12303_v14 = vld [vmem:[#allocation8 + $0xc80] sm:$0xf]  ;;  %v11792_v20 = vor.u32 %v16241_v13, %v11791_v12  ;;  %6431 = vmatpush.bf16.msra.mxu1 %v11280_v19 }
  0x5d   :  { %v16369_v15 = vld [vmem:[#allocation8 + $0xcbc] sm:$0xf0] }
  0x5e   :  { %v10703_v17 = vld [vmem:[#allocation8] sm:$0xf]  ;;  %v12304_v24 = vor.u32 %v16369_v15, %v12303_v14  ;;  %6445 = vmatpush.bf16.msra.mxu2 %v11792_v20 }
  0x5f   :  { %v15969_v18 = vld [vmem:[#allocation8 + $0x3c] sm:$0xf0] }
  0x60   :  { %v11215_v21 = vld [vmem:[#allocation8 + $0x400] sm:$0xf]  ;;  %v10704_v31 = vor.u32 %v15969_v18, %v10703_v17  ;;  %6459 = vmatpush.bf16.msra.mxu3 %v12304_v24  ;;  %v17629_v17 = vor.u32 %v15954_v8, %v10681_v11 }
  0x61   :  { %v16097_v22 = vld [vmem:[#allocation8 + $0x43c] sm:$0xf0] }
  0x62   :  { %v11727_v23 = vld [vmem:[#allocation8 + $0x800] sm:$0xf]  ;;  %v11216_v35 = vor.u32 %v16097_v22, %v11215_v21  ;;  %6418 = vmatpush.bf16.msra.mxu0 %v10704_v31 }
  0x63   :  { %v16225_v25 = vld [vmem:[#allocation8 + $0x83c] sm:$0xf0] }
  0x64   :  { %v12239_v26 = vld [vmem:[#allocation8 + $0xc00] sm:$0xf]  ;;  %v11728_v36 = vor.u32 %v16225_v25, %v11727_v23  ;;  %6432 = vmatpush.bf16.msra.mxu1 %v11216_v35 }
  0x65   :  { %v16353_v27 = vld [vmem:[#allocation8 + $0xc3c] sm:$0xf0]  ;;  %6419 = vmatmul.bf16.vlgmr.msra.gmra.mxu0 %v17621_v58 }
  0x66   :  { %v13199_v28 = vld [vmem:[#allocation8 + $0x1380] sm:$0xf]  ;;  %v12240_v39 = vor.u32 %v16353_v27, %v12239_v26  ;;  %6446 = vmatpush.bf16.msra.mxu2 %v11728_v36 }
  0x67   :  { %v16593_v29 = vld [vmem:[#allocation8 + $0x13bc] sm:$0xf0]  ;;  %6433 = vmatmul.bf16.vlgmr.msra.gmra.mxu1 %v17627_v10 }
  0x68   :  { %v13711_v30 = vld [vmem:[#allocation8 + $0x1780] sm:$0xf]  ;;  %v13200_v40 = vor.u32 %v16593_v29, %v13199_v28  ;;  %6460 = vmatpush.bf16.msra.mxu3 %v12240_v39 }
  0x69   :  { %v16721_v32 = vld [vmem:[#allocation8 + $0x17bc] sm:$0xf0] }
  0x6a   :  { %v14223_v33 = vld [vmem:[#allocation8 + $0x1b80] sm:$0xf]  ;;  %v13712_v43 = vor.u32 %v16721_v32, %v13711_v30  ;;  %6467 = vmatpush.bf16.msrb.mxu0 %v13200_v40 }
  0x6b   :  { %v16849_v34 = vld [vmem:[#allocation8 + $0x1bbc] sm:$0xf0]  ;;  %6461 = vmatmul.bf16.vlgmr.msra.gmra.mxu3 %v17629_v17 }
  0x6c   :  { %v14735_v37 = vld [vmem:[#allocation8 + $0x1f80] sm:$0xf]  ;;  %v14224_v44 = vor.u32 %v16849_v34, %v14223_v33  ;;  %6481 = vmatpush.bf16.msrb.mxu1 %v13712_v43 }
  0x6d   :  { %v16977_v38 = vld [vmem:[#allocation8 + $0x1fbc] sm:$0xf0] }
  0x6e   :  { %v13135_v41 = vld [vmem:[#allocation8 + $0x1300] sm:$0xf]  ;;  %v14736_v48 = vor.u32 %v16977_v38, %v14735_v37  ;;  %6495 = vmatpush.bf16.msrb.mxu2 %v14224_v44 }
  0x6f   :  { %v16577_v42 = vld [vmem:[#allocation8 + $0x133c] sm:$0xf0] }
  0x70   :  { %v13647_v45 = vld [vmem:[#allocation8 + $0x1700] sm:$0xf]  ;;  %v13136_v55 = vor.u32 %v16577_v42, %v13135_v41  ;;  %6509 = vmatpush.bf16.msrb.mxu3 %v14736_v48 }
  0x71   :  { %v16705_v46 = vld [vmem:[#allocation8 + $0x173c] sm:$0xf0] }
  0x72   :  { %v14159_v47 = vld [vmem:[#allocation8 + $0x1b00] sm:$0xf]  ;;  %v13648_v60 = vor.u32 %v16705_v46, %v13647_v45  ;;  %6468 = vmatpush.bf16.msrb.mxu0 %v13136_v55 }
  0x73   :  { %v16833_v49 = vld [vmem:[#allocation8 + $0x1b3c] sm:$0xf0] }
  0x74   :  { %v14671_v50 = vld [vmem:[#allocation8 + $0x1f00] sm:$0xf]  ;;  %v14160_v61 = vor.u32 %v16833_v49, %v14159_v47  ;;  %6482 = vmatpush.bf16.msrb.mxu1 %v13648_v60 }
  0x75   :  { %v16961_v51 = vld [vmem:[#allocation8 + $0x1f3c] sm:$0xf0] }
  0x76   :  { %v10679_v54 = vld [vmem:[#allocation3 + $0x8] sm:$0xf]  ;;  %v14672_v2 = vor.u32 %v16961_v51, %v14671_v50  ;;  %6496 = vmatpush.bf16.msrb.mxu2 %v14160_v61 }
  0x77   :  { %v13071_v56 = vld [vmem:[#allocation8 + $0x1280] sm:$0xf] }
  0x78   :  { %v16561_v57 = vld [vmem:[#allocation8 + $0x12bc] sm:$0xf0]  ;;  %6510 = vmatpush.bf16.msrb.mxu3 %v14672_v2 }
  0x79   :  { %v15958_v59 = vld [vmem:[#allocation3 + $0x24] sm:$0xf0]  ;;  %v13072_v9 = vor.u32 %v16561_v57, %v13071_v56 }
  0x7a   :  { %v13583_v62 = vld [vmem:[#allocation8 + $0x1680] sm:$0xf]  ;;  %v17623_v1 = vor.u32 %v15958_v59, %v10679_v54 }
  0x7b   :  { %v16689_v63 = vld [vmem:[#allocation8 + $0x16bc] sm:$0xf0]  ;;  %6469 = vmatpush.bf16.msrb.mxu0 %v13072_v9  ;;  %v16073_v9 = vld [vmem:[#allocation8 + $0x384] sm:$0xf] }
  0x7c   :  { %v14095_v0 = vld [vmem:[#allocation8 + $0x1a80] sm:$0xf]  ;;  %6447 = vmatmul.bf16.vlgmr.msra.gmra.mxu2 %v17623_v1  ;;  %v13584_v12 = vor.u32 %v16689_v63, %v13583_v62 }
  0x7d   :  { %v16817_v3 = vld [vmem:[#allocation8 + $0x1abc] sm:$0xf0] }
  0x7e   :  { %v14607_v4 = vld [vmem:[#allocation8 + $0x1e80] sm:$0xf]  ;;  %v14096_v13 = vor.u32 %v16817_v3, %v14095_v0  ;;  %6483 = vmatpush.bf16.msrb.mxu1 %v13584_v12  ;;  %v11153_v12 = vld [vmem:[#allocation8 + $0x3c0] sm:$0xf0] }
  0x7f   :  { %v16945_v5 = vld [vmem:[#allocation8 + $0x1ebc] sm:$0xf0] }
  0x80   :  { %v13007_v14 = vld [vmem:[#allocation8 + $0x1200] sm:$0xf]  ;;  %v14608_v18 = vor.u32 %v16945_v5, %v14607_v4  ;;  %6497 = vmatpush.bf16.msrb.mxu2 %v14096_v13  ;;  %v16201_v13 = vld [vmem:[#allocation8 + $0x784] sm:$0xf] }
  0x81   :  { %v16545_v15 = vld [vmem:[#allocation8 + $0x123c] sm:$0xf0] }
  0x82   :  { %v13519_v16 = vld [vmem:[#allocation8 + $0x1600] sm:$0xf]  ;;  %v13008_v24 = vor.u32 %v16545_v15, %v13007_v14  ;;  %6511 = vmatpush.bf16.msrb.mxu3 %v14608_v18  ;;  %v11665_v14 = vld [vmem:[#allocation8 + $0x7c0] sm:$0xf0] }
  0x83   :  { %v16673_v19 = vld [vmem:[#allocation8 + $0x163c] sm:$0xf0]  ;;  %v16329_v15 = vld [vmem:[#allocation8 + $0xb84] sm:$0xf] }
  0x84   :  { %v14031_v20 = vld [vmem:[#allocation8 + $0x1a00] sm:$0xf]  ;;  %v13520_v25 = vor.u32 %v16673_v19, %v13519_v16  ;;  %6470 = vmatpush.bf16.msrb.mxu0 %v13008_v24  ;;  %v12177_v16 = vld [vmem:[#allocation8 + $0xbc0] sm:$0xf0] }
  0x85   :  { %v16801_v21 = vld [vmem:[#allocation8 + $0x1a3c] sm:$0xf0]  ;;  %v16457_v18 = vld [vmem:[#allocation8 + $0xf84] sm:$0xf] }
  0x86   :  { %v14543_v22 = vld [vmem:[#allocation8 + $0x1e00] sm:$0xf]  ;;  %v14032_v26 = vor.u32 %v16801_v21, %v14031_v20  ;;  %6484 = vmatpush.bf16.msrb.mxu1 %v13520_v25  ;;  %v12689_v20 = vld [vmem:[#allocation8 + $0xfc0] sm:$0xf0]  ;;  %v10687_v21 = vld [vmem:[#allocation3 + $0x10] sm:$0xf] }
  0x87   :  { %v16929_v23 = vld [vmem:[#allocation8 + $0x1e3c] sm:$0xf0]  ;;  %v10695_v25 = vld [vmem:[#allocation3 + $0x18] sm:$0xf] }
  0x88   :  { %v12943_v27 = vld [vmem:[#allocation8 + $0x1180] sm:$0xf]  ;;  %v14544_v30 = vor.u32 %v16929_v23, %v14543_v22  ;;  %6498 = vmatpush.bf16.msrb.mxu2 %v14032_v26  ;;  %v15959_v22 = vld [vmem:[#allocation3 + $0x2c] sm:$0xf0]  ;;  %v15960_v26 = vld [vmem:[#allocation3 + $0x34] sm:$0xf0] }
  0x89   :  { %v16529_v28 = vld [vmem:[#allocation8 + $0x11bc] sm:$0xf0] }
  0x8a   :  { %v13455_v29 = vld [vmem:[#allocation8 + $0x1580] sm:$0xf]  ;;  %v12944_v36 = vor.u32 %v16529_v28, %v12943_v27  ;;  %6512 = vmatpush.bf16.msrb.mxu3 %v14544_v30  ;;  %v15955_v27 = vld [vmem:[#allocation3 + $0x14] sm:$0xf] }
  0x8b   :  { %v16657_v31 = vld [vmem:[#allocation8 + $0x15bc] sm:$0xf0]  ;;  %v10689_v30 = vld [vmem:[#allocation3 + $0x30] sm:$0xf0] }
  0x8c   :  { %v13967_v32 = vld [vmem:[#allocation8 + $0x1980] sm:$0xf]  ;;  %v13456_v37 = vor.u32 %v16657_v31, %v13455_v29  ;;  %6471 = vmatpush.bf16.msrb.mxu0 %v12944_v36  ;;  %v11156_v29 = vor.u32 %v16073_v9, %v11153_v12  ;;  %v15956_v31 = vld [vmem:[#allocation3 + $0x1c] sm:$0xf]  ;;  %v11089_v36 = vld [vmem:[#allocation8 + $0x340] sm:$0xf0] }
  0x8d   :  { %v16785_v33 = vld [vmem:[#allocation8 + $0x19bc] sm:$0xf0]  ;;  %v12497_v9 = vld [vmem:[#allocation8 + $0xe40] sm:$0xf0] }
  0x8e   :  { %v14479_v34 = vld [vmem:[#allocation8 + $0x1d80] sm:$0xf]  ;;  %v13968_v38 = vor.u32 %v16785_v33, %v13967_v32  ;;  %6485 = vmatpush.bf16.msrb.mxu1 %v13456_v37  ;;  %v10697_v32 = vld [vmem:[#allocation3 + $0x38] sm:$0xf0]  ;;  %v11668_v33 = vor.u32 %v16201_v13, %v11665_v14  ;;  %v16185_v37 = vld [vmem:[#allocation8 + $0x704] sm:$0xf] }
  0x8f   :  { %v16913_v35 = vld [vmem:[#allocation8 + $0x1dbc] sm:$0xf0]  ;;  %v16009_v14 = vld [vmem:[#allocation8 + $0x184] sm:$0xf] }
  0x90   :  { %v12879_v39 = vld [vmem:[#allocation8 + $0x1100] sm:$0xf]  ;;  %v14480_v42 = vor.u32 %v16913_v35, %v14479_v34  ;;  %6499 = vmatpush.bf16.msrb.mxu2 %v13968_v38  ;;  %v12180_v34 = vor.u32 %v16329_v15, %v12177_v16  ;;  %v16057_v35 = vld [vmem:[#allocation8 + $0x304] sm:$0xf]  ;;  %v12692_v38 = vor.u32 %v16457_v18, %v12689_v20 }
  0x91   :  { %v16513_v40 = vld [vmem:[#allocation8 + $0x113c] sm:$0xf0]  ;;  %v10897_v15 = vld [vmem:[#allocation8 + $0x1c0] sm:$0xf0] }
  0x92   :  { %v13391_v41 = vld [vmem:[#allocation8 + $0x1500] sm:$0xf]  ;;  %v12880_v48 = vor.u32 %v16513_v40, %v12879_v39  ;;  %6513 = vmatpush.bf16.msrb.mxu3 %v14480_v42  ;;  %v17633_v39 = vor.u32 %v15959_v22, %v10687_v21  ;;  %v11601_v40 = vld [vmem:[#allocation8 + $0x740] sm:$0xf0] }
  0x93   :  { %v16641_v43 = vld [vmem:[#allocation8 + $0x153c] sm:$0xf0]  ;;  %v12113_v42 = vld [vmem:[#allocation8 + $0xb40] sm:$0xf0] }
  0x94   :  { %v13903_v44 = vld [vmem:[#allocation8 + $0x1900] sm:$0xf]  ;;  %v13392_v50 = vor.u32 %v16641_v43, %v13391_v41  ;;  %6472 = vmatpush.bf16.msrb.mxu0 %v12880_v48  ;;  %v16313_v41 = vld [vmem:[#allocation8 + $0xb04] sm:$0xf]  ;;  %v17635_v43 = vor.u32 %v15960_v26, %v10695_v25  ;;  %v11092_v48 = vor.u32 %v16057_v35, %v11089_v36 }
  0x95   :  { %v16769_v45 = vld [vmem:[#allocation8 + $0x193c] sm:$0xf0]  ;;  %v16137_v16 = vld [vmem:[#allocation8 + $0x584] sm:$0xf] }
  0x96   :  { %v14415_v46 = vld [vmem:[#allocation8 + $0x1d00] sm:$0xf]  ;;  %v13904_v51 = vor.u32 %v16769_v45, %v13903_v44  ;;  %6486 = vmatpush.bf16.msrb.mxu1 %v13392_v50  ;;  %v17637_v44 = vor.u32 %v15955_v27, %v10689_v30  ;;  %v16441_v45 = vld [vmem:[#allocation8 + $0xf04] sm:$0xf]  ;;  %v12116_v50 = vor.u32 %v16313_v41, %v12113_v42 }
  0x97   :  { %v16897_v47 = vld [vmem:[#allocation8 + $0x1d3c] sm:$0xf0]  ;;  %v16265_v20 = vld [vmem:[#allocation8 + $0x984] sm:$0xf] }
  0x98   :  { %v12815_v49 = vld [vmem:[#allocation8 + $0x1080] sm:$0xf]  ;;  %v14416_v55 = vor.u32 %v16897_v47, %v14415_v46  ;;  %6500 = vmatpush.bf16.msrb.mxu2 %v13904_v51  ;;  %v12625_v46 = vld [vmem:[#allocation8 + $0xf40] sm:$0xf0]  ;;  %v17639_v47 = vor.u32 %v15956_v31, %v10697_v32 }
  0x99   :  { %v16497_v52 = vld [vmem:[#allocation8 + $0x10bc] sm:$0xf0]  ;;  %v16041_v51 = vld [vmem:[#allocation8 + $0x284] sm:$0xf] }
  0x9a   :  { %v13327_v53 = vld [vmem:[#allocation8 + $0x1480] sm:$0xf]  ;;  %v12816_v63 = vor.u32 %v16497_v52, %v12815_v49  ;;  %6514 = vmatpush.bf16.msrb.mxu3 %v14416_v55  ;;  %v11604_v49 = vor.u32 %v16185_v37, %v11601_v40  ;;  %v11025_v52 = vld [vmem:[#allocation8 + $0x2c0] sm:$0xf0] }
  0x9b   :  { %v16625_v54 = vld [vmem:[#allocation8 + $0x14bc] sm:$0xf0]  ;;  %v11537_v55 = vld [vmem:[#allocation8 + $0x6c0] sm:$0xf0] }
  0x9c   :  { %v13839_v56 = vld [vmem:[#allocation8 + $0x1880] sm:$0xf]  ;;  %v13328_v5 = vor.u32 %v16625_v54, %v13327_v53  ;;  %6473 = vmatpush.bf16.msrb.mxu0 %v12816_v63  ;;  %v16169_v53 = vld [vmem:[#allocation8 + $0x684] sm:$0xf]  ;;  %v12628_v54 = vor.u32 %v16441_v45, %v12625_v46 }
  0x9d   :  { %v16753_v57 = vld [vmem:[#allocation8 + $0x18bc] sm:$0xf0]  ;;  %v11921_v21 = vld [vmem:[#allocation8 + $0x9c0] sm:$0xf0] }
  0x9e   :  { %v14351_v59 = vld [vmem:[#allocation8 + $0x1c80] sm:$0xf]  ;;  %v13840_v6 = vor.u32 %v16753_v57, %v13839_v56  ;;  %6487 = vmatpush.bf16.msrb.mxu1 %v13328_v5  ;;  %v16297_v56 = vld [vmem:[#allocation8 + $0xa84] sm:$0xf]  ;;  %v11924_v26 = vor.u32 %v16265_v20, %v11921_v21 }
  0x9f   :  { %v16881_v60 = vld [vmem:[#allocation8 + $0x1cbc] sm:$0xf0]  ;;  %v12049_v57 = vld [vmem:[#allocation8 + $0xac0] sm:$0xf0] }
  0xa0   :  { %v12751_v61 = vld [vmem:[#allocation8 + $0x1000] sm:$0xf]  ;;  %v14352_v11 = vor.u32 %v16881_v60, %v14351_v59  ;;  %6501 = vmatpush.bf16.msrb.mxu2 %v13840_v6  ;;  %v16425_v59 = vld [vmem:[#allocation8 + $0xe84] sm:$0xf]  ;;  %v12052_v63 = vor.u32 %v16297_v56, %v12049_v57 }
  0xa1   :  { %v16481_v62 = vld [vmem:[#allocation8 + $0x103c] sm:$0xf0]  ;;  %v12561_v60 = vld [vmem:[#allocation8 + $0xec0] sm:$0xf0] }
  0xa2   :  { %v13263_v0 = vld [vmem:[#allocation8 + $0x1400] sm:$0xf]  ;;  %v12752_v19 = vor.u32 %v16481_v62, %v12751_v61  ;;  %6515 = vmatpush.bf16.msrb.mxu3 %v14352_v11  ;;  %v11028_v61 = vor.u32 %v16041_v51, %v11025_v52  ;;  %v11540_v62 = vor.u32 %v16169_v53, %v11537_v55  ;;  %v11473_v5 = vld [vmem:[#allocation8 + $0x640] sm:$0xf0] }
  0xa3   :  { %v16609_v2 = vld [vmem:[#allocation8 + $0x143c] sm:$0xf0]  ;;  %v16281_v6 = vld [vmem:[#allocation8 + $0xa04] sm:$0xf] }
  0xa4   :  { %v13775_v3 = vld [vmem:[#allocation8 + $0x1800] sm:$0xf]  ;;  %v13264_v23 = vor.u32 %v16609_v2, %v13263_v0  ;;  %6474 = vmatpush.bf16.msrb.mxu0 %v12752_v19  ;;  %v16025_v0 = vld [vmem:[#allocation8 + $0x204] sm:$0xf] }
  0xa5   :  { %v16737_v4 = vld [vmem:[#allocation8 + $0x183c] sm:$0xf0]  ;;  %v10961_v2 = vld [vmem:[#allocation8 + $0x240] sm:$0xf0] }
  0xa6   :  { %v14287_v7 = vld [vmem:[#allocation8 + $0x1c00] sm:$0xf]  ;;  %v13776_v24 = vor.u32 %v16737_v4, %v13775_v3  ;;  %6488 = vmatpush.bf16.msrb.mxu1 %v13264_v23  ;;  %v16153_v3 = vld [vmem:[#allocation8 + $0x604] sm:$0xf]  ;;  %v12564_v4 = vor.u32 %v16425_v59, %v12561_v60  ;;  %v10964_v11 = vor.u32 %v16025_v0, %v10961_v2 }
  0xa7   :  { %v16865_v8 = vld [vmem:[#allocation8 + $0x1c3c] sm:$0xf0]  ;;  %6475 = vmatmul.bf16.vlgmr.msrb.gmra.mxu0 %v17633_v39  ;;  %v11476_v12 = vor.u32 %v16153_v3, %v11473_v5  ;;  %v11409_v19 = vld [vmem:[#allocation8 + $0x5c0] sm:$0xf0] }
  0xa8   :  { %v14288_v28 = vor.u32 %v16865_v8, %v14287_v7  ;;  %6502 = vmatpush.bf16.msrb.mxu2 %v13776_v24  ;;  %6523 = vmatpush.bf16.msra.mxu0 %v11156_v29  ;;  %v11985_v7 = vld [vmem:[#allocation8 + $0xa40] sm:$0xf0]  ;;  %v10900_v24 = vor.u32 %v16009_v14, %v10897_v15  ;;  %v11412_v25 = vor.u32 %v16137_v16, %v11409_v19 }
  0xa9   :  { %6489 = vmatmul.bf16.vlgmr.msrb.gmra.mxu1 %v17637_v44  ;;  %v16409_v8 = vld [vmem:[#allocation8 + $0xe04] sm:$0xf]  ;;  %v11988_v13 = vor.u32 %v16281_v6, %v11985_v7 }
  0xaa   :  { %6516 = vmatpush.bf16.msrb.mxu3 %v14288_v28  ;;  %6537 = vmatpush.bf16.msra.mxu1 %v11668_v33  ;;  %v12500_v18 = vor.u32 %v16409_v8, %v12497_v9  ;;  %v16393_v22 = vld [vmem:[#allocation8 + $0xd84] sm:$0xf] }
  0xab   :  { %6503 = vmatmul.bf16.vlgmr.msrb.gmra.mxu2 %v17635_v43  ;;  %v12433_v23 = vld [vmem:[#allocation8 + $0xdc0] sm:$0xf0] }
  0xac   :  { %6551 = vmatpush.bf16.msra.mxu2 %v12180_v34  ;;  %6524 = vmatpush.bf16.msra.mxu0 %v11092_v48  ;;  %v15993_v27 = vld [vmem:[#allocation8 + $0x104] sm:$0xf]  ;;  %v12436_v30 = vor.u32 %v16393_v22, %v12433_v23 }
  0xad   :  { %6517 = vmatmul.bf16.vlgmr.msrb.gmra.mxu3 %v17639_v47  ;;  %v10833_v28 = vld [vmem:[#allocation8 + $0x140] sm:$0xf0] }
  0xae   :  { %6565 = vmatpush.bf16.msra.mxu3 %v12692_v38  ;;  %6538 = vmatpush.bf16.msra.mxu1 %v11604_v49  ;;  %v16121_v29 = vld [vmem:[#allocation8 + $0x504] sm:$0xf]  ;;  %v10836_v36 = vor.u32 %v15993_v27, %v10833_v28 }
  0xaf   :  { %v11345_v31 = vld [vmem:[#allocation8 + $0x540] sm:$0xf0] }
  0xb0   :  { %6552 = vmatpush.bf16.msra.mxu2 %v12116_v50  ;;  %6525 = vmatpush.bf16.msra.mxu0 %v11028_v61  ;;  %v16249_v32 = vld [vmem:[#allocation8 + $0x904] sm:$0xf]  ;;  %v11348_v37 = vor.u32 %v16121_v29, %v11345_v31 }
  0xb1   :  { %v11857_v33 = vld [vmem:[#allocation8 + $0x940] sm:$0xf0] }
  0xb2   :  { %6566 = vmatpush.bf16.msra.mxu3 %v12628_v54  ;;  %6539 = vmatpush.bf16.msra.mxu1 %v11540_v62  ;;  %v16377_v34 = vld [vmem:[#allocation8 + $0xd04] sm:$0xf]  ;;  %v11860_v38 = vor.u32 %v16249_v32, %v11857_v33 }
  0xb3   :  { %v12369_v35 = vld [vmem:[#allocation8 + $0xd40] sm:$0xf0] }
  0xb4   :  { %6553 = vmatpush.bf16.msra.mxu2 %v12052_v63  ;;  %6526 = vmatpush.bf16.msra.mxu0 %v10964_v11  ;;  %v15977_v40 = vld [vmem:[#allocation8 + $0x84] sm:$0xf]  ;;  %v12372_v45 = vor.u32 %v16377_v34, %v12369_v35 }
  0xb5   :  { %v10769_v41 = vld [vmem:[#allocation8 + $0xc0] sm:$0xf0] }
  0xb6   :  { %6567 = vmatpush.bf16.msra.mxu3 %v12564_v4  ;;  %6540 = vmatpush.bf16.msra.mxu1 %v11476_v12  ;;  %v16105_v42 = vld [vmem:[#allocation8 + $0x484] sm:$0xf]  ;;  %v10772_v52 = vor.u32 %v15977_v40, %v10769_v41 }
  0xb7   :  { %v11281_v46 = vld [vmem:[#allocation8 + $0x4c0] sm:$0xf0] }
  0xb8   :  { %6554 = vmatpush.bf16.msra.mxu2 %v11988_v13  ;;  %6527 = vmatpush.bf16.msra.mxu0 %v10900_v24  ;;  %v16233_v48 = vld [vmem:[#allocation8 + $0x884] sm:$0xf]  ;;  %v11284_v55 = vor.u32 %v16105_v42, %v11281_v46 }
  0xb9   :  { %v11793_v49 = vld [vmem:[#allocation8 + $0x8c0] sm:$0xf0] }
  0xba   :  { %6568 = vmatpush.bf16.msra.mxu3 %v12500_v18  ;;  %6541 = vmatpush.bf16.msra.mxu1 %v11412_v25  ;;  %v16361_v50 = vld [vmem:[#allocation8 + $0xc84] sm:$0xf]  ;;  %v11796_v56 = vor.u32 %v16233_v48, %v11793_v49 }
  0xbb   :  { %v12305_v51 = vld [vmem:[#allocation8 + $0xcc0] sm:$0xf0] }
  0xbc   :  { %6555 = vmatpush.bf16.msra.mxu2 %v11924_v26  ;;  %6528 = vmatpush.bf16.msra.mxu0 %v10836_v36  ;;  %v15961_v53 = vld [vmem:[#allocation8 + $0x4] sm:$0xf]  ;;  %v12308_v61 = vor.u32 %v16361_v50, %v12305_v51 }
  0xbd   :  { %v10705_v54 = vld [vmem:[#allocation8 + $0x40] sm:$0xf0] }
  0xbe   :  { %6569 = vmatpush.bf16.msra.mxu3 %v12436_v30  ;;  %6542 = vmatpush.bf16.msra.mxu1 %v11348_v37  ;;  %v16089_v57 = vld [vmem:[#allocation8 + $0x404] sm:$0xf]  ;;  %v10708_v5 = vor.u32 %v15961_v53, %v10705_v54 }
  0xbf   :  { %v11217_v59 = vld [vmem:[#allocation8 + $0x440] sm:$0xf0] }
  0xc0   :  { %6556 = vmatpush.bf16.msra.mxu2 %v11860_v38  ;;  %v16217_v60 = vld [vmem:[#allocation8 + $0x804] sm:$0xf]  ;;  %6529 = vmatpush.bf16.msra.mxu0 %v10772_v52  ;;  %v11220_v9 = vor.u32 %v16089_v57, %v11217_v59 }
  0xc1   :  { %v11729_v62 = vld [vmem:[#allocation8 + $0x840] sm:$0xf0] }
  0xc2   :  { %6570 = vmatpush.bf16.msra.mxu3 %v12372_v45  ;;  %v16345_v63 = vld [vmem:[#allocation8 + $0xc04] sm:$0xf]  ;;  %6543 = vmatpush.bf16.msra.mxu1 %v11284_v55  ;;  %v11732_v11 = vor.u32 %v16217_v60, %v11729_v62 }
  0xc3   :  { %v12241_v0 = vld [vmem:[#allocation8 + $0xc40] sm:$0xf0] }
  0xc4   :  { %v16585_v2 = vld [vmem:[#allocation8 + $0x1384] sm:$0xf]  ;;  %6557 = vmatpush.bf16.msra.mxu2 %v11796_v56  ;;  %v12244_v14 = vor.u32 %v16345_v63, %v12241_v0  ;;  %6530 = vmatpush.bf16.msra.mxu0 %v10708_v5 }
  0xc5   :  { %v13201_v3 = vld [vmem:[#allocation8 + $0x13c0] sm:$0xf0] }
  0xc6   :  { %v16713_v4 = vld [vmem:[#allocation8 + $0x1784] sm:$0xf]  ;;  %6571 = vmatpush.bf16.msra.mxu3 %v12308_v61  ;;  %v13204_v15 = vor.u32 %v16585_v2, %v13201_v3  ;;  %6544 = vmatpush.bf16.msra.mxu1 %v11220_v9 }
  0xc7   :  { %v13713_v6 = vld [vmem:[#allocation8 + $0x17c0] sm:$0xf0]  ;;  %6531 = vmatmul.bf16.vlgmr.msra.gmra.mxu0 %v17621_v58 }
  0xc8   :  { %v16841_v7 = vld [vmem:[#allocation8 + $0x1b84] sm:$0xf]  ;;  %v13716_v16 = vor.u32 %v16713_v4, %v13713_v6  ;;  %6558 = vmatpush.bf16.msra.mxu2 %v11732_v11  ;;  %6579 = vmatpush.bf16.msrb.mxu0 %v13204_v15 }
  0xc9   :  { %v14225_v8 = vld [vmem:[#allocation8 + $0x1bc0] sm:$0xf0]  ;;  %6545 = vmatmul.bf16.vlgmr.msra.gmra.mxu1 %v17627_v10 }
  0xca   :  { %v16969_v12 = vld [vmem:[#allocation8 + $0x1f84] sm:$0xf]  ;;  %v14228_v18 = vor.u32 %v16841_v7, %v14225_v8  ;;  %6572 = vmatpush.bf16.msra.mxu3 %v12244_v14  ;;  %6593 = vmatpush.bf16.msrb.mxu1 %v13716_v16 }
  0xcb   :  { %v14737_v13 = vld [vmem:[#allocation8 + $0x1fc0] sm:$0xf0]  ;;  %6559 = vmatmul.bf16.vlgmr.msra.gmra.mxu2 %v17623_v1 }
  0xcc   :  { %v16569_v19 = vld [vmem:[#allocation8 + $0x1304] sm:$0xf]  ;;  %v14740_v22 = vor.u32 %v16969_v12, %v14737_v13  ;;  %6607 = vmatpush.bf16.msrb.mxu2 %v14228_v18 }
  0xcd   :  { %v13137_v20 = vld [vmem:[#allocation8 + $0x1340] sm:$0xf0]  ;;  %6573 = vmatmul.bf16.vlgmr.msra.gmra.mxu3 %v17629_v17 }
  0xce   :  { %v16697_v21 = vld [vmem:[#allocation8 + $0x1704] sm:$0xf]  ;;  %v13140_v28 = vor.u32 %v16569_v19, %v13137_v20  ;;  %6621 = vmatpush.bf16.msrb.mxu3 %v14740_v22 }
  0xcf   :  { %v13649_v23 = vld [vmem:[#allocation8 + $0x1740] sm:$0xf0] }
  0xd0   :  { %v16825_v24 = vld [vmem:[#allocation8 + $0x1b04] sm:$0xf]  ;;  %v13652_v29 = vor.u32 %v16697_v21, %v13649_v23  ;;  %6580 = vmatpush.bf16.msrb.mxu0 %v13140_v28 }
  0xd1   :  { %v14161_v25 = vld [vmem:[#allocation8 + $0x1b40] sm:$0xf0] }
  0xd2   :  { %v16953_v26 = vld [vmem:[#allocation8 + $0x1f04] sm:$0xf]  ;;  %v14164_v30 = vor.u32 %v16825_v24, %v14161_v25  ;;  %6594 = vmatpush.bf16.msrb.mxu1 %v13652_v29 }
  0xd3   :  { %v14673_v27 = vld [vmem:[#allocation8 + $0x1f40] sm:$0xf0] }
  0xd4   :  { %v16553_v31 = vld [vmem:[#allocation8 + $0x1284] sm:$0xf]  ;;  %v14676_v34 = vor.u32 %v16953_v26, %v14673_v27  ;;  %6608 = vmatpush.bf16.msrb.mxu2 %v14164_v30 }
  0xd5   :  { %v13073_v32 = vld [vmem:[#allocation8 + $0x12c0] sm:$0xf0] }
  0xd6   :  { %v16681_v33 = vld [vmem:[#allocation8 + $0x1684] sm:$0xf]  ;;  %v13076_v41 = vor.u32 %v16553_v31, %v13073_v32  ;;  %6622 = vmatpush.bf16.msrb.mxu3 %v14676_v34 }
  0xd7   :  { %v13585_v35 = vld [vmem:[#allocation8 + $0x16c0] sm:$0xf0] }
  0xd8   :  { %v16809_v36 = vld [vmem:[#allocation8 + $0x1a84] sm:$0xf]  ;;  %v13588_v42 = vor.u32 %v16681_v33, %v13585_v35  ;;  %6581 = vmatpush.bf16.msrb.mxu0 %v13076_v41 }
  0xd9   :  { %v14097_v37 = vld [vmem:[#allocation8 + $0x1ac0] sm:$0xf0] }
  0xda   :  { %v16937_v38 = vld [vmem:[#allocation8 + $0x1e84] sm:$0xf]  ;;  %v14100_v45 = vor.u32 %v16809_v36, %v14097_v37  ;;  %6595 = vmatpush.bf16.msrb.mxu1 %v13588_v42 }
  0xdb   :  { %v14609_v40 = vld [vmem:[#allocation8 + $0x1ec0] sm:$0xf0] }
  0xdc   :  { %v16537_v46 = vld [vmem:[#allocation8 + $0x1204] sm:$0xf]  ;;  %v14612_v50 = vor.u32 %v16937_v38, %v14609_v40  ;;  %6609 = vmatpush.bf16.msrb.mxu2 %v14100_v45 }
  0xdd   :  { %v13009_v48 = vld [vmem:[#allocation8 + $0x1240] sm:$0xf0] }
  0xde   :  { %v16665_v49 = vld [vmem:[#allocation8 + $0x1604] sm:$0xf]  ;;  %v13012_v56 = vor.u32 %v16537_v46, %v13009_v48  ;;  %6623 = vmatpush.bf16.msrb.mxu3 %v14612_v50  ;;  %v11159_v48 = vld [vmem:[#allocation8 + $0x388] sm:$0xf] }
  0xdf   :  { %v13521_v51 = vld [vmem:[#allocation8 + $0x1640] sm:$0xf0]  ;;  %v11671_v50 = vld [vmem:[#allocation8 + $0x788] sm:$0xf] }
  0xe0   :  { %v16793_v52 = vld [vmem:[#allocation8 + $0x1a04] sm:$0xf]  ;;  %v13524_v57 = vor.u32 %v16665_v49, %v13521_v51  ;;  %6582 = vmatpush.bf16.msrb.mxu0 %v13012_v56  ;;  %v16082_v49 = vld [vmem:[#allocation8 + $0x3c4] sm:$0xf0] }
  0xe1   :  { %v14033_v53 = vld [vmem:[#allocation8 + $0x1a40] sm:$0xf0] }
  0xe2   :  { %v16921_v54 = vld [vmem:[#allocation8 + $0x1e04] sm:$0xf]  ;;  %v14036_v59 = vor.u32 %v16793_v52, %v14033_v53  ;;  %6596 = vmatpush.bf16.msrb.mxu1 %v13524_v57  ;;  %v16210_v52 = vld [vmem:[#allocation8 + $0x7c4] sm:$0xf0] }
  0xe3   :  { %v14545_v55 = vld [vmem:[#allocation8 + $0x1e40] sm:$0xf0]  ;;  %v12183_v53 = vld [vmem:[#allocation8 + $0xb88] sm:$0xf] }
  0xe4   :  { %v16521_v60 = vld [vmem:[#allocation8 + $0x1184] sm:$0xf]  ;;  %v14548_v63 = vor.u32 %v16921_v54, %v14545_v55  ;;  %6610 = vmatpush.bf16.msrb.mxu2 %v14036_v59  ;;  %v16338_v54 = vld [vmem:[#allocation8 + $0xbc4] sm:$0xf0] }
  0xe5   :  { %v12945_v61 = vld [vmem:[#allocation8 + $0x11c0] sm:$0xf0]  ;;  %v12695_v57 = vld [vmem:[#allocation8 + $0xf88] sm:$0xf] }
  0xe6   :  { %v16649_v62 = vld [vmem:[#allocation8 + $0x1584] sm:$0xf]  ;;  %v12948_v6 = vor.u32 %v16521_v60, %v12945_v61  ;;  %6624 = vmatpush.bf16.msrb.mxu3 %v14548_v63  ;;  %v16466_v59 = vld [vmem:[#allocation8 + $0xfc4] sm:$0xf0]  ;;  %v11160_v61 = vor.u32 %v16082_v49, %v11159_v48  ;;  %v12184_v63 = vor.u32 %v16338_v54, %v12183_v53 }
  0xe7   :  { %v13457_v0 = vld [vmem:[#allocation8 + $0x15c0] sm:$0xf0]  ;;  %v11927_v48 = vld [vmem:[#allocation8 + $0x988] sm:$0xf] }
  0xe8   :  { %v16777_v2 = vld [vmem:[#allocation8 + $0x1984] sm:$0xf]  ;;  %v13460_v7 = vor.u32 %v16649_v62, %v13457_v0  ;;  %6583 = vmatpush.bf16.msrb.mxu0 %v12948_v6  ;;  %v11672_v62 = vor.u32 %v16210_v52, %v11671_v50  ;;  %v11095_v0 = vld [vmem:[#allocation8 + $0x308] sm:$0xf] }
  0xe9   :  { %v13969_v3 = vld [vmem:[#allocation8 + $0x19c0] sm:$0xf0]  ;;  %v12119_v6 = vld [vmem:[#allocation8 + $0xb08] sm:$0xf] }
  0xea   :  { %v16905_v4 = vld [vmem:[#allocation8 + $0x1d84] sm:$0xf]  ;;  %v13972_v8 = vor.u32 %v16777_v2, %v13969_v3  ;;  %6597 = vmatpush.bf16.msrb.mxu1 %v13460_v7  ;;  %v16066_v2 = vld [vmem:[#allocation8 + $0x344] sm:$0xf0] }
  0xeb   :  { %v14481_v5 = vld [vmem:[#allocation8 + $0x1dc0] sm:$0xf0]  ;;  %v11607_v3 = vld [vmem:[#allocation8 + $0x708] sm:$0xf] }
  0xec   :  { %v16505_v9 = vld [vmem:[#allocation8 + $0x1104] sm:$0xf]  ;;  %v14484_v13 = vor.u32 %v16905_v4, %v14481_v5  ;;  %6611 = vmatpush.bf16.msrb.mxu2 %v13972_v8  ;;  %v12696_v4 = vor.u32 %v16466_v59, %v12695_v57  ;;  %v16194_v5 = vld [vmem:[#allocation8 + $0x744] sm:$0xf0] }
  0xed   :  { %v12881_v11 = vld [vmem:[#allocation8 + $0x1140] sm:$0xf0]  ;;  %v16322_v7 = vld [vmem:[#allocation8 + $0xb44] sm:$0xf0] }
  0xee   :  { %v16633_v12 = vld [vmem:[#allocation8 + $0x1504] sm:$0xf]  ;;  %v12884_v20 = vor.u32 %v16505_v9, %v12881_v11  ;;  %6625 = vmatpush.bf16.msrb.mxu3 %v14484_v13  ;;  %v12631_v8 = vld [vmem:[#allocation8 + $0xf08] sm:$0xf]  ;;  %v11096_v11 = vor.u32 %v16066_v2, %v11095_v0  ;;  %v12120_v13 = vor.u32 %v16322_v7, %v12119_v6 }
  0xef   :  { %v13393_v14 = vld [vmem:[#allocation8 + $0x1540] sm:$0xf0]  ;;  %v16450_v9 = vld [vmem:[#allocation8 + $0xf44] sm:$0xf0] }
  0xf0   :  { %v16761_v15 = vld [vmem:[#allocation8 + $0x1904] sm:$0xf]  ;;  %v13396_v21 = vor.u32 %v16633_v12, %v13393_v14  ;;  %6584 = vmatpush.bf16.msrb.mxu0 %v12884_v20  ;;  %v11608_v12 = vor.u32 %v16194_v5, %v11607_v3  ;;  %v11031_v14 = vld [vmem:[#allocation8 + $0x288] sm:$0xf] }
  0xf1   :  { %v13905_v16 = vld [vmem:[#allocation8 + $0x1940] sm:$0xf0]  ;;  %v12055_v20 = vld [vmem:[#allocation8 + $0xa88] sm:$0xf] }
  0xf2   :  { %v16889_v18 = vld [vmem:[#allocation8 + $0x1d04] sm:$0xf]  ;;  %v13908_v22 = vor.u32 %v16761_v15, %v13905_v16  ;;  %6598 = vmatpush.bf16.msrb.mxu1 %v13396_v21  ;;  %v16050_v15 = vld [vmem:[#allocation8 + $0x2c4] sm:$0xf0] }
  0xf3   :  { %v14417_v19 = vld [vmem:[#allocation8 + $0x1d40] sm:$0xf0]  ;;  %v11543_v16 = vld [vmem:[#allocation8 + $0x688] sm:$0xf] }
  0xf4   :  { %v16489_v23 = vld [vmem:[#allocation8 + $0x1084] sm:$0xf]  ;;  %v14420_v26 = vor.u32 %v16889_v18, %v14417_v19  ;;  %6612 = vmatpush.bf16.msrb.mxu2 %v13908_v22  ;;  %v12632_v18 = vor.u32 %v16450_v9, %v12631_v8  ;;  %v16178_v19 = vld [vmem:[#allocation8 + $0x6c4] sm:$0xf0] }
  0xf5   :  { %v12817_v24 = vld [vmem:[#allocation8 + $0x10c0] sm:$0xf0]  ;;  %v16306_v21 = vld [vmem:[#allocation8 + $0xac4] sm:$0xf0] }
  0xf6   :  { %v16617_v25 = vld [vmem:[#allocation8 + $0x1484] sm:$0xf]  ;;  %v12820_v32 = vor.u32 %v16489_v23, %v12817_v24  ;;  %6626 = vmatpush.bf16.msrb.mxu3 %v14420_v26  ;;  %v12567_v22 = vld [vmem:[#allocation8 + $0xe88] sm:$0xf]  ;;  %v11032_v24 = vor.u32 %v16050_v15, %v11031_v14  ;;  %v12056_v26 = vor.u32 %v16306_v21, %v12055_v20 }
  0xf7   :  { %v13329_v27 = vld [vmem:[#allocation8 + $0x14c0] sm:$0xf0]  ;;  %v16434_v23 = vld [vmem:[#allocation8 + $0xec4] sm:$0xf0] }
  0xf8   :  { %v16745_v28 = vld [vmem:[#allocation8 + $0x1884] sm:$0xf]  ;;  %v13332_v35 = vor.u32 %v16617_v25, %v13329_v27  ;;  %6585 = vmatpush.bf16.msrb.mxu0 %v12820_v32  ;;  %v11544_v25 = vor.u32 %v16178_v19, %v11543_v16  ;;  %v10967_v27 = vld [vmem:[#allocation8 + $0x208] sm:$0xf] }
  0xf9   :  { %v13841_v29 = vld [vmem:[#allocation8 + $0x18c0] sm:$0xf0]  ;;  %v11991_v32 = vld [vmem:[#allocation8 + $0xa08] sm:$0xf] }
  0xfa   :  { %v16873_v30 = vld [vmem:[#allocation8 + $0x1c84] sm:$0xf]  ;;  %v13844_v36 = vor.u32 %v16745_v28, %v13841_v29  ;;  %6599 = vmatpush.bf16.msrb.mxu1 %v13332_v35  ;;  %v16034_v28 = vld [vmem:[#allocation8 + $0x244] sm:$0xf0] }
  0xfb   :  { %v14353_v31 = vld [vmem:[#allocation8 + $0x1cc0] sm:$0xf0]  ;;  %v11479_v29 = vld [vmem:[#allocation8 + $0x608] sm:$0xf] }
  0xfc   :  { %v16473_v33 = vld [vmem:[#allocation8 + $0x1004] sm:$0xf]  ;;  %v14356_v41 = vor.u32 %v16873_v30, %v14353_v31  ;;  %6613 = vmatpush.bf16.msrb.mxu2 %v13844_v36  ;;  %v12568_v30 = vor.u32 %v16434_v23, %v12567_v22  ;;  %v16162_v31 = vld [vmem:[#allocation8 + $0x644] sm:$0xf0]  ;;  %v10968_v36 = vor.u32 %v16034_v28, %v10967_v27 }
  0xfd   :  { %v12753_v34 = vld [vmem:[#allocation8 + $0x1040] sm:$0xf0]  ;;  %v16418_v35 = vld [vmem:[#allocation8 + $0xe44] sm:$0xf0] }
  0xfe   :  { %v16601_v37 = vld [vmem:[#allocation8 + $0x1404] sm:$0xf]  ;;  %v12756_v51 = vor.u32 %v16473_v33, %v12753_v34  ;;  %6627 = vmatpush.bf16.msrb.mxu3 %v14356_v41  ;;  %v16290_v33 = vld [vmem:[#allocation8 + $0xa44] sm:$0xf0] }
  0xff   :  { %v13265_v38 = vld [vmem:[#allocation8 + $0x1440] sm:$0xf0]  ;;  %v12503_v34 = vld [vmem:[#allocation8 + $0xe08] sm:$0xf] }
 0x100   :  { %v16729_v40 = vld [vmem:[#allocation8 + $0x1804] sm:$0xf]  ;;  %v13268_v55 = vor.u32 %v16601_v37, %v13265_v38  ;;  %6586 = vmatpush.bf16.msrb.mxu0 %v12756_v51  ;;  %v11480_v37 = vor.u32 %v16162_v31, %v11479_v29  ;;  %v11992_v38 = vor.u32 %v16290_v33, %v11991_v32  ;;  %v16018_v41 = vld [vmem:[#allocation8 + $0x1c4] sm:$0xf0] }
 0x101   :  { %v13777_v42 = vld [vmem:[#allocation8 + $0x1840] sm:$0xf0]  ;;  %v16274_v49 = vld [vmem:[#allocation8 + $0x9c4] sm:$0xf0] }
 0x102   :  { %v16857_v45 = vld [vmem:[#allocation8 + $0x1c04] sm:$0xf]  ;;  %v13780_v56 = vor.u32 %v16729_v40, %v13777_v42  ;;  %6600 = vmatpush.bf16.msrb.mxu1 %v13268_v55  ;;  %v10903_v40 = vld [vmem:[#allocation8 + $0x188] sm:$0xf]  ;;  %v11928_v54 = vor.u32 %v16274_v49, %v11927_v48 }
 0x103   :  { %v14289_v46 = vld [vmem:[#allocation8 + $0x1c40] sm:$0xf0]  ;;  %6587 = vmatmul.bf16.vlgmr.msrb.gmra.mxu0 %v17633_v39  ;;  %v11415_v42 = vld [vmem:[#allocation8 + $0x588] sm:$0xf]  ;;  %v10904_v52 = vor.u32 %v16018_v41, %v10903_v40 }
 0x104   :  { %v14292_v60 = vor.u32 %v16857_v45, %v14289_v46  ;;  %6614 = vmatpush.bf16.msrb.mxu2 %v13780_v56  ;;  %6635 = vmatpush.bf16.msra.mxu0 %v11160_v61  ;;  %v12504_v45 = vor.u32 %v16418_v35, %v12503_v34  ;;  %v16146_v46 = vld [vmem:[#allocation8 + $0x5c4] sm:$0xf0] }
 0x105   :  { %6601 = vmatmul.bf16.vlgmr.msrb.gmra.mxu1 %v17637_v44  ;;  %v12439_v50 = vld [vmem:[#allocation8 + $0xd88] sm:$0xf]  ;;  %v11416_v53 = vor.u32 %v16146_v46, %v11415_v42 }
 0x106   :  { %6628 = vmatpush.bf16.msrb.mxu3 %v14292_v60  ;;  %6649 = vmatpush.bf16.msra.mxu1 %v11672_v62  ;;  %v16402_v51 = vld [vmem:[#allocation8 + $0xdc4] sm:$0xf0] }
 0x107   :  { %6615 = vmatmul.bf16.vlgmr.msrb.gmra.mxu2 %v17635_v43  ;;  %v10839_v55 = vld [vmem:[#allocation8 + $0x108] sm:$0xf]  ;;  %v12440_v59 = vor.u32 %v16402_v51, %v12439_v50 }
 0x108   :  { %6663 = vmatpush.bf16.msra.mxu2 %v12184_v63  ;;  %6636 = vmatpush.bf16.msra.mxu0 %v11096_v11  ;;  %v16002_v56 = vld [vmem:[#allocation8 + $0x144] sm:$0xf0] }
 0x109   :  { %6629 = vmatmul.bf16.vlgmr.msrb.gmra.mxu3 %v17639_v47  ;;  %v11351_v57 = vld [vmem:[#allocation8 + $0x508] sm:$0xf]  ;;  %v10840_v2 = vor.u32 %v16002_v56, %v10839_v55 }
 0x10a   :  { %6677 = vmatpush.bf16.msra.mxu3 %v12696_v4  ;;  %6650 = vmatpush.bf16.msra.mxu1 %v11608_v12  ;;  %v16130_v60 = vld [vmem:[#allocation8 + $0x544] sm:$0xf0] }
 0x10b   :  { %v11863_v61 = vld [vmem:[#allocation8 + $0x908] sm:$0xf]  ;;  %v11352_v3 = vor.u32 %v16130_v60, %v11351_v57 }
 0x10c   :  { %6664 = vmatpush.bf16.msra.mxu2 %v12120_v13  ;;  %6637 = vmatpush.bf16.msra.mxu0 %v11032_v24  ;;  %v16258_v62 = vld [vmem:[#allocation8 + $0x944] sm:$0xf0] }
 0x10d   :  { %v12375_v63 = vld [vmem:[#allocation8 + $0xd08] sm:$0xf]  ;;  %v11864_v4 = vor.u32 %v16258_v62, %v11863_v61 }
 0x10e   :  { %6678 = vmatpush.bf16.msra.mxu3 %v12632_v18  ;;  %6651 = vmatpush.bf16.msra.mxu1 %v11544_v25  ;;  %v16386_v0 = vld [vmem:[#allocation8 + $0xd44] sm:$0xf0] }
 0x10f   :  { %v10775_v5 = vld [vmem:[#allocation8 + $0x88] sm:$0xf]  ;;  %v12376_v8 = vor.u32 %v16386_v0, %v12375_v63 }
 0x110   :  { %6665 = vmatpush.bf16.msra.mxu2 %v12056_v26  ;;  %6638 = vmatpush.bf16.msra.mxu0 %v10968_v36  ;;  %v15986_v6 = vld [vmem:[#allocation8 + $0xc4] sm:$0xf0] }
 0x111   :  { %v11287_v7 = vld [vmem:[#allocation8 + $0x488] sm:$0xf]  ;;  %v10776_v15 = vor.u32 %v15986_v6, %v10775_v5 }
 0x112   :  { %6679 = vmatpush.bf16.msra.mxu3 %v12568_v30  ;;  %6652 = vmatpush.bf16.msra.mxu1 %v11480_v37  ;;  %v16114_v9 = vld [vmem:[#allocation8 + $0x4c4] sm:$0xf0] }
 0x113   :  { %v11799_v11 = vld [vmem:[#allocation8 + $0x888] sm:$0xf]  ;;  %v11288_v19 = vor.u32 %v16114_v9, %v11287_v7 }
 0x114   :  { %6666 = vmatpush.bf16.msra.mxu2 %v11992_v38  ;;  %6639 = vmatpush.bf16.msra.mxu0 %v10904_v52  ;;  %v16242_v12 = vld [vmem:[#allocation8 + $0x8c4] sm:$0xf0] }
 0x115   :  { %v12311_v13 = vld [vmem:[#allocation8 + $0xc88] sm:$0xf]  ;;  %v11800_v20 = vor.u32 %v16242_v12, %v11799_v11 }
 0x116   :  { %6680 = vmatpush.bf16.msra.mxu3 %v12504_v45  ;;  %6653 = vmatpush.bf16.msra.mxu1 %v11416_v53  ;;  %v16370_v14 = vld [vmem:[#allocation8 + $0xcc4] sm:$0xf0] }
 0x117   :  { %v10711_v16 = vld [vmem:[#allocation8 + $0x8] sm:$0xf]  ;;  %v12312_v24 = vor.u32 %v16370_v14, %v12311_v13 }
 0x118   :  { %6667 = vmatpush.bf16.msra.mxu2 %v11928_v54  ;;  %6640 = vmatpush.bf16.msra.mxu0 %v10840_v2  ;;  %v15970_v18 = vld [vmem:[#allocation8 + $0x44] sm:$0xf0] }
 0x119   :  { %v11223_v21 = vld [vmem:[#allocation8 + $0x408] sm:$0xf]  ;;  %v10712_v31 = vor.u32 %v15970_v18, %v10711_v16 }
 0x11a   :  { %6681 = vmatpush.bf16.msra.mxu3 %v12440_v59  ;;  %6654 = vmatpush.bf16.msra.mxu1 %v11352_v3  ;;  %v16098_v22 = vld [vmem:[#allocation8 + $0x444] sm:$0xf0] }
 0x11b   :  { %v11735_v23 = vld [vmem:[#allocation8 + $0x808] sm:$0xf]  ;;  %v11224_v35 = vor.u32 %v16098_v22, %v11223_v21 }
 0x11c   :  { %6668 = vmatpush.bf16.msra.mxu2 %v11864_v4  ;;  %v16226_v25 = vld [vmem:[#allocation8 + $0x844] sm:$0xf0]  ;;  %6641 = vmatpush.bf16.msra.mxu0 %v10776_v15 }
 0x11d   :  { %v12247_v26 = vld [vmem:[#allocation8 + $0xc08] sm:$0xf]  ;;  %v11736_v36 = vor.u32 %v16226_v25, %v11735_v23 }
 0x11e   :  { %6682 = vmatpush.bf16.msra.mxu3 %v12376_v8  ;;  %v16354_v27 = vld [vmem:[#allocation8 + $0xc44] sm:$0xf0]  ;;  %6655 = vmatpush.bf16.msra.mxu1 %v11288_v19 }
 0x11f   :  { %v13207_v28 = vld [vmem:[#allocation8 + $0x1388] sm:$0xf]  ;;  %v12248_v40 = vor.u32 %v16354_v27, %v12247_v26 }
 0x120   :  { %v16594_v29 = vld [vmem:[#allocation8 + $0x13c4] sm:$0xf0]  ;;  %6669 = vmatpush.bf16.msra.mxu2 %v11800_v20  ;;  %6642 = vmatpush.bf16.msra.mxu0 %v10712_v31 }
 0x121   :  { %v13719_v30 = vld [vmem:[#allocation8 + $0x1788] sm:$0xf]  ;;  %v13208_v41 = vor.u32 %v16594_v29, %v13207_v28 }
 0x122   :  { %v16722_v32 = vld [vmem:[#allocation8 + $0x17c4] sm:$0xf0]  ;;  %6683 = vmatpush.bf16.msra.mxu3 %v12312_v24  ;;  %6656 = vmatpush.bf16.msra.mxu1 %v11224_v35 }
 0x123   :  { %v14231_v33 = vld [vmem:[#allocation8 + $0x1b88] sm:$0xf]  ;;  %v13720_v42 = vor.u32 %v16722_v32, %v13719_v30  ;;  %6643 = vmatmul.bf16.vlgmr.msra.gmra.mxu0 %v17621_v58  ;;  %v6420_v32 = vpop.f32.mrf.mxu0 }
 0x124   :  { %v16850_v34 = vld [vmem:[#allocation8 + $0x1bc4] sm:$0xf0]  ;;  %6670 = vmatpush.bf16.msra.mxu2 %v11736_v36  ;;  %6691 = vmatpush.bf16.msrb.mxu0 %v13208_v41 }
 0x125   :  { %v14743_v37 = vld [vmem:[#allocation8 + $0x1f88] sm:$0xf]  ;;  %v14232_v45 = vor.u32 %v16850_v34, %v14231_v33  ;;  %6657 = vmatmul.bf16.vlgmr.msra.gmra.mxu1 %v17627_v10  ;;  %v6434_v33 = vpop.f32.mrf.mxu1 }
 0x126   :  { %v16978_v38 = vld [vmem:[#allocation8 + $0x1fc4] sm:$0xf0]  ;;  %6684 = vmatpush.bf16.msra.mxu3 %v12248_v40  ;;  %6705 = vmatpush.bf16.msrb.mxu1 %v13720_v42  ;;  %v6435_v35 = vadd.f32 %v6434_v33, %v6420_v32 }
 0x127   :  { %v13143_v46 = vld [vmem:[#allocation8 + $0x1308] sm:$0xf]  ;;  %v14744_v50 = vor.u32 %v16978_v38, %v14743_v37  ;;  %6671 = vmatmul.bf16.vlgmr.msra.gmra.mxu2 %v17623_v1 }
 0x128   :  { %v16578_v48 = vld [vmem:[#allocation8 + $0x1344] sm:$0xf0]  ;;  %6719 = vmatpush.bf16.msrb.mxu2 %v14232_v45 }
 0x129   :  { %v13655_v49 = vld [vmem:[#allocation8 + $0x1708] sm:$0xf]  ;;  %v13144_v56 = vor.u32 %v16578_v48, %v13143_v46  ;;  %6685 = vmatmul.bf16.vlgmr.msra.gmra.mxu3 %v17629_v17 }
 0x12a   :  { %v16706_v51 = vld [vmem:[#allocation8 + $0x1744] sm:$0xf0]  ;;  %6733 = vmatpush.bf16.msrb.mxu3 %v14744_v50 }
 0x12b   :  { %v14167_v52 = vld [vmem:[#allocation8 + $0x1b08] sm:$0xf]  ;;  %v13656_v57 = vor.u32 %v16706_v51, %v13655_v49  ;;  %6692 = vmatpush.bf16.msrb.mxu0 %v13144_v56  ;;  %v6448_v49 = vpop.f32.mrf.mxu2 }
 0x12c   :  { %v16834_v53 = vld [vmem:[#allocation8 + $0x1b44] sm:$0xf0] }
 0x12d   :  { %v14679_v54 = vld [vmem:[#allocation8 + $0x1f08] sm:$0xf]  ;;  %v14168_v59 = vor.u32 %v16834_v53, %v14167_v52  ;;  %6706 = vmatpush.bf16.msrb.mxu1 %v13656_v57  ;;  %v6449_v52 = vadd.f32 %v6448_v49, %v6435_v35  ;;  %v16058_v35 = vld [vmem:[#allocation8 + $0x30c] sm:$0xf] }
 0x12e   :  { %v16962_v55 = vld [vmem:[#allocation8 + $0x1f44] sm:$0xf0] }
 0x12f   :  { %v13079_v60 = vld [vmem:[#allocation8 + $0x1288] sm:$0xf]  ;;  %v14680_v63 = vor.u32 %v16962_v55, %v14679_v54  ;;  %6720 = vmatpush.bf16.msrb.mxu2 %v14168_v59 }
 0x130   :  { %v16562_v61 = vld [vmem:[#allocation8 + $0x12c4] sm:$0xf0] }
 0x131   :  { %v13591_v62 = vld [vmem:[#allocation8 + $0x1688] sm:$0xf]  ;;  %v13080_v6 = vor.u32 %v16562_v61, %v13079_v60  ;;  %6734 = vmatpush.bf16.msrb.mxu3 %v14680_v63 }
 0x132   :  { %v16690_v0 = vld [vmem:[#allocation8 + $0x16c4] sm:$0xf0] }
 0x133   :  { %v14103_v2 = vld [vmem:[#allocation8 + $0x1a88] sm:$0xf]  ;;  %v13592_v7 = vor.u32 %v16690_v0, %v13591_v62  ;;  %6693 = vmatpush.bf16.msrb.mxu0 %v13080_v6  ;;  %v6462_v0 = vpop.f32.mrf.mxu3 }
 0x134   :  { %v16818_v3 = vld [vmem:[#allocation8 + $0x1ac4] sm:$0xf0] }
 0x135   :  { %v14615_v4 = vld [vmem:[#allocation8 + $0x1e88] sm:$0xf]  ;;  %v14104_v8 = vor.u32 %v16818_v3, %v14103_v2  ;;  %6707 = vmatpush.bf16.msrb.mxu1 %v13592_v7 }
 0x136   :  { %v16946_v5 = vld [vmem:[#allocation8 + $0x1ec4] sm:$0xf0] }
 0x137   :  { %v13015_v9 = vld [vmem:[#allocation8 + $0x1208] sm:$0xf]  ;;  %v14616_v13 = vor.u32 %v16946_v5, %v14615_v4  ;;  %6721 = vmatpush.bf16.msrb.mxu2 %v14104_v8  ;;  %v17657_v4 = vadd.f32 %v6462_v0, %v6449_v52  ;;  %v16042_v52 = vld [vmem:[#allocation8 + $0x28c] sm:$0xf] }
 0x138   :  { %v16546_v11 = vld [vmem:[#allocation8 + $0x1244] sm:$0xf0] }
 0x139   :  { %v13527_v12 = vld [vmem:[#allocation8 + $0x1608] sm:$0xf]  ;;  %v13016_v20 = vor.u32 %v16546_v11, %v13015_v9  ;;  %6735 = vmatpush.bf16.msrb.mxu3 %v14616_v13 }
 0x13a   :  { %v16674_v14 = vld [vmem:[#allocation8 + $0x1644] sm:$0xf0] }
 0x13b   :  { %v14039_v15 = vld [vmem:[#allocation8 + $0x1a08] sm:$0xf]  ;;  %v13528_v21 = vor.u32 %v16674_v14, %v13527_v12  ;;  %6694 = vmatpush.bf16.msrb.mxu0 %v13016_v20  ;;  %v11161_v20 = vld [vmem:[#allocation8 + $0x3c8] sm:$0xf0] }
 0x13c   :  { %v16802_v16 = vld [vmem:[#allocation8 + $0x1a44] sm:$0xf0] }
 0x13d   :  { %v14551_v18 = vld [vmem:[#allocation8 + $0x1e08] sm:$0xf]  ;;  %v14040_v22 = vor.u32 %v16802_v16, %v14039_v15  ;;  %6708 = vmatpush.bf16.msrb.mxu1 %v13528_v21  ;;  %v16202_v21 = vld [vmem:[#allocation8 + $0x78c] sm:$0xf] }
 0x13e   :  { %v16930_v19 = vld [vmem:[#allocation8 + $0x1e44] sm:$0xf0] }
 0x13f   :  { %v12951_v23 = vld [vmem:[#allocation8 + $0x1188] sm:$0xf]  ;;  %v14552_v26 = vor.u32 %v16930_v19, %v14551_v18  ;;  %6722 = vmatpush.bf16.msrb.mxu2 %v14040_v22  ;;  %v16074_v19 = vld [vmem:[#allocation8 + $0x38c] sm:$0xf] }
 0x140   :  { %v16530_v24 = vld [vmem:[#allocation8 + $0x11c4] sm:$0xf0] }
 0x141   :  { %v13463_v25 = vld [vmem:[#allocation8 + $0x1588] sm:$0xf]  ;;  %v12952_v34 = vor.u32 %v16530_v24, %v12951_v23  ;;  %6736 = vmatpush.bf16.msrb.mxu3 %v14552_v26  ;;  %v11673_v23 = vld [vmem:[#allocation8 + $0x7c8] sm:$0xf0] }
 0x142   :  { %v16658_v27 = vld [vmem:[#allocation8 + $0x15c4] sm:$0xf0]  ;;  %v16330_v24 = vld [vmem:[#allocation8 + $0xb8c] sm:$0xf]  ;;  %v11676_v32 = vor.u32 %v16202_v21, %v11673_v23 }
 0x143   :  { %v13975_v28 = vld [vmem:[#allocation8 + $0x1988] sm:$0xf]  ;;  %v13464_v36 = vor.u32 %v16658_v27, %v13463_v25  ;;  %6695 = vmatpush.bf16.msrb.mxu0 %v12952_v34  ;;  %v12185_v25 = vld [vmem:[#allocation8 + $0xbc8] sm:$0xf0]  ;;  %v17659_v34 = vpop.f32.mrf.mxu0 }
 0x144   :  { %v16786_v29 = vld [vmem:[#allocation8 + $0x19c4] sm:$0xf0]  ;;  %v12188_v33 = vor.u32 %v16330_v24, %v12185_v25  ;;  %v10905_v23 = vld [vmem:[#allocation8 + $0x1c8] sm:$0xf0] }
 0x145   :  { %v14487_v30 = vld [vmem:[#allocation8 + $0x1d88] sm:$0xf]  ;;  %v13976_v37 = vor.u32 %v16786_v29, %v13975_v28  ;;  %6709 = vmatpush.bf16.msrb.mxu1 %v13464_v36  ;;  %v16458_v28 = vld [vmem:[#allocation8 + $0xf8c] sm:$0xf] }
 0x146   :  { %v16914_v31 = vld [vmem:[#allocation8 + $0x1dc4] sm:$0xf0]  ;;  %v12697_v29 = vld [vmem:[#allocation8 + $0xfc8] sm:$0xf0] }
 0x147   :  { %v12887_v38 = vld [vmem:[#allocation8 + $0x1108] sm:$0xf]  ;;  %v14488_v42 = vor.u32 %v16914_v31, %v14487_v30  ;;  %6723 = vmatpush.bf16.msrb.mxu2 %v13976_v37  ;;  %v11164_v31 = vor.u32 %v16074_v19, %v11161_v20  ;;  %v11097_v36 = vld [vmem:[#allocation8 + $0x348] sm:$0xf0] }
 0x148   :  { %v16514_v40 = vld [vmem:[#allocation8 + $0x1144] sm:$0xf0]  ;;  %v16186_v37 = vld [vmem:[#allocation8 + $0x70c] sm:$0xf]  ;;  %v11100_v49 = vor.u32 %v16058_v35, %v11097_v36 }
 0x149   :  { %v13399_v41 = vld [vmem:[#allocation8 + $0x1508] sm:$0xf]  ;;  %v12888_v53 = vor.u32 %v16514_v40, %v12887_v38  ;;  %6737 = vmatpush.bf16.msrb.mxu3 %v14488_v42  ;;  %v12700_v38 = vor.u32 %v16458_v28, %v12697_v29  ;;  %v11609_v40 = vld [vmem:[#allocation8 + $0x748] sm:$0xf0] }
 0x14a   :  { %v16642_v45 = vld [vmem:[#allocation8 + $0x1544] sm:$0xf0]  ;;  %v12121_v42 = vld [vmem:[#allocation8 + $0xb48] sm:$0xf0] }
 0x14b   :  { %v13911_v46 = vld [vmem:[#allocation8 + $0x1908] sm:$0xf]  ;;  %v13400_v54 = vor.u32 %v16642_v45, %v13399_v41  ;;  %6696 = vmatpush.bf16.msrb.mxu0 %v12888_v53  ;;  %v16314_v41 = vld [vmem:[#allocation8 + $0xb0c] sm:$0xf] }
 0x14c   :  { %v16770_v48 = vld [vmem:[#allocation8 + $0x1944] sm:$0xf0]  ;;  %v16442_v45 = vld [vmem:[#allocation8 + $0xf0c] sm:$0xf] }
 0x14d   :  { %v14423_v50 = vld [vmem:[#allocation8 + $0x1d08] sm:$0xf]  ;;  %v13912_v55 = vor.u32 %v16770_v48, %v13911_v46  ;;  %6710 = vmatpush.bf16.msrb.mxu1 %v13400_v54  ;;  %v12633_v46 = vld [vmem:[#allocation8 + $0xf48] sm:$0xf0]  ;;  %v17661_v48 = vpop.f32.mrf.mxu1 }
 0x14e   :  { %v16898_v51 = vld [vmem:[#allocation8 + $0x1d44] sm:$0xf0]  ;;  %v11033_v53 = vld [vmem:[#allocation8 + $0x2c8] sm:$0xf0] }
 0x14f   :  { %v12823_v56 = vld [vmem:[#allocation8 + $0x1088] sm:$0xf]  ;;  %v14424_v60 = vor.u32 %v16898_v51, %v14423_v50  ;;  %6724 = vmatpush.bf16.msrb.mxu2 %v13912_v55  ;;  %v11612_v50 = vor.u32 %v16186_v37, %v11609_v40  ;;  %v12124_v51 = vor.u32 %v16314_v41, %v12121_v42  ;;  %v16170_v54 = vld [vmem:[#allocation8 + $0x68c] sm:$0xf]  ;;  %v12636_v55 = vor.u32 %v16442_v45, %v12633_v46 }
 0x150   :  { %v16498_v57 = vld [vmem:[#allocation8 + $0x10c4] sm:$0xf0]  ;;  %v16138_v24 = vld [vmem:[#allocation8 + $0x58c] sm:$0xf] }
 0x151   :  { %v13335_v59 = vld [vmem:[#allocation8 + $0x1488] sm:$0xf]  ;;  %v12824_v5 = vor.u32 %v16498_v57, %v12823_v56  ;;  %6738 = vmatpush.bf16.msrb.mxu3 %v14424_v60  ;;  %v11545_v56 = vld [vmem:[#allocation8 + $0x6c8] sm:$0xf0] }
 0x152   :  { %v16626_v61 = vld [vmem:[#allocation8 + $0x14c4] sm:$0xf0]  ;;  %v16298_v57 = vld [vmem:[#allocation8 + $0xa8c] sm:$0xf]  ;;  %v11548_v0 = vor.u32 %v16170_v54, %v11545_v56 }
 0x153   :  { %v13847_v62 = vld [vmem:[#allocation8 + $0x1888] sm:$0xf]  ;;  %v13336_v8 = vor.u32 %v16626_v61, %v13335_v59  ;;  %6697 = vmatpush.bf16.msrb.mxu0 %v12824_v5  ;;  %v12057_v59 = vld [vmem:[#allocation8 + $0xac8] sm:$0xf0] }
 0x154   :  { %v16754_v63 = vld [vmem:[#allocation8 + $0x18c4] sm:$0xf0]  ;;  %v16426_v60 = vld [vmem:[#allocation8 + $0xe8c] sm:$0xf] }
 0x155   :  { %v14359_v2 = vld [vmem:[#allocation8 + $0x1c88] sm:$0xf]  ;;  %v13848_v9 = vor.u32 %v16754_v63, %v13847_v62  ;;  %6711 = vmatpush.bf16.msrb.mxu1 %v13336_v8  ;;  %v12569_v61 = vld [vmem:[#allocation8 + $0xec8] sm:$0xf0]  ;;  %v11036_v62 = vor.u32 %v16042_v52, %v11033_v53  ;;  %v17667_v63 = vpop.f32.mrf.mxu2  ;;  %v17669_v8 = vpop.f32.mrf.mxu3 }
 0x156   :  { %v16882_v3 = vld [vmem:[#allocation8 + $0x1cc4] sm:$0xf0]  ;;  %v10969_v5 = vld [vmem:[#allocation8 + $0x248] sm:$0xf0]  ;;  %v6490_v21 = vpop.f32.mrf.mxu1 }
 0x157   :  { %v12759_v6 = vld [vmem:[#allocation8 + $0x1008] sm:$0xf]  ;;  %v14360_v14 = vor.u32 %v16882_v3, %v14359_v2  ;;  %6725 = vmatpush.bf16.msrb.mxu2 %v13848_v9  ;;  %v12060_v2 = vor.u32 %v16298_v57, %v12057_v59  ;;  %v16026_v3 = vld [vmem:[#allocation8 + $0x20c] sm:$0xf] }
 0x158   :  { %v16482_v7 = vld [vmem:[#allocation8 + $0x1044] sm:$0xf0]  ;;  %v11481_v9 = vld [vmem:[#allocation8 + $0x648] sm:$0xf0] }
 0x159   :  { %v13271_v11 = vld [vmem:[#allocation8 + $0x1408] sm:$0xf]  ;;  %v12760_v22 = vor.u32 %v16482_v7, %v12759_v6  ;;  %6739 = vmatpush.bf16.msrb.mxu3 %v14360_v14  ;;  %v16154_v6 = vld [vmem:[#allocation8 + $0x60c] sm:$0xf]  ;;  %v12572_v7 = vor.u32 %v16426_v60, %v12569_v61 }
 0x15a   :  { %v16610_v12 = vld [vmem:[#allocation8 + $0x1444] sm:$0xf0]  ;;  %v16410_v14 = vld [vmem:[#allocation8 + $0xe0c] sm:$0xf]  ;;  %v11484_v19 = vor.u32 %v16154_v6, %v11481_v9 }
 0x15b   :  { %v13783_v13 = vld [vmem:[#allocation8 + $0x1808] sm:$0xf]  ;;  %v13272_v26 = vor.u32 %v16610_v12, %v13271_v11  ;;  %6698 = vmatpush.bf16.msrb.mxu0 %v12760_v22  ;;  %v16282_v11 = vld [vmem:[#allocation8 + $0xa0c] sm:$0xf] }
 0x15c   :  { %v16738_v15 = vld [vmem:[#allocation8 + $0x1844] sm:$0xf0]  ;;  %v11993_v12 = vld [vmem:[#allocation8 + $0xa48] sm:$0xf0] }
 0x15d   :  { %v14295_v16 = vld [vmem:[#allocation8 + $0x1c08] sm:$0xf]  ;;  %v13784_v27 = vor.u32 %v16738_v15, %v13783_v13  ;;  %6712 = vmatpush.bf16.msrb.mxu1 %v13272_v26  ;;  %v6476_v13 = vpop.f32.mrf.mxu0  ;;  %v12505_v15 = vld [vmem:[#allocation8 + $0xe48] sm:$0xf0]  ;;  %v11996_v20 = vor.u32 %v16282_v11, %v11993_v12  ;;  %v6504_v40 = vpop.f32.mrf.mxu2 }
 0x15e   :  { %v16866_v18 = vld [vmem:[#allocation8 + $0x1c44] sm:$0xf0]  ;;  %6699 = vmatmul.bf16.vlgmr.msrb.gmra.mxu0 %v17633_v39  ;;  %v16010_v22 = vld [vmem:[#allocation8 + $0x18c] sm:$0xf]  ;;  %v12508_v25 = vor.u32 %v16410_v14, %v12505_v15 }
 0x15f   :  { %v14296_v30 = vor.u32 %v16866_v18, %v14295_v16  ;;  %6726 = vmatpush.bf16.msrb.mxu2 %v13784_v27  ;;  %6747 = vmatpush.bf16.msra.mxu0 %v11164_v31  ;;  %v6477_v16 = vadd.f32 %v6476_v13, %v17657_v4  ;;  %v10972_v18 = vor.u32 %v16026_v3, %v10969_v5  ;;  %v11417_v27 = vld [vmem:[#allocation8 + $0x5c8] sm:$0xf0] }
 0x160   :  { %6713 = vmatmul.bf16.vlgmr.msrb.gmra.mxu1 %v17637_v44  ;;  %v16266_v28 = vld [vmem:[#allocation8 + $0x98c] sm:$0xf]  ;;  %v11420_v4 = vor.u32 %v16138_v24, %v11417_v27 }
 0x161   :  { %6740 = vmatpush.bf16.msrb.mxu3 %v14296_v30  ;;  %6761 = vmatpush.bf16.msra.mxu1 %v11676_v32  ;;  %v6491_v26 = vadd.f32 %v6490_v21, %v6477_v16  ;;  %v11929_v29 = vld [vmem:[#allocation8 + $0x9c8] sm:$0xf0]  ;;  %v10908_v32 = vor.u32 %v16010_v22, %v10905_v23 }
 0x162   :  { %6727 = vmatmul.bf16.vlgmr.msrb.gmra.mxu2 %v17635_v43  ;;  %v16394_v30 = vld [vmem:[#allocation8 + $0xd8c] sm:$0xf] }
 0x163   :  { %6775 = vmatpush.bf16.msra.mxu2 %v12188_v33  ;;  %6748 = vmatpush.bf16.msra.mxu0 %v11100_v49  ;;  %v12441_v31 = vld [vmem:[#allocation8 + $0xdc8] sm:$0xf0]  ;;  %v11932_v33 = vor.u32 %v16266_v28, %v11929_v29  ;;  %v6505_v46 = vadd.f32 %v6504_v40, %v6491_v26 }
 0x164   :  { %6741 = vmatmul.bf16.vlgmr.msrb.gmra.mxu3 %v17639_v47  ;;  %v15994_v35 = vld [vmem:[#allocation8 + $0x10c] sm:$0xf] }
 0x165   :  { %6789 = vmatpush.bf16.msra.mxu3 %v12700_v38  ;;  %6762 = vmatpush.bf16.msra.mxu1 %v11612_v50  ;;  %v10841_v36 = vld [vmem:[#allocation8 + $0x148] sm:$0xf0]  ;;  %v12444_v38 = vor.u32 %v16394_v30, %v12441_v31 }
 0x166   :  { %v16122_v37 = vld [vmem:[#allocation8 + $0x50c] sm:$0xf]  ;;  %v10844_v52 = vor.u32 %v15994_v35, %v10841_v36 }
 0x167   :  { %6776 = vmatpush.bf16.msra.mxu2 %v12124_v51  ;;  %6749 = vmatpush.bf16.msra.mxu0 %v11036_v62  ;;  %v11353_v41 = vld [vmem:[#allocation8 + $0x548] sm:$0xf0]  ;;  %v6518_v51 = vpop.f32.mrf.mxu3 }
 0x168   :  { %v16250_v42 = vld [vmem:[#allocation8 + $0x90c] sm:$0xf]  ;;  %v17672_v53 = vadd.f32 %v6518_v51, %v6505_v46  ;;  %v11356_v54 = vor.u32 %v16122_v37, %v11353_v41 }
 0x169   :  { %6790 = vmatpush.bf16.msra.mxu3 %v12636_v55  ;;  %6763 = vmatpush.bf16.msra.mxu1 %v11548_v0  ;;  %v11865_v45 = vld [vmem:[#allocation8 + $0x948] sm:$0xf0] }
 0x16a   :  { %v16378_v49 = vld [vmem:[#allocation8 + $0xd0c] sm:$0xf]  ;;  %v11868_v55 = vor.u32 %v16250_v42, %v11865_v45 }
 0x16b   :  { %6777 = vmatpush.bf16.msra.mxu2 %v12060_v2  ;;  %6750 = vmatpush.bf16.msra.mxu0 %v10972_v18  ;;  %v12377_v50 = vld [vmem:[#allocation8 + $0xd48] sm:$0xf0] }
 0x16c   :  { %v15978_v56 = vld [vmem:[#allocation8 + $0x8c] sm:$0xf]  ;;  %v12380_v60 = vor.u32 %v16378_v49, %v12377_v50  ;;  %v17674_v49 = vpop.f32.mrf.mxu0  ;;  %v17676_v50 = vpop.f32.mrf.mxu1 }
 0x16d   :  { %6791 = vmatpush.bf16.msra.mxu3 %v12572_v7  ;;  %6764 = vmatpush.bf16.msra.mxu1 %v11484_v19  ;;  %v10777_v57 = vld [vmem:[#allocation8 + $0xc8] sm:$0xf0] }
 0x16e   :  { %v16106_v59 = vld [vmem:[#allocation8 + $0x48c] sm:$0xf]  ;;  %v10780_v5 = vor.u32 %v15978_v56, %v10777_v57 }
 0x16f   :  { %6778 = vmatpush.bf16.msra.mxu2 %v11996_v20  ;;  %6751 = vmatpush.bf16.msra.mxu0 %v10908_v32  ;;  %v11289_v61 = vld [vmem:[#allocation8 + $0x4c8] sm:$0xf0] }
 0x170   :  { %v16234_v62 = vld [vmem:[#allocation8 + $0x88c] sm:$0xf]  ;;  %v11292_v9 = vor.u32 %v16106_v59, %v11289_v61 }
 0x171   :  { %6792 = vmatpush.bf16.msra.mxu3 %v12508_v25  ;;  %6765 = vmatpush.bf16.msra.mxu1 %v11420_v4  ;;  %v11801_v0 = vld [vmem:[#allocation8 + $0x8c8] sm:$0xf0] }
 0x172   :  { %v16362_v2 = vld [vmem:[#allocation8 + $0xc8c] sm:$0xf]  ;;  %v11804_v11 = vor.u32 %v16234_v62, %v11801_v0 }
 0x173   :  { %6779 = vmatpush.bf16.msra.mxu2 %v11932_v33  ;;  %v12313_v3 = vld [vmem:[#allocation8 + $0xcc8] sm:$0xf0]  ;;  %6752 = vmatpush.bf16.msra.mxu0 %v10844_v52 }
 0x174   :  { %v15962_v6 = vld [vmem:[#allocation8 + $0xc] sm:$0xf]  ;;  %v12316_v15 = vor.u32 %v16362_v2, %v12313_v3 }
 0x175   :  { %6793 = vmatpush.bf16.msra.mxu3 %v12444_v38  ;;  %v10713_v7 = vld [vmem:[#allocation8 + $0x48] sm:$0xf0]  ;;  %6766 = vmatpush.bf16.msra.mxu1 %v11356_v54 }
 0x176   :  { %v16090_v12 = vld [vmem:[#allocation8 + $0x40c] sm:$0xf]  ;;  %v10716_v23 = vor.u32 %v15962_v6, %v10713_v7 }
 0x177   :  { %6780 = vmatpush.bf16.msra.mxu2 %v11868_v55  ;;  %v11225_v13 = vld [vmem:[#allocation8 + $0x448] sm:$0xf0]  ;;  %6753 = vmatpush.bf16.msra.mxu0 %v10780_v5 }
 0x178   :  { %v16218_v14 = vld [vmem:[#allocation8 + $0x80c] sm:$0xf]  ;;  %v11228_v27 = vor.u32 %v16090_v12, %v11225_v13  ;;  %v17682_v12 = vpop.f32.mrf.mxu2 }
 0x179   :  { %6794 = vmatpush.bf16.msra.mxu3 %v12380_v60  ;;  %v11737_v16 = vld [vmem:[#allocation8 + $0x848] sm:$0xf0]  ;;  %6767 = vmatpush.bf16.msra.mxu1 %v11292_v9 }
 0x17a   :  { %v16346_v18 = vld [vmem:[#allocation8 + $0xc0c] sm:$0xf]  ;;  %v11740_v28 = vor.u32 %v16218_v14, %v11737_v16 }
 0x17b   :  { %v12249_v19 = vld [vmem:[#allocation8 + $0xc48] sm:$0xf0]  ;;  %6781 = vmatpush.bf16.msra.mxu2 %v11804_v11  ;;  %6754 = vmatpush.bf16.msra.mxu0 %v10716_v23  ;;  %v6546_v23 = vpop.f32.mrf.mxu1 }
 0x17c   :  { %v16586_v20 = vld [vmem:[#allocation8 + $0x138c] sm:$0xf]  ;;  %v12252_v31 = vor.u32 %v16346_v18, %v12249_v19  ;;  %v17684_v18 = vpop.f32.mrf.mxu3 }
 0x17d   :  { %v13209_v21 = vld [vmem:[#allocation8 + $0x13c8] sm:$0xf0]  ;;  %6795 = vmatpush.bf16.msra.mxu3 %v12316_v15  ;;  %6768 = vmatpush.bf16.msra.mxu1 %v11228_v27 }
 0x17e   :  { %v16714_v22 = vld [vmem:[#allocation8 + $0x178c] sm:$0xf]  ;;  %v13212_v32 = vor.u32 %v16586_v20, %v13209_v21  ;;  %6755 = vmatmul.bf16.vlgmr.msra.gmra.mxu0 %v17621_v58 }
 0x17f   :  { %v13721_v24 = vld [vmem:[#allocation8 + $0x17c8] sm:$0xf0]  ;;  %6782 = vmatpush.bf16.msra.mxu2 %v11740_v28 }
 0x180   :  { %v16842_v25 = vld [vmem:[#allocation8 + $0x1b8c] sm:$0xf]  ;;  %v13724_v4 = vor.u32 %v16714_v22, %v13721_v24  ;;  %6803 = vmatpush.bf16.msrb.mxu0 %v13212_v32  ;;  %6769 = vmatmul.bf16.vlgmr.msra.gmra.mxu1 %v17627_v10  ;;  %v6532_v22 = vpop.f32.mrf.mxu0 }
 0x181   :  { %v14233_v26 = vld [vmem:[#allocation8 + $0x1bc8] sm:$0xf0]  ;;  %6796 = vmatpush.bf16.msra.mxu3 %v12252_v31 }
 0x182   :  { %v16970_v29 = vld [vmem:[#allocation8 + $0x1f8c] sm:$0xf]  ;;  %v14236_v33 = vor.u32 %v16842_v25, %v14233_v26  ;;  %6817 = vmatpush.bf16.msrb.mxu1 %v13724_v4  ;;  %6783 = vmatmul.bf16.vlgmr.msra.gmra.mxu2 %v17623_v1 }
 0x183   :  { %v14745_v30 = vld [vmem:[#allocation8 + $0x1fc8] sm:$0xf0] }
 0x184   :  { %v16570_v35 = vld [vmem:[#allocation8 + $0x130c] sm:$0xf]  ;;  %v14748_v38 = vor.u32 %v16970_v29, %v14745_v30  ;;  %6831 = vmatpush.bf16.msrb.mxu2 %v14236_v33  ;;  %6797 = vmatmul.bf16.vlgmr.msra.gmra.mxu3 %v17629_v17  ;;  %v6547_v29 = vadd.f32 %v6546_v23, %v6532_v22 }
 0x185   :  { %v13145_v36 = vld [vmem:[#allocation8 + $0x1348] sm:$0xf0] }
 0x186   :  { %v16698_v37 = vld [vmem:[#allocation8 + $0x170c] sm:$0xf]  ;;  %v13148_v51 = vor.u32 %v16570_v35, %v13145_v36  ;;  %6845 = vmatpush.bf16.msrb.mxu3 %v14748_v38 }
 0x187   :  { %v13657_v40 = vld [vmem:[#allocation8 + $0x1748] sm:$0xf0] }
 0x188   :  { %v16826_v41 = vld [vmem:[#allocation8 + $0x1b0c] sm:$0xf]  ;;  %v13660_v52 = vor.u32 %v16698_v37, %v13657_v40  ;;  %6804 = vmatpush.bf16.msrb.mxu0 %v13148_v51 }
 0x189   :  { %v14169_v42 = vld [vmem:[#allocation8 + $0x1b48] sm:$0xf0] }
 0x18a   :  { %v16954_v45 = vld [vmem:[#allocation8 + $0x1f0c] sm:$0xf]  ;;  %v14172_v54 = vor.u32 %v16826_v41, %v14169_v42  ;;  %6818 = vmatpush.bf16.msrb.mxu1 %v13660_v52 }
 0x18b   :  { %v14681_v46 = vld [vmem:[#allocation8 + $0x1f48] sm:$0xf0] }
 0x18c   :  { %v16554_v55 = vld [vmem:[#allocation8 + $0x128c] sm:$0xf]  ;;  %v14684_v59 = vor.u32 %v16954_v45, %v14681_v46  ;;  %6832 = vmatpush.bf16.msrb.mxu2 %v14172_v54  ;;  %v6560_v54 = vpop.f32.mrf.mxu2 }
 0x18d   :  { %v13081_v56 = vld [vmem:[#allocation8 + $0x12c8] sm:$0xf0] }
 0x18e   :  { %v16682_v57 = vld [vmem:[#allocation8 + $0x168c] sm:$0xf]  ;;  %v13084_v3 = vor.u32 %v16554_v55, %v13081_v56  ;;  %6846 = vmatpush.bf16.msrb.mxu3 %v14684_v59 }
 0x18f   :  { %v13593_v60 = vld [vmem:[#allocation8 + $0x16c8] sm:$0xf0] }
 0x190   :  { %v16810_v61 = vld [vmem:[#allocation8 + $0x1a8c] sm:$0xf]  ;;  %v13596_v5 = vor.u32 %v16682_v57, %v13593_v60  ;;  %6805 = vmatpush.bf16.msrb.mxu0 %v13084_v3  ;;  %v6561_v57 = vadd.f32 %v6560_v54, %v6547_v29  ;;  %v6574_v60 = vpop.f32.mrf.mxu3  ;;  %v11167_v29 = vld [vmem:[#allocation8 + $0x390] sm:$0xf] }
 0x191   :  { %v14105_v62 = vld [vmem:[#allocation8 + $0x1ac8] sm:$0xf0]  ;;  %v16067_v54 = vld [vmem:[#allocation8 + $0x34c] sm:$0xf0] }
 0x192   :  { %v16938_v0 = vld [vmem:[#allocation8 + $0x1e8c] sm:$0xf]  ;;  %v14108_v6 = vor.u32 %v16810_v61, %v14105_v62  ;;  %6819 = vmatpush.bf16.msrb.mxu1 %v13596_v5  ;;  %v17686_v5 = vadd.f32 %v6574_v60, %v6561_v57  ;;  %v16195_v57 = vld [vmem:[#allocation8 + $0x74c] sm:$0xf0] }
 0x193   :  { %v14617_v2 = vld [vmem:[#allocation8 + $0x1ec8] sm:$0xf0]  ;;  %v16323_v60 = vld [vmem:[#allocation8 + $0xb4c] sm:$0xf0] }
 0x194   :  { %v16538_v7 = vld [vmem:[#allocation8 + $0x120c] sm:$0xf]  ;;  %v14620_v13 = vor.u32 %v16938_v0, %v14617_v2  ;;  %6833 = vmatpush.bf16.msrb.mxu2 %v14108_v6 }
 0x195   :  { %v13017_v9 = vld [vmem:[#allocation8 + $0x1248] sm:$0xf0] }
 0x196   :  { %v16666_v11 = vld [vmem:[#allocation8 + $0x160c] sm:$0xf]  ;;  %v13020_v21 = vor.u32 %v16538_v7, %v13017_v9  ;;  %6847 = vmatpush.bf16.msrb.mxu3 %v14620_v13 }
 0x197   :  { %v13529_v14 = vld [vmem:[#allocation8 + $0x1648] sm:$0xf0] }
 0x198   :  { %v16794_v15 = vld [vmem:[#allocation8 + $0x1a0c] sm:$0xf]  ;;  %v13532_v24 = vor.u32 %v16666_v11, %v13529_v14  ;;  %6806 = vmatpush.bf16.msrb.mxu0 %v13020_v21 }
 0x199   :  { %v14041_v16 = vld [vmem:[#allocation8 + $0x1a48] sm:$0xf0] }
 0x19a   :  { %v16922_v19 = vld [vmem:[#allocation8 + $0x1e0c] sm:$0xf]  ;;  %v14044_v25 = vor.u32 %v16794_v15, %v14041_v16  ;;  %6820 = vmatpush.bf16.msrb.mxu1 %v13532_v24 }
 0x19b   :  { %v14553_v20 = vld [vmem:[#allocation8 + $0x1e48] sm:$0xf0] }
 0x19c   :  { %v16522_v26 = vld [vmem:[#allocation8 + $0x118c] sm:$0xf]  ;;  %v14556_v30 = vor.u32 %v16922_v19, %v14553_v20  ;;  %6834 = vmatpush.bf16.msrb.mxu2 %v14044_v25 }
 0x19d   :  { %v12953_v27 = vld [vmem:[#allocation8 + $0x11c8] sm:$0xf0] }
 0x19e   :  { %v16650_v28 = vld [vmem:[#allocation8 + $0x158c] sm:$0xf]  ;;  %v12956_v36 = vor.u32 %v16522_v26, %v12953_v27  ;;  %6848 = vmatpush.bf16.msrb.mxu3 %v14556_v30  ;;  %v16083_v30 = vld [vmem:[#allocation8 + $0x3cc] sm:$0xf0] }
 0x19f   :  { %v13465_v31 = vld [vmem:[#allocation8 + $0x15c8] sm:$0xf0] }
 0x1a0   :  { %v16778_v32 = vld [vmem:[#allocation8 + $0x198c] sm:$0xf]  ;;  %v13468_v37 = vor.u32 %v16650_v28, %v13465_v31  ;;  %6807 = vmatpush.bf16.msrb.mxu0 %v12956_v36  ;;  %v11679_v31 = vld [vmem:[#allocation8 + $0x790] sm:$0xf] }
 0x1a1   :  { %v13977_v4 = vld [vmem:[#allocation8 + $0x19c8] sm:$0xf0] }
 0x1a2   :  { %v16906_v33 = vld [vmem:[#allocation8 + $0x1d8c] sm:$0xf]  ;;  %v13980_v38 = vor.u32 %v16778_v32, %v13977_v4  ;;  %6821 = vmatpush.bf16.msrb.mxu1 %v13468_v37  ;;  %v16211_v4 = vld [vmem:[#allocation8 + $0x7cc] sm:$0xf0] }
 0x1a3   :  { %v14489_v35 = vld [vmem:[#allocation8 + $0x1dc8] sm:$0xf0] }
 0x1a4   :  { %v16506_v40 = vld [vmem:[#allocation8 + $0x110c] sm:$0xf]  ;;  %v14492_v45 = vor.u32 %v16906_v33, %v14489_v35  ;;  %6835 = vmatpush.bf16.msrb.mxu2 %v13980_v38  ;;  %v12191_v33 = vld [vmem:[#allocation8 + $0xb90] sm:$0xf] }
 0x1a5   :  { %v12889_v41 = vld [vmem:[#allocation8 + $0x1148] sm:$0xf0]  ;;  %v16339_v35 = vld [vmem:[#allocation8 + $0xbcc] sm:$0xf0] }
 0x1a6   :  { %v16634_v42 = vld [vmem:[#allocation8 + $0x150c] sm:$0xf]  ;;  %v12892_v59 = vor.u32 %v16506_v40, %v12889_v41  ;;  %6849 = vmatpush.bf16.msrb.mxu3 %v14492_v45  ;;  %v12703_v38 = vld [vmem:[#allocation8 + $0xf90] sm:$0xf]  ;;  %v11680_v45 = vor.u32 %v16211_v4, %v11679_v31 }
 0x1a7   :  { %v13401_v46 = vld [vmem:[#allocation8 + $0x1548] sm:$0xf0]  ;;  %v16467_v40 = vld [vmem:[#allocation8 + $0xfcc] sm:$0xf0] }
 0x1a8   :  { %v16762_v51 = vld [vmem:[#allocation8 + $0x190c] sm:$0xf]  ;;  %v13404_v61 = vor.u32 %v16634_v42, %v13401_v46  ;;  %6808 = vmatpush.bf16.msrb.mxu0 %v12892_v59  ;;  %v11168_v42 = vor.u32 %v16083_v30, %v11167_v29  ;;  %v12192_v46 = vor.u32 %v16339_v35, %v12191_v33  ;;  %v12127_v59 = vld [vmem:[#allocation8 + $0xb10] sm:$0xf]  ;;  %v17698_v29 = vpop.f32.mrf.mxu3 }
 0x1a9   :  { %v13913_v52 = vld [vmem:[#allocation8 + $0x1948] sm:$0xf0]  ;;  %v16163_v30 = vld [vmem:[#allocation8 + $0x64c] sm:$0xf0] }
 0x1aa   :  { %v16890_v55 = vld [vmem:[#allocation8 + $0x1d0c] sm:$0xf]  ;;  %v13916_v62 = vor.u32 %v16762_v51, %v13913_v52  ;;  %6822 = vmatpush.bf16.msrb.mxu1 %v13404_v61  ;;  %v17688_v51 = vpop.f32.mrf.mxu0  ;;  %v11103_v52 = vld [vmem:[#allocation8 + $0x310] sm:$0xf] }
 0x1ab   :  { %v14425_v56 = vld [vmem:[#allocation8 + $0x1d48] sm:$0xf0]  ;;  %v12639_v61 = vld [vmem:[#allocation8 + $0xf10] sm:$0xf] }
 0x1ac   :  { %v16490_v0 = vld [vmem:[#allocation8 + $0x108c] sm:$0xf]  ;;  %v14428_v6 = vor.u32 %v16890_v55, %v14425_v56  ;;  %6836 = vmatpush.bf16.msrb.mxu2 %v13916_v62  ;;  %v11615_v55 = vld [vmem:[#allocation8 + $0x710] sm:$0xf]  ;;  %v12704_v56 = vor.u32 %v16467_v40, %v12703_v38 }
 0x1ad   :  { %v12825_v2 = vld [vmem:[#allocation8 + $0x10c8] sm:$0xf0]  ;;  %v16451_v62 = vld [vmem:[#allocation8 + $0xf4c] sm:$0xf0] }
 0x1ae   :  { %v16618_v3 = vld [vmem:[#allocation8 + $0x148c] sm:$0xf]  ;;  %v12828_v15 = vor.u32 %v16490_v0, %v12825_v2  ;;  %6850 = vmatpush.bf16.msrb.mxu3 %v14428_v6  ;;  %v17690_v0 = vpop.f32.mrf.mxu1  ;;  %v11104_v2 = vor.u32 %v16067_v54, %v11103_v52  ;;  %v12128_v6 = vor.u32 %v16323_v60, %v12127_v59  ;;  %v11999_v31 = vld [vmem:[#allocation8 + $0xa10] sm:$0xf] }
 0x1af   :  { %v13337_v7 = vld [vmem:[#allocation8 + $0x14c8] sm:$0xf0]  ;;  %v12511_v33 = vld [vmem:[#allocation8 + $0xe10] sm:$0xf] }
 0x1b0   :  { %v16746_v9 = vld [vmem:[#allocation8 + $0x188c] sm:$0xf]  ;;  %v13340_v20 = vor.u32 %v16618_v3, %v13337_v7  ;;  %6809 = vmatpush.bf16.msrb.mxu0 %v12828_v15  ;;  %v11616_v3 = vor.u32 %v16195_v57, %v11615_v55  ;;  %v11039_v7 = vld [vmem:[#allocation8 + $0x290] sm:$0xf] }
 0x1b1   :  { %v13849_v11 = vld [vmem:[#allocation8 + $0x18c8] sm:$0xf0]  ;;  %v12063_v15 = vld [vmem:[#allocation8 + $0xa90] sm:$0xf] }
 0x1b2   :  { %v16874_v13 = vld [vmem:[#allocation8 + $0x1c8c] sm:$0xf]  ;;  %v13852_v21 = vor.u32 %v16746_v9, %v13849_v11  ;;  %6823 = vmatpush.bf16.msrb.mxu1 %v13340_v20  ;;  %v16051_v9 = vld [vmem:[#allocation8 + $0x2cc] sm:$0xf0]  ;;  %v6588_v4 = vpop.f32.mrf.mxu0 }
 0x1b3   :  { %v14361_v14 = vld [vmem:[#allocation8 + $0x1cc8] sm:$0xf0]  ;;  %v11551_v11 = vld [vmem:[#allocation8 + $0x690] sm:$0xf] }
 0x1b4   :  { %v16474_v16 = vld [vmem:[#allocation8 + $0x100c] sm:$0xf]  ;;  %v14364_v25 = vor.u32 %v16874_v13, %v14361_v14  ;;  %6837 = vmatpush.bf16.msrb.mxu2 %v13852_v21  ;;  %v12640_v13 = vor.u32 %v16451_v62, %v12639_v61  ;;  %v16179_v14 = vld [vmem:[#allocation8 + $0x6cc] sm:$0xf0]  ;;  %v11040_v21 = vor.u32 %v16051_v9, %v11039_v7 }
 0x1b5   :  { %v12761_v19 = vld [vmem:[#allocation8 + $0x1048] sm:$0xf0]  ;;  %v16435_v20 = vld [vmem:[#allocation8 + $0xecc] sm:$0xf0] }
 0x1b6   :  { %v16602_v22 = vld [vmem:[#allocation8 + $0x140c] sm:$0xf]  ;;  %v12764_v32 = vor.u32 %v16474_v16, %v12761_v19  ;;  %6851 = vmatpush.bf16.msrb.mxu3 %v14364_v25  ;;  %v16307_v16 = vld [vmem:[#allocation8 + $0xacc] sm:$0xf0] }
 0x1b7   :  { %v13273_v23 = vld [vmem:[#allocation8 + $0x1448] sm:$0xf0]  ;;  %v12575_v19 = vld [vmem:[#allocation8 + $0xe90] sm:$0xf] }
 0x1b8   :  { %v16730_v24 = vld [vmem:[#allocation8 + $0x180c] sm:$0xf]  ;;  %v13276_v36 = vor.u32 %v16602_v22, %v13273_v23  ;;  %6810 = vmatpush.bf16.msrb.mxu0 %v12764_v32  ;;  %v17696_v22 = vpop.f32.mrf.mxu2  ;;  %v11552_v23 = vor.u32 %v16179_v14, %v11551_v11  ;;  %v10975_v25 = vld [vmem:[#allocation8 + $0x210] sm:$0xf] }
 0x1b9   :  { %v13785_v26 = vld [vmem:[#allocation8 + $0x1848] sm:$0xf0]  ;;  %v16291_v32 = vld [vmem:[#allocation8 + $0xa4c] sm:$0xf0] }
 0x1ba   :  { %v16858_v27 = vld [vmem:[#allocation8 + $0x1c0c] sm:$0xf]  ;;  %v13788_v37 = vor.u32 %v16730_v24, %v13785_v26  ;;  %6824 = vmatpush.bf16.msrb.mxu1 %v13276_v36  ;;  %v12064_v24 = vor.u32 %v16307_v16, %v12063_v15  ;;  %v16035_v26 = vld [vmem:[#allocation8 + $0x24c] sm:$0xf0]  ;;  %v6589_v36 = vadd.f32 %v6588_v4, %v17686_v5  ;;  %v12000_v40 = vor.u32 %v16291_v32, %v11999_v31 }
 0x1bb   :  { %v14297_v28 = vld [vmem:[#allocation8 + $0x1c48] sm:$0xf0]  ;;  %6811 = vmatmul.bf16.vlgmr.msrb.gmra.mxu0 %v17633_v39  ;;  %v16419_v35 = vld [vmem:[#allocation8 + $0xe4c] sm:$0xf0] }
 0x1bc   :  { %v14300_v41 = vor.u32 %v16858_v27, %v14297_v28  ;;  %6838 = vmatpush.bf16.msrb.mxu2 %v13788_v37  ;;  %6859 = vmatpush.bf16.msra.mxu0 %v11168_v42  ;;  %v11487_v27 = vld [vmem:[#allocation8 + $0x610] sm:$0xf]  ;;  %v12576_v28 = vor.u32 %v16435_v20, %v12575_v19  ;;  %v10976_v37 = vor.u32 %v16035_v26, %v10975_v25  ;;  %v6630_v20 = vpop.f32.mrf.mxu3 }
 0x1bd   :  { %6825 = vmatmul.bf16.vlgmr.msrb.gmra.mxu1 %v17637_v44  ;;  %v11488_v38 = vor.u32 %v16163_v30, %v11487_v27  ;;  %v10911_v42 = vld [vmem:[#allocation8 + $0x190] sm:$0xf]  ;;  %v12512_v52 = vor.u32 %v16419_v35, %v12511_v33 }
 0x1be   :  { %6852 = vmatpush.bf16.msrb.mxu3 %v14300_v41  ;;  %6873 = vmatpush.bf16.msra.mxu1 %v11680_v45  ;;  %v6602_v41 = vpop.f32.mrf.mxu1  ;;  %v16019_v45 = vld [vmem:[#allocation8 + $0x1cc] sm:$0xf0] }
 0x1bf   :  { %6839 = vmatmul.bf16.vlgmr.msrb.gmra.mxu2 %v17635_v43  ;;  %v6603_v54 = vadd.f32 %v6602_v41, %v6589_v36  ;;  %v16147_v55 = vld [vmem:[#allocation8 + $0x5cc] sm:$0xf0]  ;;  %v10912_v61 = vor.u32 %v16019_v45, %v10911_v42 }
 0x1c0   :  { %6887 = vmatpush.bf16.msra.mxu2 %v12192_v46  ;;  %6860 = vmatpush.bf16.msra.mxu0 %v11104_v2  ;;  %v11423_v46 = vld [vmem:[#allocation8 + $0x590] sm:$0xf]  ;;  %v6616_v9 = vpop.f32.mrf.mxu2 }
 0x1c1   :  { %6853 = vmatmul.bf16.vlgmr.msrb.gmra.mxu3 %v17639_v47  ;;  %v16275_v57 = vld [vmem:[#allocation8 + $0x9cc] sm:$0xf0]  ;;  %v11424_v5 = vor.u32 %v16147_v55, %v11423_v46  ;;  %v6617_v15 = vadd.f32 %v6616_v9, %v6603_v54 }
 0x1c2   :  { %6901 = vmatpush.bf16.msra.mxu3 %v12704_v56  ;;  %6874 = vmatpush.bf16.msra.mxu1 %v11616_v3  ;;  %v11935_v56 = vld [vmem:[#allocation8 + $0x990] sm:$0xf] }
 0x1c3   :  { %v12447_v59 = vld [vmem:[#allocation8 + $0xd90] sm:$0xf]  ;;  %v11936_v62 = vor.u32 %v16275_v57, %v11935_v56 }
 0x1c4   :  { %6888 = vmatpush.bf16.msra.mxu2 %v12128_v6  ;;  %6861 = vmatpush.bf16.msra.mxu0 %v11040_v21  ;;  %v16403_v60 = vld [vmem:[#allocation8 + $0xdcc] sm:$0xf0] }
 0x1c5   :  { %v10847_v2 = vld [vmem:[#allocation8 + $0x110] sm:$0xf]  ;;  %v12448_v7 = vor.u32 %v16403_v60, %v12447_v59 }
 0x1c6   :  { %6902 = vmatpush.bf16.msra.mxu3 %v12640_v13  ;;  %6875 = vmatpush.bf16.msra.mxu1 %v11552_v23  ;;  %v16003_v3 = vld [vmem:[#allocation8 + $0x14c] sm:$0xf0]  ;;  %v17701_v23 = vadd.f32 %v6630_v20, %v6617_v15 }
 0x1c7   :  { %v11359_v6 = vld [vmem:[#allocation8 + $0x510] sm:$0xf]  ;;  %v10848_v21 = vor.u32 %v16003_v3, %v10847_v2 }
 0x1c8   :  { %6889 = vmatpush.bf16.msra.mxu2 %v12064_v24  ;;  %6862 = vmatpush.bf16.msra.mxu0 %v10976_v37  ;;  %v16131_v11 = vld [vmem:[#allocation8 + $0x54c] sm:$0xf0] }
 0x1c9   :  { %v11871_v13 = vld [vmem:[#allocation8 + $0x910] sm:$0xf]  ;;  %v11360_v24 = vor.u32 %v16131_v11, %v11359_v6 }
 0x1ca   :  { %6903 = vmatpush.bf16.msra.mxu3 %v12576_v28  ;;  %6876 = vmatpush.bf16.msra.mxu1 %v11488_v38  ;;  %v16259_v14 = vld [vmem:[#allocation8 + $0x94c] sm:$0xf0] }
 0x1cb   :  { %v12383_v16 = vld [vmem:[#allocation8 + $0xd10] sm:$0xf]  ;;  %v11872_v25 = vor.u32 %v16259_v14, %v11871_v13 }
 0x1cc   :  { %6890 = vmatpush.bf16.msra.mxu2 %v12000_v40  ;;  %v16387_v19 = vld [vmem:[#allocation8 + $0xd4c] sm:$0xf0]  ;;  %6863 = vmatpush.bf16.msra.mxu0 %v10912_v61 }
 0x1cd   :  { %v10783_v26 = vld [vmem:[#allocation8 + $0x90] sm:$0xf]  ;;  %v12384_v30 = vor.u32 %v16387_v19, %v12383_v16 }
 0x1ce   :  { %6904 = vmatpush.bf16.msra.mxu3 %v12512_v52  ;;  %6877 = vmatpush.bf16.msra.mxu1 %v11424_v5  ;;  %v15987_v27 = vld [vmem:[#allocation8 + $0xcc] sm:$0xf0] }
 0x1cf   :  { %v11295_v28 = vld [vmem:[#allocation8 + $0x490] sm:$0xf]  ;;  %v10784_v36 = vor.u32 %v15987_v27, %v10783_v26 }
 0x1d0   :  { %6891 = vmatpush.bf16.msra.mxu2 %v11936_v62  ;;  %v16115_v31 = vld [vmem:[#allocation8 + $0x4cc] sm:$0xf0]  ;;  %6864 = vmatpush.bf16.msra.mxu0 %v10848_v21 }
 0x1d1   :  { %v11807_v32 = vld [vmem:[#allocation8 + $0x890] sm:$0xf]  ;;  %v11296_v40 = vor.u32 %v16115_v31, %v11295_v28  ;;  %v17705_v31 = vpop.f32.mrf.mxu1 }
 0x1d2   :  { %6905 = vmatpush.bf16.msra.mxu3 %v12448_v7  ;;  %v16243_v4 = vld [vmem:[#allocation8 + $0x8cc] sm:$0xf0]  ;;  %6878 = vmatpush.bf16.msra.mxu1 %v11360_v24 }
 0x1d3   :  { %v12319_v33 = vld [vmem:[#allocation8 + $0xc90] sm:$0xf]  ;;  %v11808_v41 = vor.u32 %v16243_v4, %v11807_v32 }
 0x1d4   :  { %v16371_v35 = vld [vmem:[#allocation8 + $0xccc] sm:$0xf0]  ;;  %6892 = vmatpush.bf16.msra.mxu2 %v11872_v25  ;;  %6865 = vmatpush.bf16.msra.mxu0 %v10784_v36 }
 0x1d5   :  { %v10719_v37 = vld [vmem:[#allocation8 + $0x10] sm:$0xf]  ;;  %v12320_v52 = vor.u32 %v16371_v35, %v12319_v33 }
 0x1d6   :  { %v15971_v38 = vld [vmem:[#allocation8 + $0x4c] sm:$0xf0]  ;;  %6906 = vmatpush.bf16.msra.mxu3 %v12384_v30  ;;  %6879 = vmatpush.bf16.msra.mxu1 %v11296_v40  ;;  %v17703_v30 = vpop.f32.mrf.mxu0 }
 0x1d7   :  { %v11231_v42 = vld [vmem:[#allocation8 + $0x410] sm:$0xf]  ;;  %v10720_v61 = vor.u32 %v15971_v38, %v10719_v37 }
 0x1d8   :  { %v16099_v45 = vld [vmem:[#allocation8 + $0x44c] sm:$0xf0]  ;;  %6893 = vmatpush.bf16.msra.mxu2 %v11808_v41 }
 0x1d9   :  { %v11743_v46 = vld [vmem:[#allocation8 + $0x810] sm:$0xf]  ;;  %v11232_v3 = vor.u32 %v16099_v45, %v11231_v42  ;;  %6866 = vmatpush.bf16.msra.mxu0 %v10720_v61 }
 0x1da   :  { %v16227_v54 = vld [vmem:[#allocation8 + $0x84c] sm:$0xf0]  ;;  %6907 = vmatpush.bf16.msra.mxu3 %v12320_v52 }
 0x1db   :  { %v12255_v55 = vld [vmem:[#allocation8 + $0xc10] sm:$0xf]  ;;  %v11744_v6 = vor.u32 %v16227_v54, %v11743_v46  ;;  %6880 = vmatpush.bf16.msra.mxu1 %v11232_v3  ;;  %v17713_v3 = vpop.f32.mrf.mxu3 }
 0x1dc   :  { %v16355_v56 = vld [vmem:[#allocation8 + $0xc4c] sm:$0xf0]  ;;  %6867 = vmatmul.bf16.vlgmr.msra.gmra.mxu0 %v17621_v58 }
 0x1dd   :  { %v13215_v57 = vld [vmem:[#allocation8 + $0x1390] sm:$0xf]  ;;  %v12256_v11 = vor.u32 %v16355_v56, %v12255_v55  ;;  %6894 = vmatpush.bf16.msra.mxu2 %v11744_v6 }
 0x1de   :  { %v16595_v59 = vld [vmem:[#allocation8 + $0x13cc] sm:$0xf0]  ;;  %6881 = vmatmul.bf16.vlgmr.msra.gmra.mxu1 %v17627_v10 }
 0x1df   :  { %v13727_v60 = vld [vmem:[#allocation8 + $0x1790] sm:$0xf]  ;;  %v13216_v13 = vor.u32 %v16595_v59, %v13215_v57  ;;  %6908 = vmatpush.bf16.msra.mxu3 %v12256_v11  ;;  %v6644_v11 = vpop.f32.mrf.mxu0 }
 0x1e0   :  { %v16723_v5 = vld [vmem:[#allocation8 + $0x17cc] sm:$0xf0]  ;;  %6895 = vmatmul.bf16.vlgmr.msra.gmra.mxu2 %v17623_v1 }
 0x1e1   :  { %v14239_v62 = vld [vmem:[#allocation8 + $0x1b90] sm:$0xf]  ;;  %v13728_v14 = vor.u32 %v16723_v5, %v13727_v60  ;;  %6915 = vmatpush.bf16.msrb.mxu0 %v13216_v13  ;;  %v17711_v60 = vpop.f32.mrf.mxu2  ;;  %v6658_v13 = vpop.f32.mrf.mxu1 }
 0x1e2   :  { %v16851_v2 = vld [vmem:[#allocation8 + $0x1bcc] sm:$0xf0]  ;;  %6909 = vmatmul.bf16.vlgmr.msra.gmra.mxu3 %v17629_v17 }
 0x1e3   :  { %v14751_v7 = vld [vmem:[#allocation8 + $0x1f90] sm:$0xf]  ;;  %v14240_v15 = vor.u32 %v16851_v2, %v14239_v62  ;;  %6929 = vmatpush.bf16.msrb.mxu1 %v13728_v14 }
 0x1e4   :  { %v16979_v9 = vld [vmem:[#allocation8 + $0x1fcc] sm:$0xf0] }
 0x1e5   :  { %v13151_v16 = vld [vmem:[#allocation8 + $0x1310] sm:$0xf]  ;;  %v14752_v21 = vor.u32 %v16979_v9, %v14751_v7  ;;  %6943 = vmatpush.bf16.msrb.mxu2 %v14240_v15 }
 0x1e6   :  { %v16579_v19 = vld [vmem:[#allocation8 + $0x134c] sm:$0xf0] }
 0x1e7   :  { %v13663_v20 = vld [vmem:[#allocation8 + $0x1710] sm:$0xf]  ;;  %v13152_v32 = vor.u32 %v16579_v19, %v13151_v16  ;;  %6957 = vmatpush.bf16.msrb.mxu3 %v14752_v21  ;;  %v6659_v21 = vadd.f32 %v6658_v13, %v6644_v11 }
 0x1e8   :  { %v16707_v24 = vld [vmem:[#allocation8 + $0x174c] sm:$0xf0] }
 0x1e9   :  { %v14175_v25 = vld [vmem:[#allocation8 + $0x1b10] sm:$0xf]  ;;  %v13664_v4 = vor.u32 %v16707_v24, %v13663_v20  ;;  %6916 = vmatpush.bf16.msrb.mxu0 %v13152_v32 }
 0x1ea   :  { %v16835_v26 = vld [vmem:[#allocation8 + $0x1b4c] sm:$0xf0] }
 0x1eb   :  { %v14687_v27 = vld [vmem:[#allocation8 + $0x1f10] sm:$0xf]  ;;  %v14176_v33 = vor.u32 %v16835_v26, %v14175_v25  ;;  %6930 = vmatpush.bf16.msrb.mxu1 %v13664_v4 }
 0x1ec   :  { %v16963_v28 = vld [vmem:[#allocation8 + $0x1f4c] sm:$0xf0] }
 0x1ed   :  { %v13087_v35 = vld [vmem:[#allocation8 + $0x1290] sm:$0xf]  ;;  %v14688_v38 = vor.u32 %v16963_v28, %v14687_v27  ;;  %6944 = vmatpush.bf16.msrb.mxu2 %v14176_v33 }
 0x1ee   :  { %v16563_v36 = vld [vmem:[#allocation8 + $0x12cc] sm:$0xf0] }
 0x1ef   :  { %v13599_v37 = vld [vmem:[#allocation8 + $0x1690] sm:$0xf]  ;;  %v13088_v52 = vor.u32 %v16563_v36, %v13087_v35  ;;  %6958 = vmatpush.bf16.msrb.mxu3 %v14688_v38 }
 0x1f0   :  { %v16691_v40 = vld [vmem:[#allocation8 + $0x16cc] sm:$0xf0] }
 0x1f1   :  { %v14111_v41 = vld [vmem:[#allocation8 + $0x1a90] sm:$0xf]  ;;  %v13600_v54 = vor.u32 %v16691_v40, %v13599_v37  ;;  %6917 = vmatpush.bf16.msrb.mxu0 %v13088_v52 }
 0x1f2   :  { %v16819_v42 = vld [vmem:[#allocation8 + $0x1acc] sm:$0xf0] }
 0x1f3   :  { %v14623_v45 = vld [vmem:[#allocation8 + $0x1e90] sm:$0xf]  ;;  %v14112_v55 = vor.u32 %v16819_v42, %v14111_v41  ;;  %6931 = vmatpush.bf16.msrb.mxu1 %v13600_v54 }
 0x1f4   :  { %v16947_v46 = vld [vmem:[#allocation8 + $0x1ecc] sm:$0xf0] }
 0x1f5   :  { %v13023_v56 = vld [vmem:[#allocation8 + $0x1210] sm:$0xf]  ;;  %v14624_v61 = vor.u32 %v16947_v46, %v14623_v45  ;;  %6945 = vmatpush.bf16.msrb.mxu2 %v14112_v55  ;;  %v6672_v46 = vpop.f32.mrf.mxu2 }
 0x1f6   :  { %v16547_v57 = vld [vmem:[#allocation8 + $0x124c] sm:$0xf0]  ;;  %v6673_v55 = vadd.f32 %v6672_v46, %v6659_v21 }
 0x1f7   :  { %v13535_v59 = vld [vmem:[#allocation8 + $0x1610] sm:$0xf]  ;;  %v13024_v9 = vor.u32 %v16547_v57, %v13023_v56  ;;  %6959 = vmatpush.bf16.msrb.mxu3 %v14624_v61  ;;  %v6686_v57 = vpop.f32.mrf.mxu3 }
 0x1f8   :  { %v16675_v5 = vld [vmem:[#allocation8 + $0x164c] sm:$0xf0] }
 0x1f9   :  { %v14047_v62 = vld [vmem:[#allocation8 + $0x1a10] sm:$0xf]  ;;  %v13536_v14 = vor.u32 %v16675_v5, %v13535_v59  ;;  %6918 = vmatpush.bf16.msrb.mxu0 %v13024_v9 }
 0x1fa   :  { %v16803_v2 = vld [vmem:[#allocation8 + $0x1a4c] sm:$0xf0] }
 0x1fb   :  { %v14559_v6 = vld [vmem:[#allocation8 + $0x1e10] sm:$0xf]  ;;  %v14048_v15 = vor.u32 %v16803_v2, %v14047_v62  ;;  %6932 = vmatpush.bf16.msrb.mxu1 %v13536_v14 }
 0x1fc   :  { %v16931_v7 = vld [vmem:[#allocation8 + $0x1e4c] sm:$0xf0] }
 0x1fd   :  { %v12959_v16 = vld [vmem:[#allocation8 + $0x1190] sm:$0xf]  ;;  %v14560_v24 = vor.u32 %v16931_v7, %v14559_v6  ;;  %6946 = vmatpush.bf16.msrb.mxu2 %v14048_v15  ;;  %v17715_v6 = vadd.f32 %v6686_v57, %v6673_v55 }
 0x1fe   :  { %v16531_v19 = vld [vmem:[#allocation8 + $0x11cc] sm:$0xf0] }
 0x1ff   :  { %v13471_v20 = vld [vmem:[#allocation8 + $0x1590] sm:$0xf]  ;;  %v12960_v4 = vor.u32 %v16531_v19, %v12959_v16  ;;  %6960 = vmatpush.bf16.msrb.mxu3 %v14560_v24 }
 0x200   :  { %v16659_v25 = vld [vmem:[#allocation8 + $0x15cc] sm:$0xf0] }
 0x201   :  { %v13983_v26 = vld [vmem:[#allocation8 + $0x1990] sm:$0xf]  ;;  %v13472_v33 = vor.u32 %v16659_v25, %v13471_v20  ;;  %6919 = vmatpush.bf16.msrb.mxu0 %v12960_v4 }
 0x202   :  { %v16787_v27 = vld [vmem:[#allocation8 + $0x19cc] sm:$0xf0] }
 0x203   :  { %v14495_v28 = vld [vmem:[#allocation8 + $0x1d90] sm:$0xf]  ;;  %v13984_v35 = vor.u32 %v16787_v27, %v13983_v26  ;;  %6933 = vmatpush.bf16.msrb.mxu1 %v13472_v33 }
 0x204   :  { %v16915_v32 = vld [vmem:[#allocation8 + $0x1dcc] sm:$0xf0] }
 0x205   :  { %v12895_v36 = vld [vmem:[#allocation8 + $0x1110] sm:$0xf]  ;;  %v14496_v40 = vor.u32 %v16915_v32, %v14495_v28  ;;  %6947 = vmatpush.bf16.msrb.mxu2 %v13984_v35  ;;  %v16075_v35 = vld [vmem:[#allocation8 + $0x394] sm:$0xf] }
 0x206   :  { %v16515_v37 = vld [vmem:[#allocation8 + $0x114c] sm:$0xf0] }
 0x207   :  { %v13407_v38 = vld [vmem:[#allocation8 + $0x1510] sm:$0xf]  ;;  %v12896_v56 = vor.u32 %v16515_v37, %v12895_v36  ;;  %6961 = vmatpush.bf16.msrb.mxu3 %v14496_v40  ;;  %v11169_v36 = vld [vmem:[#allocation8 + $0x3d0] sm:$0xf0] }
 0x208   :  { %v16643_v41 = vld [vmem:[#allocation8 + $0x154c] sm:$0xf0]  ;;  %v16203_v37 = vld [vmem:[#allocation8 + $0x794] sm:$0xf] }
 0x209   :  { %v13919_v42 = vld [vmem:[#allocation8 + $0x1910] sm:$0xf]  ;;  %v13408_v59 = vor.u32 %v16643_v41, %v13407_v38  ;;  %6920 = vmatpush.bf16.msrb.mxu0 %v12896_v56  ;;  %v11681_v40 = vld [vmem:[#allocation8 + $0x7d0] sm:$0xf0]  ;;  %v11172_v56 = vor.u32 %v16075_v35, %v11169_v36 }
 0x20a   :  { %v16771_v45 = vld [vmem:[#allocation8 + $0x194c] sm:$0xf0]  ;;  %v16331_v41 = vld [vmem:[#allocation8 + $0xb94] sm:$0xf]  ;;  %v11684_v57 = vor.u32 %v16203_v37, %v11681_v40  ;;  %v17725_v37 = vpop.f32.mrf.mxu2 }
 0x20b   :  { %v14431_v52 = vld [vmem:[#allocation8 + $0x1d10] sm:$0xf]  ;;  %v13920_v61 = vor.u32 %v16771_v45, %v13919_v42  ;;  %6934 = vmatpush.bf16.msrb.mxu1 %v13408_v59  ;;  %v12193_v42 = vld [vmem:[#allocation8 + $0xbd0] sm:$0xf0] }
 0x20c   :  { %v16899_v54 = vld [vmem:[#allocation8 + $0x1d4c] sm:$0xf0]  ;;  %v12196_v59 = vor.u32 %v16331_v41, %v12193_v42  ;;  %v12577_v35 = vld [vmem:[#allocation8 + $0xed0] sm:$0xf0] }
 0x20d   :  { %v12831_v5 = vld [vmem:[#allocation8 + $0x1090] sm:$0xf]  ;;  %v14432_v7 = vor.u32 %v16899_v54, %v14431_v52  ;;  %6948 = vmatpush.bf16.msrb.mxu2 %v13920_v61  ;;  %v16459_v52 = vld [vmem:[#allocation8 + $0xf94] sm:$0xf]  ;;  %v17717_v61 = vpop.f32.mrf.mxu0 }
 0x20e   :  { %v16499_v62 = vld [vmem:[#allocation8 + $0x10cc] sm:$0xf0]  ;;  %v12705_v54 = vld [vmem:[#allocation8 + $0xfd0] sm:$0xf0] }
 0x20f   :  { %v13343_v2 = vld [vmem:[#allocation8 + $0x1490] sm:$0xf]  ;;  %v12832_v16 = vor.u32 %v16499_v62, %v12831_v5  ;;  %6962 = vmatpush.bf16.msrb.mxu3 %v14432_v7  ;;  %v16059_v5 = vld [vmem:[#allocation8 + $0x314] sm:$0xf]  ;;  %v12708_v7 = vor.u32 %v16459_v52, %v12705_v54  ;;  %v17727_v52 = vpop.f32.mrf.mxu3 }
 0x210   :  { %v16627_v9 = vld [vmem:[#allocation8 + $0x14cc] sm:$0xf0]  ;;  %v11105_v62 = vld [vmem:[#allocation8 + $0x350] sm:$0xf0]  ;;  %18424 = vst [vmem:[#allocation24_spill] sm:$0xff] %v17727_v52 }
 0x211   :  { %v13855_v11 = vld [vmem:[#allocation8 + $0x1890] sm:$0xf]  ;;  %v13344_v21 = vor.u32 %v16627_v9, %v13343_v2  ;;  %6921 = vmatpush.bf16.msrb.mxu0 %v12832_v16  ;;  %v16187_v2 = vld [vmem:[#allocation8 + $0x714] sm:$0xf]  ;;  %v17719_v16 = vpop.f32.mrf.mxu1  ;;  %v16316_v52 = vld [vmem:[#allocation8 + $0xb1c] sm:$0xf] }
 0x212   :  { %v16755_v13 = vld [vmem:[#allocation8 + $0x18cc] sm:$0xf0]  ;;  %v11617_v9 = vld [vmem:[#allocation8 + $0x750] sm:$0xf0] }
 0x213   :  { %v14367_v14 = vld [vmem:[#allocation8 + $0x1c90] sm:$0xf]  ;;  %v13856_v24 = vor.u32 %v16755_v13, %v13855_v11  ;;  %6935 = vmatpush.bf16.msrb.mxu1 %v13344_v21  ;;  %v16315_v11 = vld [vmem:[#allocation8 + $0xb14] sm:$0xf] }
 0x214   :  { %v16883_v15 = vld [vmem:[#allocation8 + $0x1ccc] sm:$0xf0]  ;;  %v12129_v13 = vld [vmem:[#allocation8 + $0xb50] sm:$0xf0] }
 0x215   :  { %v12767_v19 = vld [vmem:[#allocation8 + $0x1010] sm:$0xf]  ;;  %v14368_v28 = vor.u32 %v16883_v15, %v14367_v14  ;;  %6949 = vmatpush.bf16.msrb.mxu2 %v13856_v24  ;;  %v16443_v14 = vld [vmem:[#allocation8 + $0xf14] sm:$0xf]  ;;  %v12132_v21 = vor.u32 %v16315_v11, %v12129_v13 }
 0x216   :  { %v16483_v20 = vld [vmem:[#allocation8 + $0x104c] sm:$0xf0]  ;;  %v12641_v15 = vld [vmem:[#allocation8 + $0xf50] sm:$0xf0] }
 0x217   :  { %v13279_v25 = vld [vmem:[#allocation8 + $0x1410] sm:$0xf]  ;;  %v12768_v38 = vor.u32 %v16483_v20, %v12767_v19  ;;  %6963 = vmatpush.bf16.msrb.mxu3 %v14368_v28  ;;  %v11108_v19 = vor.u32 %v16059_v5, %v11105_v62  ;;  %v11620_v20 = vor.u32 %v16187_v2, %v11617_v9  ;;  %v16043_v24 = vld [vmem:[#allocation8 + $0x294] sm:$0xf] }
 0x218   :  { %v16611_v26 = vld [vmem:[#allocation8 + $0x144c] sm:$0xf0]  ;;  %v11553_v28 = vld [vmem:[#allocation8 + $0x6d0] sm:$0xf0] }
 0x219   :  { %v13791_v27 = vld [vmem:[#allocation8 + $0x1810] sm:$0xf]  ;;  %v13280_v45 = vor.u32 %v16611_v26, %v13279_v25  ;;  %6922 = vmatpush.bf16.msrb.mxu0 %v12768_v38  ;;  %v11041_v25 = vld [vmem:[#allocation8 + $0x2d0] sm:$0xf0]  ;;  %v6714_v11 = vpop.f32.mrf.mxu1 }
 0x21a   :  { %v16739_v32 = vld [vmem:[#allocation8 + $0x184c] sm:$0xf0]  ;;  %v16171_v26 = vld [vmem:[#allocation8 + $0x694] sm:$0xf]  ;;  %v11044_v36 = vor.u32 %v16043_v24, %v11041_v25 }
 0x21b   :  { %v14303_v4 = vld [vmem:[#allocation8 + $0x1c10] sm:$0xf]  ;;  %v13792_v46 = vor.u32 %v16739_v32, %v13791_v27  ;;  %6936 = vmatpush.bf16.msrb.mxu1 %v13280_v45  ;;  %v12644_v27 = vor.u32 %v16443_v14, %v12641_v15  ;;  %v16299_v32 = vld [vmem:[#allocation8 + $0xa94] sm:$0xf]  ;;  %v11556_v38 = vor.u32 %v16171_v26, %v11553_v28 }
 0x21c   :  { %v16867_v33 = vld [vmem:[#allocation8 + $0x1c4c] sm:$0xf0]  ;;  %6923 = vmatmul.bf16.vlgmr.msrb.gmra.mxu0 %v17633_v39  ;;  %v16027_v41 = vld [vmem:[#allocation8 + $0x214] sm:$0xf] }
 0x21d   :  { %v14304_v55 = vor.u32 %v16867_v33, %v14303_v4  ;;  %6950 = vmatpush.bf16.msrb.mxu2 %v13792_v46  ;;  %6971 = vmatpush.bf16.msra.mxu0 %v11172_v56  ;;  %v12065_v4 = vld [vmem:[#allocation8 + $0xad0] sm:$0xf0] }
 0x21e   :  { %6937 = vmatmul.bf16.vlgmr.msrb.gmra.mxu1 %v17637_v44  ;;  %v16427_v33 = vld [vmem:[#allocation8 + $0xe94] sm:$0xf]  ;;  %v12068_v40 = vor.u32 %v16299_v32, %v12065_v4 }
 0x21f   :  { %6964 = vmatpush.bf16.msrb.mxu3 %v14304_v55  ;;  %6985 = vmatpush.bf16.msra.mxu1 %v11684_v57  ;;  %v10977_v42 = vld [vmem:[#allocation8 + $0x250] sm:$0xf0]  ;;  %v12580_v46 = vor.u32 %v16427_v33, %v12577_v35  ;;  %v6700_v57 = vpop.f32.mrf.mxu0 }
 0x220   :  { %6951 = vmatmul.bf16.vlgmr.msrb.gmra.mxu2 %v17635_v43  ;;  %v16155_v45 = vld [vmem:[#allocation8 + $0x614] sm:$0xf]  ;;  %v6701_v62 = vadd.f32 %v6700_v57, %v17715_v6  ;;  %v10980_v2 = vor.u32 %v16027_v41, %v10977_v42 }
 0x221   :  { %6999 = vmatpush.bf16.msra.mxu2 %v12196_v59  ;;  %6972 = vmatpush.bf16.msra.mxu0 %v11108_v19  ;;  %v11489_v54 = vld [vmem:[#allocation8 + $0x650] sm:$0xf0] }
 0x222   :  { %6965 = vmatmul.bf16.vlgmr.msrb.gmra.mxu3 %v17639_v47  ;;  %v16283_v55 = vld [vmem:[#allocation8 + $0xa14] sm:$0xf] }
 0x223   :  { %7013 = vmatpush.bf16.msra.mxu3 %v12708_v7  ;;  %6986 = vmatpush.bf16.msra.mxu1 %v11620_v20  ;;  %v12001_v56 = vld [vmem:[#allocation8 + $0xa50] sm:$0xf0]  ;;  %v11492_v7 = vor.u32 %v16155_v45, %v11489_v54  ;;  %v6715_v20 = vadd.f32 %v6714_v11, %v6701_v62 }
 0x224   :  { %v16411_v59 = vld [vmem:[#allocation8 + $0xe14] sm:$0xf]  ;;  %v12004_v9 = vor.u32 %v16283_v55, %v12001_v56  ;;  %v6742_v55 = vpop.f32.mrf.mxu3 }
 0x225   :  { %7000 = vmatpush.bf16.msra.mxu2 %v12132_v21  ;;  %v12513_v5 = vld [vmem:[#allocation8 + $0xe50] sm:$0xf0]  ;;  %6973 = vmatpush.bf16.msra.mxu0 %v11044_v36 }
 0x226   :  { %v16011_v13 = vld [vmem:[#allocation8 + $0x194] sm:$0xf]  ;;  %v12516_v19 = vor.u32 %v16411_v59, %v12513_v5 }
 0x227   :  { %7014 = vmatpush.bf16.msra.mxu3 %v12644_v27  ;;  %6987 = vmatpush.bf16.msra.mxu1 %v11556_v38  ;;  %v10913_v14 = vld [vmem:[#allocation8 + $0x1d0] sm:$0xf0]  ;;  %v6728_v38 = vpop.f32.mrf.mxu2 }
 0x228   :  { %v16139_v15 = vld [vmem:[#allocation8 + $0x594] sm:$0xf]  ;;  %v10916_v28 = vor.u32 %v16011_v13, %v10913_v14  ;;  %v6729_v45 = vadd.f32 %v6728_v38, %v6715_v20 }
 0x229   :  { %7001 = vmatpush.bf16.msra.mxu2 %v12068_v40  ;;  %v11425_v21 = vld [vmem:[#allocation8 + $0x5d0] sm:$0xf0]  ;;  %6974 = vmatpush.bf16.msra.mxu0 %v10980_v2 }
 0x22a   :  { %v16267_v24 = vld [vmem:[#allocation8 + $0x994] sm:$0xf]  ;;  %v11428_v6 = vor.u32 %v16139_v15, %v11425_v21  ;;  %v17730_v57 = vadd.f32 %v6742_v55, %v6729_v45 }
 0x22b   :  { %7015 = vmatpush.bf16.msra.mxu3 %v12580_v46  ;;  %v11937_v25 = vld [vmem:[#allocation8 + $0x9d0] sm:$0xf0]  ;;  %6988 = vmatpush.bf16.msra.mxu1 %v11492_v7 }
 0x22c   :  { %v16395_v26 = vld [vmem:[#allocation8 + $0xd94] sm:$0xf]  ;;  %v11940_v32 = vor.u32 %v16267_v24, %v11937_v25  ;;  %18425 = vst [vmem:[#allocation25_spill] sm:$0xff] %v17730_v57  ;;  %v16068_v57 = vld [vmem:[#allocation8 + $0x354] sm:$0xf0] }
 0x22d   :  { %v12449_v27 = vld [vmem:[#allocation8 + $0xdd0] sm:$0xf0]  ;;  %7002 = vmatpush.bf16.msra.mxu2 %v12004_v9  ;;  %6975 = vmatpush.bf16.msra.mxu0 %v10916_v28 }
 0x22e   :  { %v15995_v4 = vld [vmem:[#allocation8 + $0x114] sm:$0xf]  ;;  %v12452_v36 = vor.u32 %v16395_v26, %v12449_v27 }
 0x22f   :  { %v10849_v33 = vld [vmem:[#allocation8 + $0x150] sm:$0xf0]  ;;  %7016 = vmatpush.bf16.msra.mxu3 %v12516_v19  ;;  %6989 = vmatpush.bf16.msra.mxu1 %v11428_v6 }
 0x230   :  { %v16123_v35 = vld [vmem:[#allocation8 + $0x514] sm:$0xf]  ;;  %v10852_v56 = vor.u32 %v15995_v4, %v10849_v33 }
 0x231   :  { %v11361_v40 = vld [vmem:[#allocation8 + $0x550] sm:$0xf0]  ;;  %7003 = vmatpush.bf16.msra.mxu2 %v11940_v32 }
 0x232   :  { %v16251_v41 = vld [vmem:[#allocation8 + $0x914] sm:$0xf]  ;;  %v11364_v59 = vor.u32 %v16123_v35, %v11361_v40  ;;  %6976 = vmatpush.bf16.msra.mxu0 %v10852_v56 }
 0x233   :  { %v11873_v42 = vld [vmem:[#allocation8 + $0x950] sm:$0xf0]  ;;  %7017 = vmatpush.bf16.msra.mxu3 %v12452_v36 }
 0x234   :  { %v16379_v46 = vld [vmem:[#allocation8 + $0xd14] sm:$0xf]  ;;  %v11876_v5 = vor.u32 %v16251_v41, %v11873_v42  ;;  %6990 = vmatpush.bf16.msra.mxu1 %v11364_v59 }
 0x235   :  { %v12385_v54 = vld [vmem:[#allocation8 + $0xd50] sm:$0xf0] }
 0x236   :  { %v15979_v62 = vld [vmem:[#allocation8 + $0x94] sm:$0xf]  ;;  %v12388_v9 = vor.u32 %v16379_v46, %v12385_v54  ;;  %7004 = vmatpush.bf16.msra.mxu2 %v11876_v5 }
 0x237   :  { %v10785_v2 = vld [vmem:[#allocation8 + $0xd0] sm:$0xf0] }
 0x238   :  { %v16107_v7 = vld [vmem:[#allocation8 + $0x494] sm:$0xf]  ;;  %v10788_v20 = vor.u32 %v15979_v62, %v10785_v2  ;;  %7018 = vmatpush.bf16.msra.mxu3 %v12388_v9 }
 0x239   :  { %v11297_v11 = vld [vmem:[#allocation8 + $0x4d0] sm:$0xf0] }
 0x23a   :  { %v16235_v13 = vld [vmem:[#allocation8 + $0x894] sm:$0xf]  ;;  %v11300_v25 = vor.u32 %v16107_v7, %v11297_v11  ;;  %6977 = vmatpush.bf16.msra.mxu0 %v10788_v20 }
 0x23b   :  { %v11809_v14 = vld [vmem:[#allocation8 + $0x8d0] sm:$0xf0] }
 0x23c   :  { %v16363_v15 = vld [vmem:[#allocation8 + $0xc94] sm:$0xf]  ;;  %v11812_v26 = vor.u32 %v16235_v13, %v11809_v14  ;;  %6991 = vmatpush.bf16.msra.mxu1 %v11300_v25  ;;  %v17732_v25 = vpop.f32.mrf.mxu0 }
 0x23d   :  { %v12321_v19 = vld [vmem:[#allocation8 + $0xcd0] sm:$0xf0]  ;;  %18426 = vst [vmem:[#allocation26_spill] sm:$0xff] %v17732_v25  ;;  %v13671_v25 = vld [vmem:[#allocation8 + $0x1718] sm:$0xf] }
 0x23e   :  { %v15963_v21 = vld [vmem:[#allocation8 + $0x14] sm:$0xf]  ;;  %v12324_v32 = vor.u32 %v16363_v15, %v12321_v19  ;;  %7005 = vmatpush.bf16.msra.mxu2 %v11812_v26  ;;  %v17734_v26 = vpop.f32.mrf.mxu1 }
 0x23f   :  { %v10721_v24 = vld [vmem:[#allocation8 + $0x50] sm:$0xf0]  ;;  %18427 = vst [vmem:[#allocation27_spill] sm:$0xff] %v17734_v26  ;;  %v16404_v26 = vld [vmem:[#allocation8 + $0xdd4] sm:$0xf0] }
 0x240   :  { %v16091_v27 = vld [vmem:[#allocation8 + $0x414] sm:$0xf]  ;;  %v10724_v41 = vor.u32 %v15963_v21, %v10721_v24  ;;  %7019 = vmatpush.bf16.msra.mxu3 %v12324_v32 }
 0x241   :  { %v11233_v28 = vld [vmem:[#allocation8 + $0x450] sm:$0xf0] }
 0x242   :  { %v16219_v6 = vld [vmem:[#allocation8 + $0x814] sm:$0xf]  ;;  %v11236_v54 = vor.u32 %v16091_v27, %v11233_v28  ;;  %6978 = vmatpush.bf16.msra.mxu0 %v10724_v41 }
 0x243   :  { %v11745_v4 = vld [vmem:[#allocation8 + $0x850] sm:$0xf0] }
 0x244   :  { %v16347_v33 = vld [vmem:[#allocation8 + $0xc14] sm:$0xf]  ;;  %v11748_v55 = vor.u32 %v16219_v6, %v11745_v4  ;;  %6992 = vmatpush.bf16.msra.mxu1 %v11236_v54 }
 0x245   :  { %v12257_v35 = vld [vmem:[#allocation8 + $0xc50] sm:$0xf0]  ;;  %6979 = vmatmul.bf16.vlgmr.msra.gmra.mxu0 %v17621_v58 }
 0x246   :  { %v16587_v36 = vld [vmem:[#allocation8 + $0x1394] sm:$0xf]  ;;  %v12260_v5 = vor.u32 %v16347_v33, %v12257_v35  ;;  %7006 = vmatpush.bf16.msra.mxu2 %v11748_v55 }
 0x247   :  { %v13217_v38 = vld [vmem:[#allocation8 + $0x13d0] sm:$0xf0]  ;;  %6993 = vmatmul.bf16.vlgmr.msra.gmra.mxu1 %v17627_v10 }
 0x248   :  { %v16715_v40 = vld [vmem:[#allocation8 + $0x1794] sm:$0xf]  ;;  %v13220_v62 = vor.u32 %v16587_v36, %v13217_v38  ;;  %7020 = vmatpush.bf16.msra.mxu3 %v12260_v5  ;;  %v17740_v5 = vpop.f32.mrf.mxu2 }
 0x249   :  { %v13729_v42 = vld [vmem:[#allocation8 + $0x17d0] sm:$0xf0]  ;;  %7007 = vmatmul.bf16.vlgmr.msra.gmra.mxu2 %v17623_v1  ;;  %18428 = vst [vmem:[#allocation28_spill] sm:$0xff] %v17740_v5  ;;  %v12135_v5 = vld [vmem:[#allocation8 + $0xb18] sm:$0xf] }
 0x24a   :  { %v16843_v45 = vld [vmem:[#allocation8 + $0x1b94] sm:$0xf]  ;;  %v13732_v2 = vor.u32 %v16715_v40, %v13729_v42  ;;  %7027 = vmatpush.bf16.msrb.mxu0 %v13220_v62 }
 0x24b   :  { %v14241_v46 = vld [vmem:[#allocation8 + $0x1bd0] sm:$0xf0]  ;;  %7021 = vmatmul.bf16.vlgmr.msra.gmra.mxu3 %v17629_v17 }
 0x24c   :  { %v16971_v56 = vld [vmem:[#allocation8 + $0x1f94] sm:$0xf]  ;;  %v14244_v7 = vor.u32 %v16843_v45, %v14241_v46  ;;  %7041 = vmatpush.bf16.msrb.mxu1 %v13732_v2 }
 0x24d   :  { %v14753_v59 = vld [vmem:[#allocation8 + $0x1fd0] sm:$0xf0] }
 0x24e   :  { %v16571_v9 = vld [vmem:[#allocation8 + $0x1314] sm:$0xf]  ;;  %v14756_v14 = vor.u32 %v16971_v56, %v14753_v59  ;;  %7055 = vmatpush.bf16.msrb.mxu2 %v14244_v7 }
 0x24f   :  { %v13153_v11 = vld [vmem:[#allocation8 + $0x1350] sm:$0xf0] }
 0x250   :  { %v16699_v13 = vld [vmem:[#allocation8 + $0x1714] sm:$0xf]  ;;  %v13156_v27 = vor.u32 %v16571_v9, %v13153_v11  ;;  %7069 = vmatpush.bf16.msrb.mxu3 %v14756_v14  ;;  %v17742_v11 = vpop.f32.mrf.mxu3 }
 0x251   :  { %v13665_v15 = vld [vmem:[#allocation8 + $0x1750] sm:$0xf0]  ;;  %18429 = vst [vmem:[#allocation29_spill] sm:$0xff] %v17742_v11  ;;  %v11111_v11 = vld [vmem:[#allocation8 + $0x318] sm:$0xf] }
 0x252   :  { %v16827_v19 = vld [vmem:[#allocation8 + $0x1b14] sm:$0xf]  ;;  %v13668_v28 = vor.u32 %v16699_v13, %v13665_v15  ;;  %7028 = vmatpush.bf16.msrb.mxu0 %v13156_v27 }
 0x253   :  { %v14177_v20 = vld [vmem:[#allocation8 + $0x1b50] sm:$0xf0] }
 0x254   :  { %v16955_v21 = vld [vmem:[#allocation8 + $0x1f14] sm:$0xf]  ;;  %v14180_v6 = vor.u32 %v16827_v19, %v14177_v20  ;;  %7042 = vmatpush.bf16.msrb.mxu1 %v13668_v28  ;;  %v6756_v19 = vpop.f32.mrf.mxu0  ;;  %v6770_v20 = vpop.f32.mrf.mxu1 }
 0x255   :  { %v14689_v24 = vld [vmem:[#allocation8 + $0x1f50] sm:$0xf0] }
 0x256   :  { %v16555_v32 = vld [vmem:[#allocation8 + $0x1294] sm:$0xf]  ;;  %v14692_v35 = vor.u32 %v16955_v21, %v14689_v24  ;;  %7056 = vmatpush.bf16.msrb.mxu2 %v14180_v6 }
 0x257   :  { %v13089_v4 = vld [vmem:[#allocation8 + $0x12d0] sm:$0xf0] }
 0x258   :  { %v16683_v33 = vld [vmem:[#allocation8 + $0x1694] sm:$0xf]  ;;  %v13092_v45 = vor.u32 %v16555_v32, %v13089_v4  ;;  %7070 = vmatpush.bf16.msrb.mxu3 %v14692_v35  ;;  %v6771_v32 = vadd.f32 %v6770_v20, %v6756_v19 }
 0x259   :  { %v13601_v36 = vld [vmem:[#allocation8 + $0x16d0] sm:$0xf0] }
 0x25a   :  { %v16811_v38 = vld [vmem:[#allocation8 + $0x1a94] sm:$0xf]  ;;  %v13604_v46 = vor.u32 %v16683_v33, %v13601_v36  ;;  %7029 = vmatpush.bf16.msrb.mxu0 %v13092_v45 }
 0x25b   :  { %v14113_v40 = vld [vmem:[#allocation8 + $0x1ad0] sm:$0xf0] }
 0x25c   :  { %v16939_v41 = vld [vmem:[#allocation8 + $0x1e94] sm:$0xf]  ;;  %v14116_v54 = vor.u32 %v16811_v38, %v14113_v40  ;;  %7043 = vmatpush.bf16.msrb.mxu1 %v13604_v46 }
 0x25d   :  { %v14625_v42 = vld [vmem:[#allocation8 + $0x1ed0] sm:$0xf0] }
 0x25e   :  { %v16539_v55 = vld [vmem:[#allocation8 + $0x1214] sm:$0xf]  ;;  %v14628_v62 = vor.u32 %v16939_v41, %v14625_v42  ;;  %7057 = vmatpush.bf16.msrb.mxu2 %v14116_v54 }
 0x25f   :  { %v13025_v56 = vld [vmem:[#allocation8 + $0x1250] sm:$0xf0] }
 0x260   :  { %v16667_v59 = vld [vmem:[#allocation8 + $0x1614] sm:$0xf]  ;;  %v13028_v15 = vor.u32 %v16539_v55, %v13025_v56  ;;  %7071 = vmatpush.bf16.msrb.mxu3 %v14628_v62 }
 0x261   :  { %v13537_v2 = vld [vmem:[#allocation8 + $0x1650] sm:$0xf0] }
 0x262   :  { %v16795_v7 = vld [vmem:[#allocation8 + $0x1a14] sm:$0xf]  ;;  %v13540_v21 = vor.u32 %v16667_v59, %v13537_v2  ;;  %7030 = vmatpush.bf16.msrb.mxu0 %v13028_v15  ;;  %v6798_v15 = vpop.f32.mrf.mxu3 }
 0x263   :  { %v14049_v9 = vld [vmem:[#allocation8 + $0x1a50] sm:$0xf0] }
 0x264   :  { %v16923_v13 = vld [vmem:[#allocation8 + $0x1e14] sm:$0xf]  ;;  %v14052_v24 = vor.u32 %v16795_v7, %v14049_v9  ;;  %7044 = vmatpush.bf16.msrb.mxu1 %v13540_v21  ;;  %v6784_v7 = vpop.f32.mrf.mxu2 }
 0x265   :  { %v14561_v14 = vld [vmem:[#allocation8 + $0x1e50] sm:$0xf0] }
 0x266   :  { %v16523_v27 = vld [vmem:[#allocation8 + $0x1194] sm:$0xf]  ;;  %v14564_v4 = vor.u32 %v16923_v13, %v14561_v14  ;;  %7058 = vmatpush.bf16.msrb.mxu2 %v14052_v24  ;;  %v6785_v14 = vadd.f32 %v6784_v7, %v6771_v32 }
 0x267   :  { %v12961_v28 = vld [vmem:[#allocation8 + $0x11d0] sm:$0xf0] }
 0x268   :  { %v16651_v6 = vld [vmem:[#allocation8 + $0x1594] sm:$0xf]  ;;  %v12964_v41 = vor.u32 %v16523_v27, %v12961_v28  ;;  %7072 = vmatpush.bf16.msrb.mxu3 %v14564_v4 }
 0x269   :  { %v13473_v33 = vld [vmem:[#allocation8 + $0x15d0] sm:$0xf0] }
 0x26a   :  { %v16779_v35 = vld [vmem:[#allocation8 + $0x1994] sm:$0xf]  ;;  %v13476_v42 = vor.u32 %v16651_v6, %v13473_v33  ;;  %7031 = vmatpush.bf16.msrb.mxu0 %v12964_v41  ;;  %v17744_v6 = vadd.f32 %v6798_v15, %v6785_v14  ;;  %v11687_v14 = vld [vmem:[#allocation8 + $0x798] sm:$0xf] }
 0x26b   :  { %v13985_v36 = vld [vmem:[#allocation8 + $0x19d0] sm:$0xf0]  ;;  %v16212_v15 = vld [vmem:[#allocation8 + $0x7d4] sm:$0xf0] }
 0x26c   :  { %v16907_v38 = vld [vmem:[#allocation8 + $0x1d94] sm:$0xf]  ;;  %v13988_v45 = vor.u32 %v16779_v35, %v13985_v36  ;;  %7045 = vmatpush.bf16.msrb.mxu1 %v13476_v42 }
 0x26d   :  { %v14497_v40 = vld [vmem:[#allocation8 + $0x1dd0] sm:$0xf0] }
 0x26e   :  { %v16507_v46 = vld [vmem:[#allocation8 + $0x1114] sm:$0xf]  ;;  %v14500_v56 = vor.u32 %v16907_v38, %v14497_v40  ;;  %7059 = vmatpush.bf16.msrb.mxu2 %v13988_v45 }
 0x26f   :  { %v12897_v54 = vld [vmem:[#allocation8 + $0x1150] sm:$0xf0] }
 0x270   :  { %v16635_v55 = vld [vmem:[#allocation8 + $0x1514] sm:$0xf]  ;;  %v12900_v19 = vor.u32 %v16507_v46, %v12897_v54  ;;  %7073 = vmatpush.bf16.msrb.mxu3 %v14500_v56 }
 0x271   :  { %v13409_v59 = vld [vmem:[#allocation8 + $0x1550] sm:$0xf0] }
 0x272   :  { %v16763_v2 = vld [vmem:[#allocation8 + $0x1914] sm:$0xf]  ;;  %v13412_v20 = vor.u32 %v16635_v55, %v13409_v59  ;;  %7032 = vmatpush.bf16.msrb.mxu0 %v12900_v19 }
 0x273   :  { %v13921_v62 = vld [vmem:[#allocation8 + $0x1950] sm:$0xf0] }
 0x274   :  { %v16891_v9 = vld [vmem:[#allocation8 + $0x1d14] sm:$0xf]  ;;  %v13924_v21 = vor.u32 %v16763_v2, %v13921_v62  ;;  %7046 = vmatpush.bf16.msrb.mxu1 %v13412_v20 }
 0x275   :  { %v14433_v13 = vld [vmem:[#allocation8 + $0x1d50] sm:$0xf0] }
 0x276   :  { %v16491_v24 = vld [vmem:[#allocation8 + $0x1094] sm:$0xf]  ;;  %v14436_v4 = vor.u32 %v16891_v9, %v14433_v13  ;;  %7060 = vmatpush.bf16.msrb.mxu2 %v13924_v21  ;;  %v11175_v9 = vld [vmem:[#allocation8 + $0x398] sm:$0xf] }
 0x277   :  { %v12833_v27 = vld [vmem:[#allocation8 + $0x10d0] sm:$0xf0]  ;;  %v16084_v13 = vld [vmem:[#allocation8 + $0x3d4] sm:$0xf0] }
 0x278   :  { %v16619_v28 = vld [vmem:[#allocation8 + $0x1494] sm:$0xf]  ;;  %v12836_v32 = vor.u32 %v16491_v24, %v12833_v27  ;;  %7074 = vmatpush.bf16.msrb.mxu3 %v14436_v4  ;;  %v12199_v24 = vld [vmem:[#allocation8 + $0xb98] sm:$0xf] }
 0x279   :  { %v13345_v33 = vld [vmem:[#allocation8 + $0x14d0] sm:$0xf0]  ;;  %v16340_v27 = vld [vmem:[#allocation8 + $0xbd4] sm:$0xf0] }
 0x27a   :  { %v16747_v35 = vld [vmem:[#allocation8 + $0x1894] sm:$0xf]  ;;  %v13348_v42 = vor.u32 %v16619_v28, %v13345_v33  ;;  %7033 = vmatpush.bf16.msrb.mxu0 %v12836_v32  ;;  %v12711_v28 = vld [vmem:[#allocation8 + $0xf98] sm:$0xf] }
 0x27b   :  { %v13857_v36 = vld [vmem:[#allocation8 + $0x18d0] sm:$0xf0]  ;;  %v16468_v33 = vld [vmem:[#allocation8 + $0xfd4] sm:$0xf0] }
 0x27c   :  { %v16875_v38 = vld [vmem:[#allocation8 + $0x1c94] sm:$0xf]  ;;  %v13860_v45 = vor.u32 %v16747_v35, %v13857_v36  ;;  %7047 = vmatpush.bf16.msrb.mxu1 %v13348_v42  ;;  %v11176_v35 = vor.u32 %v16084_v13, %v11175_v9  ;;  %v11688_v36 = vor.u32 %v16212_v15, %v11687_v14  ;;  %v11623_v32 = vld [vmem:[#allocation8 + $0x718] sm:$0xf] }
 0x27d   :  { %v14369_v40 = vld [vmem:[#allocation8 + $0x1cd0] sm:$0xf0]  ;;  %v16324_v42 = vld [vmem:[#allocation8 + $0xb54] sm:$0xf0] }
 0x27e   :  { %v16475_v41 = vld [vmem:[#allocation8 + $0x1014] sm:$0xf]  ;;  %v14372_v2 = vor.u32 %v16875_v38, %v14369_v40  ;;  %7061 = vmatpush.bf16.msrb.mxu2 %v13860_v45  ;;  %v12200_v38 = vor.u32 %v16340_v27, %v12199_v24  ;;  %v17746_v40 = vpop.f32.mrf.mxu0  ;;  %v12647_v45 = vld [vmem:[#allocation8 + $0xf18] sm:$0xf] }
 0x27f   :  { %v12769_v46 = vld [vmem:[#allocation8 + $0x1050] sm:$0xf0]  ;;  %v11559_v9 = vld [vmem:[#allocation8 + $0x698] sm:$0xf] }
 0x280   :  { %v16603_v54 = vld [vmem:[#allocation8 + $0x1414] sm:$0xf]  ;;  %v12772_v19 = vor.u32 %v16475_v41, %v12769_v46  ;;  %7075 = vmatpush.bf16.msrb.mxu3 %v14372_v2  ;;  %v12712_v41 = vor.u32 %v16468_v33, %v12711_v28  ;;  %v16196_v46 = vld [vmem:[#allocation8 + $0x754] sm:$0xf0] }
 0x281   :  { %v13281_v55 = vld [vmem:[#allocation8 + $0x1450] sm:$0xf0]  ;;  %v11624_v2 = vor.u32 %v16196_v46, %v11623_v32  ;;  %v16180_v14 = vld [vmem:[#allocation8 + $0x6d4] sm:$0xf0] }
 0x282   :  { %v16731_v59 = vld [vmem:[#allocation8 + $0x1814] sm:$0xf]  ;;  %v13284_v20 = vor.u32 %v16603_v54, %v13281_v55  ;;  %7034 = vmatpush.bf16.msrb.mxu0 %v12772_v19  ;;  %v16452_v54 = vld [vmem:[#allocation8 + $0xf54] sm:$0xf0]  ;;  %v17748_v55 = vpop.f32.mrf.mxu1  ;;  %v11560_v27 = vor.u32 %v16180_v14, %v11559_v9 }
 0x283   :  { %v13793_v56 = vld [vmem:[#allocation8 + $0x1850] sm:$0xf0]  ;;  %v12648_v13 = vor.u32 %v16452_v54, %v12647_v45  ;;  %v12071_v19 = vld [vmem:[#allocation8 + $0xa98] sm:$0xf] }
 0x284   :  { %v16859_v62 = vld [vmem:[#allocation8 + $0x1c14] sm:$0xf]  ;;  %v13796_v21 = vor.u32 %v16731_v59, %v13793_v56  ;;  %7048 = vmatpush.bf16.msrb.mxu1 %v13284_v20  ;;  %v11112_v59 = vor.u32 %v16068_v57, %v11111_v11  ;;  %v12136_v56 = vor.u32 %v16324_v42, %v12135_v5  ;;  %v16308_v15 = vld [vmem:[#allocation8 + $0xad4] sm:$0xf0]  ;;  %v17754_v11 = vpop.f32.mrf.mxu2 }
 0x285   :  { %v14305_v7 = vld [vmem:[#allocation8 + $0x1c50] sm:$0xf0]  ;;  %7035 = vmatmul.bf16.vlgmr.msrb.gmra.mxu0 %v17633_v39  ;;  %v12583_v24 = vld [vmem:[#allocation8 + $0xe98] sm:$0xf]  ;;  %v12072_v20 = vor.u32 %v16308_v15, %v12071_v19 }
 0x286   :  { %v14308_v4 = vor.u32 %v16859_v62, %v14305_v7  ;;  %7062 = vmatpush.bf16.msrb.mxu2 %v13796_v21  ;;  %7083 = vmatpush.bf16.msra.mxu0 %v11176_v35  ;;  %v11047_v62 = vld [vmem:[#allocation8 + $0x298] sm:$0xf]  ;;  %v17756_v35 = vpop.f32.mrf.mxu3 }
 0x287   :  { %v16052_v7 = vld [vmem:[#allocation8 + $0x2d4] sm:$0xf0]  ;;  %7049 = vmatmul.bf16.vlgmr.msrb.gmra.mxu1 %v17637_v44  ;;  %18430 = vst [vmem:[#allocation30_spill] sm:$0xff] %v17756_v35 }
 0x288   :  { %7076 = vmatpush.bf16.msrb.mxu3 %v14308_v4  ;;  %7097 = vmatpush.bf16.msra.mxu1 %v11688_v36  ;;  %v16436_v57 = vld [vmem:[#allocation8 + $0xed4] sm:$0xf0]  ;;  %v11048_v5 = vor.u32 %v16052_v7, %v11047_v62 }
 0x289   :  { %7063 = vmatmul.bf16.vlgmr.msrb.gmra.mxu2 %v17635_v43  ;;  %v10983_v21 = vld [vmem:[#allocation8 + $0x218] sm:$0xf]  ;;  %v12584_v4 = vor.u32 %v16436_v57, %v12583_v24 }
 0x28a   :  { %7111 = vmatpush.bf16.msra.mxu2 %v12200_v38  ;;  %7084 = vmatpush.bf16.msra.mxu0 %v11112_v59  ;;  %v16036_v28 = vld [vmem:[#allocation8 + $0x254] sm:$0xf0] }
 0x28b   :  { %7077 = vmatmul.bf16.vlgmr.msrb.gmra.mxu3 %v17639_v47  ;;  %v11495_v33 = vld [vmem:[#allocation8 + $0x618] sm:$0xf]  ;;  %v10984_v54 = vor.u32 %v16036_v28, %v10983_v21 }
 0x28c   :  { %7125 = vmatpush.bf16.msra.mxu3 %v12712_v41  ;;  %7098 = vmatpush.bf16.msra.mxu1 %v11624_v2  ;;  %v16164_v36 = vld [vmem:[#allocation8 + $0x654] sm:$0xf0]  ;;  %v6812_v41 = vpop.f32.mrf.mxu0 }
 0x28d   :  { %v12007_v38 = vld [vmem:[#allocation8 + $0xa18] sm:$0xf]  ;;  %v6813_v45 = vadd.f32 %v6812_v41, %v17744_v6  ;;  %v11496_v59 = vor.u32 %v16164_v36, %v11495_v33  ;;  %v6840_v36 = vpop.f32.mrf.mxu2 }
 0x28e   :  { %7112 = vmatpush.bf16.msra.mxu2 %v12136_v56  ;;  %v16292_v32 = vld [vmem:[#allocation8 + $0xa54] sm:$0xf0]  ;;  %7085 = vmatpush.bf16.msra.mxu0 %v11048_v5  ;;  %v6826_v56 = vpop.f32.mrf.mxu1 }
 0x28f   :  { %v12519_v46 = vld [vmem:[#allocation8 + $0xe18] sm:$0xf]  ;;  %v12008_v2 = vor.u32 %v16292_v32, %v12007_v38  ;;  %v6827_v14 = vadd.f32 %v6826_v56, %v6813_v45  ;;  %v6854_v45 = vpop.f32.mrf.mxu3 }
 0x290   :  { %7126 = vmatpush.bf16.msra.mxu3 %v12648_v13  ;;  %v16420_v42 = vld [vmem:[#allocation8 + $0xe54] sm:$0xf0]  ;;  %7099 = vmatpush.bf16.msra.mxu1 %v11560_v27 }
 0x291   :  { %v10919_v62 = vld [vmem:[#allocation8 + $0x198] sm:$0xf]  ;;  %v12520_v13 = vor.u32 %v16420_v42, %v12519_v46  ;;  %v6841_v41 = vadd.f32 %v6840_v36, %v6827_v14 }
 0x292   :  { %7113 = vmatpush.bf16.msra.mxu2 %v12072_v20  ;;  %v16020_v7 = vld [vmem:[#allocation8 + $0x1d4] sm:$0xf0]  ;;  %7086 = vmatpush.bf16.msra.mxu0 %v10984_v54 }
 0x293   :  { %v11431_v9 = vld [vmem:[#allocation8 + $0x598] sm:$0xf]  ;;  %v10920_v5 = vor.u32 %v16020_v7, %v10919_v62 }
 0x294   :  { %7127 = vmatpush.bf16.msra.mxu3 %v12584_v4  ;;  %v16148_v19 = vld [vmem:[#allocation8 + $0x5d4] sm:$0xf0]  ;;  %7100 = vmatpush.bf16.msra.mxu1 %v11496_v59  ;;  %v17759_v59 = vadd.f32 %v6854_v45, %v6841_v41 }
 0x295   :  { %v11943_v15 = vld [vmem:[#allocation8 + $0x998] sm:$0xf]  ;;  %v11432_v6 = vor.u32 %v16148_v19, %v11431_v9 }
 0x296   :  { %v16276_v24 = vld [vmem:[#allocation8 + $0x9d4] sm:$0xf0]  ;;  %7114 = vmatpush.bf16.msra.mxu2 %v12008_v2  ;;  %7087 = vmatpush.bf16.msra.mxu0 %v10920_v5  ;;  %18431 = vst [vmem:[#allocation31_spill] sm:$0xff] %v17759_v59 }
 0x297   :  { %v12455_v57 = vld [vmem:[#allocation8 + $0xd98] sm:$0xf]  ;;  %v11944_v27 = vor.u32 %v16276_v24, %v11943_v15 }
 0x298   :  { %v10855_v20 = vld [vmem:[#allocation8 + $0x118] sm:$0xf]  ;;  %7128 = vmatpush.bf16.msra.mxu3 %v12520_v13  ;;  %v12456_v33 = vor.u32 %v16404_v26, %v12455_v57  ;;  %7101 = vmatpush.bf16.msra.mxu1 %v11432_v6 }
 0x299   :  { %v16004_v21 = vld [vmem:[#allocation8 + $0x154] sm:$0xf0] }
 0x29a   :  { %v11367_v28 = vld [vmem:[#allocation8 + $0x518] sm:$0xf]  ;;  %v10856_v54 = vor.u32 %v16004_v21, %v10855_v20  ;;  %7115 = vmatpush.bf16.msra.mxu2 %v11944_v27 }
 0x29b   :  { %v16132_v4 = vld [vmem:[#allocation8 + $0x554] sm:$0xf0] }
 0x29c   :  { %v11879_v38 = vld [vmem:[#allocation8 + $0x918] sm:$0xf]  ;;  %v11368_v2 = vor.u32 %v16132_v4, %v11367_v28  ;;  %7129 = vmatpush.bf16.msra.mxu3 %v12456_v33  ;;  %7088 = vmatpush.bf16.msra.mxu0 %v10856_v54 }
 0x29d   :  { %v16260_v32 = vld [vmem:[#allocation8 + $0x954] sm:$0xf0] }
 0x29e   :  { %v12391_v46 = vld [vmem:[#allocation8 + $0xd18] sm:$0xf]  ;;  %v11880_v56 = vor.u32 %v16260_v32, %v11879_v38  ;;  %7102 = vmatpush.bf16.msra.mxu1 %v11368_v2 }
 0x29f   :  { %v16388_v42 = vld [vmem:[#allocation8 + $0xd54] sm:$0xf0] }
 0x2a0   :  { %v10791_v62 = vld [vmem:[#allocation8 + $0x98] sm:$0xf]  ;;  %v12392_v26 = vor.u32 %v16388_v42, %v12391_v46  ;;  %7116 = vmatpush.bf16.msra.mxu2 %v11880_v56 }
 0x2a1   :  { %v15988_v7 = vld [vmem:[#allocation8 + $0xd4] sm:$0xf0] }
 0x2a2   :  { %v11303_v9 = vld [vmem:[#allocation8 + $0x498] sm:$0xf]  ;;  %v10792_v57 = vor.u32 %v15988_v7, %v10791_v62  ;;  %7130 = vmatpush.bf16.msra.mxu3 %v12392_v26 }
 0x2a3   :  { %v16116_v13 = vld [vmem:[#allocation8 + $0x4d4] sm:$0xf0] }
 0x2a4   :  { %v11815_v19 = vld [vmem:[#allocation8 + $0x898] sm:$0xf]  ;;  %v11304_v6 = vor.u32 %v16116_v13, %v11303_v9  ;;  %7089 = vmatpush.bf16.msra.mxu0 %v10792_v57 }
 0x2a5   :  { %v16244_v15 = vld [vmem:[#allocation8 + $0x8d4] sm:$0xf0] }
 0x2a6   :  { %v12327_v14 = vld [vmem:[#allocation8 + $0xc98] sm:$0xf]  ;;  %v11816_v27 = vor.u32 %v16244_v15, %v11815_v19  ;;  %7103 = vmatpush.bf16.msra.mxu1 %v11304_v6 }
 0x2a7   :  { %v16372_v24 = vld [vmem:[#allocation8 + $0xcd4] sm:$0xf0] }
 0x2a8   :  { %v10727_v5 = vld [vmem:[#allocation8 + $0x18] sm:$0xf]  ;;  %v12328_v4 = vor.u32 %v16372_v24, %v12327_v14  ;;  %7117 = vmatpush.bf16.msra.mxu2 %v11816_v27 }
 0x2a9   :  { %v15972_v20 = vld [vmem:[#allocation8 + $0x54] sm:$0xf0] }
 0x2aa   :  { %v11239_v21 = vld [vmem:[#allocation8 + $0x418] sm:$0xf]  ;;  %v10728_v45 = vor.u32 %v15972_v20, %v10727_v5  ;;  %7131 = vmatpush.bf16.msra.mxu3 %v12328_v4 }
 0x2ab   :  { %v16100_v28 = vld [vmem:[#allocation8 + $0x454] sm:$0xf0] }
 0x2ac   :  { %v11751_v36 = vld [vmem:[#allocation8 + $0x818] sm:$0xf]  ;;  %v11240_v2 = vor.u32 %v16100_v28, %v11239_v21  ;;  %7090 = vmatpush.bf16.msra.mxu0 %v10728_v45  ;;  %v17761_v21 = vpop.f32.mrf.mxu0  ;;  %v17763_v28 = vpop.f32.mrf.mxu1 }
 0x2ad   :  { %v16228_v33 = vld [vmem:[#allocation8 + $0x854] sm:$0xf0]  ;;  %18432 = vst [vmem:[#allocation32_spill] sm:$0xff] %v17761_v21  ;;  %v11113_v21 = vld [vmem:[#allocation8 + $0x358] sm:$0xf0] }
 0x2ae   :  { %v12263_v38 = vld [vmem:[#allocation8 + $0xc18] sm:$0xf]  ;;  %v11752_v56 = vor.u32 %v16228_v33, %v11751_v36  ;;  %7104 = vmatpush.bf16.msra.mxu1 %v11240_v2  ;;  %18433 = vst [vmem:[#allocation33_spill] sm:$0xff] %v17763_v28  ;;  %v16060_v28 = vld [vmem:[#allocation8 + $0x31c] sm:$0xf] }
 0x2af   :  { %v16356_v32 = vld [vmem:[#allocation8 + $0xc54] sm:$0xf0]  ;;  %7091 = vmatmul.bf16.vlgmr.msra.gmra.mxu0 %v17621_v58 }
 0x2b0   :  { %v13223_v41 = vld [vmem:[#allocation8 + $0x1398] sm:$0xf]  ;;  %v12264_v26 = vor.u32 %v16356_v32, %v12263_v38  ;;  %7118 = vmatpush.bf16.msra.mxu2 %v11752_v56 }
 0x2b1   :  { %v16596_v46 = vld [vmem:[#allocation8 + $0x13d4] sm:$0xf0]  ;;  %7105 = vmatmul.bf16.vlgmr.msra.gmra.mxu1 %v17627_v10 }
 0x2b2   :  { %v13735_v42 = vld [vmem:[#allocation8 + $0x1798] sm:$0xf]  ;;  %v13224_v19 = vor.u32 %v16596_v46, %v13223_v41  ;;  %7132 = vmatpush.bf16.msra.mxu3 %v12264_v26 }
 0x2b3   :  { %v16724_v54 = vld [vmem:[#allocation8 + $0x17d4] sm:$0xf0]  ;;  %7119 = vmatmul.bf16.vlgmr.msra.gmra.mxu2 %v17623_v1 }
 0x2b4   :  { %v14247_v62 = vld [vmem:[#allocation8 + $0x1b98] sm:$0xf]  ;;  %v13736_v15 = vor.u32 %v16724_v54, %v13735_v42  ;;  %7139 = vmatpush.bf16.msrb.mxu0 %v13224_v19 }
 0x2b5   :  { %v16852_v7 = vld [vmem:[#allocation8 + $0x1bd4] sm:$0xf0]  ;;  %7133 = vmatmul.bf16.vlgmr.msra.gmra.mxu3 %v17629_v17 }
 0x2b6   :  { %v14759_v9 = vld [vmem:[#allocation8 + $0x1f98] sm:$0xf]  ;;  %v14248_v14 = vor.u32 %v16852_v7, %v14247_v62  ;;  %7153 = vmatpush.bf16.msrb.mxu1 %v13736_v15 }
 0x2b7   :  { %v16980_v13 = vld [vmem:[#allocation8 + $0x1fd4] sm:$0xf0] }
 0x2b8   :  { %v13159_v24 = vld [vmem:[#allocation8 + $0x1318] sm:$0xf]  ;;  %v14760_v57 = vor.u32 %v16980_v13, %v14759_v9  ;;  %7167 = vmatpush.bf16.msrb.mxu2 %v14248_v14  ;;  %v17769_v13 = vpop.f32.mrf.mxu2 }
 0x2b9   :  { %v16580_v59 = vld [vmem:[#allocation8 + $0x1354] sm:$0xf0]  ;;  %18434 = vst [vmem:[#allocation34_spill] sm:$0xff] %v17769_v13 }
 0x2ba   :  { %v16708_v5 = vld [vmem:[#allocation8 + $0x1754] sm:$0xf0]  ;;  %v13160_v36 = vor.u32 %v16580_v59, %v13159_v24  ;;  %7181 = vmatpush.bf16.msrb.mxu3 %v14760_v57  ;;  %v17771_v24 = vpop.f32.mrf.mxu3 }
 0x2bb   :  { %v14183_v20 = vld [vmem:[#allocation8 + $0x1b18] sm:$0xf]  ;;  %v13672_v4 = vor.u32 %v16708_v5, %v13671_v25  ;;  %18435 = vst [vmem:[#allocation35_spill] sm:$0xff] %v17771_v24 }
 0x2bc   :  { %v16836_v35 = vld [vmem:[#allocation8 + $0x1b54] sm:$0xf0]  ;;  %7140 = vmatpush.bf16.msrb.mxu0 %v13160_v36 }
 0x2bd   :  { %v14695_v6 = vld [vmem:[#allocation8 + $0x1f18] sm:$0xf]  ;;  %v14184_v33 = vor.u32 %v16836_v35, %v14183_v20  ;;  %7154 = vmatpush.bf16.msrb.mxu1 %v13672_v4 }
 0x2be   :  { %v16964_v27 = vld [vmem:[#allocation8 + $0x1f54] sm:$0xf0] }
 0x2bf   :  { %v13095_v38 = vld [vmem:[#allocation8 + $0x1298] sm:$0xf]  ;;  %v14696_v46 = vor.u32 %v16964_v27, %v14695_v6  ;;  %7168 = vmatpush.bf16.msrb.mxu2 %v14184_v33  ;;  %v6868_v6 = vpop.f32.mrf.mxu0  ;;  %v6882_v27 = vpop.f32.mrf.mxu1 }
 0x2c0   :  { %v16564_v32 = vld [vmem:[#allocation8 + $0x12d4] sm:$0xf0] }
 0x2c1   :  { %v13607_v41 = vld [vmem:[#allocation8 + $0x1698] sm:$0xf]  ;;  %v13096_v59 = vor.u32 %v16564_v32, %v13095_v38  ;;  %7182 = vmatpush.bf16.msrb.mxu3 %v14696_v46 }
 0x2c2   :  { %v16692_v42 = vld [vmem:[#allocation8 + $0x16d4] sm:$0xf0] }
 0x2c3   :  { %v14119_v45 = vld [vmem:[#allocation8 + $0x1a98] sm:$0xf]  ;;  %v13608_v25 = vor.u32 %v16692_v42, %v13607_v41  ;;  %7141 = vmatpush.bf16.msrb.mxu0 %v13096_v59  ;;  %v6883_v41 = vadd.f32 %v6882_v27, %v6868_v6 }
 0x2c4   :  { %v16820_v54 = vld [vmem:[#allocation8 + $0x1ad4] sm:$0xf0] }
 0x2c5   :  { %v14631_v62 = vld [vmem:[#allocation8 + $0x1e98] sm:$0xf]  ;;  %v14120_v35 = vor.u32 %v16820_v54, %v14119_v45  ;;  %7155 = vmatpush.bf16.msrb.mxu1 %v13608_v25 }
 0x2c6   :  { %v16948_v7 = vld [vmem:[#allocation8 + $0x1ed4] sm:$0xf0] }
 0x2c7   :  { %v13031_v2 = vld [vmem:[#allocation8 + $0x1218] sm:$0xf]  ;;  %v14632_v26 = vor.u32 %v16948_v7, %v14631_v62  ;;  %7169 = vmatpush.bf16.msrb.mxu2 %v14120_v35 }
 0x2c8   :  { %v16548_v56 = vld [vmem:[#allocation8 + $0x1254] sm:$0xf0] }
 0x2c9   :  { %v13543_v9 = vld [vmem:[#allocation8 + $0x1618] sm:$0xf]  ;;  %v13032_v20 = vor.u32 %v16548_v56, %v13031_v2  ;;  %7183 = vmatpush.bf16.msrb.mxu3 %v14632_v26 }
 0x2ca   :  { %v16676_v19 = vld [vmem:[#allocation8 + $0x1654] sm:$0xf0] }
 0x2cb   :  { %v14055_v15 = vld [vmem:[#allocation8 + $0x1a18] sm:$0xf]  ;;  %v13544_v36 = vor.u32 %v16676_v19, %v13543_v9  ;;  %7142 = vmatpush.bf16.msrb.mxu0 %v13032_v20  ;;  %v6910_v20 = vpop.f32.mrf.mxu3 }
 0x2cc   :  { %v16804_v14 = vld [vmem:[#allocation8 + $0x1a54] sm:$0xf0] }
 0x2cd   :  { %v14567_v57 = vld [vmem:[#allocation8 + $0x1e18] sm:$0xf]  ;;  %v14056_v4 = vor.u32 %v16804_v14, %v14055_v15  ;;  %7156 = vmatpush.bf16.msrb.mxu1 %v13544_v36 }
 0x2ce   :  { %v16932_v5 = vld [vmem:[#allocation8 + $0x1e54] sm:$0xf0] }
 0x2cf   :  { %v12967_v33 = vld [vmem:[#allocation8 + $0x1198] sm:$0xf]  ;;  %v14568_v46 = vor.u32 %v16932_v5, %v14567_v57  ;;  %7170 = vmatpush.bf16.msrb.mxu2 %v14056_v4  ;;  %v6896_v57 = vpop.f32.mrf.mxu2 }
 0x2d0   :  { %v16532_v38 = vld [vmem:[#allocation8 + $0x11d4] sm:$0xf0]  ;;  %v6897_v27 = vadd.f32 %v6896_v57, %v6883_v41 }
 0x2d1   :  { %v13479_v32 = vld [vmem:[#allocation8 + $0x1598] sm:$0xf]  ;;  %v12968_v59 = vor.u32 %v16532_v38, %v12967_v33  ;;  %7184 = vmatpush.bf16.msrb.mxu3 %v14568_v46 }
 0x2d2   :  { %v16660_v42 = vld [vmem:[#allocation8 + $0x15d4] sm:$0xf0] }
 0x2d3   :  { %v13991_v45 = vld [vmem:[#allocation8 + $0x1998] sm:$0xf]  ;;  %v13480_v2 = vor.u32 %v16660_v42, %v13479_v32  ;;  %7143 = vmatpush.bf16.msrb.mxu0 %v12968_v59  ;;  %v17773_v42 = vadd.f32 %v6910_v20, %v6897_v27  ;;  %v16204_v27 = vld [vmem:[#allocation8 + $0x79c] sm:$0xf] }
 0x2d4   :  { %v16788_v54 = vld [vmem:[#allocation8 + $0x19d4] sm:$0xf0]  ;;  %v11689_v20 = vld [vmem:[#allocation8 + $0x7d8] sm:$0xf0] }
 0x2d5   :  { %v14503_v62 = vld [vmem:[#allocation8 + $0x1d98] sm:$0xf]  ;;  %v13992_v25 = vor.u32 %v16788_v54, %v13991_v45  ;;  %7157 = vmatpush.bf16.msrb.mxu1 %v13480_v2 }
 0x2d6   :  { %v16916_v7 = vld [vmem:[#allocation8 + $0x1dd4] sm:$0xf0] }
 0x2d7   :  { %v12903_v35 = vld [vmem:[#allocation8 + $0x1118] sm:$0xf]  ;;  %v14504_v19 = vor.u32 %v16916_v7, %v14503_v62  ;;  %7171 = vmatpush.bf16.msrb.mxu2 %v13992_v25 }
 0x2d8   :  { %v16516_v56 = vld [vmem:[#allocation8 + $0x1154] sm:$0xf0] }
 0x2d9   :  { %v13415_v9 = vld [vmem:[#allocation8 + $0x1518] sm:$0xf]  ;;  %v12904_v24 = vor.u32 %v16516_v56, %v12903_v35  ;;  %7185 = vmatpush.bf16.msrb.mxu3 %v14504_v19 }
 0x2da   :  { %v16644_v15 = vld [vmem:[#allocation8 + $0x1554] sm:$0xf0] }
 0x2db   :  { %v13927_v14 = vld [vmem:[#allocation8 + $0x1918] sm:$0xf]  ;;  %v13416_v36 = vor.u32 %v16644_v15, %v13415_v9  ;;  %7144 = vmatpush.bf16.msrb.mxu0 %v12904_v24 }
 0x2dc   :  { %v16772_v26 = vld [vmem:[#allocation8 + $0x1954] sm:$0xf0] }
 0x2dd   :  { %v14439_v5 = vld [vmem:[#allocation8 + $0x1d18] sm:$0xf]  ;;  %v13928_v4 = vor.u32 %v16772_v26, %v13927_v14  ;;  %7158 = vmatpush.bf16.msrb.mxu1 %v13416_v36 }
 0x2de   :  { %v16900_v6 = vld [vmem:[#allocation8 + $0x1d54] sm:$0xf0] }
 0x2df   :  { %v12839_v33 = vld [vmem:[#allocation8 + $0x1098] sm:$0xf]  ;;  %v14440_v46 = vor.u32 %v16900_v6, %v14439_v5  ;;  %7172 = vmatpush.bf16.msrb.mxu2 %v13928_v4  ;;  %v16076_v5 = vld [vmem:[#allocation8 + $0x39c] sm:$0xf] }
 0x2e0   :  { %v16500_v38 = vld [vmem:[#allocation8 + $0x10d4] sm:$0xf0]  ;;  %v11177_v6 = vld [vmem:[#allocation8 + $0x3d8] sm:$0xf0] }
 0x2e1   :  { %v13351_v32 = vld [vmem:[#allocation8 + $0x1498] sm:$0xf]  ;;  %v12840_v41 = vor.u32 %v16500_v38, %v12839_v33  ;;  %7186 = vmatpush.bf16.msrb.mxu3 %v14440_v46  ;;  %v16332_v33 = vld [vmem:[#allocation8 + $0xb9c] sm:$0xf] }
 0x2e2   :  { %v16628_v45 = vld [vmem:[#allocation8 + $0x14d4] sm:$0xf0]  ;;  %v12201_v38 = vld [vmem:[#allocation8 + $0xbd8] sm:$0xf0] }
 0x2e3   :  { %v13863_v54 = vld [vmem:[#allocation8 + $0x1898] sm:$0xf]  ;;  %v13352_v2 = vor.u32 %v16628_v45, %v13351_v32  ;;  %7145 = vmatpush.bf16.msrb.mxu0 %v12840_v41  ;;  %v16460_v32 = vld [vmem:[#allocation8 + $0xf9c] sm:$0xf] }
 0x2e4   :  { %v16756_v62 = vld [vmem:[#allocation8 + $0x18d4] sm:$0xf0]  ;;  %v12713_v45 = vld [vmem:[#allocation8 + $0xfd8] sm:$0xf0] }
 0x2e5   :  { %v14375_v7 = vld [vmem:[#allocation8 + $0x1c98] sm:$0xf]  ;;  %v13864_v25 = vor.u32 %v16756_v62, %v13863_v54  ;;  %7159 = vmatpush.bf16.msrb.mxu1 %v13352_v2  ;;  %v11692_v54 = vor.u32 %v16204_v27, %v11689_v20  ;;  %v12204_v62 = vor.u32 %v16332_v33, %v12201_v38  ;;  %v16188_v41 = vld [vmem:[#allocation8 + $0x71c] sm:$0xf] }
 0x2e6   :  { %v16884_v13 = vld [vmem:[#allocation8 + $0x1cd4] sm:$0xf0]  ;;  %v12137_v2 = vld [vmem:[#allocation8 + $0xb58] sm:$0xf0] }
 0x2e7   :  { %v12775_v59 = vld [vmem:[#allocation8 + $0x1018] sm:$0xf]  ;;  %v14376_v14 = vor.u32 %v16884_v13, %v14375_v7  ;;  %7173 = vmatpush.bf16.msrb.mxu2 %v13864_v25  ;;  %v11180_v13 = vor.u32 %v16076_v5, %v11177_v6  ;;  %v17775_v7 = vpop.f32.mrf.mxu0  ;;  %v16444_v25 = vld [vmem:[#allocation8 + $0xf1c] sm:$0xf] }
 0x2e8   :  { %v16484_v35 = vld [vmem:[#allocation8 + $0x1054] sm:$0xf0]  ;;  %18436 = vst [vmem:[#allocation36_spill] sm:$0xff] %v17775_v7  ;;  %v16172_v5 = vld [vmem:[#allocation8 + $0x69c] sm:$0xf] }
 0x2e9   :  { %v13287_v56 = vld [vmem:[#allocation8 + $0x1418] sm:$0xf]  ;;  %v12776_v24 = vor.u32 %v16484_v35, %v12775_v59  ;;  %7187 = vmatpush.bf16.msrb.mxu3 %v14376_v14  ;;  %v12716_v59 = vor.u32 %v16460_v32, %v12713_v45  ;;  %v11625_v35 = vld [vmem:[#allocation8 + $0x758] sm:$0xf0]  ;;  %v12143_v7 = vld [vmem:[#allocation8 + $0xb20] sm:$0xf] }
 0x2ea   :  { %v16612_v9 = vld [vmem:[#allocation8 + $0x1454] sm:$0xf0]  ;;  %v11628_v14 = vor.u32 %v16188_v41, %v11625_v35  ;;  %v11561_v27 = vld [vmem:[#allocation8 + $0x6d8] sm:$0xf0] }
 0x2eb   :  { %v13799_v15 = vld [vmem:[#allocation8 + $0x1818] sm:$0xf]  ;;  %v13288_v36 = vor.u32 %v16612_v9, %v13287_v56  ;;  %7146 = vmatpush.bf16.msrb.mxu0 %v12776_v24  ;;  %v12649_v56 = vld [vmem:[#allocation8 + $0xf58] sm:$0xf0]  ;;  %v17777_v9 = vpop.f32.mrf.mxu1  ;;  %v11564_v38 = vor.u32 %v16172_v5, %v11561_v27 }
 0x2ec   :  { %v16740_v19 = vld [vmem:[#allocation8 + $0x1854] sm:$0xf0]  ;;  %18437 = vst [vmem:[#allocation37_spill] sm:$0xff] %v17777_v9  ;;  %v12652_v6 = vor.u32 %v16444_v25, %v12649_v56  ;;  %v16300_v24 = vld [vmem:[#allocation8 + $0xa9c] sm:$0xf] }
 0x2ed   :  { %v14311_v26 = vld [vmem:[#allocation8 + $0x1c18] sm:$0xf]  ;;  %v13800_v4 = vor.u32 %v16740_v19, %v13799_v15  ;;  %7160 = vmatpush.bf16.msrb.mxu1 %v13288_v36  ;;  %v11116_v15 = vor.u32 %v16060_v28, %v11113_v21  ;;  %v12140_v19 = vor.u32 %v16316_v52, %v12137_v2  ;;  %v12073_v20 = vld [vmem:[#allocation8 + $0xad8] sm:$0xf0]  ;;  %v17783_v28 = vpop.f32.mrf.mxu2 }
 0x2ee   :  { %v16868_v57 = vld [vmem:[#allocation8 + $0x1c54] sm:$0xf0]  ;;  %7147 = vmatmul.bf16.vlgmr.msrb.gmra.mxu0 %v17633_v39  ;;  %v16428_v33 = vld [vmem:[#allocation8 + $0xe9c] sm:$0xf]  ;;  %18438 = vst [vmem:[#allocation38_spill] sm:$0xff] %v17783_v28  ;;  %v12076_v36 = vor.u32 %v16300_v24, %v12073_v20 }
 0x2ef   :  { %v14312_v46 = vor.u32 %v16868_v57, %v14311_v26  ;;  %7174 = vmatpush.bf16.msrb.mxu2 %v13800_v4  ;;  %7195 = vmatpush.bf16.msra.mxu0 %v11180_v13  ;;  %v16044_v26 = vld [vmem:[#allocation8 + $0x29c] sm:$0xf]  ;;  %v17785_v13 = vpop.f32.mrf.mxu3 }
 0x2f0   :  { %v11049_v57 = vld [vmem:[#allocation8 + $0x2d8] sm:$0xf0]  ;;  %7161 = vmatmul.bf16.vlgmr.msrb.gmra.mxu1 %v17637_v44  ;;  %18439 = vst [vmem:[#allocation39_spill] sm:$0xff] %v17785_v13 }
 0x2f1   :  { %7188 = vmatpush.bf16.msrb.mxu3 %v14312_v46  ;;  %7209 = vmatpush.bf16.msra.mxu1 %v11692_v54  ;;  %v12585_v21 = vld [vmem:[#allocation8 + $0xed8] sm:$0xf0]  ;;  %v11052_v52 = vor.u32 %v16044_v26, %v11049_v57 }
 0x2f2   :  { %7175 = vmatmul.bf16.vlgmr.msrb.gmra.mxu2 %v17635_v43  ;;  %v16028_v4 = vld [vmem:[#allocation8 + $0x21c] sm:$0xf]  ;;  %v12588_v46 = vor.u32 %v16428_v33, %v12585_v21 }
 0x2f3   :  { %7223 = vmatpush.bf16.msra.mxu2 %v12204_v62  ;;  %7196 = vmatpush.bf16.msra.mxu0 %v11116_v15  ;;  %v10985_v32 = vld [vmem:[#allocation8 + $0x258] sm:$0xf0] }
 0x2f4   :  { %7189 = vmatmul.bf16.vlgmr.msrb.gmra.mxu3 %v17639_v47  ;;  %v16156_v45 = vld [vmem:[#allocation8 + $0x61c] sm:$0xf]  ;;  %v10988_v56 = vor.u32 %v16028_v4, %v10985_v32 }
 0x2f5   :  { %7237 = vmatpush.bf16.msra.mxu3 %v12716_v59  ;;  %7210 = vmatpush.bf16.msra.mxu1 %v11628_v14  ;;  %v11497_v54 = vld [vmem:[#allocation8 + $0x658] sm:$0xf0]  ;;  %v6924_v59 = vpop.f32.mrf.mxu0 }
 0x2f6   :  { %v16284_v62 = vld [vmem:[#allocation8 + $0xa1c] sm:$0xf]  ;;  %v6925_v25 = vadd.f32 %v6924_v59, %v17773_v42  ;;  %v11500_v15 = vor.u32 %v16156_v45, %v11497_v54  ;;  %v6952_v54 = vpop.f32.mrf.mxu2 }
 0x2f7   :  { %7224 = vmatpush.bf16.msra.mxu2 %v12140_v19  ;;  %v12009_v41 = vld [vmem:[#allocation8 + $0xa58] sm:$0xf0]  ;;  %7197 = vmatpush.bf16.msra.mxu0 %v11052_v52  ;;  %v6938_v19 = vpop.f32.mrf.mxu1 }
 0x2f8   :  { %v16412_v35 = vld [vmem:[#allocation8 + $0xe1c] sm:$0xf]  ;;  %v12012_v14 = vor.u32 %v16284_v62, %v12009_v41  ;;  %v6939_v27 = vadd.f32 %v6938_v19, %v6925_v25  ;;  %v6966_v25 = vpop.f32.mrf.mxu3 }
 0x2f9   :  { %7238 = vmatpush.bf16.msra.mxu3 %v12652_v6  ;;  %v12521_v2 = vld [vmem:[#allocation8 + $0xe58] sm:$0xf0]  ;;  %7211 = vmatpush.bf16.msra.mxu1 %v11564_v38 }
 0x2fa   :  { %v16012_v26 = vld [vmem:[#allocation8 + $0x19c] sm:$0xf]  ;;  %v12524_v6 = vor.u32 %v16412_v35, %v12521_v2  ;;  %v6953_v59 = vadd.f32 %v6952_v54, %v6939_v27 }
 0x2fb   :  { %7225 = vmatpush.bf16.msra.mxu2 %v12076_v36  ;;  %v10921_v57 = vld [vmem:[#allocation8 + $0x1d8] sm:$0xf0]  ;;  %7198 = vmatpush.bf16.msra.mxu0 %v10988_v56 }
 0x2fc   :  { %v16140_v5 = vld [vmem:[#allocation8 + $0x59c] sm:$0xf]  ;;  %v10924_v52 = vor.u32 %v16012_v26, %v10921_v57 }
 0x2fd   :  { %7239 = vmatpush.bf16.msra.mxu3 %v12588_v46  ;;  %v11433_v24 = vld [vmem:[#allocation8 + $0x5d8] sm:$0xf0]  ;;  %7212 = vmatpush.bf16.msra.mxu1 %v11500_v15  ;;  %v17788_v15 = vadd.f32 %v6966_v25, %v6953_v59 }
 0x2fe   :  { %v16268_v20 = vld [vmem:[#allocation8 + $0x99c] sm:$0xf]  ;;  %v11436_v42 = vor.u32 %v16140_v5, %v11433_v24 }
 0x2ff   :  { %v11945_v33 = vld [vmem:[#allocation8 + $0x9d8] sm:$0xf0]  ;;  %7226 = vmatpush.bf16.msra.mxu2 %v12012_v14  ;;  %7199 = vmatpush.bf16.msra.mxu0 %v10924_v52  ;;  %18440 = vst [vmem:[#allocation40_spill] sm:$0xff] %v17788_v15 }
 0x300   :  { %v16396_v21 = vld [vmem:[#allocation8 + $0xd9c] sm:$0xf]  ;;  %v11948_v38 = vor.u32 %v16268_v20, %v11945_v33 }
 0x301   :  { %v12457_v13 = vld [vmem:[#allocation8 + $0xdd8] sm:$0xf0]  ;;  %7240 = vmatpush.bf16.msra.mxu3 %v12524_v6  ;;  %7213 = vmatpush.bf16.msra.mxu1 %v11436_v42 }
 0x302   :  { %v15996_v36 = vld [vmem:[#allocation8 + $0x11c] sm:$0xf]  ;;  %v12460_v45 = vor.u32 %v16396_v21, %v12457_v13 }
 0x303   :  { %v10857_v4 = vld [vmem:[#allocation8 + $0x158] sm:$0xf0]  ;;  %7227 = vmatpush.bf16.msra.mxu2 %v11948_v38 }
 0x304   :  { %v16124_v32 = vld [vmem:[#allocation8 + $0x51c] sm:$0xf]  ;;  %v10860_v56 = vor.u32 %v15996_v36, %v10857_v4 }
 0x305   :  { %v11369_v46 = vld [vmem:[#allocation8 + $0x558] sm:$0xf0]  ;;  %7241 = vmatpush.bf16.msra.mxu3 %v12460_v45 }
 0x306   :  { %v16252_v62 = vld [vmem:[#allocation8 + $0x91c] sm:$0xf]  ;;  %v11372_v14 = vor.u32 %v16124_v32, %v11369_v46  ;;  %7200 = vmatpush.bf16.msra.mxu0 %v10860_v56 }
 0x307   :  { %v11881_v41 = vld [vmem:[#allocation8 + $0x958] sm:$0xf0] }
 0x308   :  { %v16380_v35 = vld [vmem:[#allocation8 + $0xd1c] sm:$0xf]  ;;  %v11884_v19 = vor.u32 %v16252_v62, %v11881_v41  ;;  %7214 = vmatpush.bf16.msra.mxu1 %v11372_v14 }
 0x309   :  { %v12393_v2 = vld [vmem:[#allocation8 + $0xd58] sm:$0xf0] }
 0x30a   :  { %v15980_v26 = vld [vmem:[#allocation8 + $0x9c] sm:$0xf]  ;;  %v12396_v13 = vor.u32 %v16380_v35, %v12393_v2  ;;  %7228 = vmatpush.bf16.msra.mxu2 %v11884_v19 }
 0x30b   :  { %v10793_v57 = vld [vmem:[#allocation8 + $0xd8] sm:$0xf0] }
 0x30c   :  { %v16108_v5 = vld [vmem:[#allocation8 + $0x49c] sm:$0xf]  ;;  %v10796_v21 = vor.u32 %v15980_v26, %v10793_v57  ;;  %7242 = vmatpush.bf16.msra.mxu3 %v12396_v13 }
 0x30d   :  { %v11305_v6 = vld [vmem:[#allocation8 + $0x4d8] sm:$0xf0] }
 0x30e   :  { %v16236_v24 = vld [vmem:[#allocation8 + $0x89c] sm:$0xf]  ;;  %v11308_v42 = vor.u32 %v16108_v5, %v11305_v6  ;;  %7201 = vmatpush.bf16.msra.mxu0 %v10796_v21 }
 0x30f   :  { %v11817_v20 = vld [vmem:[#allocation8 + $0x8d8] sm:$0xf0] }
 0x310   :  { %v16364_v27 = vld [vmem:[#allocation8 + $0xc9c] sm:$0xf]  ;;  %v11820_v38 = vor.u32 %v16236_v24, %v11817_v20  ;;  %7215 = vmatpush.bf16.msra.mxu1 %v11308_v42 }
 0x311   :  { %v12329_v33 = vld [vmem:[#allocation8 + $0xcd8] sm:$0xf0] }
 0x312   :  { %v15964_v52 = vld [vmem:[#allocation8 + $0x1c] sm:$0xf]  ;;  %v12332_v46 = vor.u32 %v16364_v27, %v12329_v33  ;;  %7229 = vmatpush.bf16.msra.mxu2 %v11820_v38 }
 0x313   :  { %v10729_v36 = vld [vmem:[#allocation8 + $0x58] sm:$0xf0] }
 0x314   :  { %v16092_v4 = vld [vmem:[#allocation8 + $0x41c] sm:$0xf]  ;;  %v10732_v25 = vor.u32 %v15964_v52, %v10729_v36  ;;  %7243 = vmatpush.bf16.msra.mxu3 %v12332_v46 }
 0x315   :  { %v11241_v32 = vld [vmem:[#allocation8 + $0x458] sm:$0xf0] }
 0x316   :  { %v16220_v54 = vld [vmem:[#allocation8 + $0x81c] sm:$0xf]  ;;  %v11244_v14 = vor.u32 %v16092_v4, %v11241_v32  ;;  %7202 = vmatpush.bf16.msra.mxu0 %v10732_v25  ;;  %v17790_v4 = vpop.f32.mrf.mxu0  ;;  %v17792_v32 = vpop.f32.mrf.mxu1 }
 0x317   :  { %v11753_v45 = vld [vmem:[#allocation8 + $0x858] sm:$0xf0]  ;;  %18441 = vst [vmem:[#allocation41_spill] sm:$0xff] %v17790_v4  ;;  %v16069_v4 = vld [vmem:[#allocation8 + $0x35c] sm:$0xf0] }
 0x318   :  { %v16348_v62 = vld [vmem:[#allocation8 + $0xc1c] sm:$0xf]  ;;  %v11756_v19 = vor.u32 %v16220_v54, %v11753_v45  ;;  %7216 = vmatpush.bf16.msra.mxu1 %v11244_v14  ;;  %18442 = vst [vmem:[#allocation42_spill] sm:$0xff] %v17792_v32  ;;  %v11119_v32 = vld [vmem:[#allocation8 + $0x320] sm:$0xf] }
 0x319   :  { %v12265_v41 = vld [vmem:[#allocation8 + $0xc58] sm:$0xf0]  ;;  %7203 = vmatmul.bf16.vlgmr.msra.gmra.mxu0 %v17621_v58 }
 0x31a   :  { %v16588_v59 = vld [vmem:[#allocation8 + $0x139c] sm:$0xf]  ;;  %v12268_v13 = vor.u32 %v16348_v62, %v12265_v41  ;;  %7230 = vmatpush.bf16.msra.mxu2 %v11756_v19 }
 0x31b   :  { %v13225_v35 = vld [vmem:[#allocation8 + $0x13d8] sm:$0xf0]  ;;  %7217 = vmatmul.bf16.vlgmr.msra.gmra.mxu1 %v17627_v10 }
 0x31c   :  { %v16716_v2 = vld [vmem:[#allocation8 + $0x179c] sm:$0xf]  ;;  %v13228_v24 = vor.u32 %v16588_v59, %v13225_v35  ;;  %7244 = vmatpush.bf16.msra.mxu3 %v12268_v13 }
 0x31d   :  { %v13737_v56 = vld [vmem:[#allocation8 + $0x17d8] sm:$0xf0]  ;;  %7231 = vmatmul.bf16.vlgmr.msra.gmra.mxu2 %v17623_v1 }
 0x31e   :  { %v16844_v26 = vld [vmem:[#allocation8 + $0x1b9c] sm:$0xf]  ;;  %v13740_v20 = vor.u32 %v16716_v2, %v13737_v56  ;;  %7251 = vmatpush.bf16.msrb.mxu0 %v13228_v24 }
 0x31f   :  { %v14249_v57 = vld [vmem:[#allocation8 + $0x1bd8] sm:$0xf0]  ;;  %7245 = vmatmul.bf16.vlgmr.msra.gmra.mxu3 %v17629_v17 }
 0x320   :  { %v16972_v5 = vld [vmem:[#allocation8 + $0x1f9c] sm:$0xf]  ;;  %v14252_v27 = vor.u32 %v16844_v26, %v14249_v57  ;;  %7265 = vmatpush.bf16.msrb.mxu1 %v13740_v20 }
 0x321   :  { %v14761_v6 = vld [vmem:[#allocation8 + $0x1fd8] sm:$0xf0] }
 0x322   :  { %v16572_v33 = vld [vmem:[#allocation8 + $0x131c] sm:$0xf]  ;;  %v14764_v21 = vor.u32 %v16972_v5, %v14761_v6  ;;  %7279 = vmatpush.bf16.msrb.mxu2 %v14252_v27  ;;  %v17798_v6 = vpop.f32.mrf.mxu2 }
 0x323   :  { %v13161_v15 = vld [vmem:[#allocation8 + $0x1358] sm:$0xf0]  ;;  %18443 = vst [vmem:[#allocation43_spill] sm:$0xff] %v17798_v6 }
 0x324   :  { %v16700_v28 = vld [vmem:[#allocation8 + $0x171c] sm:$0xf]  ;;  %v13164_v54 = vor.u32 %v16572_v33, %v13161_v15  ;;  %7293 = vmatpush.bf16.msrb.mxu3 %v14764_v21  ;;  %v17800_v33 = vpop.f32.mrf.mxu3 }
 0x325   :  { %v13673_v52 = vld [vmem:[#allocation8 + $0x1758] sm:$0xf0]  ;;  %18444 = vst [vmem:[#allocation44_spill] sm:$0xff] %v17800_v33 }
 0x326   :  { %v16828_v36 = vld [vmem:[#allocation8 + $0x1b1c] sm:$0xf]  ;;  %v13676_v46 = vor.u32 %v16700_v28, %v13673_v52  ;;  %7252 = vmatpush.bf16.msrb.mxu0 %v13164_v54 }
 0x327   :  { %v14185_v9 = vld [vmem:[#allocation8 + $0x1b58] sm:$0xf0] }
 0x328   :  { %v16956_v42 = vld [vmem:[#allocation8 + $0x1f1c] sm:$0xf]  ;;  %v14188_v45 = vor.u32 %v16828_v36, %v14185_v9  ;;  %7266 = vmatpush.bf16.msrb.mxu1 %v13676_v46 }
 0x329   :  { %v14697_v38 = vld [vmem:[#allocation8 + $0x1f58] sm:$0xf0] }
 0x32a   :  { %v16556_v62 = vld [vmem:[#allocation8 + $0x129c] sm:$0xf]  ;;  %v14700_v35 = vor.u32 %v16956_v42, %v14697_v38  ;;  %7280 = vmatpush.bf16.msrb.mxu2 %v14188_v45  ;;  %v6980_v42 = vpop.f32.mrf.mxu0  ;;  %v6994_v38 = vpop.f32.mrf.mxu1 }
 0x32b   :  { %v13097_v41 = vld [vmem:[#allocation8 + $0x12d8] sm:$0xf0] }
 0x32c   :  { %v16684_v59 = vld [vmem:[#allocation8 + $0x169c] sm:$0xf]  ;;  %v13100_v15 = vor.u32 %v16556_v62, %v13097_v41  ;;  %7294 = vmatpush.bf16.msrb.mxu3 %v14700_v35 }
 0x32d   :  { %v13609_v2 = vld [vmem:[#allocation8 + $0x16d8] sm:$0xf0] }
 0x32e   :  { %v16812_v25 = vld [vmem:[#allocation8 + $0x1a9c] sm:$0xf]  ;;  %v13612_v9 = vor.u32 %v16684_v59, %v13609_v2  ;;  %7253 = vmatpush.bf16.msrb.mxu0 %v13100_v15  ;;  %v6995_v59 = vadd.f32 %v6994_v38, %v6980_v42 }
 0x32f   :  { %v14121_v56 = vld [vmem:[#allocation8 + $0x1ad8] sm:$0xf0] }
 0x330   :  { %v16940_v26 = vld [vmem:[#allocation8 + $0x1e9c] sm:$0xf]  ;;  %v14124_v28 = vor.u32 %v16812_v25, %v14121_v56  ;;  %7267 = vmatpush.bf16.msrb.mxu1 %v13612_v9 }
 0x331   :  { %v14633_v57 = vld [vmem:[#allocation8 + $0x1ed8] sm:$0xf0] }
 0x332   :  { %v16540_v14 = vld [vmem:[#allocation8 + $0x121c] sm:$0xf]  ;;  %v14636_v13 = vor.u32 %v16940_v26, %v14633_v57  ;;  %7281 = vmatpush.bf16.msrb.mxu2 %v14124_v28 }
 0x333   :  { %v13033_v19 = vld [vmem:[#allocation8 + $0x1258] sm:$0xf0] }
 0x334   :  { %v16668_v5 = vld [vmem:[#allocation8 + $0x161c] sm:$0xf]  ;;  %v13036_v36 = vor.u32 %v16540_v14, %v13033_v19  ;;  %7295 = vmatpush.bf16.msrb.mxu3 %v14636_v13 }
 0x335   :  { %v13545_v24 = vld [vmem:[#allocation8 + $0x1658] sm:$0xf0] }
 0x336   :  { %v16796_v20 = vld [vmem:[#allocation8 + $0x1a1c] sm:$0xf]  ;;  %v13548_v54 = vor.u32 %v16668_v5, %v13545_v24  ;;  %7254 = vmatpush.bf16.msrb.mxu0 %v13036_v36  ;;  %v7022_v36 = vpop.f32.mrf.mxu3 }
 0x337   :  { %v14057_v27 = vld [vmem:[#allocation8 + $0x1a58] sm:$0xf0] }
 0x338   :  { %v16924_v21 = vld [vmem:[#allocation8 + $0x1e1c] sm:$0xf]  ;;  %v14060_v46 = vor.u32 %v16796_v20, %v14057_v27  ;;  %7268 = vmatpush.bf16.msrb.mxu1 %v13548_v54 }
 0x339   :  { %v14569_v52 = vld [vmem:[#allocation8 + $0x1e58] sm:$0xf0] }
 0x33a   :  { %v16524_v45 = vld [vmem:[#allocation8 + $0x119c] sm:$0xf]  ;;  %v14572_v35 = vor.u32 %v16924_v21, %v14569_v52  ;;  %7282 = vmatpush.bf16.msrb.mxu2 %v14060_v46  ;;  %v7008_v21 = vpop.f32.mrf.mxu2 }
 0x33b   :  { %v12969_v62 = vld [vmem:[#allocation8 + $0x11d8] sm:$0xf0]  ;;  %v7009_v38 = vadd.f32 %v7008_v21, %v6995_v59 }
 0x33c   :  { %v16652_v41 = vld [vmem:[#allocation8 + $0x159c] sm:$0xf]  ;;  %v12972_v15 = vor.u32 %v16524_v45, %v12969_v62  ;;  %7296 = vmatpush.bf16.msrb.mxu3 %v14572_v35 }
 0x33d   :  { %v13481_v2 = vld [vmem:[#allocation8 + $0x15d8] sm:$0xf0] }
 0x33e   :  { %v16780_v25 = vld [vmem:[#allocation8 + $0x199c] sm:$0xf]  ;;  %v13484_v14 = vor.u32 %v16652_v41, %v13481_v2  ;;  %7255 = vmatpush.bf16.msrb.mxu0 %v12972_v15  ;;  %v17802_v2 = vadd.f32 %v7022_v36, %v7009_v38  ;;  %v11695_v38 = vld [vmem:[#allocation8 + $0x7a0] sm:$0xf] }
 0x33f   :  { %v13993_v56 = vld [vmem:[#allocation8 + $0x19d8] sm:$0xf0]  ;;  %v16213_v36 = vld [vmem:[#allocation8 + $0x7dc] sm:$0xf0] }
 0x340   :  { %v16908_v26 = vld [vmem:[#allocation8 + $0x1d9c] sm:$0xf]  ;;  %v13996_v9 = vor.u32 %v16780_v25, %v13993_v56  ;;  %7269 = vmatpush.bf16.msrb.mxu1 %v13484_v14 }
 0x341   :  { %v14505_v57 = vld [vmem:[#allocation8 + $0x1dd8] sm:$0xf0] }
 0x342   :  { %v16508_v28 = vld [vmem:[#allocation8 + $0x111c] sm:$0xf]  ;;  %v14508_v24 = vor.u32 %v16908_v26, %v14505_v57  ;;  %7283 = vmatpush.bf16.msrb.mxu2 %v13996_v9 }
 0x343   :  { %v12905_v19 = vld [vmem:[#allocation8 + $0x1158] sm:$0xf0] }
 0x344   :  { %v16636_v5 = vld [vmem:[#allocation8 + $0x151c] sm:$0xf]  ;;  %v12908_v33 = vor.u32 %v16508_v28, %v12905_v19  ;;  %7297 = vmatpush.bf16.msrb.mxu3 %v14508_v24 }
 0x345   :  { %v13417_v20 = vld [vmem:[#allocation8 + $0x1558] sm:$0xf0] }
 0x346   :  { %v16764_v27 = vld [vmem:[#allocation8 + $0x191c] sm:$0xf]  ;;  %v13420_v54 = vor.u32 %v16636_v5, %v13417_v20  ;;  %7256 = vmatpush.bf16.msrb.mxu0 %v12908_v33 }
 0x347   :  { %v13929_v13 = vld [vmem:[#allocation8 + $0x1958] sm:$0xf0] }
 0x348   :  { %v16892_v52 = vld [vmem:[#allocation8 + $0x1d1c] sm:$0xf]  ;;  %v13932_v46 = vor.u32 %v16764_v27, %v13929_v13  ;;  %7270 = vmatpush.bf16.msrb.mxu1 %v13420_v54 }
 0x349   :  { %v14441_v42 = vld [vmem:[#allocation8 + $0x1d58] sm:$0xf0] }
 0x34a   :  { %v16492_v45 = vld [vmem:[#allocation8 + $0x109c] sm:$0xf]  ;;  %v14444_v35 = vor.u32 %v16892_v52, %v14441_v42  ;;  %7284 = vmatpush.bf16.msrb.mxu2 %v13932_v46  ;;  %v11183_v52 = vld [vmem:[#allocation8 + $0x3a0] sm:$0xf] }
 0x34b   :  { %v12841_v62 = vld [vmem:[#allocation8 + $0x10d8] sm:$0xf0]  ;;  %v16085_v42 = vld [vmem:[#allocation8 + $0x3dc] sm:$0xf0] }
 0x34c   :  { %v16620_v41 = vld [vmem:[#allocation8 + $0x149c] sm:$0xf]  ;;  %v12844_v59 = vor.u32 %v16492_v45, %v12841_v62  ;;  %7298 = vmatpush.bf16.msrb.mxu3 %v14444_v35  ;;  %v12207_v45 = vld [vmem:[#allocation8 + $0xba0] sm:$0xf] }
 0x34d   :  { %v13353_v25 = vld [vmem:[#allocation8 + $0x14d8] sm:$0xf0]  ;;  %v16341_v62 = vld [vmem:[#allocation8 + $0xbdc] sm:$0xf0] }
 0x34e   :  { %v16748_v56 = vld [vmem:[#allocation8 + $0x189c] sm:$0xf]  ;;  %v13356_v14 = vor.u32 %v16620_v41, %v13353_v25  ;;  %7257 = vmatpush.bf16.msrb.mxu0 %v12844_v59  ;;  %v12719_v41 = vld [vmem:[#allocation8 + $0xfa0] sm:$0xf] }
 0x34f   :  { %v13865_v26 = vld [vmem:[#allocation8 + $0x18d8] sm:$0xf0]  ;;  %v16469_v25 = vld [vmem:[#allocation8 + $0xfdc] sm:$0xf0] }
 0x350   :  { %v16876_v57 = vld [vmem:[#allocation8 + $0x1c9c] sm:$0xf]  ;;  %v13868_v9 = vor.u32 %v16748_v56, %v13865_v26  ;;  %7271 = vmatpush.bf16.msrb.mxu1 %v13356_v14  ;;  %v11696_v56 = vor.u32 %v16213_v36, %v11695_v38  ;;  %v12208_v26 = vor.u32 %v16341_v62, %v12207_v45  ;;  %v11631_v59 = vld [vmem:[#allocation8 + $0x720] sm:$0xf] }
 0x351   :  { %v14377_v6 = vld [vmem:[#allocation8 + $0x1cd8] sm:$0xf0]  ;;  %v16325_v14 = vld [vmem:[#allocation8 + $0xb5c] sm:$0xf0] }
 0x352   :  { %v16476_v15 = vld [vmem:[#allocation8 + $0x101c] sm:$0xf]  ;;  %v14380_v27 = vor.u32 %v16876_v57, %v14377_v6  ;;  %7285 = vmatpush.bf16.msrb.mxu2 %v13868_v9  ;;  %v11184_v6 = vor.u32 %v16085_v42, %v11183_v52  ;;  %v17804_v57 = vpop.f32.mrf.mxu0  ;;  %v12655_v9 = vld [vmem:[#allocation8 + $0xf20] sm:$0xf] }
 0x353   :  { %v12777_v28 = vld [vmem:[#allocation8 + $0x1058] sm:$0xf0]  ;;  %18445 = vst [vmem:[#allocation45_spill] sm:$0xff] %v17804_v57  ;;  %v11567_v52 = vld [vmem:[#allocation8 + $0x6a0] sm:$0xf] }
 0x354   :  { %v16604_v19 = vld [vmem:[#allocation8 + $0x141c] sm:$0xf]  ;;  %v12780_v33 = vor.u32 %v16476_v15, %v12777_v28  ;;  %7299 = vmatpush.bf16.msrb.mxu3 %v14380_v27  ;;  %v12720_v15 = vor.u32 %v16469_v25, %v12719_v41  ;;  %v16197_v28 = vld [vmem:[#allocation8 + $0x75c] sm:$0xf0]  ;;  %v16317_v57 = vld [vmem:[#allocation8 + $0xb24] sm:$0xf] }
 0x355   :  { %v13289_v5 = vld [vmem:[#allocation8 + $0x1458] sm:$0xf0]  ;;  %v11632_v27 = vor.u32 %v16197_v28, %v11631_v59  ;;  %v16181_v38 = vld [vmem:[#allocation8 + $0x6dc] sm:$0xf0] }
 0x356   :  { %v16732_v20 = vld [vmem:[#allocation8 + $0x181c] sm:$0xf]  ;;  %v13292_v54 = vor.u32 %v16604_v19, %v13289_v5  ;;  %7258 = vmatpush.bf16.msrb.mxu0 %v12780_v33  ;;  %v16453_v19 = vld [vmem:[#allocation8 + $0xf5c] sm:$0xf0]  ;;  %v17806_v5 = vpop.f32.mrf.mxu1  ;;  %v11568_v62 = vor.u32 %v16181_v38, %v11567_v52 }
 0x357   :  { %v13801_v24 = vld [vmem:[#allocation8 + $0x1858] sm:$0xf0]  ;;  %18446 = vst [vmem:[#allocation46_spill] sm:$0xff] %v17806_v5  ;;  %v12656_v42 = vor.u32 %v16453_v19, %v12655_v9  ;;  %v12079_v33 = vld [vmem:[#allocation8 + $0xaa0] sm:$0xf] }
 0x358   :  { %v16860_v13 = vld [vmem:[#allocation8 + $0x1c1c] sm:$0xf]  ;;  %v13804_v46 = vor.u32 %v16732_v20, %v13801_v24  ;;  %7272 = vmatpush.bf16.msrb.mxu1 %v13292_v54  ;;  %v11120_v20 = vor.u32 %v16069_v4, %v11119_v32  ;;  %v12144_v24 = vor.u32 %v16325_v14, %v12143_v7  ;;  %v16309_v36 = vld [vmem:[#allocation8 + $0xadc] sm:$0xf0]  ;;  %v17812_v32 = vpop.f32.mrf.mxu2 }
 0x359   :  { %v14313_v21 = vld [vmem:[#allocation8 + $0x1c58] sm:$0xf0]  ;;  %7259 = vmatmul.bf16.vlgmr.msrb.gmra.mxu0 %v17633_v39  ;;  %v12591_v45 = vld [vmem:[#allocation8 + $0xea0] sm:$0xf]  ;;  %18447 = vst [vmem:[#allocation47_spill] sm:$0xff] %v17812_v32  ;;  %v12080_v54 = vor.u32 %v16309_v36, %v12079_v33 }
 0x35a   :  { %v14316_v35 = vor.u32 %v16860_v13, %v14313_v21  ;;  %7286 = vmatpush.bf16.msrb.mxu2 %v13804_v46  ;;  %7307 = vmatpush.bf16.msra.mxu0 %v11184_v6  ;;  %v11055_v13 = vld [vmem:[#allocation8 + $0x2a0] sm:$0xf]  ;;  %v17814_v6 = vpop.f32.mrf.mxu3 }
 0x35b   :  { %v16053_v21 = vld [vmem:[#allocation8 + $0x2dc] sm:$0xf0]  ;;  %7273 = vmatmul.bf16.vlgmr.msrb.gmra.mxu1 %v17637_v44  ;;  %18448 = vst [vmem:[#allocation48_spill] sm:$0xff] %v17814_v6 }
 0x35c   :  { %7300 = vmatpush.bf16.msrb.mxu3 %v14316_v35  ;;  %7321 = vmatpush.bf16.msra.mxu1 %v11696_v56  ;;  %v16437_v4 = vld [vmem:[#allocation8 + $0xedc] sm:$0xf0]  ;;  %v11056_v7 = vor.u32 %v16053_v21, %v11055_v13 }
 0x35d   :  { %7287 = vmatmul.bf16.vlgmr.msrb.gmra.mxu2 %v17635_v43  ;;  %v10991_v46 = vld [vmem:[#allocation8 + $0x220] sm:$0xf]  ;;  %v12592_v35 = vor.u32 %v16437_v4, %v12591_v45 }
 0x35e   :  { %7335 = vmatpush.bf16.msra.mxu2 %v12208_v26  ;;  %7308 = vmatpush.bf16.msra.mxu0 %v11120_v20  ;;  %v16037_v41 = vld [vmem:[#allocation8 + $0x25c] sm:$0xf0] }
 0x35f   :  { %7301 = vmatmul.bf16.vlgmr.msrb.gmra.mxu3 %v17639_v47  ;;  %v11503_v25 = vld [vmem:[#allocation8 + $0x620] sm:$0xf]  ;;  %v10992_v19 = vor.u32 %v16037_v41, %v10991_v46 }
 0x360   :  { %7349 = vmatpush.bf16.msra.mxu3 %v12720_v15  ;;  %7322 = vmatpush.bf16.msra.mxu1 %v11632_v27  ;;  %v16165_v56 = vld [vmem:[#allocation8 + $0x65c] sm:$0xf0]  ;;  %v7036_v15 = vpop.f32.mrf.mxu0 }
 0x361   :  { %v12015_v26 = vld [vmem:[#allocation8 + $0xa20] sm:$0xf]  ;;  %v7037_v9 = vadd.f32 %v7036_v15, %v17802_v2  ;;  %v11504_v20 = vor.u32 %v16165_v56, %v11503_v25  ;;  %v7064_v56 = vpop.f32.mrf.mxu2 }
 0x362   :  { %7336 = vmatpush.bf16.msra.mxu2 %v12144_v24  ;;  %v16293_v59 = vld [vmem:[#allocation8 + $0xa5c] sm:$0xf0]  ;;  %7309 = vmatpush.bf16.msra.mxu0 %v11056_v7  ;;  %v7050_v24 = vpop.f32.mrf.mxu1 }
 0x363   :  { %v12527_v28 = vld [vmem:[#allocation8 + $0xe20] sm:$0xf]  ;;  %v12016_v27 = vor.u32 %v16293_v59, %v12015_v26  ;;  %v7051_v38 = vadd.f32 %v7050_v24, %v7037_v9  ;;  %v7078_v9 = vpop.f32.mrf.mxu3 }
 0x364   :  { %7350 = vmatpush.bf16.msra.mxu3 %v12656_v42  ;;  %v16421_v14 = vld [vmem:[#allocation8 + $0xe5c] sm:$0xf0]  ;;  %7323 = vmatpush.bf16.msra.mxu1 %v11568_v62 }
 0x365   :  { %v10927_v13 = vld [vmem:[#allocation8 + $0x1a0] sm:$0xf]  ;;  %v12528_v42 = vor.u32 %v16421_v14, %v12527_v28  ;;  %v7065_v15 = vadd.f32 %v7064_v56, %v7051_v38 }
 0x366   :  { %7337 = vmatpush.bf16.msra.mxu2 %v12080_v54  ;;  %v16021_v21 = vld [vmem:[#allocation8 + $0x1dc] sm:$0xf0]  ;;  %7310 = vmatpush.bf16.msra.mxu0 %v10992_v19 }
 0x367   :  { %v11439_v52 = vld [vmem:[#allocation8 + $0x5a0] sm:$0xf]  ;;  %v10928_v7 = vor.u32 %v16021_v21, %v10927_v13 }
 0x368   :  { %7351 = vmatpush.bf16.msra.mxu3 %v12592_v35  ;;  %v16149_v33 = vld [vmem:[#allocation8 + $0x5dc] sm:$0xf0]  ;;  %7324 = vmatpush.bf16.msra.mxu1 %v11504_v20  ;;  %v17817_v20 = vadd.f32 %v7078_v9, %v7065_v15 }
 0x369   :  { %v11951_v36 = vld [vmem:[#allocation8 + $0x9a0] sm:$0xf]  ;;  %v11440_v2 = vor.u32 %v16149_v33, %v11439_v52 }
 0x36a   :  { %v16277_v45 = vld [vmem:[#allocation8 + $0x9dc] sm:$0xf0]  ;;  %7338 = vmatpush.bf16.msra.mxu2 %v12016_v27  ;;  %7311 = vmatpush.bf16.msra.mxu0 %v10928_v7  ;;  %18449 = vst [vmem:[#allocation49_spill] sm:$0xff] %v17817_v20 }
 0x36b   :  { %v12463_v4 = vld [vmem:[#allocation8 + $0xda0] sm:$0xf]  ;;  %v11952_v62 = vor.u32 %v16277_v45, %v11951_v36 }
 0x36c   :  { %v16405_v6 = vld [vmem:[#allocation8 + $0xddc] sm:$0xf0]  ;;  %7352 = vmatpush.bf16.msra.mxu3 %v12528_v42  ;;  %7325 = vmatpush.bf16.msra.mxu1 %v11440_v2 }
 0x36d   :  { %v10863_v54 = vld [vmem:[#allocation8 + $0x120] sm:$0xf]  ;;  %v12464_v25 = vor.u32 %v16405_v6, %v12463_v4 }
 0x36e   :  { %v16005_v46 = vld [vmem:[#allocation8 + $0x15c] sm:$0xf0]  ;;  %7339 = vmatpush.bf16.msra.mxu2 %v11952_v62 }
 0x36f   :  { %v11375_v41 = vld [vmem:[#allocation8 + $0x520] sm:$0xf]  ;;  %v10864_v19 = vor.u32 %v16005_v46, %v10863_v54 }
 0x370   :  { %v16133_v35 = vld [vmem:[#allocation8 + $0x55c] sm:$0xf0]  ;;  %7353 = vmatpush.bf16.msra.mxu3 %v12464_v25 }
 0x371   :  { %v11887_v26 = vld [vmem:[#allocation8 + $0x920] sm:$0xf]  ;;  %v11376_v27 = vor.u32 %v16133_v35, %v11375_v41  ;;  %7312 = vmatpush.bf16.msra.mxu0 %v10864_v19 }
 0x372   :  { %v16261_v59 = vld [vmem:[#allocation8 + $0x95c] sm:$0xf0] }
 0x373   :  { %v12399_v28 = vld [vmem:[#allocation8 + $0xd20] sm:$0xf]  ;;  %v11888_v24 = vor.u32 %v16261_v59, %v11887_v26  ;;  %7326 = vmatpush.bf16.msra.mxu1 %v11376_v27 }
 0x374   :  { %v16389_v14 = vld [vmem:[#allocation8 + $0xd5c] sm:$0xf0] }
 0x375   :  { %v10799_v13 = vld [vmem:[#allocation8 + $0xa0] sm:$0xf]  ;;  %v12400_v6 = vor.u32 %v16389_v14, %v12399_v28  ;;  %7340 = vmatpush.bf16.msra.mxu2 %v11888_v24 }
 0x376   :  { %v15989_v21 = vld [vmem:[#allocation8 + $0xdc] sm:$0xf0] }
 0x377   :  { %v11311_v52 = vld [vmem:[#allocation8 + $0x4a0] sm:$0xf]  ;;  %v10800_v4 = vor.u32 %v15989_v21, %v10799_v13  ;;  %7354 = vmatpush.bf16.msra.mxu3 %v12400_v6 }
 0x378   :  { %v16117_v42 = vld [vmem:[#allocation8 + $0x4dc] sm:$0xf0] }
 0x379   :  { %v11823_v33 = vld [vmem:[#allocation8 + $0x8a0] sm:$0xf]  ;;  %v11312_v2 = vor.u32 %v16117_v42, %v11311_v52  ;;  %7313 = vmatpush.bf16.msra.mxu0 %v10800_v4 }
 0x37a   :  { %v16245_v36 = vld [vmem:[#allocation8 + $0x8dc] sm:$0xf0] }
 0x37b   :  { %v12335_v38 = vld [vmem:[#allocation8 + $0xca0] sm:$0xf]  ;;  %v11824_v62 = vor.u32 %v16245_v36, %v11823_v33  ;;  %7327 = vmatpush.bf16.msra.mxu1 %v11312_v2 }
 0x37c   :  { %v16373_v45 = vld [vmem:[#allocation8 + $0xcdc] sm:$0xf0] }
 0x37d   :  { %v10735_v7 = vld [vmem:[#allocation8 + $0x20] sm:$0xf]  ;;  %v12336_v35 = vor.u32 %v16373_v45, %v12335_v38  ;;  %7341 = vmatpush.bf16.msra.mxu2 %v11824_v62 }
 0x37e   :  { %v15973_v54 = vld [vmem:[#allocation8 + $0x5c] sm:$0xf0] }
 0x37f   :  { %v11247_v46 = vld [vmem:[#allocation8 + $0x420] sm:$0xf]  ;;  %v10736_v9 = vor.u32 %v15973_v54, %v10735_v7  ;;  %7355 = vmatpush.bf16.msra.mxu3 %v12336_v35 }
 0x380   :  { %v16101_v41 = vld [vmem:[#allocation8 + $0x45c] sm:$0xf0] }
 0x381   :  { %v11759_v56 = vld [vmem:[#allocation8 + $0x820] sm:$0xf]  ;;  %v11248_v27 = vor.u32 %v16101_v41, %v11247_v46  ;;  %7314 = vmatpush.bf16.msra.mxu0 %v10736_v9  ;;  %v17819_v46 = vpop.f32.mrf.mxu0  ;;  %v17821_v41 = vpop.f32.mrf.mxu1 }
 0x382   :  { %v16229_v25 = vld [vmem:[#allocation8 + $0x85c] sm:$0xf0]  ;;  %18450 = vst [vmem:[#allocation50_spill] sm:$0xff] %v17819_v46  ;;  %v11121_v46 = vld [vmem:[#allocation8 + $0x360] sm:$0xf0] }
 0x383   :  { %v12271_v26 = vld [vmem:[#allocation8 + $0xc20] sm:$0xf]  ;;  %v11760_v24 = vor.u32 %v16229_v25, %v11759_v56  ;;  %7328 = vmatpush.bf16.msra.mxu1 %v11248_v27  ;;  %18451 = vst [vmem:[#allocation51_spill] sm:$0xff] %v17821_v41  ;;  %v16061_v41 = vld [vmem:[#allocation8 + $0x324] sm:$0xf] }
 0x384   :  { %v16357_v59 = vld [vmem:[#allocation8 + $0xc5c] sm:$0xf0]  ;;  %7315 = vmatmul.bf16.vlgmr.msra.gmra.mxu0 %v17621_v58 }
 0x385   :  { %v13231_v15 = vld [vmem:[#allocation8 + $0x13a0] sm:$0xf]  ;;  %v12272_v6 = vor.u32 %v16357_v59, %v12271_v26  ;;  %7342 = vmatpush.bf16.msra.mxu2 %v11760_v24 }
 0x386   :  { %v16597_v28 = vld [vmem:[#allocation8 + $0x13dc] sm:$0xf0]  ;;  %7329 = vmatmul.bf16.vlgmr.msra.gmra.mxu1 %v17627_v10 }
 0x387   :  { %v13743_v14 = vld [vmem:[#allocation8 + $0x17a0] sm:$0xf]  ;;  %v13232_v33 = vor.u32 %v16597_v28, %v13231_v15  ;;  %7356 = vmatpush.bf16.msra.mxu3 %v12272_v6 }
 0x388   :  { %v16725_v19 = vld [vmem:[#allocation8 + $0x17dc] sm:$0xf0]  ;;  %7343 = vmatmul.bf16.vlgmr.msra.gmra.mxu2 %v17623_v1 }
 0x389   :  { %v14255_v13 = vld [vmem:[#allocation8 + $0x1ba0] sm:$0xf]  ;;  %v13744_v36 = vor.u32 %v16725_v19, %v13743_v14  ;;  %7363 = vmatpush.bf16.msrb.mxu0 %v13232_v33 }
 0x38a   :  { %v16853_v21 = vld [vmem:[#allocation8 + $0x1bdc] sm:$0xf0]  ;;  %7357 = vmatmul.bf16.vlgmr.msra.gmra.mxu3 %v17629_v17 }
 0x38b   :  { %v14767_v52 = vld [vmem:[#allocation8 + $0x1fa0] sm:$0xf]  ;;  %v14256_v38 = vor.u32 %v16853_v21, %v14255_v13  ;;  %7377 = vmatpush.bf16.msrb.mxu1 %v13744_v36 }
 0x38c   :  { %v16981_v42 = vld [vmem:[#allocation8 + $0x1fdc] sm:$0xf0] }
 0x38d   :  { %v13167_v45 = vld [vmem:[#allocation8 + $0x1320] sm:$0xf]  ;;  %v14768_v4 = vor.u32 %v16981_v42, %v14767_v52  ;;  %7391 = vmatpush.bf16.msrb.mxu2 %v14256_v38  ;;  %v17827_v42 = vpop.f32.mrf.mxu2 }
 0x38e   :  { %v16581_v20 = vld [vmem:[#allocation8 + $0x135c] sm:$0xf0]  ;;  %18452 = vst [vmem:[#allocation52_spill] sm:$0xff] %v17827_v42 }
 0x38f   :  { %v13679_v32 = vld [vmem:[#allocation8 + $0x1720] sm:$0xf]  ;;  %v13168_v56 = vor.u32 %v16581_v20, %v13167_v45  ;;  %7405 = vmatpush.bf16.msrb.mxu3 %v14768_v4  ;;  %v17829_v45 = vpop.f32.mrf.mxu3 }
 0x390   :  { %v16709_v7 = vld [vmem:[#allocation8 + $0x175c] sm:$0xf0]  ;;  %18453 = vst [vmem:[#allocation53_spill] sm:$0xff] %v17829_v45 }
 0x391   :  { %v14191_v54 = vld [vmem:[#allocation8 + $0x1b20] sm:$0xf]  ;;  %v13680_v35 = vor.u32 %v16709_v7, %v13679_v32  ;;  %7364 = vmatpush.bf16.msrb.mxu0 %v13168_v56 }
 0x392   :  { %v16837_v5 = vld [vmem:[#allocation8 + $0x1b5c] sm:$0xf0] }
 0x393   :  { %v14703_v2 = vld [vmem:[#allocation8 + $0x1f20] sm:$0xf]  ;;  %v14192_v25 = vor.u32 %v16837_v5, %v14191_v54  ;;  %7378 = vmatpush.bf16.msrb.mxu1 %v13680_v35 }
 0x394   :  { %v16965_v62 = vld [vmem:[#allocation8 + $0x1f5c] sm:$0xf0] }
 0x395   :  { %v13103_v26 = vld [vmem:[#allocation8 + $0x12a0] sm:$0xf]  ;;  %v14704_v28 = vor.u32 %v16965_v62, %v14703_v2  ;;  %7392 = vmatpush.bf16.msrb.mxu2 %v14192_v25  ;;  %v7092_v2 = vpop.f32.mrf.mxu0  ;;  %v7106_v62 = vpop.f32.mrf.mxu1 }
 0x396   :  { %v16565_v59 = vld [vmem:[#allocation8 + $0x12dc] sm:$0xf0] }
 0x397   :  { %v13615_v15 = vld [vmem:[#allocation8 + $0x16a0] sm:$0xf]  ;;  %v13104_v20 = vor.u32 %v16565_v59, %v13103_v26  ;;  %7406 = vmatpush.bf16.msrb.mxu3 %v14704_v28 }
 0x398   :  { %v16693_v14 = vld [vmem:[#allocation8 + $0x16dc] sm:$0xf0] }
 0x399   :  { %v14127_v9 = vld [vmem:[#allocation8 + $0x1aa0] sm:$0xf]  ;;  %v13616_v5 = vor.u32 %v16693_v14, %v13615_v15  ;;  %7365 = vmatpush.bf16.msrb.mxu0 %v13104_v20  ;;  %v7107_v15 = vadd.f32 %v7106_v62, %v7092_v2 }
 0x39a   :  { %v16821_v19 = vld [vmem:[#allocation8 + $0x1adc] sm:$0xf0] }
 0x39b   :  { %v14639_v13 = vld [vmem:[#allocation8 + $0x1ea0] sm:$0xf]  ;;  %v14128_v32 = vor.u32 %v16821_v19, %v14127_v9  ;;  %7379 = vmatpush.bf16.msrb.mxu1 %v13616_v5 }
 0x39c   :  { %v16949_v21 = vld [vmem:[#allocation8 + $0x1edc] sm:$0xf0] }
 0x39d   :  { %v13039_v27 = vld [vmem:[#allocation8 + $0x1220] sm:$0xf]  ;;  %v14640_v6 = vor.u32 %v16949_v21, %v14639_v13  ;;  %7393 = vmatpush.bf16.msrb.mxu2 %v14128_v32 }
 0x39e   :  { %v16549_v24 = vld [vmem:[#allocation8 + $0x125c] sm:$0xf0] }
 0x39f   :  { %v13551_v52 = vld [vmem:[#allocation8 + $0x1620] sm:$0xf]  ;;  %v13040_v54 = vor.u32 %v16549_v24, %v13039_v27  ;;  %7407 = vmatpush.bf16.msrb.mxu3 %v14640_v6 }
 0x3a0   :  { %v16677_v33 = vld [vmem:[#allocation8 + $0x165c] sm:$0xf0] }
 0x3a1   :  { %v14063_v36 = vld [vmem:[#allocation8 + $0x1a20] sm:$0xf]  ;;  %v13552_v56 = vor.u32 %v16677_v33, %v13551_v52  ;;  %7366 = vmatpush.bf16.msrb.mxu0 %v13040_v54  ;;  %v7134_v54 = vpop.f32.mrf.mxu3 }
 0x3a2   :  { %v16805_v38 = vld [vmem:[#allocation8 + $0x1a5c] sm:$0xf0] }
 0x3a3   :  { %v14575_v4 = vld [vmem:[#allocation8 + $0x1e20] sm:$0xf]  ;;  %v14064_v35 = vor.u32 %v16805_v38, %v14063_v36  ;;  %7380 = vmatpush.bf16.msrb.mxu1 %v13552_v56 }
 0x3a4   :  { %v16933_v7 = vld [vmem:[#allocation8 + $0x1e5c] sm:$0xf0] }
 0x3a5   :  { %v12975_v25 = vld [vmem:[#allocation8 + $0x11a0] sm:$0xf]  ;;  %v14576_v28 = vor.u32 %v16933_v7, %v14575_v4  ;;  %7394 = vmatpush.bf16.msrb.mxu2 %v14064_v35  ;;  %v7120_v4 = vpop.f32.mrf.mxu2 }
 0x3a6   :  { %v16533_v26 = vld [vmem:[#allocation8 + $0x11dc] sm:$0xf0]  ;;  %v7121_v62 = vadd.f32 %v7120_v4, %v7107_v15 }
 0x3a7   :  { %v13487_v59 = vld [vmem:[#allocation8 + $0x15a0] sm:$0xf]  ;;  %v12976_v20 = vor.u32 %v16533_v26, %v12975_v25  ;;  %7408 = vmatpush.bf16.msrb.mxu3 %v14576_v28 }
 0x3a8   :  { %v16661_v14 = vld [vmem:[#allocation8 + $0x15dc] sm:$0xf0] }
 0x3a9   :  { %v13999_v9 = vld [vmem:[#allocation8 + $0x19a0] sm:$0xf]  ;;  %v13488_v27 = vor.u32 %v16661_v14, %v13487_v59  ;;  %7367 = vmatpush.bf16.msrb.mxu0 %v12976_v20  ;;  %v17831_v14 = vadd.f32 %v7134_v54, %v7121_v62  ;;  %v16205_v62 = vld [vmem:[#allocation8 + $0x7a4] sm:$0xf] }
 0x3aa   :  { %v16789_v19 = vld [vmem:[#allocation8 + $0x19dc] sm:$0xf0]  ;;  %v11697_v54 = vld [vmem:[#allocation8 + $0x7e0] sm:$0xf0] }
 0x3ab   :  { %v14511_v13 = vld [vmem:[#allocation8 + $0x1da0] sm:$0xf]  ;;  %v14000_v5 = vor.u32 %v16789_v19, %v13999_v9  ;;  %7381 = vmatpush.bf16.msrb.mxu1 %v13488_v27 }
 0x3ac   :  { %v16917_v21 = vld [vmem:[#allocation8 + $0x1ddc] sm:$0xf0] }
 0x3ad   :  { %v12911_v32 = vld [vmem:[#allocation8 + $0x1120] sm:$0xf]  ;;  %v14512_v33 = vor.u32 %v16917_v21, %v14511_v13  ;;  %7395 = vmatpush.bf16.msrb.mxu2 %v14000_v5 }
 0x3ae   :  { %v16517_v24 = vld [vmem:[#allocation8 + $0x115c] sm:$0xf0] }
 0x3af   :  { %v13423_v52 = vld [vmem:[#allocation8 + $0x1520] sm:$0xf]  ;;  %v12912_v45 = vor.u32 %v16517_v24, %v12911_v32  ;;  %7409 = vmatpush.bf16.msrb.mxu3 %v14512_v33 }
 0x3b0   :  { %v16645_v36 = vld [vmem:[#allocation8 + $0x155c] sm:$0xf0] }
 0x3b1   :  { %v13935_v38 = vld [vmem:[#allocation8 + $0x1920] sm:$0xf]  ;;  %v13424_v56 = vor.u32 %v16645_v36, %v13423_v52  ;;  %7368 = vmatpush.bf16.msrb.mxu0 %v12912_v45 }
 0x3b2   :  { %v16773_v6 = vld [vmem:[#allocation8 + $0x195c] sm:$0xf0] }
 0x3b3   :  { %v14447_v7 = vld [vmem:[#allocation8 + $0x1d20] sm:$0xf]  ;;  %v13936_v35 = vor.u32 %v16773_v6, %v13935_v38  ;;  %7382 = vmatpush.bf16.msrb.mxu1 %v13424_v56 }
 0x3b4   :  { %v16901_v2 = vld [vmem:[#allocation8 + $0x1d5c] sm:$0xf0] }
 0x3b5   :  { %v12847_v25 = vld [vmem:[#allocation8 + $0x10a0] sm:$0xf]  ;;  %v14448_v28 = vor.u32 %v16901_v2, %v14447_v7  ;;  %7396 = vmatpush.bf16.msrb.mxu2 %v13936_v35  ;;  %v16077_v7 = vld [vmem:[#allocation8 + $0x3a4] sm:$0xf] }
 0x3b6   :  { %v16501_v26 = vld [vmem:[#allocation8 + $0x10dc] sm:$0xf0]  ;;  %v11185_v2 = vld [vmem:[#allocation8 + $0x3e0] sm:$0xf0] }
 0x3b7   :  { %v13359_v59 = vld [vmem:[#allocation8 + $0x14a0] sm:$0xf]  ;;  %v12848_v15 = vor.u32 %v16501_v26, %v12847_v25  ;;  %7410 = vmatpush.bf16.msrb.mxu3 %v14448_v28  ;;  %v16333_v25 = vld [vmem:[#allocation8 + $0xba4] sm:$0xf] }
 0x3b8   :  { %v16629_v9 = vld [vmem:[#allocation8 + $0x14dc] sm:$0xf0]  ;;  %v12209_v26 = vld [vmem:[#allocation8 + $0xbe0] sm:$0xf0] }
 0x3b9   :  { %v13871_v19 = vld [vmem:[#allocation8 + $0x18a0] sm:$0xf]  ;;  %v13360_v27 = vor.u32 %v16629_v9, %v13359_v59  ;;  %7369 = vmatpush.bf16.msrb.mxu0 %v12848_v15  ;;  %v16461_v59 = vld [vmem:[#allocation8 + $0xfa4] sm:$0xf] }
 0x3ba   :  { %v16757_v13 = vld [vmem:[#allocation8 + $0x18dc] sm:$0xf0]  ;;  %v12721_v9 = vld [vmem:[#allocation8 + $0xfe0] sm:$0xf0] }
 0x3bb   :  { %v14383_v21 = vld [vmem:[#allocation8 + $0x1ca0] sm:$0xf]  ;;  %v13872_v5 = vor.u32 %v16757_v13, %v13871_v19  ;;  %7383 = vmatpush.bf16.msrb.mxu1 %v13360_v27  ;;  %v11700_v19 = vor.u32 %v16205_v62, %v11697_v54  ;;  %v12212_v13 = vor.u32 %v16333_v25, %v12209_v26  ;;  %v16189_v15 = vld [vmem:[#allocation8 + $0x724] sm:$0xf] }
 0x3bc   :  { %v16885_v42 = vld [vmem:[#allocation8 + $0x1cdc] sm:$0xf0]  ;;  %v12145_v27 = vld [vmem:[#allocation8 + $0xb60] sm:$0xf0] }
 0x3bd   :  { %v12783_v20 = vld [vmem:[#allocation8 + $0x1020] sm:$0xf]  ;;  %v14384_v38 = vor.u32 %v16885_v42, %v14383_v21  ;;  %7397 = vmatpush.bf16.msrb.mxu2 %v13872_v5  ;;  %v11188_v42 = vor.u32 %v16077_v7, %v11185_v2  ;;  %v17833_v21 = vpop.f32.mrf.mxu0  ;;  %v16445_v5 = vld [vmem:[#allocation8 + $0xf24] sm:$0xf] }
 0x3be   :  { %v16485_v32 = vld [vmem:[#allocation8 + $0x105c] sm:$0xf0]  ;;  %18454 = vst [vmem:[#allocation54_spill] sm:$0xff] %v17833_v21  ;;  %v16173_v7 = vld [vmem:[#allocation8 + $0x6a4] sm:$0xf] }
 0x3bf   :  { %v13295_v24 = vld [vmem:[#allocation8 + $0x1420] sm:$0xf]  ;;  %v12784_v45 = vor.u32 %v16485_v32, %v12783_v20  ;;  %7411 = vmatpush.bf16.msrb.mxu3 %v14384_v38  ;;  %v12724_v20 = vor.u32 %v16461_v59, %v12721_v9  ;;  %v11633_v32 = vld [vmem:[#allocation8 + $0x760] sm:$0xf0]  ;;  %v12151_v21 = vld [vmem:[#allocation8 + $0xb28] sm:$0xf] }
 0x3c0   :  { %v16613_v52 = vld [vmem:[#allocation8 + $0x145c] sm:$0xf0]  ;;  %v11636_v38 = vor.u32 %v16189_v15, %v11633_v32  ;;  %v11569_v62 = vld [vmem:[#allocation8 + $0x6e0] sm:$0xf0] }
 0x3c1   :  { %v13807_v36 = vld [vmem:[#allocation8 + $0x1820] sm:$0xf]  ;;  %v13296_v56 = vor.u32 %v16613_v52, %v13295_v24  ;;  %7370 = vmatpush.bf16.msrb.mxu0 %v12784_v45  ;;  %v12657_v24 = vld [vmem:[#allocation8 + $0xf60] sm:$0xf0]  ;;  %v17835_v52 = vpop.f32.mrf.mxu1  ;;  %v11572_v26 = vor.u32 %v16173_v7, %v11569_v62 }
 0x3c2   :  { %v16741_v33 = vld [vmem:[#allocation8 + $0x185c] sm:$0xf0]  ;;  %18455 = vst [vmem:[#allocation55_spill] sm:$0xff] %v17835_v52  ;;  %v12660_v2 = vor.u32 %v16445_v5, %v12657_v24  ;;  %v16301_v45 = vld [vmem:[#allocation8 + $0xaa4] sm:$0xf] }
 0x3c3   :  { %v14319_v6 = vld [vmem:[#allocation8 + $0x1c20] sm:$0xf]  ;;  %v13808_v35 = vor.u32 %v16741_v33, %v13807_v36  ;;  %7384 = vmatpush.bf16.msrb.mxu1 %v13296_v56  ;;  %v11124_v36 = vor.u32 %v16061_v41, %v11121_v46  ;;  %v12148_v33 = vor.u32 %v16317_v57, %v12145_v27  ;;  %v12081_v54 = vld [vmem:[#allocation8 + $0xae0] sm:$0xf0]  ;;  %v17841_v41 = vpop.f32.mrf.mxu2 }
 0x3c4   :  { %v16869_v4 = vld [vmem:[#allocation8 + $0x1c5c] sm:$0xf0]  ;;  %7371 = vmatmul.bf16.vlgmr.msrb.gmra.mxu0 %v17633_v39  ;;  %v16429_v25 = vld [vmem:[#allocation8 + $0xea4] sm:$0xf]  ;;  %18456 = vst [vmem:[#allocation56_spill] sm:$0xff] %v17841_v41  ;;  %v12084_v56 = vor.u32 %v16301_v45, %v12081_v54 }
 0x3c5   :  { %v14320_v28 = vor.u32 %v16869_v4, %v14319_v6  ;;  %7398 = vmatpush.bf16.msrb.mxu2 %v13808_v35  ;;  %7419 = vmatpush.bf16.msra.mxu0 %v11188_v42  ;;  %v16045_v6 = vld [vmem:[#allocation8 + $0x2a4] sm:$0xf]  ;;  %v17843_v42 = vpop.f32.mrf.mxu3 }
 0x3c6   :  { %v11057_v4 = vld [vmem:[#allocation8 + $0x2e0] sm:$0xf0]  ;;  %7385 = vmatmul.bf16.vlgmr.msrb.gmra.mxu1 %v17637_v44  ;;  %18457 = vst [vmem:[#allocation57_spill] sm:$0xff] %v17843_v42 }
 0x3c7   :  { %7412 = vmatpush.bf16.msrb.mxu3 %v14320_v28  ;;  %7433 = vmatpush.bf16.msra.mxu1 %v11700_v19  ;;  %v12593_v46 = vld [vmem:[#allocation8 + $0xee0] sm:$0xf0]  ;;  %v11060_v57 = vor.u32 %v16045_v6, %v11057_v4 }
 0x3c8   :  { %7399 = vmatmul.bf16.vlgmr.msrb.gmra.mxu2 %v17635_v43  ;;  %v16029_v35 = vld [vmem:[#allocation8 + $0x224] sm:$0xf]  ;;  %v12596_v28 = vor.u32 %v16429_v25, %v12593_v46 }
 0x3c9   :  { %7447 = vmatpush.bf16.msra.mxu2 %v12212_v13  ;;  %7420 = vmatpush.bf16.msra.mxu0 %v11124_v36  ;;  %v10993_v59 = vld [vmem:[#allocation8 + $0x260] sm:$0xf0] }
 0x3ca   :  { %7413 = vmatmul.bf16.vlgmr.msrb.gmra.mxu3 %v17639_v47  ;;  %v16157_v9 = vld [vmem:[#allocation8 + $0x624] sm:$0xf]  ;;  %v10996_v24 = vor.u32 %v16029_v35, %v10993_v59 }
 0x3cb   :  { %7461 = vmatpush.bf16.msra.mxu3 %v12724_v20  ;;  %7434 = vmatpush.bf16.msra.mxu1 %v11636_v38  ;;  %v11505_v19 = vld [vmem:[#allocation8 + $0x660] sm:$0xf0]  ;;  %v7148_v20 = vpop.f32.mrf.mxu0 }
 0x3cc   :  { %v16285_v13 = vld [vmem:[#allocation8 + $0xa24] sm:$0xf]  ;;  %v7149_v5 = vadd.f32 %v7148_v20, %v17831_v14  ;;  %v11508_v36 = vor.u32 %v16157_v9, %v11505_v19  ;;  %v7176_v19 = vpop.f32.mrf.mxu2 }
 0x3cd   :  { %7448 = vmatpush.bf16.msra.mxu2 %v12148_v33  ;;  %v12017_v15 = vld [vmem:[#allocation8 + $0xa60] sm:$0xf0]  ;;  %7421 = vmatpush.bf16.msra.mxu0 %v11060_v57  ;;  %v7162_v33 = vpop.f32.mrf.mxu1 }
 0x3ce   :  { %v16413_v32 = vld [vmem:[#allocation8 + $0xe24] sm:$0xf]  ;;  %v12020_v38 = vor.u32 %v16285_v13, %v12017_v15  ;;  %v7163_v62 = vadd.f32 %v7162_v33, %v7149_v5  ;;  %v7190_v5 = vpop.f32.mrf.mxu3 }
 0x3cf   :  { %7462 = vmatpush.bf16.msra.mxu3 %v12660_v2  ;;  %v12529_v27 = vld [vmem:[#allocation8 + $0xe60] sm:$0xf0]  ;;  %7435 = vmatpush.bf16.msra.mxu1 %v11572_v26 }
 0x3d0   :  { %v16013_v6 = vld [vmem:[#allocation8 + $0x1a4] sm:$0xf]  ;;  %v12532_v2 = vor.u32 %v16413_v32, %v12529_v27  ;;  %v7177_v20 = vadd.f32 %v7176_v19, %v7163_v62 }
 0x3d1   :  { %7449 = vmatpush.bf16.msra.mxu2 %v12084_v56  ;;  %v10929_v4 = vld [vmem:[#allocation8 + $0x1e0] sm:$0xf0]  ;;  %7422 = vmatpush.bf16.msra.mxu0 %v10996_v24 }
 0x3d2   :  { %v16141_v7 = vld [vmem:[#allocation8 + $0x5a4] sm:$0xf]  ;;  %v10932_v57 = vor.u32 %v16013_v6, %v10929_v4 }
 0x3d3   :  { %7463 = vmatpush.bf16.msra.mxu3 %v12596_v28  ;;  %v11441_v45 = vld [vmem:[#allocation8 + $0x5e0] sm:$0xf0]  ;;  %7436 = vmatpush.bf16.msra.mxu1 %v11508_v36  ;;  %v17846_v36 = vadd.f32 %v7190_v5, %v7177_v20 }
 0x3d4   :  { %v16269_v54 = vld [vmem:[#allocation8 + $0x9a4] sm:$0xf]  ;;  %v11444_v14 = vor.u32 %v16141_v7, %v11441_v45 }
 0x3d5   :  { %v11953_v25 = vld [vmem:[#allocation8 + $0x9e0] sm:$0xf0]  ;;  %7450 = vmatpush.bf16.msra.mxu2 %v12020_v38  ;;  %7423 = vmatpush.bf16.msra.mxu0 %v10932_v57  ;;  %18458 = vst [vmem:[#allocation58_spill] sm:$0xff] %v17846_v36 }
 0x3d6   :  { %v16397_v46 = vld [vmem:[#allocation8 + $0xda4] sm:$0xf]  ;;  %v11956_v26 = vor.u32 %v16269_v54, %v11953_v25 }
 0x3d7   :  { %v12465_v42 = vld [vmem:[#allocation8 + $0xde0] sm:$0xf0]  ;;  %7464 = vmatpush.bf16.msra.mxu3 %v12532_v2  ;;  %7437 = vmatpush.bf16.msra.mxu1 %v11444_v14 }
 0x3d8   :  { %v15997_v56 = vld [vmem:[#allocation8 + $0x124] sm:$0xf]  ;;  %v12468_v9 = vor.u32 %v16397_v46, %v12465_v42 }
 0x3d9   :  { %v10865_v35 = vld [vmem:[#allocation8 + $0x160] sm:$0xf0]  ;;  %7451 = vmatpush.bf16.msra.mxu2 %v11956_v26 }
 0x3da   :  { %v16125_v59 = vld [vmem:[#allocation8 + $0x524] sm:$0xf]  ;;  %v10868_v24 = vor.u32 %v15997_v56, %v10865_v35 }
 0x3db   :  { %v11377_v28 = vld [vmem:[#allocation8 + $0x560] sm:$0xf0]  ;;  %7465 = vmatpush.bf16.msra.mxu3 %v12468_v9 }
 0x3dc   :  { %v16253_v13 = vld [vmem:[#allocation8 + $0x924] sm:$0xf]  ;;  %v11380_v38 = vor.u32 %v16125_v59, %v11377_v28  ;;  %7424 = vmatpush.bf16.msra.mxu0 %v10868_v24 }
 0x3dd   :  { %v11889_v15 = vld [vmem:[#allocation8 + $0x960] sm:$0xf0] }
 0x3de   :  { %v16381_v32 = vld [vmem:[#allocation8 + $0xd24] sm:$0xf]  ;;  %v11892_v33 = vor.u32 %v16253_v13, %v11889_v15  ;;  %7438 = vmatpush.bf16.msra.mxu1 %v11380_v38 }
 0x3df   :  { %v12401_v27 = vld [vmem:[#allocation8 + $0xd60] sm:$0xf0] }
 0x3e0   :  { %v15981_v6 = vld [vmem:[#allocation8 + $0xa4] sm:$0xf]  ;;  %v12404_v42 = vor.u32 %v16381_v32, %v12401_v27  ;;  %7452 = vmatpush.bf16.msra.mxu2 %v11892_v33 }
 0x3e1   :  { %v10801_v4 = vld [vmem:[#allocation8 + $0xe0] sm:$0xf0] }
 0x3e2   :  { %v16109_v7 = vld [vmem:[#allocation8 + $0x4a4] sm:$0xf]  ;;  %v10804_v46 = vor.u32 %v15981_v6, %v10801_v4  ;;  %7466 = vmatpush.bf16.msra.mxu3 %v12404_v42 }
 0x3e3   :  { %v11313_v2 = vld [vmem:[#allocation8 + $0x4e0] sm:$0xf0] }
 0x3e4   :  { %v16237_v45 = vld [vmem:[#allocation8 + $0x8a4] sm:$0xf]  ;;  %v11316_v14 = vor.u32 %v16109_v7, %v11313_v2  ;;  %7425 = vmatpush.bf16.msra.mxu0 %v10804_v46 }
 0x3e5   :  { %v11825_v54 = vld [vmem:[#allocation8 + $0x8e0] sm:$0xf0] }
 0x3e6   :  { %v16365_v62 = vld [vmem:[#allocation8 + $0xca4] sm:$0xf]  ;;  %v11828_v26 = vor.u32 %v16237_v45, %v11825_v54  ;;  %7439 = vmatpush.bf16.msra.mxu1 %v11316_v14 }
 0x3e7   :  { %v12337_v25 = vld [vmem:[#allocation8 + $0xce0] sm:$0xf0] }
 0x3e8   :  { %v15965_v57 = vld [vmem:[#allocation8 + $0x24] sm:$0xf]  ;;  %v12340_v28 = vor.u32 %v16365_v62, %v12337_v25  ;;  %7453 = vmatpush.bf16.msra.mxu2 %v11828_v26 }
 0x3e9   :  { %v10737_v56 = vld [vmem:[#allocation8 + $0x60] sm:$0xf0] }
 0x3ea   :  { %v16093_v35 = vld [vmem:[#allocation8 + $0x424] sm:$0xf]  ;;  %v10740_v5 = vor.u32 %v15965_v57, %v10737_v56  ;;  %7467 = vmatpush.bf16.msra.mxu3 %v12340_v28 }
 0x3eb   :  { %v11249_v59 = vld [vmem:[#allocation8 + $0x460] sm:$0xf0] }
 0x3ec   :  { %v16221_v19 = vld [vmem:[#allocation8 + $0x824] sm:$0xf]  ;;  %v11252_v38 = vor.u32 %v16093_v35, %v11249_v59  ;;  %7426 = vmatpush.bf16.msra.mxu0 %v10740_v5  ;;  %v17848_v35 = vpop.f32.mrf.mxu0  ;;  %v17850_v59 = vpop.f32.mrf.mxu1 }
 0x3ed   :  { %v11761_v9 = vld [vmem:[#allocation8 + $0x860] sm:$0xf0]  ;;  %18459 = vst [vmem:[#allocation59_spill] sm:$0xff] %v17848_v35  ;;  %v16070_v35 = vld [vmem:[#allocation8 + $0x364] sm:$0xf0] }
 0x3ee   :  { %v16349_v13 = vld [vmem:[#allocation8 + $0xc24] sm:$0xf]  ;;  %v11764_v33 = vor.u32 %v16221_v19, %v11761_v9  ;;  %7440 = vmatpush.bf16.msra.mxu1 %v11252_v38  ;;  %18460 = vst [vmem:[#allocation60_spill] sm:$0xff] %v17850_v59  ;;  %v11127_v59 = vld [vmem:[#allocation8 + $0x328] sm:$0xf] }
 0x3ef   :  { %v12273_v15 = vld [vmem:[#allocation8 + $0xc60] sm:$0xf0]  ;;  %7427 = vmatmul.bf16.vlgmr.msra.gmra.mxu0 %v17621_v58 }
 0x3f0   :  { %v16589_v20 = vld [vmem:[#allocation8 + $0x13a4] sm:$0xf]  ;;  %v12276_v42 = vor.u32 %v16349_v13, %v12273_v15  ;;  %7454 = vmatpush.bf16.msra.mxu2 %v11764_v33 }
 0x3f1   :  { %v13233_v32 = vld [vmem:[#allocation8 + $0x13e0] sm:$0xf0]  ;;  %7441 = vmatmul.bf16.vlgmr.msra.gmra.mxu1 %v17627_v10 }
 0x3f2   :  { %v16717_v27 = vld [vmem:[#allocation8 + $0x17a4] sm:$0xf]  ;;  %v13236_v45 = vor.u32 %v16589_v20, %v13233_v32  ;;  %7468 = vmatpush.bf16.msra.mxu3 %v12276_v42 }
 0x3f3   :  { %v13745_v24 = vld [vmem:[#allocation8 + $0x17e0] sm:$0xf0]  ;;  %7455 = vmatmul.bf16.vlgmr.msra.gmra.mxu2 %v17623_v1 }
 0x3f4   :  { %v16845_v6 = vld [vmem:[#allocation8 + $0x1ba4] sm:$0xf]  ;;  %v13748_v54 = vor.u32 %v16717_v27, %v13745_v24  ;;  %7475 = vmatpush.bf16.msrb.mxu0 %v13236_v45 }
 0x3f5   :  { %v14257_v4 = vld [vmem:[#allocation8 + $0x1be0] sm:$0xf0]  ;;  %7469 = vmatmul.bf16.vlgmr.msra.gmra.mxu3 %v17629_v17 }
 0x3f6   :  { %v16973_v7 = vld [vmem:[#allocation8 + $0x1fa4] sm:$0xf]  ;;  %v14260_v62 = vor.u32 %v16845_v6, %v14257_v4  ;;  %7489 = vmatpush.bf16.msrb.mxu1 %v13748_v54 }
 0x3f7   :  { %v14769_v2 = vld [vmem:[#allocation8 + $0x1fe0] sm:$0xf0] }
 0x3f8   :  { %v16573_v25 = vld [vmem:[#allocation8 + $0x1324] sm:$0xf]  ;;  %v14772_v46 = vor.u32 %v16973_v7, %v14769_v2  ;;  %7503 = vmatpush.bf16.msrb.mxu2 %v14260_v62  ;;  %v17856_v2 = vpop.f32.mrf.mxu2 }
 0x3f9   :  { %v13169_v36 = vld [vmem:[#allocation8 + $0x1360] sm:$0xf0]  ;;  %18461 = vst [vmem:[#allocation61_spill] sm:$0xff] %v17856_v2 }
 0x3fa   :  { %v16701_v41 = vld [vmem:[#allocation8 + $0x1724] sm:$0xf]  ;;  %v13172_v19 = vor.u32 %v16573_v25, %v13169_v36  ;;  %7517 = vmatpush.bf16.msrb.mxu3 %v14772_v46  ;;  %v17858_v25 = vpop.f32.mrf.mxu3 }
 0x3fb   :  { %v13681_v57 = vld [vmem:[#allocation8 + $0x1760] sm:$0xf0]  ;;  %18462 = vst [vmem:[#allocation62_spill] sm:$0xff] %v17858_v25 }
 0x3fc   :  { %v16829_v56 = vld [vmem:[#allocation8 + $0x1b24] sm:$0xf]  ;;  %v13684_v28 = vor.u32 %v16701_v41, %v13681_v57  ;;  %7476 = vmatpush.bf16.msrb.mxu0 %v13172_v19 }
 0x3fd   :  { %v14193_v52 = vld [vmem:[#allocation8 + $0x1b60] sm:$0xf0] }
 0x3fe   :  { %v16957_v14 = vld [vmem:[#allocation8 + $0x1f24] sm:$0xf]  ;;  %v14196_v9 = vor.u32 %v16829_v56, %v14193_v52  ;;  %7490 = vmatpush.bf16.msrb.mxu1 %v13684_v28 }
 0x3ff   :  { %v14705_v26 = vld [vmem:[#allocation8 + $0x1f60] sm:$0xf0] }
 0x400   :  { %v16557_v13 = vld [vmem:[#allocation8 + $0x12a4] sm:$0xf]  ;;  %v14708_v32 = vor.u32 %v16957_v14, %v14705_v26  ;;  %7504 = vmatpush.bf16.msrb.mxu2 %v14196_v9  ;;  %v7204_v14 = vpop.f32.mrf.mxu0  ;;  %v7218_v26 = vpop.f32.mrf.mxu1 }
 0x401   :  { %v13105_v15 = vld [vmem:[#allocation8 + $0x12e0] sm:$0xf0] }
 0x402   :  { %v16685_v20 = vld [vmem:[#allocation8 + $0x16a4] sm:$0xf]  ;;  %v13108_v36 = vor.u32 %v16557_v13, %v13105_v15  ;;  %7518 = vmatpush.bf16.msrb.mxu3 %v14708_v32 }
 0x403   :  { %v13617_v27 = vld [vmem:[#allocation8 + $0x16e0] sm:$0xf0] }
 0x404   :  { %v16813_v5 = vld [vmem:[#allocation8 + $0x1aa4] sm:$0xf]  ;;  %v13620_v52 = vor.u32 %v16685_v20, %v13617_v27  ;;  %7477 = vmatpush.bf16.msrb.mxu0 %v13108_v36  ;;  %v7219_v20 = vadd.f32 %v7218_v26, %v7204_v14 }
 0x405   :  { %v14129_v24 = vld [vmem:[#allocation8 + $0x1ae0] sm:$0xf0] }
 0x406   :  { %v16941_v6 = vld [vmem:[#allocation8 + $0x1ea4] sm:$0xf]  ;;  %v14132_v41 = vor.u32 %v16813_v5, %v14129_v24  ;;  %7491 = vmatpush.bf16.msrb.mxu1 %v13620_v52 }
 0x407   :  { %v14641_v4 = vld [vmem:[#allocation8 + $0x1ee0] sm:$0xf0] }
 0x408   :  { %v16541_v38 = vld [vmem:[#allocation8 + $0x1224] sm:$0xf]  ;;  %v14644_v42 = vor.u32 %v16941_v6, %v14641_v4  ;;  %7505 = vmatpush.bf16.msrb.mxu2 %v14132_v41 }
 0x409   :  { %v13041_v33 = vld [vmem:[#allocation8 + $0x1260] sm:$0xf0] }
 0x40a   :  { %v16669_v7 = vld [vmem:[#allocation8 + $0x1624] sm:$0xf]  ;;  %v13044_v56 = vor.u32 %v16541_v38, %v13041_v33  ;;  %7519 = vmatpush.bf16.msrb.mxu3 %v14644_v42 }
 0x40b   :  { %v13553_v45 = vld [vmem:[#allocation8 + $0x1660] sm:$0xf0] }
 0x40c   :  { %v16797_v54 = vld [vmem:[#allocation8 + $0x1a24] sm:$0xf]  ;;  %v13556_v19 = vor.u32 %v16669_v7, %v13553_v45  ;;  %7478 = vmatpush.bf16.msrb.mxu0 %v13044_v56  ;;  %v7246_v56 = vpop.f32.mrf.mxu3 }
 0x40d   :  { %v14065_v62 = vld [vmem:[#allocation8 + $0x1a60] sm:$0xf0] }
 0x40e   :  { %v16925_v46 = vld [vmem:[#allocation8 + $0x1e24] sm:$0xf]  ;;  %v14068_v28 = vor.u32 %v16797_v54, %v14065_v62  ;;  %7492 = vmatpush.bf16.msrb.mxu1 %v13556_v19 }
 0x40f   :  { %v14577_v57 = vld [vmem:[#allocation8 + $0x1e60] sm:$0xf0] }
 0x410   :  { %v16525_v9 = vld [vmem:[#allocation8 + $0x11a4] sm:$0xf]  ;;  %v14580_v32 = vor.u32 %v16925_v46, %v14577_v57  ;;  %7506 = vmatpush.bf16.msrb.mxu2 %v14068_v28  ;;  %v7232_v46 = vpop.f32.mrf.mxu2 }
 0x411   :  { %v12977_v13 = vld [vmem:[#allocation8 + $0x11e0] sm:$0xf0]  ;;  %v7233_v26 = vadd.f32 %v7232_v46, %v7219_v20 }
 0x412   :  { %v16653_v15 = vld [vmem:[#allocation8 + $0x15a4] sm:$0xf]  ;;  %v12980_v36 = vor.u32 %v16525_v9, %v12977_v13  ;;  %7520 = vmatpush.bf16.msrb.mxu3 %v14580_v32 }
 0x413   :  { %v13489_v27 = vld [vmem:[#allocation8 + $0x15e0] sm:$0xf0] }
 0x414   :  { %v16781_v5 = vld [vmem:[#allocation8 + $0x19a4] sm:$0xf]  ;;  %v13492_v38 = vor.u32 %v16653_v15, %v13489_v27  ;;  %7479 = vmatpush.bf16.msrb.mxu0 %v12980_v36  ;;  %v17860_v27 = vadd.f32 %v7246_v56, %v7233_v26  ;;  %v11703_v26 = vld [vmem:[#allocation8 + $0x7a8] sm:$0xf] }
 0x415   :  { %v14001_v24 = vld [vmem:[#allocation8 + $0x19e0] sm:$0xf0]  ;;  %v16214_v56 = vld [vmem:[#allocation8 + $0x7e4] sm:$0xf0] }
 0x416   :  { %v16909_v6 = vld [vmem:[#allocation8 + $0x1da4] sm:$0xf]  ;;  %v14004_v52 = vor.u32 %v16781_v5, %v14001_v24  ;;  %7493 = vmatpush.bf16.msrb.mxu1 %v13492_v38 }
 0x417   :  { %v14513_v4 = vld [vmem:[#allocation8 + $0x1de0] sm:$0xf0] }
 0x418   :  { %v16509_v41 = vld [vmem:[#allocation8 + $0x1124] sm:$0xf]  ;;  %v14516_v45 = vor.u32 %v16909_v6, %v14513_v4  ;;  %7507 = vmatpush.bf16.msrb.mxu2 %v14004_v52 }
 0x419   :  { %v12913_v33 = vld [vmem:[#allocation8 + $0x1160] sm:$0xf0] }
 0x41a   :  { %v16637_v7 = vld [vmem:[#allocation8 + $0x1524] sm:$0xf]  ;;  %v12916_v25 = vor.u32 %v16509_v41, %v12913_v33  ;;  %7521 = vmatpush.bf16.msrb.mxu3 %v14516_v45 }
 0x41b   :  { %v13425_v54 = vld [vmem:[#allocation8 + $0x1560] sm:$0xf0] }
 0x41c   :  { %v16765_v62 = vld [vmem:[#allocation8 + $0x1924] sm:$0xf]  ;;  %v13428_v19 = vor.u32 %v16637_v7, %v13425_v54  ;;  %7480 = vmatpush.bf16.msrb.mxu0 %v12916_v25 }
 0x41d   :  { %v13937_v42 = vld [vmem:[#allocation8 + $0x1960] sm:$0xf0] }
 0x41e   :  { %v16893_v57 = vld [vmem:[#allocation8 + $0x1d24] sm:$0xf]  ;;  %v13940_v28 = vor.u32 %v16765_v62, %v13937_v42  ;;  %7494 = vmatpush.bf16.msrb.mxu1 %v13428_v19 }
 0x41f   :  { %v14449_v14 = vld [vmem:[#allocation8 + $0x1d60] sm:$0xf0] }
 0x420   :  { %v16493_v9 = vld [vmem:[#allocation8 + $0x10a4] sm:$0xf]  ;;  %v14452_v32 = vor.u32 %v16893_v57, %v14449_v14  ;;  %7508 = vmatpush.bf16.msrb.mxu2 %v13940_v28  ;;  %v11191_v57 = vld [vmem:[#allocation8 + $0x3a8] sm:$0xf] }
 0x421   :  { %v12849_v13 = vld [vmem:[#allocation8 + $0x10e0] sm:$0xf0]  ;;  %v16086_v14 = vld [vmem:[#allocation8 + $0x3e4] sm:$0xf0] }
 0x422   :  { %v16621_v15 = vld [vmem:[#allocation8 + $0x14a4] sm:$0xf]  ;;  %v12852_v20 = vor.u32 %v16493_v9, %v12849_v13  ;;  %7522 = vmatpush.bf16.msrb.mxu3 %v14452_v32  ;;  %v12215_v9 = vld [vmem:[#allocation8 + $0xba8] sm:$0xf] }
 0x423   :  { %v13361_v5 = vld [vmem:[#allocation8 + $0x14e0] sm:$0xf0]  ;;  %v16342_v13 = vld [vmem:[#allocation8 + $0xbe4] sm:$0xf0] }
 0x424   :  { %v16749_v24 = vld [vmem:[#allocation8 + $0x18a4] sm:$0xf]  ;;  %v13364_v38 = vor.u32 %v16621_v15, %v13361_v5  ;;  %7481 = vmatpush.bf16.msrb.mxu0 %v12852_v20  ;;  %v12727_v15 = vld [vmem:[#allocation8 + $0xfa8] sm:$0xf] }
 0x425   :  { %v13873_v6 = vld [vmem:[#allocation8 + $0x18e0] sm:$0xf0]  ;;  %v16470_v5 = vld [vmem:[#allocation8 + $0xfe4] sm:$0xf0] }
 0x426   :  { %v16877_v4 = vld [vmem:[#allocation8 + $0x1ca4] sm:$0xf]  ;;  %v13876_v52 = vor.u32 %v16749_v24, %v13873_v6  ;;  %7495 = vmatpush.bf16.msrb.mxu1 %v13364_v38  ;;  %v11704_v24 = vor.u32 %v16214_v56, %v11703_v26  ;;  %v12216_v6 = vor.u32 %v16342_v13, %v12215_v9  ;;  %v11639_v20 = vld [vmem:[#allocation8 + $0x728] sm:$0xf] }
 0x427   :  { %v14385_v2 = vld [vmem:[#allocation8 + $0x1ce0] sm:$0xf0]  ;;  %v16326_v38 = vld [vmem:[#allocation8 + $0xb64] sm:$0xf0] }
 0x428   :  { %v16477_v36 = vld [vmem:[#allocation8 + $0x1024] sm:$0xf]  ;;  %v14388_v62 = vor.u32 %v16877_v4, %v14385_v2  ;;  %7509 = vmatpush.bf16.msrb.mxu2 %v13876_v52  ;;  %v11192_v2 = vor.u32 %v16086_v14, %v11191_v57  ;;  %v17862_v4 = vpop.f32.mrf.mxu0  ;;  %v12663_v52 = vld [vmem:[#allocation8 + $0xf28] sm:$0xf] }
 0x429   :  { %v12785_v41 = vld [vmem:[#allocation8 + $0x1060] sm:$0xf0]  ;;  %18463 = vst [vmem:[#allocation63_spill] sm:$0xff] %v17862_v4  ;;  %v11575_v57 = vld [vmem:[#allocation8 + $0x6a8] sm:$0xf] }
 0x42a   :  { %v16605_v33 = vld [vmem:[#allocation8 + $0x1424] sm:$0xf]  ;;  %v12788_v25 = vor.u32 %v16477_v36, %v12785_v41  ;;  %7523 = vmatpush.bf16.msrb.mxu3 %v14388_v62  ;;  %v12728_v36 = vor.u32 %v16470_v5, %v12727_v15  ;;  %v16198_v41 = vld [vmem:[#allocation8 + $0x764] sm:$0xf0]  ;;  %v16318_v4 = vld [vmem:[#allocation8 + $0xb2c] sm:$0xf] }
 0x42b   :  { %v13297_v7 = vld [vmem:[#allocation8 + $0x1460] sm:$0xf0]  ;;  %v11640_v62 = vor.u32 %v16198_v41, %v11639_v20  ;;  %v16182_v26 = vld [vmem:[#allocation8 + $0x6e4] sm:$0xf0] }
 0x42c   :  { %v16733_v54 = vld [vmem:[#allocation8 + $0x1824] sm:$0xf]  ;;  %v13300_v19 = vor.u32 %v16605_v33, %v13297_v7  ;;  %7482 = vmatpush.bf16.msrb.mxu0 %v12788_v25  ;;  %v16454_v33 = vld [vmem:[#allocation8 + $0xf64] sm:$0xf0]  ;;  %v17864_v7 = vpop.f32.mrf.mxu1  ;;  %v11576_v13 = vor.u32 %v16182_v26, %v11575_v57 }
 0x42d   :  { %v13809_v45 = vld [vmem:[#allocation8 + $0x1860] sm:$0xf0]  ;;  %18464 = vst [vmem:[#allocation64_spill] sm:$0xff] %v17864_v7  ;;  %v12664_v14 = vor.u32 %v16454_v33, %v12663_v52  ;;  %v12087_v25 = vld [vmem:[#allocation8 + $0xaa8] sm:$0xf] }
 0x42e   :  { %v16861_v42 = vld [vmem:[#allocation8 + $0x1c24] sm:$0xf]  ;;  %v13812_v28 = vor.u32 %v16733_v54, %v13809_v45  ;;  %7496 = vmatpush.bf16.msrb.mxu1 %v13300_v19  ;;  %v11128_v54 = vor.u32 %v16070_v35, %v11127_v59  ;;  %v12152_v45 = vor.u32 %v16326_v38, %v12151_v21  ;;  %v16310_v56 = vld [vmem:[#allocation8 + $0xae4] sm:$0xf0]  ;;  %v17870_v59 = vpop.f32.mrf.mxu2 }
 0x42f   :  { %v14321_v46 = vld [vmem:[#allocation8 + $0x1c60] sm:$0xf0]  ;;  %7483 = vmatmul.bf16.vlgmr.msrb.gmra.mxu0 %v17633_v39  ;;  %v12599_v9 = vld [vmem:[#allocation8 + $0xea8] sm:$0xf]  ;;  %18465 = vst [vmem:[#allocation65_spill] sm:$0xff] %v17870_v59  ;;  %v12088_v19 = vor.u32 %v16310_v56, %v12087_v25 }
 0x430   :  { %v14324_v32 = vor.u32 %v16861_v42, %v14321_v46  ;;  %7510 = vmatpush.bf16.msrb.mxu2 %v13812_v28  ;;  %7531 = vmatpush.bf16.msra.mxu0 %v11192_v2  ;;  %v11063_v42 = vld [vmem:[#allocation8 + $0x2a8] sm:$0xf]  ;;  %v17872_v2 = vpop.f32.mrf.mxu3 }
 0x431   :  { %v16054_v46 = vld [vmem:[#allocation8 + $0x2e4] sm:$0xf0]  ;;  %7497 = vmatmul.bf16.vlgmr.msrb.gmra.mxu1 %v17637_v44  ;;  %18466 = vst [vmem:[#allocation66_spill] sm:$0xff] %v17872_v2 }
 0x432   :  { %7524 = vmatpush.bf16.msrb.mxu3 %v14324_v32  ;;  %7545 = vmatpush.bf16.msra.mxu1 %v11704_v24  ;;  %v16438_v35 = vld [vmem:[#allocation8 + $0xee4] sm:$0xf0]  ;;  %v11064_v21 = vor.u32 %v16054_v46, %v11063_v42 }
 0x433   :  { %7511 = vmatmul.bf16.vlgmr.msrb.gmra.mxu2 %v17635_v43  ;;  %v10999_v28 = vld [vmem:[#allocation8 + $0x228] sm:$0xf]  ;;  %v12600_v32 = vor.u32 %v16438_v35, %v12599_v9 }
 0x434   :  { %7559 = vmatpush.bf16.msra.mxu2 %v12216_v6  ;;  %7532 = vmatpush.bf16.msra.mxu0 %v11128_v54  ;;  %v16038_v15 = vld [vmem:[#allocation8 + $0x264] sm:$0xf0] }
 0x435   :  { %7525 = vmatmul.bf16.vlgmr.msrb.gmra.mxu3 %v17639_v47  ;;  %v11511_v5 = vld [vmem:[#allocation8 + $0x628] sm:$0xf]  ;;  %v11000_v33 = vor.u32 %v16038_v15, %v10999_v28 }
 0x436   :  { %7573 = vmatpush.bf16.msra.mxu3 %v12728_v36  ;;  %7546 = vmatpush.bf16.msra.mxu1 %v11640_v62  ;;  %v16166_v24 = vld [vmem:[#allocation8 + $0x664] sm:$0xf0]  ;;  %v7260_v36 = vpop.f32.mrf.mxu0 }
 0x437   :  { %v12023_v6 = vld [vmem:[#allocation8 + $0xa28] sm:$0xf]  ;;  %v7261_v52 = vadd.f32 %v7260_v36, %v17860_v27  ;;  %v11512_v54 = vor.u32 %v16166_v24, %v11511_v5  ;;  %v7288_v24 = vpop.f32.mrf.mxu2 }
 0x438   :  { %7560 = vmatpush.bf16.msra.mxu2 %v12152_v45  ;;  %v16294_v20 = vld [vmem:[#allocation8 + $0xa64] sm:$0xf0]  ;;  %7533 = vmatpush.bf16.msra.mxu0 %v11064_v21  ;;  %v7274_v45 = vpop.f32.mrf.mxu1 }
 0x439   :  { %v12535_v41 = vld [vmem:[#allocation8 + $0xe28] sm:$0xf]  ;;  %v12024_v62 = vor.u32 %v16294_v20, %v12023_v6  ;;  %v7275_v26 = vadd.f32 %v7274_v45, %v7261_v52  ;;  %v7302_v52 = vpop.f32.mrf.mxu3 }
 0x43a   :  { %7574 = vmatpush.bf16.msra.mxu3 %v12664_v14  ;;  %v16422_v38 = vld [vmem:[#allocation8 + $0xe64] sm:$0xf0]  ;;  %7547 = vmatpush.bf16.msra.mxu1 %v11576_v13 }
 0x43b   :  { %v10935_v42 = vld [vmem:[#allocation8 + $0x1a8] sm:$0xf]  ;;  %v12536_v14 = vor.u32 %v16422_v38, %v12535_v41  ;;  %v7289_v36 = vadd.f32 %v7288_v24, %v7275_v26 }
 0x43c   :  { %7561 = vmatpush.bf16.msra.mxu2 %v12088_v19  ;;  %v16022_v46 = vld [vmem:[#allocation8 + $0x1e4] sm:$0xf0]  ;;  %7534 = vmatpush.bf16.msra.mxu0 %v11000_v33 }
 0x43d   :  { %v11447_v57 = vld [vmem:[#allocation8 + $0x5a8] sm:$0xf]  ;;  %v10936_v21 = vor.u32 %v16022_v46, %v10935_v42 }
 0x43e   :  { %7575 = vmatpush.bf16.msra.mxu3 %v12600_v32  ;;  %v16150_v25 = vld [vmem:[#allocation8 + $0x5e4] sm:$0xf0]  ;;  %7548 = vmatpush.bf16.msra.mxu1 %v11512_v54  ;;  %v17875_v54 = vadd.f32 %v7302_v52, %v7289_v36 }
 0x43f   :  { %v11959_v56 = vld [vmem:[#allocation8 + $0x9a8] sm:$0xf]  ;;  %v11448_v27 = vor.u32 %v16150_v25, %v11447_v57 }
 0x440   :  { %v16278_v9 = vld [vmem:[#allocation8 + $0x9e4] sm:$0xf0]  ;;  %7562 = vmatpush.bf16.msra.mxu2 %v12024_v62  ;;  %7535 = vmatpush.bf16.msra.mxu0 %v10936_v21  ;;  %18467 = vst [vmem:[#allocation67_spill] sm:$0xff] %v17875_v54 }
 0x441   :  { %v12471_v35 = vld [vmem:[#allocation8 + $0xda8] sm:$0xf]  ;;  %v11960_v13 = vor.u32 %v16278_v9, %v11959_v56 }
 0x442   :  { %v16406_v2 = vld [vmem:[#allocation8 + $0xde4] sm:$0xf0]  ;;  %7576 = vmatpush.bf16.msra.mxu3 %v12536_v14  ;;  %7549 = vmatpush.bf16.msra.mxu1 %v11448_v27 }
 0x443   :  { %v10871_v19 = vld [vmem:[#allocation8 + $0x128] sm:$0xf]  ;;  %v12472_v5 = vor.u32 %v16406_v2, %v12471_v35 }
 0x444   :  { %v16006_v28 = vld [vmem:[#allocation8 + $0x164] sm:$0xf0]  ;;  %7563 = vmatpush.bf16.msra.mxu2 %v11960_v13 }
 0x445   :  { %v11383_v15 = vld [vmem:[#allocation8 + $0x528] sm:$0xf]  ;;  %v10872_v33 = vor.u32 %v16006_v28, %v10871_v19 }
 0x446   :  { %v16134_v32 = vld [vmem:[#allocation8 + $0x564] sm:$0xf0]  ;;  %7577 = vmatpush.bf16.msra.mxu3 %v12472_v5 }
 0x447   :  { %v11895_v6 = vld [vmem:[#allocation8 + $0x928] sm:$0xf]  ;;  %v11384_v62 = vor.u32 %v16134_v32, %v11383_v15  ;;  %7536 = vmatpush.bf16.msra.mxu0 %v10872_v33 }
 0x448   :  { %v16262_v20 = vld [vmem:[#allocation8 + $0x964] sm:$0xf0] }
 0x449   :  { %v12407_v41 = vld [vmem:[#allocation8 + $0xd28] sm:$0xf]  ;;  %v11896_v45 = vor.u32 %v16262_v20, %v11895_v6  ;;  %7550 = vmatpush.bf16.msra.mxu1 %v11384_v62 }
 0x44a   :  { %v16390_v38 = vld [vmem:[#allocation8 + $0xd64] sm:$0xf0] }
 0x44b   :  { %v10807_v42 = vld [vmem:[#allocation8 + $0xa8] sm:$0xf]  ;;  %v12408_v2 = vor.u32 %v16390_v38, %v12407_v41  ;;  %7564 = vmatpush.bf16.msra.mxu2 %v11896_v45 }
 0x44c   :  { %v15990_v46 = vld [vmem:[#allocation8 + $0xe4] sm:$0xf0] }
 0x44d   :  { %v11319_v57 = vld [vmem:[#allocation8 + $0x4a8] sm:$0xf]  ;;  %v10808_v35 = vor.u32 %v15990_v46, %v10807_v42  ;;  %7578 = vmatpush.bf16.msra.mxu3 %v12408_v2 }
 0x44e   :  { %v16118_v14 = vld [vmem:[#allocation8 + $0x4e4] sm:$0xf0] }
 0x44f   :  { %v11831_v25 = vld [vmem:[#allocation8 + $0x8a8] sm:$0xf]  ;;  %v11320_v27 = vor.u32 %v16118_v14, %v11319_v57  ;;  %7537 = vmatpush.bf16.msra.mxu0 %v10808_v35 }
 0x450   :  { %v16246_v56 = vld [vmem:[#allocation8 + $0x8e4] sm:$0xf0] }
 0x451   :  { %v12343_v26 = vld [vmem:[#allocation8 + $0xca8] sm:$0xf]  ;;  %v11832_v13 = vor.u32 %v16246_v56, %v11831_v25  ;;  %7551 = vmatpush.bf16.msra.mxu1 %v11320_v27 }
 0x452   :  { %v16374_v9 = vld [vmem:[#allocation8 + $0xce4] sm:$0xf0] }
 0x453   :  { %v10743_v21 = vld [vmem:[#allocation8 + $0x28] sm:$0xf]  ;;  %v12344_v32 = vor.u32 %v16374_v9, %v12343_v26  ;;  %7565 = vmatpush.bf16.msra.mxu2 %v11832_v13 }
 0x454   :  { %v15974_v19 = vld [vmem:[#allocation8 + $0x64] sm:$0xf0] }
 0x455   :  { %v11255_v28 = vld [vmem:[#allocation8 + $0x428] sm:$0xf]  ;;  %v10744_v52 = vor.u32 %v15974_v19, %v10743_v21  ;;  %7579 = vmatpush.bf16.msra.mxu3 %v12344_v32 }
 0x456   :  { %v16102_v15 = vld [vmem:[#allocation8 + $0x464] sm:$0xf0] }
 0x457   :  { %v11767_v24 = vld [vmem:[#allocation8 + $0x828] sm:$0xf]  ;;  %v11256_v62 = vor.u32 %v16102_v15, %v11255_v28  ;;  %7538 = vmatpush.bf16.msra.mxu0 %v10744_v52  ;;  %v17877_v28 = vpop.f32.mrf.mxu0  ;;  %v17879_v15 = vpop.f32.mrf.mxu1 }
 0x458   :  { %v16230_v5 = vld [vmem:[#allocation8 + $0x864] sm:$0xf0]  ;;  %18468 = vst [vmem:[#allocation68_spill] sm:$0xff] %v17877_v28  ;;  %v11129_v28 = vld [vmem:[#allocation8 + $0x368] sm:$0xf0] }
 0x459   :  { %v12279_v6 = vld [vmem:[#allocation8 + $0xc28] sm:$0xf]  ;;  %v11768_v45 = vor.u32 %v16230_v5, %v11767_v24  ;;  %7552 = vmatpush.bf16.msra.mxu1 %v11256_v62  ;;  %18469 = vst [vmem:[#allocation69_spill] sm:$0xff] %v17879_v15  ;;  %v16062_v15 = vld [vmem:[#allocation8 + $0x32c] sm:$0xf] }
 0x45a   :  { %v16358_v20 = vld [vmem:[#allocation8 + $0xc64] sm:$0xf0]  ;;  %7539 = vmatmul.bf16.vlgmr.msra.gmra.mxu0 %v17621_v58 }
 0x45b   :  { %v13239_v36 = vld [vmem:[#allocation8 + $0x13a8] sm:$0xf]  ;;  %v12280_v2 = vor.u32 %v16358_v20, %v12279_v6  ;;  %7566 = vmatpush.bf16.msra.mxu2 %v11768_v45 }
 0x45c   :  { %v16598_v41 = vld [vmem:[#allocation8 + $0x13e4] sm:$0xf0]  ;;  %7553 = vmatmul.bf16.vlgmr.msra.gmra.mxu1 %v17627_v10 }
 0x45d   :  { %v13751_v38 = vld [vmem:[#allocation8 + $0x17a8] sm:$0xf]  ;;  %v13240_v25 = vor.u32 %v16598_v41, %v13239_v36  ;;  %7580 = vmatpush.bf16.msra.mxu3 %v12280_v2 }
 0x45e   :  { %v16726_v33 = vld [vmem:[#allocation8 + $0x17e4] sm:$0xf0]  ;;  %7567 = vmatmul.bf16.vlgmr.msra.gmra.mxu2 %v17623_v1 }
 0x45f   :  { %v14263_v42 = vld [vmem:[#allocation8 + $0x1ba8] sm:$0xf]  ;;  %v13752_v56 = vor.u32 %v16726_v33, %v13751_v38  ;;  %7587 = vmatpush.bf16.msrb.mxu0 %v13240_v25 }
 0x460   :  { %v16854_v46 = vld [vmem:[#allocation8 + $0x1be4] sm:$0xf0]  ;;  %7581 = vmatmul.bf16.vlgmr.msra.gmra.mxu3 %v17629_v17 }
 0x461   :  { %v14775_v57 = vld [vmem:[#allocation8 + $0x1fa8] sm:$0xf]  ;;  %v14264_v26 = vor.u32 %v16854_v46, %v14263_v42  ;;  %7601 = vmatpush.bf16.msrb.mxu1 %v13752_v56 }
 0x462   :  { %v16982_v14 = vld [vmem:[#allocation8 + $0x1fe4] sm:$0xf0] }
 0x463   :  { %v13175_v9 = vld [vmem:[#allocation8 + $0x1328] sm:$0xf]  ;;  %v14776_v35 = vor.u32 %v16982_v14, %v14775_v57  ;;  %7615 = vmatpush.bf16.msrb.mxu2 %v14264_v26  ;;  %v17885_v14 = vpop.f32.mrf.mxu2 }
 0x464   :  { %v16582_v54 = vld [vmem:[#allocation8 + $0x1364] sm:$0xf0]  ;;  %18470 = vst [vmem:[#allocation70_spill] sm:$0xff] %v17885_v14 }
 0x465   :  { %v13687_v59 = vld [vmem:[#allocation8 + $0x1728] sm:$0xf]  ;;  %v13176_v24 = vor.u32 %v16582_v54, %v13175_v9  ;;  %7629 = vmatpush.bf16.msrb.mxu3 %v14776_v35  ;;  %v17887_v9 = vpop.f32.mrf.mxu3 }
 0x466   :  { %v16710_v21 = vld [vmem:[#allocation8 + $0x1764] sm:$0xf0]  ;;  %18471 = vst [vmem:[#allocation71_spill] sm:$0xff] %v17887_v9 }
 0x467   :  { %v14199_v19 = vld [vmem:[#allocation8 + $0x1b28] sm:$0xf]  ;;  %v13688_v32 = vor.u32 %v16710_v21, %v13687_v59  ;;  %7588 = vmatpush.bf16.msrb.mxu0 %v13176_v24 }
 0x468   :  { %v16838_v7 = vld [vmem:[#allocation8 + $0x1b64] sm:$0xf0] }
 0x469   :  { %v14711_v27 = vld [vmem:[#allocation8 + $0x1f28] sm:$0xf]  ;;  %v14200_v5 = vor.u32 %v16838_v7, %v14199_v19  ;;  %7602 = vmatpush.bf16.msrb.mxu1 %v13688_v32 }
 0x46a   :  { %v16966_v13 = vld [vmem:[#allocation8 + $0x1f64] sm:$0xf0] }
 0x46b   :  { %v13111_v6 = vld [vmem:[#allocation8 + $0x12a8] sm:$0xf]  ;;  %v14712_v41 = vor.u32 %v16966_v13, %v14711_v27  ;;  %7616 = vmatpush.bf16.msrb.mxu2 %v14200_v5  ;;  %v7316_v27 = vpop.f32.mrf.mxu0  ;;  %v7330_v13 = vpop.f32.mrf.mxu1 }
 0x46c   :  { %v16566_v20 = vld [vmem:[#allocation8 + $0x12e4] sm:$0xf0] }
 0x46d   :  { %v13623_v36 = vld [vmem:[#allocation8 + $0x16a8] sm:$0xf]  ;;  %v13112_v54 = vor.u32 %v16566_v20, %v13111_v6  ;;  %7630 = vmatpush.bf16.msrb.mxu3 %v14712_v41 }
 0x46e   :  { %v16694_v38 = vld [vmem:[#allocation8 + $0x16e4] sm:$0xf0] }
 0x46f   :  { %v14135_v52 = vld [vmem:[#allocation8 + $0x1aa8] sm:$0xf]  ;;  %v13624_v7 = vor.u32 %v16694_v38, %v13623_v36  ;;  %7589 = vmatpush.bf16.msrb.mxu0 %v13112_v54  ;;  %v7331_v36 = vadd.f32 %v7330_v13, %v7316_v27 }
 0x470   :  { %v16822_v33 = vld [vmem:[#allocation8 + $0x1ae4] sm:$0xf0] }
 0x471   :  { %v14647_v42 = vld [vmem:[#allocation8 + $0x1ea8] sm:$0xf]  ;;  %v14136_v59 = vor.u32 %v16822_v33, %v14135_v52  ;;  %7603 = vmatpush.bf16.msrb.mxu1 %v13624_v7 }
 0x472   :  { %v16950_v46 = vld [vmem:[#allocation8 + $0x1ee4] sm:$0xf0] }
 0x473   :  { %v13047_v62 = vld [vmem:[#allocation8 + $0x1228] sm:$0xf]  ;;  %v14648_v2 = vor.u32 %v16950_v46, %v14647_v42  ;;  %7617 = vmatpush.bf16.msrb.mxu2 %v14136_v59 }
 0x474   :  { %v16550_v45 = vld [vmem:[#allocation8 + $0x1264] sm:$0xf0] }
 0x475   :  { %v13559_v57 = vld [vmem:[#allocation8 + $0x1628] sm:$0xf]  ;;  %v13048_v19 = vor.u32 %v16550_v45, %v13047_v62  ;;  %7631 = vmatpush.bf16.msrb.mxu3 %v14648_v2 }
 0x476   :  { %v16678_v25 = vld [vmem:[#allocation8 + $0x1664] sm:$0xf0] }
 0x477   :  { %v14071_v56 = vld [vmem:[#allocation8 + $0x1a28] sm:$0xf]  ;;  %v13560_v24 = vor.u32 %v16678_v25, %v13559_v57  ;;  %7590 = vmatpush.bf16.msrb.mxu0 %v13048_v19  ;;  %v7358_v19 = vpop.f32.mrf.mxu3 }
 0x478   :  { %v16806_v26 = vld [vmem:[#allocation8 + $0x1a64] sm:$0xf0] }
 0x479   :  { %v14583_v35 = vld [vmem:[#allocation8 + $0x1e28] sm:$0xf]  ;;  %v14072_v32 = vor.u32 %v16806_v26, %v14071_v56  ;;  %7604 = vmatpush.bf16.msrb.mxu1 %v13560_v24 }
 0x47a   :  { %v16934_v21 = vld [vmem:[#allocation8 + $0x1e64] sm:$0xf0] }
 0x47b   :  { %v12983_v5 = vld [vmem:[#allocation8 + $0x11a8] sm:$0xf]  ;;  %v14584_v41 = vor.u32 %v16934_v21, %v14583_v35  ;;  %7618 = vmatpush.bf16.msrb.mxu2 %v14072_v32  ;;  %v7344_v35 = vpop.f32.mrf.mxu2 }
 0x47c   :  { %v16534_v6 = vld [vmem:[#allocation8 + $0x11e4] sm:$0xf0]  ;;  %v7345_v13 = vadd.f32 %v7344_v35, %v7331_v36 }
 0x47d   :  { %v13495_v20 = vld [vmem:[#allocation8 + $0x15a8] sm:$0xf]  ;;  %v12984_v54 = vor.u32 %v16534_v6, %v12983_v5  ;;  %7632 = vmatpush.bf16.msrb.mxu3 %v14584_v41 }
 0x47e   :  { %v16662_v38 = vld [vmem:[#allocation8 + $0x15e4] sm:$0xf0] }
 0x47f   :  { %v14007_v52 = vld [vmem:[#allocation8 + $0x19a8] sm:$0xf]  ;;  %v13496_v62 = vor.u32 %v16662_v38, %v13495_v20  ;;  %7591 = vmatpush.bf16.msrb.mxu0 %v12984_v54  ;;  %v17889_v38 = vadd.f32 %v7358_v19, %v7345_v13  ;;  %v16206_v13 = vld [vmem:[#allocation8 + $0x7ac] sm:$0xf] }
 0x480   :  { %v16790_v33 = vld [vmem:[#allocation8 + $0x19e4] sm:$0xf0]  ;;  %v11705_v19 = vld [vmem:[#allocation8 + $0x7e8] sm:$0xf0] }
 0x481   :  { %v14519_v42 = vld [vmem:[#allocation8 + $0x1da8] sm:$0xf]  ;;  %v14008_v7 = vor.u32 %v16790_v33, %v14007_v52  ;;  %7605 = vmatpush.bf16.msrb.mxu1 %v13496_v62 }
 0x482   :  { %v16918_v46 = vld [vmem:[#allocation8 + $0x1de4] sm:$0xf0] }
 0x483   :  { %v12919_v59 = vld [vmem:[#allocation8 + $0x1128] sm:$0xf]  ;;  %v14520_v25 = vor.u32 %v16918_v46, %v14519_v42  ;;  %7619 = vmatpush.bf16.msrb.mxu2 %v14008_v7 }
 0x484   :  { %v16518_v45 = vld [vmem:[#allocation8 + $0x1164] sm:$0xf0] }
 0x485   :  { %v13431_v57 = vld [vmem:[#allocation8 + $0x1528] sm:$0xf]  ;;  %v12920_v9 = vor.u32 %v16518_v45, %v12919_v59  ;;  %7633 = vmatpush.bf16.msrb.mxu3 %v14520_v25 }
 0x486   :  { %v16646_v56 = vld [vmem:[#allocation8 + $0x1564] sm:$0xf0] }
 0x487   :  { %v13943_v26 = vld [vmem:[#allocation8 + $0x1928] sm:$0xf]  ;;  %v13432_v24 = vor.u32 %v16646_v56, %v13431_v57  ;;  %7592 = vmatpush.bf16.msrb.mxu0 %v12920_v9 }
 0x488   :  { %v16774_v2 = vld [vmem:[#allocation8 + $0x1964] sm:$0xf0] }
 0x489   :  { %v14455_v21 = vld [vmem:[#allocation8 + $0x1d28] sm:$0xf]  ;;  %v13944_v32 = vor.u32 %v16774_v2, %v13943_v26  ;;  %7606 = vmatpush.bf16.msrb.mxu1 %v13432_v24 }
 0x48a   :  { %v16902_v27 = vld [vmem:[#allocation8 + $0x1d64] sm:$0xf0] }
 0x48b   :  { %v12855_v5 = vld [vmem:[#allocation8 + $0x10a8] sm:$0xf]  ;;  %v14456_v41 = vor.u32 %v16902_v27, %v14455_v21  ;;  %7620 = vmatpush.bf16.msrb.mxu2 %v13944_v32  ;;  %v16078_v21 = vld [vmem:[#allocation8 + $0x3ac] sm:$0xf] }
 0x48c   :  { %v16502_v6 = vld [vmem:[#allocation8 + $0x10e4] sm:$0xf0]  ;;  %v11193_v27 = vld [vmem:[#allocation8 + $0x3e8] sm:$0xf0] }
 0x48d   :  { %v13367_v20 = vld [vmem:[#allocation8 + $0x14a8] sm:$0xf]  ;;  %v12856_v36 = vor.u32 %v16502_v6, %v12855_v5  ;;  %7634 = vmatpush.bf16.msrb.mxu3 %v14456_v41  ;;  %v16334_v5 = vld [vmem:[#allocation8 + $0xbac] sm:$0xf] }
 0x48e   :  { %v16630_v52 = vld [vmem:[#allocation8 + $0x14e4] sm:$0xf0]  ;;  %v12217_v6 = vld [vmem:[#allocation8 + $0xbe8] sm:$0xf0] }
 0x48f   :  { %v13879_v33 = vld [vmem:[#allocation8 + $0x18a8] sm:$0xf]  ;;  %v13368_v62 = vor.u32 %v16630_v52, %v13367_v20  ;;  %7593 = vmatpush.bf16.msrb.mxu0 %v12856_v36  ;;  %v16462_v20 = vld [vmem:[#allocation8 + $0xfac] sm:$0xf] }
 0x490   :  { %v16758_v42 = vld [vmem:[#allocation8 + $0x18e4] sm:$0xf0]  ;;  %v12729_v52 = vld [vmem:[#allocation8 + $0xfe8] sm:$0xf0] }
 0x491   :  { %v14391_v46 = vld [vmem:[#allocation8 + $0x1ca8] sm:$0xf]  ;;  %v13880_v7 = vor.u32 %v16758_v42, %v13879_v33  ;;  %7607 = vmatpush.bf16.msrb.mxu1 %v13368_v62  ;;  %v11708_v33 = vor.u32 %v16206_v13, %v11705_v19  ;;  %v12220_v42 = vor.u32 %v16334_v5, %v12217_v6  ;;  %v16190_v36 = vld [vmem:[#allocation8 + $0x72c] sm:$0xf] }
 0x492   :  { %v16886_v14 = vld [vmem:[#allocation8 + $0x1ce4] sm:$0xf0]  ;;  %v12153_v62 = vld [vmem:[#allocation8 + $0xb68] sm:$0xf0] }
 0x493   :  { %v12791_v54 = vld [vmem:[#allocation8 + $0x1028] sm:$0xf]  ;;  %v14392_v26 = vor.u32 %v16886_v14, %v14391_v46  ;;  %7621 = vmatpush.bf16.msrb.mxu2 %v13880_v7  ;;  %v11196_v14 = vor.u32 %v16078_v21, %v11193_v27  ;;  %v17891_v46 = vpop.f32.mrf.mxu0  ;;  %v16446_v7 = vld [vmem:[#allocation8 + $0xf2c] sm:$0xf] }
 0x494   :  { %v16486_v59 = vld [vmem:[#allocation8 + $0x1064] sm:$0xf0]  ;;  %18472 = vst [vmem:[#allocation72_spill] sm:$0xff] %v17891_v46  ;;  %v16174_v21 = vld [vmem:[#allocation8 + $0x6ac] sm:$0xf] }
 0x495   :  { %v13303_v45 = vld [vmem:[#allocation8 + $0x1428] sm:$0xf]  ;;  %v12792_v9 = vor.u32 %v16486_v59, %v12791_v54  ;;  %7635 = vmatpush.bf16.msrb.mxu3 %v14392_v26  ;;  %v12732_v54 = vor.u32 %v16462_v20, %v12729_v52  ;;  %v11641_v59 = vld [vmem:[#allocation8 + $0x768] sm:$0xf0]  ;;  %v12159_v46 = vld [vmem:[#allocation8 + $0xb30] sm:$0xf] }
 0x496   :  { %v16614_v57 = vld [vmem:[#allocation8 + $0x1464] sm:$0xf0]  ;;  %v11644_v26 = vor.u32 %v16190_v36, %v11641_v59  ;;  %v11577_v13 = vld [vmem:[#allocation8 + $0x6e8] sm:$0xf0] }
 0x497   :  { %v13815_v56 = vld [vmem:[#allocation8 + $0x1828] sm:$0xf]  ;;  %v13304_v24 = vor.u32 %v16614_v57, %v13303_v45  ;;  %7594 = vmatpush.bf16.msrb.mxu0 %v12792_v9  ;;  %v12665_v45 = vld [vmem:[#allocation8 + $0xf68] sm:$0xf0]  ;;  %v17893_v57 = vpop.f32.mrf.mxu1  ;;  %v11580_v6 = vor.u32 %v16174_v21, %v11577_v13 }
 0x498   :  { %v16742_v25 = vld [vmem:[#allocation8 + $0x1864] sm:$0xf0]  ;;  %18473 = vst [vmem:[#allocation73_spill] sm:$0xff] %v17893_v57  ;;  %v12668_v27 = vor.u32 %v16446_v7, %v12665_v45  ;;  %v16302_v9 = vld [vmem:[#allocation8 + $0xaac] sm:$0xf] }
 0x499   :  { %v14327_v2 = vld [vmem:[#allocation8 + $0x1c28] sm:$0xf]  ;;  %v13816_v32 = vor.u32 %v16742_v25, %v13815_v56  ;;  %7608 = vmatpush.bf16.msrb.mxu1 %v13304_v24  ;;  %v11132_v56 = vor.u32 %v16062_v15, %v11129_v28  ;;  %v12156_v25 = vor.u32 %v16318_v4, %v12153_v62  ;;  %v12089_v19 = vld [vmem:[#allocation8 + $0xae8] sm:$0xf0]  ;;  %v17899_v15 = vpop.f32.mrf.mxu2 }
 0x49a   :  { %v16870_v35 = vld [vmem:[#allocation8 + $0x1c64] sm:$0xf0]  ;;  %7595 = vmatmul.bf16.vlgmr.msrb.gmra.mxu0 %v17633_v39  ;;  %v16430_v5 = vld [vmem:[#allocation8 + $0xeac] sm:$0xf]  ;;  %18474 = vst [vmem:[#allocation74_spill] sm:$0xff] %v17899_v15  ;;  %v12092_v24 = vor.u32 %v16302_v9, %v12089_v19 }
 0x49b   :  { %v14328_v41 = vor.u32 %v16870_v35, %v14327_v2  ;;  %7622 = vmatpush.bf16.msrb.mxu2 %v13816_v32  ;;  %7643 = vmatpush.bf16.msra.mxu0 %v11196_v14  ;;  %v16046_v2 = vld [vmem:[#allocation8 + $0x2ac] sm:$0xf]  ;;  %v17901_v14 = vpop.f32.mrf.mxu3 }
 0x49c   :  { %v11065_v35 = vld [vmem:[#allocation8 + $0x2e8] sm:$0xf0]  ;;  %7609 = vmatmul.bf16.vlgmr.msrb.gmra.mxu1 %v17637_v44  ;;  %18475 = vst [vmem:[#allocation75_spill] sm:$0xff] %v17901_v14 }
 0x49d   :  { %7636 = vmatpush.bf16.msrb.mxu3 %v14328_v41  ;;  %7657 = vmatpush.bf16.msra.mxu1 %v11708_v33  ;;  %v12601_v28 = vld [vmem:[#allocation8 + $0xee8] sm:$0xf0]  ;;  %v11068_v4 = vor.u32 %v16046_v2, %v11065_v35 }
 0x49e   :  { %7623 = vmatmul.bf16.vlgmr.msrb.gmra.mxu2 %v17635_v43  ;;  %v16030_v32 = vld [vmem:[#allocation8 + $0x22c] sm:$0xf]  ;;  %v12604_v41 = vor.u32 %v16430_v5, %v12601_v28 }
 0x49f   :  { %7671 = vmatpush.bf16.msra.mxu2 %v12220_v42  ;;  %7644 = vmatpush.bf16.msra.mxu0 %v11132_v56  ;;  %v11001_v20 = vld [vmem:[#allocation8 + $0x268] sm:$0xf0] }
 0x4a0   :  { %7637 = vmatmul.bf16.vlgmr.msrb.gmra.mxu3 %v17639_v47  ;;  %v16158_v52 = vld [vmem:[#allocation8 + $0x62c] sm:$0xf]  ;;  %v11004_v45 = vor.u32 %v16030_v32, %v11001_v20 }
 0x4a1   :  { %7685 = vmatpush.bf16.msra.mxu3 %v12732_v54  ;;  %7658 = vmatpush.bf16.msra.mxu1 %v11644_v26  ;;  %v11513_v33 = vld [vmem:[#allocation8 + $0x668] sm:$0xf0]  ;;  %v7372_v54 = vpop.f32.mrf.mxu0 }
 0x4a2   :  { %v16286_v42 = vld [vmem:[#allocation8 + $0xa2c] sm:$0xf]  ;;  %v7373_v7 = vadd.f32 %v7372_v54, %v17889_v38  ;;  %v11516_v56 = vor.u32 %v16158_v52, %v11513_v33  ;;  %v7400_v33 = vpop.f32.mrf.mxu2 }
 0x4a3   :  { %7672 = vmatpush.bf16.msra.mxu2 %v12156_v25  ;;  %v12025_v36 = vld [vmem:[#allocation8 + $0xa68] sm:$0xf0]  ;;  %7645 = vmatpush.bf16.msra.mxu0 %v11068_v4  ;;  %v7386_v25 = vpop.f32.mrf.mxu1 }
 0x4a4   :  { %v16414_v59 = vld [vmem:[#allocation8 + $0xe2c] sm:$0xf]  ;;  %v12028_v26 = vor.u32 %v16286_v42, %v12025_v36  ;;  %v7387_v13 = vadd.f32 %v7386_v25, %v7373_v7  ;;  %v7414_v7 = vpop.f32.mrf.mxu3 }
 0x4a5   :  { %7686 = vmatpush.bf16.msra.mxu3 %v12668_v27  ;;  %v12537_v62 = vld [vmem:[#allocation8 + $0xe68] sm:$0xf0]  ;;  %7659 = vmatpush.bf16.msra.mxu1 %v11580_v6 }
 0x4a6   :  { %v16014_v2 = vld [vmem:[#allocation8 + $0x1ac] sm:$0xf]  ;;  %v12540_v27 = vor.u32 %v16414_v59, %v12537_v62  ;;  %v7401_v54 = vadd.f32 %v7400_v33, %v7387_v13 }
 0x4a7   :  { %7673 = vmatpush.bf16.msra.mxu2 %v12092_v24  ;;  %v10937_v35 = vld [vmem:[#allocation8 + $0x1e8] sm:$0xf0]  ;;  %7646 = vmatpush.bf16.msra.mxu0 %v11004_v45 }
 0x4a8   :  { %v16142_v21 = vld [vmem:[#allocation8 + $0x5ac] sm:$0xf]  ;;  %v10940_v4 = vor.u32 %v16014_v2, %v10937_v35 }
 0x4a9   :  { %7687 = vmatpush.bf16.msra.mxu3 %v12604_v41  ;;  %v11449_v9 = vld [vmem:[#allocation8 + $0x5e8] sm:$0xf0]  ;;  %7660 = vmatpush.bf16.msra.mxu1 %v11516_v56  ;;  %v17904_v56 = vadd.f32 %v7414_v7, %v7401_v54 }
 0x4aa   :  { %v16270_v19 = vld [vmem:[#allocation8 + $0x9ac] sm:$0xf]  ;;  %v11452_v38 = vor.u32 %v16142_v21, %v11449_v9 }
 0x4ab   :  { %v11961_v5 = vld [vmem:[#allocation8 + $0x9e8] sm:$0xf0]  ;;  %7674 = vmatpush.bf16.msra.mxu2 %v12028_v26  ;;  %7647 = vmatpush.bf16.msra.mxu0 %v10940_v4  ;;  %18476 = vst [vmem:[#allocation76_spill] sm:$0xff] %v17904_v56 }
 0x4ac   :  { %v16398_v28 = vld [vmem:[#allocation8 + $0xdac] sm:$0xf]  ;;  %v11964_v6 = vor.u32 %v16270_v19, %v11961_v5 }
 0x4ad   :  { %v12473_v14 = vld [vmem:[#allocation8 + $0xde8] sm:$0xf0]  ;;  %7688 = vmatpush.bf16.msra.mxu3 %v12540_v27  ;;  %7661 = vmatpush.bf16.msra.mxu1 %v11452_v38 }
 0x4ae   :  { %v15998_v24 = vld [vmem:[#allocation8 + $0x12c] sm:$0xf]  ;;  %v12476_v52 = vor.u32 %v16398_v28, %v12473_v14 }
 0x4af   :  { %v10873_v32 = vld [vmem:[#allocation8 + $0x168] sm:$0xf0]  ;;  %7675 = vmatpush.bf16.msra.mxu2 %v11964_v6 }
 0x4b0   :  { %v16126_v20 = vld [vmem:[#allocation8 + $0x52c] sm:$0xf]  ;;  %v10876_v45 = vor.u32 %v15998_v24, %v10873_v32 }
 0x4b1   :  { %v11385_v41 = vld [vmem:[#allocation8 + $0x568] sm:$0xf0]  ;;  %7689 = vmatpush.bf16.msra.mxu3 %v12476_v52 }
 0x4b2   :  { %v16254_v42 = vld [vmem:[#allocation8 + $0x92c] sm:$0xf]  ;;  %v11388_v26 = vor.u32 %v16126_v20, %v11385_v41  ;;  %7648 = vmatpush.bf16.msra.mxu0 %v10876_v45 }
 0x4b3   :  { %v11897_v36 = vld [vmem:[#allocation8 + $0x968] sm:$0xf0] }
 0x4b4   :  { %v16382_v59 = vld [vmem:[#allocation8 + $0xd2c] sm:$0xf]  ;;  %v11900_v25 = vor.u32 %v16254_v42, %v11897_v36  ;;  %7662 = vmatpush.bf16.msra.mxu1 %v11388_v26 }
 0x4b5   :  { %v12409_v62 = vld [vmem:[#allocation8 + $0xd68] sm:$0xf0] }
 0x4b6   :  { %v15982_v2 = vld [vmem:[#allocation8 + $0xac] sm:$0xf]  ;;  %v12412_v14 = vor.u32 %v16382_v59, %v12409_v62  ;;  %7676 = vmatpush.bf16.msra.mxu2 %v11900_v25 }
 0x4b7   :  { %v10809_v35 = vld [vmem:[#allocation8 + $0xe8] sm:$0xf0] }
 0x4b8   :  { %v16110_v21 = vld [vmem:[#allocation8 + $0x4ac] sm:$0xf]  ;;  %v10812_v28 = vor.u32 %v15982_v2, %v10809_v35  ;;  %7690 = vmatpush.bf16.msra.mxu3 %v12412_v14 }
 0x4b9   :  { %v11321_v27 = vld [vmem:[#allocation8 + $0x4e8] sm:$0xf0] }
 0x4ba   :  { %v16238_v9 = vld [vmem:[#allocation8 + $0x8ac] sm:$0xf]  ;;  %v11324_v38 = vor.u32 %v16110_v21, %v11321_v27  ;;  %7649 = vmatpush.bf16.msra.mxu0 %v10812_v28 }
 0x4bb   :  { %v11833_v19 = vld [vmem:[#allocation8 + $0x8e8] sm:$0xf0] }
 0x4bc   :  { %v16366_v13 = vld [vmem:[#allocation8 + $0xcac] sm:$0xf]  ;;  %v11836_v6 = vor.u32 %v16238_v9, %v11833_v19  ;;  %7663 = vmatpush.bf16.msra.mxu1 %v11324_v38 }
 0x4bd   :  { %v12345_v5 = vld [vmem:[#allocation8 + $0xce8] sm:$0xf0] }
 0x4be   :  { %v15966_v4 = vld [vmem:[#allocation8 + $0x2c] sm:$0xf]  ;;  %v12348_v41 = vor.u32 %v16366_v13, %v12345_v5  ;;  %7677 = vmatpush.bf16.msra.mxu2 %v11836_v6 }
 0x4bf   :  { %v10745_v24 = vld [vmem:[#allocation8 + $0x68] sm:$0xf0] }
 0x4c0   :  { %v16094_v32 = vld [vmem:[#allocation8 + $0x42c] sm:$0xf]  ;;  %v10748_v7 = vor.u32 %v15966_v4, %v10745_v24  ;;  %7691 = vmatpush.bf16.msra.mxu3 %v12348_v41 }
 0x4c1   :  { %v11257_v20 = vld [vmem:[#allocation8 + $0x468] sm:$0xf0] }
 0x4c2   :  { %v16222_v33 = vld [vmem:[#allocation8 + $0x82c] sm:$0xf]  ;;  %v11260_v26 = vor.u32 %v16094_v32, %v11257_v20  ;;  %7650 = vmatpush.bf16.msra.mxu0 %v10748_v7  ;;  %v17906_v32 = vpop.f32.mrf.mxu0  ;;  %v17908_v20 = vpop.f32.mrf.mxu1 }
 0x4c3   :  { %v11769_v52 = vld [vmem:[#allocation8 + $0x868] sm:$0xf0]  ;;  %18477 = vst [vmem:[#allocation77_spill] sm:$0xff] %v17906_v32  ;;  %v16071_v32 = vld [vmem:[#allocation8 + $0x36c] sm:$0xf0] }
 0x4c4   :  { %v16350_v42 = vld [vmem:[#allocation8 + $0xc2c] sm:$0xf]  ;;  %v11772_v25 = vor.u32 %v16222_v33, %v11769_v52  ;;  %7664 = vmatpush.bf16.msra.mxu1 %v11260_v26  ;;  %18478 = vst [vmem:[#allocation78_spill] sm:$0xff] %v17908_v20  ;;  %v11135_v20 = vld [vmem:[#allocation8 + $0x330] sm:$0xf] }
 0x4c5   :  { %v12281_v36 = vld [vmem:[#allocation8 + $0xc68] sm:$0xf0]  ;;  %7651 = vmatmul.bf16.vlgmr.msra.gmra.mxu0 %v17621_v58 }
 0x4c6   :  { %v16590_v54 = vld [vmem:[#allocation8 + $0x13ac] sm:$0xf]  ;;  %v12284_v14 = vor.u32 %v16350_v42, %v12281_v36  ;;  %7678 = vmatpush.bf16.msra.mxu2 %v11772_v25 }
 0x4c7   :  { %v13241_v59 = vld [vmem:[#allocation8 + $0x13e8] sm:$0xf0]  ;;  %7665 = vmatmul.bf16.vlgmr.msra.gmra.mxu1 %v17627_v10 }
 0x4c8   :  { %v16718_v62 = vld [vmem:[#allocation8 + $0x17ac] sm:$0xf]  ;;  %v13244_v9 = vor.u32 %v16590_v54, %v13241_v59  ;;  %7692 = vmatpush.bf16.msra.mxu3 %v12284_v14 }
 0x4c9   :  { %v13753_v45 = vld [vmem:[#allocation8 + $0x17e8] sm:$0xf0]  ;;  %7679 = vmatmul.bf16.vlgmr.msra.gmra.mxu2 %v17623_v1 }
 0x4ca   :  { %v16846_v2 = vld [vmem:[#allocation8 + $0x1bac] sm:$0xf]  ;;  %v13756_v19 = vor.u32 %v16718_v62, %v13753_v45  ;;  %7699 = vmatpush.bf16.msrb.mxu0 %v13244_v9 }
 0x4cb   :  { %v14265_v35 = vld [vmem:[#allocation8 + $0x1be8] sm:$0xf0]  ;;  %7693 = vmatmul.bf16.vlgmr.msra.gmra.mxu3 %v17629_v17 }
 0x4cc   :  { %v16974_v21 = vld [vmem:[#allocation8 + $0x1fac] sm:$0xf]  ;;  %v14268_v13 = vor.u32 %v16846_v2, %v14265_v35  ;;  %7713 = vmatpush.bf16.msrb.mxu1 %v13756_v19 }
 0x4cd   :  { %v14777_v27 = vld [vmem:[#allocation8 + $0x1fe8] sm:$0xf0] }
 0x4ce   :  { %v16574_v5 = vld [vmem:[#allocation8 + $0x132c] sm:$0xf]  ;;  %v14780_v28 = vor.u32 %v16974_v21, %v14777_v27  ;;  %7727 = vmatpush.bf16.msrb.mxu2 %v14268_v13  ;;  %v17914_v27 = vpop.f32.mrf.mxu2 }
 0x4cf   :  { %v13177_v56 = vld [vmem:[#allocation8 + $0x1368] sm:$0xf0]  ;;  %18479 = vst [vmem:[#allocation79_spill] sm:$0xff] %v17914_v27 }
 0x4d0   :  { %v16702_v15 = vld [vmem:[#allocation8 + $0x172c] sm:$0xf]  ;;  %v13180_v33 = vor.u32 %v16574_v5, %v13177_v56  ;;  %7741 = vmatpush.bf16.msrb.mxu3 %v14780_v28  ;;  %v17916_v5 = vpop.f32.mrf.mxu3 }
 0x4d1   :  { %v13689_v4 = vld [vmem:[#allocation8 + $0x1768] sm:$0xf0]  ;;  %18480 = vst [vmem:[#allocation80_spill] sm:$0xff] %v17916_v5 }
 0x4d2   :  { %v16830_v24 = vld [vmem:[#allocation8 + $0x1b2c] sm:$0xf]  ;;  %v13692_v41 = vor.u32 %v16702_v15, %v13689_v4  ;;  %7700 = vmatpush.bf16.msrb.mxu0 %v13180_v33 }
 0x4d3   :  { %v14201_v57 = vld [vmem:[#allocation8 + $0x1b68] sm:$0xf0] }
 0x4d4   :  { %v16958_v38 = vld [vmem:[#allocation8 + $0x1f2c] sm:$0xf]  ;;  %v14204_v52 = vor.u32 %v16830_v24, %v14201_v57  ;;  %7714 = vmatpush.bf16.msrb.mxu1 %v13692_v41 }
 0x4d5   :  { %v14713_v6 = vld [vmem:[#allocation8 + $0x1f68] sm:$0xf0] }
 0x4d6   :  { %v16558_v42 = vld [vmem:[#allocation8 + $0x12ac] sm:$0xf]  ;;  %v14716_v59 = vor.u32 %v16958_v38, %v14713_v6  ;;  %7728 = vmatpush.bf16.msrb.mxu2 %v14204_v52  ;;  %v7428_v38 = vpop.f32.mrf.mxu0  ;;  %v7442_v6 = vpop.f32.mrf.mxu1 }
 0x4d7   :  { %v13113_v36 = vld [vmem:[#allocation8 + $0x12e8] sm:$0xf0] }
 0x4d8   :  { %v16686_v54 = vld [vmem:[#allocation8 + $0x16ac] sm:$0xf]  ;;  %v13116_v56 = vor.u32 %v16558_v42, %v13113_v36  ;;  %7742 = vmatpush.bf16.msrb.mxu3 %v14716_v59 }
 0x4d9   :  { %v13625_v62 = vld [vmem:[#allocation8 + $0x16e8] sm:$0xf0] }
 0x4da   :  { %v16814_v7 = vld [vmem:[#allocation8 + $0x1aac] sm:$0xf]  ;;  %v13628_v57 = vor.u32 %v16686_v54, %v13625_v62  ;;  %7701 = vmatpush.bf16.msrb.mxu0 %v13116_v56  ;;  %v7443_v54 = vadd.f32 %v7442_v6, %v7428_v38 }
 0x4db   :  { %v14137_v45 = vld [vmem:[#allocation8 + $0x1ae8] sm:$0xf0] }
 0x4dc   :  { %v16942_v2 = vld [vmem:[#allocation8 + $0x1eac] sm:$0xf]  ;;  %v14140_v15 = vor.u32 %v16814_v7, %v14137_v45  ;;  %7715 = vmatpush.bf16.msrb.mxu1 %v13628_v57 }
 0x4dd   :  { %v14649_v35 = vld [vmem:[#allocation8 + $0x1ee8] sm:$0xf0] }
 0x4de   :  { %v16542_v26 = vld [vmem:[#allocation8 + $0x122c] sm:$0xf]  ;;  %v14652_v14 = vor.u32 %v16942_v2, %v14649_v35  ;;  %7729 = vmatpush.bf16.msrb.mxu2 %v14140_v15 }
 0x4df   :  { %v13049_v25 = vld [vmem:[#allocation8 + $0x1268] sm:$0xf0] }
 0x4e0   :  { %v16670_v21 = vld [vmem:[#allocation8 + $0x162c] sm:$0xf]  ;;  %v13052_v24 = vor.u32 %v16542_v26, %v13049_v25  ;;  %7743 = vmatpush.bf16.msrb.mxu3 %v14652_v14 }
 0x4e1   :  { %v13561_v9 = vld [vmem:[#allocation8 + $0x1668] sm:$0xf0] }
 0x4e2   :  { %v16798_v19 = vld [vmem:[#allocation8 + $0x1a2c] sm:$0xf]  ;;  %v13564_v33 = vor.u32 %v16670_v21, %v13561_v9  ;;  %7702 = vmatpush.bf16.msrb.mxu0 %v13052_v24  ;;  %v7470_v24 = vpop.f32.mrf.mxu3 }
 0x4e3   :  { %v14073_v13 = vld [vmem:[#allocation8 + $0x1a68] sm:$0xf0] }
 0x4e4   :  { %v16926_v28 = vld [vmem:[#allocation8 + $0x1e2c] sm:$0xf]  ;;  %v14076_v41 = vor.u32 %v16798_v19, %v14073_v13  ;;  %7716 = vmatpush.bf16.msrb.mxu1 %v13564_v33 }
 0x4e5   :  { %v14585_v4 = vld [vmem:[#allocation8 + $0x1e68] sm:$0xf0] }
 0x4e6   :  { %v16526_v52 = vld [vmem:[#allocation8 + $0x11ac] sm:$0xf]  ;;  %v14588_v59 = vor.u32 %v16926_v28, %v14585_v4  ;;  %7730 = vmatpush.bf16.msrb.mxu2 %v14076_v41  ;;  %v7456_v28 = vpop.f32.mrf.mxu2 }
 0x4e7   :  { %v12985_v42 = vld [vmem:[#allocation8 + $0x11e8] sm:$0xf0]  ;;  %v7457_v6 = vadd.f32 %v7456_v28, %v7443_v54 }
 0x4e8   :  { %v16654_v36 = vld [vmem:[#allocation8 + $0x15ac] sm:$0xf]  ;;  %v12988_v56 = vor.u32 %v16526_v52, %v12985_v42  ;;  %7744 = vmatpush.bf16.msrb.mxu3 %v14588_v59 }
 0x4e9   :  { %v13497_v62 = vld [vmem:[#allocation8 + $0x15e8] sm:$0xf0] }
 0x4ea   :  { %v16782_v7 = vld [vmem:[#allocation8 + $0x19ac] sm:$0xf]  ;;  %v13500_v26 = vor.u32 %v16654_v36, %v13497_v62  ;;  %7703 = vmatpush.bf16.msrb.mxu0 %v12988_v56  ;;  %v17918_v62 = vadd.f32 %v7470_v24, %v7457_v6  ;;  %v11711_v6 = vld [vmem:[#allocation8 + $0x7b0] sm:$0xf] }
 0x4eb   :  { %v14009_v45 = vld [vmem:[#allocation8 + $0x19e8] sm:$0xf0]  ;;  %v16215_v24 = vld [vmem:[#allocation8 + $0x7ec] sm:$0xf0] }
 0x4ec   :  { %v16910_v2 = vld [vmem:[#allocation8 + $0x1dac] sm:$0xf]  ;;  %v14012_v57 = vor.u32 %v16782_v7, %v14009_v45  ;;  %7717 = vmatpush.bf16.msrb.mxu1 %v13500_v26 }
 0x4ed   :  { %v14521_v35 = vld [vmem:[#allocation8 + $0x1de8] sm:$0xf0] }
 0x4ee   :  { %v16510_v15 = vld [vmem:[#allocation8 + $0x112c] sm:$0xf]  ;;  %v14524_v9 = vor.u32 %v16910_v2, %v14521_v35  ;;  %7731 = vmatpush.bf16.msrb.mxu2 %v14012_v57 }
 0x4ef   :  { %v12921_v25 = vld [vmem:[#allocation8 + $0x1168] sm:$0xf0] }
 0x4f0   :  { %v16638_v21 = vld [vmem:[#allocation8 + $0x152c] sm:$0xf]  ;;  %v12924_v5 = vor.u32 %v16510_v15, %v12921_v25  ;;  %7745 = vmatpush.bf16.msrb.mxu3 %v14524_v9 }
 0x4f1   :  { %v13433_v19 = vld [vmem:[#allocation8 + $0x1568] sm:$0xf0] }
 0x4f2   :  { %v16766_v13 = vld [vmem:[#allocation8 + $0x192c] sm:$0xf]  ;;  %v13436_v33 = vor.u32 %v16638_v21, %v13433_v19  ;;  %7704 = vmatpush.bf16.msrb.mxu0 %v12924_v5 }
 0x4f3   :  { %v13945_v14 = vld [vmem:[#allocation8 + $0x1968] sm:$0xf0] }
 0x4f4   :  { %v16894_v4 = vld [vmem:[#allocation8 + $0x1d2c] sm:$0xf]  ;;  %v13948_v41 = vor.u32 %v16766_v13, %v13945_v14  ;;  %7718 = vmatpush.bf16.msrb.mxu1 %v13436_v33 }
 0x4f5   :  { %v14457_v38 = vld [vmem:[#allocation8 + $0x1d68] sm:$0xf0] }
 0x4f6   :  { %v16494_v52 = vld [vmem:[#allocation8 + $0x10ac] sm:$0xf]  ;;  %v14460_v59 = vor.u32 %v16894_v4, %v14457_v38  ;;  %7732 = vmatpush.bf16.msrb.mxu2 %v13948_v41  ;;  %v11199_v4 = vld [vmem:[#allocation8 + $0x3b0] sm:$0xf] }
 0x4f7   :  { %v12857_v42 = vld [vmem:[#allocation8 + $0x10e8] sm:$0xf0]  ;;  %v16087_v38 = vld [vmem:[#allocation8 + $0x3ec] sm:$0xf0] }
 0x4f8   :  { %v16622_v36 = vld [vmem:[#allocation8 + $0x14ac] sm:$0xf]  ;;  %v12860_v54 = vor.u32 %v16494_v52, %v12857_v42  ;;  %7746 = vmatpush.bf16.msrb.mxu3 %v14460_v59  ;;  %v12223_v52 = vld [vmem:[#allocation8 + $0xbb0] sm:$0xf] }
 0x4f9   :  { %v13369_v7 = vld [vmem:[#allocation8 + $0x14e8] sm:$0xf0]  ;;  %v16343_v42 = vld [vmem:[#allocation8 + $0xbec] sm:$0xf0] }
 0x4fa   :  { %v16750_v45 = vld [vmem:[#allocation8 + $0x18ac] sm:$0xf]  ;;  %v13372_v26 = vor.u32 %v16622_v36, %v13369_v7  ;;  %7705 = vmatpush.bf16.msrb.mxu0 %v12860_v54  ;;  %v12735_v36 = vld [vmem:[#allocation8 + $0xfb0] sm:$0xf] }
 0x4fb   :  { %v13881_v2 = vld [vmem:[#allocation8 + $0x18e8] sm:$0xf0]  ;;  %v16471_v7 = vld [vmem:[#allocation8 + $0xfec] sm:$0xf0] }
 0x4fc   :  { %v16878_v35 = vld [vmem:[#allocation8 + $0x1cac] sm:$0xf]  ;;  %v13884_v57 = vor.u32 %v16750_v45, %v13881_v2  ;;  %7719 = vmatpush.bf16.msrb.mxu1 %v13372_v26  ;;  %v11712_v45 = vor.u32 %v16215_v24, %v11711_v6  ;;  %v12224_v2 = vor.u32 %v16343_v42, %v12223_v52  ;;  %v11647_v54 = vld [vmem:[#allocation8 + $0x730] sm:$0xf] }
 0x4fd   :  { %v14393_v27 = vld [vmem:[#allocation8 + $0x1ce8] sm:$0xf0]  ;;  %v16327_v26 = vld [vmem:[#allocation8 + $0xb6c] sm:$0xf0] }
 0x4fe   :  { %v16478_v56 = vld [vmem:[#allocation8 + $0x102c] sm:$0xf]  ;;  %v14396_v13 = vor.u32 %v16878_v35, %v14393_v27  ;;  %7733 = vmatpush.bf16.msrb.mxu2 %v13884_v57  ;;  %v11200_v27 = vor.u32 %v16087_v38, %v11199_v4  ;;  %v17920_v35 = vpop.f32.mrf.mxu0  ;;  %v12671_v57 = vld [vmem:[#allocation8 + $0xf30] sm:$0xf] }
 0x4ff   :  { %v12793_v15 = vld [vmem:[#allocation8 + $0x1068] sm:$0xf0]  ;;  %18481 = vst [vmem:[#allocation81_spill] sm:$0xff] %v17920_v35  ;;  %v11583_v4 = vld [vmem:[#allocation8 + $0x6b0] sm:$0xf] }
 0x500   :  { %v16606_v25 = vld [vmem:[#allocation8 + $0x142c] sm:$0xf]  ;;  %v12796_v5 = vor.u32 %v16478_v56, %v12793_v15  ;;  %7747 = vmatpush.bf16.msrb.mxu3 %v14396_v13  ;;  %v12736_v56 = vor.u32 %v16471_v7, %v12735_v36  ;;  %v16199_v15 = vld [vmem:[#allocation8 + $0x76c] sm:$0xf0]  ;;  %v16319_v35 = vld [vmem:[#allocation8 + $0xb34] sm:$0xf] }
 0x501   :  { %v13305_v21 = vld [vmem:[#allocation8 + $0x1468] sm:$0xf0]  ;;  %v11648_v13 = vor.u32 %v16199_v15, %v11647_v54  ;;  %v16183_v6 = vld [vmem:[#allocation8 + $0x6ec] sm:$0xf0] }
 0x502   :  { %v16734_v19 = vld [vmem:[#allocation8 + $0x182c] sm:$0xf]  ;;  %v13308_v33 = vor.u32 %v16606_v25, %v13305_v21  ;;  %7706 = vmatpush.bf16.msrb.mxu0 %v12796_v5  ;;  %v16455_v25 = vld [vmem:[#allocation8 + $0xf6c] sm:$0xf0]  ;;  %v17922_v21 = vpop.f32.mrf.mxu1  ;;  %v11584_v42 = vor.u32 %v16183_v6, %v11583_v4 }
 0x503   :  { %v13817_v9 = vld [vmem:[#allocation8 + $0x1868] sm:$0xf0]  ;;  %18482 = vst [vmem:[#allocation82_spill] sm:$0xff] %v17922_v21  ;;  %v12672_v38 = vor.u32 %v16455_v25, %v12671_v57  ;;  %v12095_v5 = vld [vmem:[#allocation8 + $0xab0] sm:$0xf] }
 0x504   :  { %v16862_v14 = vld [vmem:[#allocation8 + $0x1c2c] sm:$0xf]  ;;  %v13820_v41 = vor.u32 %v16734_v19, %v13817_v9  ;;  %7720 = vmatpush.bf16.msrb.mxu1 %v13308_v33  ;;  %v11136_v19 = vor.u32 %v16071_v32, %v11135_v20  ;;  %v12160_v9 = vor.u32 %v16327_v26, %v12159_v46  ;;  %v16311_v24 = vld [vmem:[#allocation8 + $0xaec] sm:$0xf0]  ;;  %v17928_v20 = vpop.f32.mrf.mxu2 }
 0x505   :  { %v14329_v28 = vld [vmem:[#allocation8 + $0x1c68] sm:$0xf0]  ;;  %7707 = vmatmul.bf16.vlgmr.msrb.gmra.mxu0 %v17633_v39  ;;  %v12607_v52 = vld [vmem:[#allocation8 + $0xeb0] sm:$0xf]  ;;  %18483 = vst [vmem:[#allocation83_spill] sm:$0xff] %v17928_v20  ;;  %v12096_v33 = vor.u32 %v16311_v24, %v12095_v5 }
 0x506   :  { %v14332_v59 = vor.u32 %v16862_v14, %v14329_v28  ;;  %7734 = vmatpush.bf16.msrb.mxu2 %v13820_v41  ;;  %7755 = vmatpush.bf16.msra.mxu0 %v11200_v27  ;;  %v11071_v14 = vld [vmem:[#allocation8 + $0x2b0] sm:$0xf]  ;;  %v17930_v27 = vpop.f32.mrf.mxu3 }
 0x507   :  { %v16055_v28 = vld [vmem:[#allocation8 + $0x2ec] sm:$0xf0]  ;;  %7721 = vmatmul.bf16.vlgmr.msrb.gmra.mxu1 %v17637_v44  ;;  %18484 = vst [vmem:[#allocation84_spill] sm:$0xff] %v17930_v27 }
 0x508   :  { %7748 = vmatpush.bf16.msrb.mxu3 %v14332_v59  ;;  %7769 = vmatpush.bf16.msra.mxu1 %v11712_v45  ;;  %v16439_v32 = vld [vmem:[#allocation8 + $0xeec] sm:$0xf0]  ;;  %v11072_v46 = vor.u32 %v16055_v28, %v11071_v14 }
 0x509   :  { %7735 = vmatmul.bf16.vlgmr.msrb.gmra.mxu2 %v17635_v43  ;;  %v11007_v41 = vld [vmem:[#allocation8 + $0x230] sm:$0xf]  ;;  %v12608_v59 = vor.u32 %v16439_v32, %v12607_v52 }
 0x50a   :  { %7783 = vmatpush.bf16.msra.mxu2 %v12224_v2  ;;  %7756 = vmatpush.bf16.msra.mxu0 %v11136_v19  ;;  %v16039_v36 = vld [vmem:[#allocation8 + $0x26c] sm:$0xf0] }
 0x50b   :  { %7749 = vmatmul.bf16.vlgmr.msrb.gmra.mxu3 %v17639_v47  ;;  %v11519_v7 = vld [vmem:[#allocation8 + $0x630] sm:$0xf]  ;;  %v11008_v25 = vor.u32 %v16039_v36, %v11007_v41 }
 0x50c   :  { %7797 = vmatpush.bf16.msra.mxu3 %v12736_v56  ;;  %7770 = vmatpush.bf16.msra.mxu1 %v11648_v13  ;;  %v16167_v45 = vld [vmem:[#allocation8 + $0x66c] sm:$0xf0]  ;;  %v7484_v56 = vpop.f32.mrf.mxu0 }
 0x50d   :  { %v12031_v2 = vld [vmem:[#allocation8 + $0xa30] sm:$0xf]  ;;  %v7485_v57 = vadd.f32 %v7484_v56, %v17918_v62  ;;  %v11520_v19 = vor.u32 %v16167_v45, %v11519_v7  ;;  %v7512_v45 = vpop.f32.mrf.mxu2 }
 0x50e   :  { %7784 = vmatpush.bf16.msra.mxu2 %v12160_v9  ;;  %v16295_v54 = vld [vmem:[#allocation8 + $0xa6c] sm:$0xf0]  ;;  %7757 = vmatpush.bf16.msra.mxu0 %v11072_v46  ;;  %v7498_v9 = vpop.f32.mrf.mxu1 }
 0x50f   :  { %v12543_v15 = vld [vmem:[#allocation8 + $0xe30] sm:$0xf]  ;;  %v12032_v13 = vor.u32 %v16295_v54, %v12031_v2  ;;  %v7499_v6 = vadd.f32 %v7498_v9, %v7485_v57  ;;  %v7526_v57 = vpop.f32.mrf.mxu3 }
 0x510   :  { %7798 = vmatpush.bf16.msra.mxu3 %v12672_v38  ;;  %v16423_v26 = vld [vmem:[#allocation8 + $0xe6c] sm:$0xf0]  ;;  %7771 = vmatpush.bf16.msra.mxu1 %v11584_v42 }
 0x511   :  { %v10943_v14 = vld [vmem:[#allocation8 + $0x1b0] sm:$0xf]  ;;  %v12544_v38 = vor.u32 %v16423_v26, %v12543_v15  ;;  %v7513_v56 = vadd.f32 %v7512_v45, %v7499_v6 }
 0x512   :  { %7785 = vmatpush.bf16.msra.mxu2 %v12096_v33  ;;  %v16023_v28 = vld [vmem:[#allocation8 + $0x1ec] sm:$0xf0]  ;;  %7758 = vmatpush.bf16.msra.mxu0 %v11008_v25 }
 0x513   :  { %v11455_v4 = vld [vmem:[#allocation8 + $0x5b0] sm:$0xf]  ;;  %v10944_v46 = vor.u32 %v16023_v28, %v10943_v14 }
 0x514   :  { %7799 = vmatpush.bf16.msra.mxu3 %v12608_v59  ;;  %v16151_v5 = vld [vmem:[#allocation8 + $0x5ec] sm:$0xf0]  ;;  %7772 = vmatpush.bf16.msra.mxu1 %v11520_v19  ;;  %v17933_v19 = vadd.f32 %v7526_v57, %v7513_v56 }
 0x515   :  { %v11967_v24 = vld [vmem:[#allocation8 + $0x9b0] sm:$0xf]  ;;  %v11456_v62 = vor.u32 %v16151_v5, %v11455_v4 }
 0x516   :  { %v16279_v52 = vld [vmem:[#allocation8 + $0x9ec] sm:$0xf0]  ;;  %7786 = vmatpush.bf16.msra.mxu2 %v12032_v13  ;;  %7759 = vmatpush.bf16.msra.mxu0 %v10944_v46  ;;  %18485 = vst [vmem:[#allocation85_spill] sm:$0xff] %v17933_v19 }
 0x517   :  { %v12479_v32 = vld [vmem:[#allocation8 + $0xdb0] sm:$0xf]  ;;  %v11968_v42 = vor.u32 %v16279_v52, %v11967_v24 }
 0x518   :  { %v16407_v27 = vld [vmem:[#allocation8 + $0xdec] sm:$0xf0]  ;;  %7800 = vmatpush.bf16.msra.mxu3 %v12544_v38  ;;  %7773 = vmatpush.bf16.msra.mxu1 %v11456_v62 }
 0x519   :  { %v10879_v33 = vld [vmem:[#allocation8 + $0x130] sm:$0xf]  ;;  %v12480_v7 = vor.u32 %v16407_v27, %v12479_v32 }
 0x51a   :  { %v16007_v41 = vld [vmem:[#allocation8 + $0x16c] sm:$0xf0]  ;;  %7787 = vmatpush.bf16.msra.mxu2 %v11968_v42 }
 0x51b   :  { %v11391_v36 = vld [vmem:[#allocation8 + $0x530] sm:$0xf]  ;;  %v10880_v25 = vor.u32 %v16007_v41, %v10879_v33 }
 0x51c   :  { %v16135_v59 = vld [vmem:[#allocation8 + $0x56c] sm:$0xf0]  ;;  %7801 = vmatpush.bf16.msra.mxu3 %v12480_v7 }
 0x51d   :  { %v11903_v2 = vld [vmem:[#allocation8 + $0x930] sm:$0xf]  ;;  %v11392_v13 = vor.u32 %v16135_v59, %v11391_v36  ;;  %7760 = vmatpush.bf16.msra.mxu0 %v10880_v25 }
 0x51e   :  { %v16263_v54 = vld [vmem:[#allocation8 + $0x96c] sm:$0xf0] }
 0x51f   :  { %v12415_v15 = vld [vmem:[#allocation8 + $0xd30] sm:$0xf]  ;;  %v11904_v9 = vor.u32 %v16263_v54, %v11903_v2  ;;  %7774 = vmatpush.bf16.msra.mxu1 %v11392_v13 }
 0x520   :  { %v16391_v26 = vld [vmem:[#allocation8 + $0xd6c] sm:$0xf0] }
 0x521   :  { %v10815_v14 = vld [vmem:[#allocation8 + $0xb0] sm:$0xf]  ;;  %v12416_v27 = vor.u32 %v16391_v26, %v12415_v15  ;;  %7788 = vmatpush.bf16.msra.mxu2 %v11904_v9 }
 0x522   :  { %v15991_v28 = vld [vmem:[#allocation8 + $0xec] sm:$0xf0] }
 0x523   :  { %v11327_v4 = vld [vmem:[#allocation8 + $0x4b0] sm:$0xf]  ;;  %v10816_v32 = vor.u32 %v15991_v28, %v10815_v14  ;;  %7802 = vmatpush.bf16.msra.mxu3 %v12416_v27 }
 0x524   :  { %v16119_v38 = vld [vmem:[#allocation8 + $0x4ec] sm:$0xf0] }
 0x525   :  { %v11839_v5 = vld [vmem:[#allocation8 + $0x8b0] sm:$0xf]  ;;  %v11328_v62 = vor.u32 %v16119_v38, %v11327_v4  ;;  %7761 = vmatpush.bf16.msra.mxu0 %v10816_v32 }
 0x526   :  { %v16247_v24 = vld [vmem:[#allocation8 + $0x8ec] sm:$0xf0] }
 0x527   :  { %v12351_v6 = vld [vmem:[#allocation8 + $0xcb0] sm:$0xf]  ;;  %v11840_v42 = vor.u32 %v16247_v24, %v11839_v5  ;;  %7775 = vmatpush.bf16.msra.mxu1 %v11328_v62 }
 0x528   :  { %v16375_v52 = vld [vmem:[#allocation8 + $0xcec] sm:$0xf0] }
 0x529   :  { %v10751_v46 = vld [vmem:[#allocation8 + $0x30] sm:$0xf]  ;;  %v12352_v59 = vor.u32 %v16375_v52, %v12351_v6  ;;  %7789 = vmatpush.bf16.msra.mxu2 %v11840_v42 }
 0x52a   :  { %v15975_v33 = vld [vmem:[#allocation8 + $0x6c] sm:$0xf0] }
 0x52b   :  { %v11263_v41 = vld [vmem:[#allocation8 + $0x430] sm:$0xf]  ;;  %v10752_v57 = vor.u32 %v15975_v33, %v10751_v46  ;;  %7803 = vmatpush.bf16.msra.mxu3 %v12352_v59 }
 0x52c   :  { %v16103_v36 = vld [vmem:[#allocation8 + $0x46c] sm:$0xf0] }
 0x52d   :  { %v11775_v45 = vld [vmem:[#allocation8 + $0x830] sm:$0xf]  ;;  %v11264_v13 = vor.u32 %v16103_v36, %v11263_v41  ;;  %7762 = vmatpush.bf16.msra.mxu0 %v10752_v57  ;;  %v17935_v41 = vpop.f32.mrf.mxu0  ;;  %v17937_v36 = vpop.f32.mrf.mxu1 }
 0x52e   :  { %v16231_v7 = vld [vmem:[#allocation8 + $0x86c] sm:$0xf0]  ;;  %18486 = vst [vmem:[#allocation86_spill] sm:$0xff] %v17935_v41  ;;  %v11137_v41 = vld [vmem:[#allocation8 + $0x370] sm:$0xf0] }
 0x52f   :  { %v12287_v2 = vld [vmem:[#allocation8 + $0xc30] sm:$0xf]  ;;  %v11776_v9 = vor.u32 %v16231_v7, %v11775_v45  ;;  %7776 = vmatpush.bf16.msra.mxu1 %v11264_v13  ;;  %18487 = vst [vmem:[#allocation87_spill] sm:$0xff] %v17937_v36  ;;  %v16063_v36 = vld [vmem:[#allocation8 + $0x334] sm:$0xf] }
 0x530   :  { %v16359_v54 = vld [vmem:[#allocation8 + $0xc6c] sm:$0xf0]  ;;  %7763 = vmatmul.bf16.vlgmr.msra.gmra.mxu0 %v17621_v58 }
 0x531   :  { %v13247_v56 = vld [vmem:[#allocation8 + $0x13b0] sm:$0xf]  ;;  %v12288_v27 = vor.u32 %v16359_v54, %v12287_v2  ;;  %7790 = vmatpush.bf16.msra.mxu2 %v11776_v9 }
 0x532   :  { %v16599_v15 = vld [vmem:[#allocation8 + $0x13ec] sm:$0xf0]  ;;  %7777 = vmatmul.bf16.vlgmr.msra.gmra.mxu1 %v17627_v10 }
 0x533   :  { %v13759_v26 = vld [vmem:[#allocation8 + $0x17b0] sm:$0xf]  ;;  %v13248_v5 = vor.u32 %v16599_v15, %v13247_v56  ;;  %7804 = vmatpush.bf16.msra.mxu3 %v12288_v27 }
 0x534   :  { %v16727_v25 = vld [vmem:[#allocation8 + $0x17ec] sm:$0xf0]  ;;  %7791 = vmatmul.bf16.vlgmr.msra.gmra.mxu2 %v17623_v1 }
 0x535   :  { %v14271_v14 = vld [vmem:[#allocation8 + $0x1bb0] sm:$0xf]  ;;  %v13760_v24 = vor.u32 %v16727_v25, %v13759_v26  ;;  %7811 = vmatpush.bf16.msrb.mxu0 %v13248_v5 }
 0x536   :  { %v16855_v28 = vld [vmem:[#allocation8 + $0x1bec] sm:$0xf0]  ;;  %7805 = vmatmul.bf16.vlgmr.msra.gmra.mxu3 %v17629_v17 }
 0x537   :  { %v14783_v4 = vld [vmem:[#allocation8 + $0x1fb0] sm:$0xf]  ;;  %v14272_v6 = vor.u32 %v16855_v28, %v14271_v14  ;;  %7825 = vmatpush.bf16.msrb.mxu1 %v13760_v24 }
 0x538   :  { %v16983_v38 = vld [vmem:[#allocation8 + $0x1fec] sm:$0xf0] }
 0x539   :  { %v13183_v52 = vld [vmem:[#allocation8 + $0x1330] sm:$0xf]  ;;  %v14784_v32 = vor.u32 %v16983_v38, %v14783_v4  ;;  %7839 = vmatpush.bf16.msrb.mxu2 %v14272_v6  ;;  %v17943_v38 = vpop.f32.mrf.mxu2 }
 0x53a   :  { %v16583_v19 = vld [vmem:[#allocation8 + $0x136c] sm:$0xf0]  ;;  %18488 = vst [vmem:[#allocation88_spill] sm:$0xff] %v17943_v38 }
 0x53b   :  { %v13695_v20 = vld [vmem:[#allocation8 + $0x1730] sm:$0xf]  ;;  %v13184_v45 = vor.u32 %v16583_v19, %v13183_v52  ;;  %7853 = vmatpush.bf16.msrb.mxu3 %v14784_v32  ;;  %v17945_v52 = vpop.f32.mrf.mxu3 }
 0x53c   :  { %v16711_v46 = vld [vmem:[#allocation8 + $0x176c] sm:$0xf0]  ;;  %18489 = vst [vmem:[#allocation89_spill] sm:$0xff] %v17945_v52 }
 0x53d   :  { %v14207_v33 = vld [vmem:[#allocation8 + $0x1b30] sm:$0xf]  ;;  %v13696_v59 = vor.u32 %v16711_v46, %v13695_v20  ;;  %7812 = vmatpush.bf16.msrb.mxu0 %v13184_v45 }
 0x53e   :  { %v16839_v21 = vld [vmem:[#allocation8 + $0x1b6c] sm:$0xf0] }
 0x53f   :  { %v14719_v62 = vld [vmem:[#allocation8 + $0x1f30] sm:$0xf]  ;;  %v14208_v7 = vor.u32 %v16839_v21, %v14207_v33  ;;  %7826 = vmatpush.bf16.msrb.mxu1 %v13696_v59 }
 0x540   :  { %v16967_v42 = vld [vmem:[#allocation8 + $0x1f6c] sm:$0xf0] }
 0x541   :  { %v13119_v2 = vld [vmem:[#allocation8 + $0x12b0] sm:$0xf]  ;;  %v14720_v15 = vor.u32 %v16967_v42, %v14719_v62  ;;  %7840 = vmatpush.bf16.msrb.mxu2 %v14208_v7  ;;  %v7540_v62 = vpop.f32.mrf.mxu0  ;;  %v7554_v42 = vpop.f32.mrf.mxu1 }
 0x542   :  { %v16567_v54 = vld [vmem:[#allocation8 + $0x12ec] sm:$0xf0] }
 0x543   :  { %v13631_v56 = vld [vmem:[#allocation8 + $0x16b0] sm:$0xf]  ;;  %v13120_v19 = vor.u32 %v16567_v54, %v13119_v2  ;;  %7854 = vmatpush.bf16.msrb.mxu3 %v14720_v15 }
 0x544   :  { %v16695_v26 = vld [vmem:[#allocation8 + $0x16ec] sm:$0xf0] }
 0x545   :  { %v14143_v57 = vld [vmem:[#allocation8 + $0x1ab0] sm:$0xf]  ;;  %v13632_v21 = vor.u32 %v16695_v26, %v13631_v56  ;;  %7813 = vmatpush.bf16.msrb.mxu0 %v13120_v19  ;;  %v7555_v56 = vadd.f32 %v7554_v42, %v7540_v62 }
 0x546   :  { %v16823_v25 = vld [vmem:[#allocation8 + $0x1aec] sm:$0xf0] }
 0x547   :  { %v14655_v14 = vld [vmem:[#allocation8 + $0x1eb0] sm:$0xf]  ;;  %v14144_v20 = vor.u32 %v16823_v25, %v14143_v57  ;;  %7827 = vmatpush.bf16.msrb.mxu1 %v13632_v21 }
 0x548   :  { %v16951_v28 = vld [vmem:[#allocation8 + $0x1eec] sm:$0xf0] }
 0x549   :  { %v13055_v13 = vld [vmem:[#allocation8 + $0x1230] sm:$0xf]  ;;  %v14656_v27 = vor.u32 %v16951_v28, %v14655_v14  ;;  %7841 = vmatpush.bf16.msrb.mxu2 %v14144_v20 }
 0x54a   :  { %v16551_v9 = vld [vmem:[#allocation8 + $0x126c] sm:$0xf0] }
 0x54b   :  { %v13567_v4 = vld [vmem:[#allocation8 + $0x1630] sm:$0xf]  ;;  %v13056_v33 = vor.u32 %v16551_v9, %v13055_v13  ;;  %7855 = vmatpush.bf16.msrb.mxu3 %v14656_v27 }
 0x54c   :  { %v16679_v5 = vld [vmem:[#allocation8 + $0x166c] sm:$0xf0] }
 0x54d   :  { %v14079_v24 = vld [vmem:[#allocation8 + $0x1a30] sm:$0xf]  ;;  %v13568_v45 = vor.u32 %v16679_v5, %v13567_v4  ;;  %7814 = vmatpush.bf16.msrb.mxu0 %v13056_v33  ;;  %v7582_v33 = vpop.f32.mrf.mxu3 }
 0x54e   :  { %v16807_v6 = vld [vmem:[#allocation8 + $0x1a6c] sm:$0xf0] }
 0x54f   :  { %v14591_v32 = vld [vmem:[#allocation8 + $0x1e30] sm:$0xf]  ;;  %v14080_v59 = vor.u32 %v16807_v6, %v14079_v24  ;;  %7828 = vmatpush.bf16.msrb.mxu1 %v13568_v45 }
 0x550   :  { %v16935_v46 = vld [vmem:[#allocation8 + $0x1e6c] sm:$0xf0] }
 0x551   :  { %v12991_v7 = vld [vmem:[#allocation8 + $0x11b0] sm:$0xf]  ;;  %v14592_v15 = vor.u32 %v16935_v46, %v14591_v32  ;;  %7842 = vmatpush.bf16.msrb.mxu2 %v14080_v59  ;;  %v7568_v32 = vpop.f32.mrf.mxu2 }
 0x552   :  { %v16535_v2 = vld [vmem:[#allocation8 + $0x11ec] sm:$0xf0]  ;;  %v7569_v42 = vadd.f32 %v7568_v32, %v7555_v56 }
 0x553   :  { %v13503_v54 = vld [vmem:[#allocation8 + $0x15b0] sm:$0xf]  ;;  %v12992_v19 = vor.u32 %v16535_v2, %v12991_v7  ;;  %7856 = vmatpush.bf16.msrb.mxu3 %v14592_v15 }
 0x554   :  { %v16663_v26 = vld [vmem:[#allocation8 + $0x15ec] sm:$0xf0] }
 0x555   :  { %v14015_v57 = vld [vmem:[#allocation8 + $0x19b0] sm:$0xf]  ;;  %v13504_v13 = vor.u32 %v16663_v26, %v13503_v54  ;;  %7815 = vmatpush.bf16.msrb.mxu0 %v12992_v19  ;;  %v17947_v26 = vadd.f32 %v7582_v33, %v7569_v42  ;;  %v16207_v42 = vld [vmem:[#allocation8 + $0x7b4] sm:$0xf] }
 0x556   :  { %v16791_v25 = vld [vmem:[#allocation8 + $0x19ec] sm:$0xf0]  ;;  %v11713_v33 = vld [vmem:[#allocation8 + $0x7f0] sm:$0xf0] }
 0x557   :  { %v14527_v14 = vld [vmem:[#allocation8 + $0x1db0] sm:$0xf]  ;;  %v14016_v21 = vor.u32 %v16791_v25, %v14015_v57  ;;  %7829 = vmatpush.bf16.msrb.mxu1 %v13504_v13 }
 0x558   :  { %v16919_v28 = vld [vmem:[#allocation8 + $0x1dec] sm:$0xf0] }
 0x559   :  { %v12927_v20 = vld [vmem:[#allocation8 + $0x1130] sm:$0xf]  ;;  %v14528_v5 = vor.u32 %v16919_v28, %v14527_v14  ;;  %7843 = vmatpush.bf16.msrb.mxu2 %v14016_v21 }
 0x55a   :  { %v16519_v9 = vld [vmem:[#allocation8 + $0x116c] sm:$0xf0] }
 0x55b   :  { %v13439_v4 = vld [vmem:[#allocation8 + $0x1530] sm:$0xf]  ;;  %v12928_v52 = vor.u32 %v16519_v9, %v12927_v20  ;;  %7857 = vmatpush.bf16.msrb.mxu3 %v14528_v5 }
 0x55c   :  { %v16647_v24 = vld [vmem:[#allocation8 + $0x156c] sm:$0xf0] }
 0x55d   :  { %v13951_v6 = vld [vmem:[#allocation8 + $0x1930] sm:$0xf]  ;;  %v13440_v45 = vor.u32 %v16647_v24, %v13439_v4  ;;  %7816 = vmatpush.bf16.msrb.mxu0 %v12928_v52 }
 0x55e   :  { %v16775_v27 = vld [vmem:[#allocation8 + $0x196c] sm:$0xf0] }
 0x55f   :  { %v14463_v46 = vld [vmem:[#allocation8 + $0x1d30] sm:$0xf]  ;;  %v13952_v59 = vor.u32 %v16775_v27, %v13951_v6  ;;  %7830 = vmatpush.bf16.msrb.mxu1 %v13440_v45 }
 0x560   :  { %v16903_v62 = vld [vmem:[#allocation8 + $0x1d6c] sm:$0xf0] }
 0x561   :  { %v12863_v7 = vld [vmem:[#allocation8 + $0x10b0] sm:$0xf]  ;;  %v14464_v15 = vor.u32 %v16903_v62, %v14463_v46  ;;  %7844 = vmatpush.bf16.msrb.mxu2 %v13952_v59  ;;  %v16079_v46 = vld [vmem:[#allocation8 + $0x3b4] sm:$0xf] }
 0x562   :  { %v16503_v2 = vld [vmem:[#allocation8 + $0x10ec] sm:$0xf0]  ;;  %v11201_v62 = vld [vmem:[#allocation8 + $0x3f0] sm:$0xf0] }
 0x563   :  { %v13375_v54 = vld [vmem:[#allocation8 + $0x14b0] sm:$0xf]  ;;  %v12864_v56 = vor.u32 %v16503_v2, %v12863_v7  ;;  %7858 = vmatpush.bf16.msrb.mxu3 %v14464_v15  ;;  %v16335_v7 = vld [vmem:[#allocation8 + $0xbb4] sm:$0xf] }
 0x564   :  { %v16631_v57 = vld [vmem:[#allocation8 + $0x14ec] sm:$0xf0]  ;;  %v12225_v2 = vld [vmem:[#allocation8 + $0xbf0] sm:$0xf0] }
 0x565   :  { %v13887_v25 = vld [vmem:[#allocation8 + $0x18b0] sm:$0xf]  ;;  %v13376_v13 = vor.u32 %v16631_v57, %v13375_v54  ;;  %7817 = vmatpush.bf16.msrb.mxu0 %v12864_v56  ;;  %v16463_v54 = vld [vmem:[#allocation8 + $0xfb4] sm:$0xf] }
 0x566   :  { %v16759_v14 = vld [vmem:[#allocation8 + $0x18ec] sm:$0xf0]  ;;  %v12737_v57 = vld [vmem:[#allocation8 + $0xff0] sm:$0xf0] }
 0x567   :  { %v14399_v28 = vld [vmem:[#allocation8 + $0x1cb0] sm:$0xf]  ;;  %v13888_v21 = vor.u32 %v16759_v14, %v13887_v25  ;;  %7831 = vmatpush.bf16.msrb.mxu1 %v13376_v13  ;;  %v11716_v25 = vor.u32 %v16207_v42, %v11713_v33  ;;  %v12228_v14 = vor.u32 %v16335_v7, %v12225_v2  ;;  %v16191_v56 = vld [vmem:[#allocation8 + $0x734] sm:$0xf] }
 0x568   :  { %v16887_v38 = vld [vmem:[#allocation8 + $0x1cec] sm:$0xf0]  ;;  %v12161_v13 = vld [vmem:[#allocation8 + $0xb70] sm:$0xf0] }
 0x569   :  { %v12799_v19 = vld [vmem:[#allocation8 + $0x1030] sm:$0xf]  ;;  %v14400_v6 = vor.u32 %v16887_v38, %v14399_v28  ;;  %7845 = vmatpush.bf16.msrb.mxu2 %v13888_v21  ;;  %v11204_v38 = vor.u32 %v16079_v46, %v11201_v62  ;;  %v17949_v28 = vpop.f32.mrf.mxu0  ;;  %v16447_v21 = vld [vmem:[#allocation8 + $0xf34] sm:$0xf] }
 0x56a   :  { %v16487_v20 = vld [vmem:[#allocation8 + $0x106c] sm:$0xf0]  ;;  %18490 = vst [vmem:[#allocation90_spill] sm:$0xff] %v17949_v28  ;;  %v16175_v46 = vld [vmem:[#allocation8 + $0x6b4] sm:$0xf] }
 0x56b   :  { %v13311_v9 = vld [vmem:[#allocation8 + $0x1430] sm:$0xf]  ;;  %v12800_v52 = vor.u32 %v16487_v20, %v12799_v19  ;;  %7859 = vmatpush.bf16.msrb.mxu3 %v14400_v6  ;;  %v12740_v19 = vor.u32 %v16463_v54, %v12737_v57  ;;  %v11649_v20 = vld [vmem:[#allocation8 + $0x770] sm:$0xf0]  ;;  %v12167_v28 = vld [vmem:[#allocation8 + $0xb38] sm:$0xf] }
 0x56c   :  { %v16615_v4 = vld [vmem:[#allocation8 + $0x146c] sm:$0xf0]  ;;  %v11652_v6 = vor.u32 %v16191_v56, %v11649_v20  ;;  %v11585_v42 = vld [vmem:[#allocation8 + $0x6f0] sm:$0xf0] }
 0x56d   :  { %v13823_v24 = vld [vmem:[#allocation8 + $0x1830] sm:$0xf]  ;;  %v13312_v45 = vor.u32 %v16615_v4, %v13311_v9  ;;  %7818 = vmatpush.bf16.msrb.mxu0 %v12800_v52  ;;  %v12673_v9 = vld [vmem:[#allocation8 + $0xf70] sm:$0xf0]  ;;  %v17951_v4 = vpop.f32.mrf.mxu1  ;;  %v11588_v2 = vor.u32 %v16175_v46, %v11585_v42 }
 0x56e   :  { %v16743_v5 = vld [vmem:[#allocation8 + $0x186c] sm:$0xf0]  ;;  %18491 = vst [vmem:[#allocation91_spill] sm:$0xff] %v17951_v4  ;;  %v12676_v62 = vor.u32 %v16447_v21, %v12673_v9  ;;  %v16303_v52 = vld [vmem:[#allocation8 + $0xab4] sm:$0xf] }
 0x56f   :  { %v14335_v27 = vld [vmem:[#allocation8 + $0x1c30] sm:$0xf]  ;;  %v13824_v59 = vor.u32 %v16743_v5, %v13823_v24  ;;  %7832 = vmatpush.bf16.msrb.mxu1 %v13312_v45  ;;  %v11140_v24 = vor.u32 %v16063_v36, %v11137_v41  ;;  %v12164_v5 = vor.u32 %v16319_v35, %v12161_v13  ;;  %v12097_v33 = vld [vmem:[#allocation8 + $0xaf0] sm:$0xf0]  ;;  %v17957_v36 = vpop.f32.mrf.mxu2 }
 0x570   :  { %v16871_v32 = vld [vmem:[#allocation8 + $0x1c6c] sm:$0xf0]  ;;  %7819 = vmatmul.bf16.vlgmr.msrb.gmra.mxu0 %v17633_v39  ;;  %v16431_v7 = vld [vmem:[#allocation8 + $0xeb4] sm:$0xf]  ;;  %18492 = vst [vmem:[#allocation92_spill] sm:$0xff] %v17957_v36  ;;  %v12100_v45 = vor.u32 %v16303_v52, %v12097_v33 }
 0x571   :  { %v14336_v15 = vor.u32 %v16871_v32, %v14335_v27  ;;  %7846 = vmatpush.bf16.msrb.mxu2 %v13824_v59  ;;  %7867 = vmatpush.bf16.msra.mxu0 %v11204_v38  ;;  %v16047_v27 = vld [vmem:[#allocation8 + $0x2b4] sm:$0xf]  ;;  %v17959_v38 = vpop.f32.mrf.mxu3 }
 0x572   :  { %v11073_v32 = vld [vmem:[#allocation8 + $0x2f0] sm:$0xf0]  ;;  %7833 = vmatmul.bf16.vlgmr.msrb.gmra.mxu1 %v17637_v44  ;;  %18493 = vst [vmem:[#allocation93_spill] sm:$0xff] %v17959_v38 }
 0x573   :  { %7860 = vmatpush.bf16.msrb.mxu3 %v14336_v15  ;;  %7881 = vmatpush.bf16.msra.mxu1 %v11716_v25  ;;  %v12609_v41 = vld [vmem:[#allocation8 + $0xef0] sm:$0xf0]  ;;  %v11076_v35 = vor.u32 %v16047_v27, %v11073_v32 }
 0x574   :  { %7847 = vmatmul.bf16.vlgmr.msrb.gmra.mxu2 %v17635_v43  ;;  %v16031_v59 = vld [vmem:[#allocation8 + $0x234] sm:$0xf]  ;;  %v12612_v15 = vor.u32 %v16431_v7, %v12609_v41 }
 0x575   :  { %7895 = vmatpush.bf16.msra.mxu2 %v12228_v14  ;;  %7868 = vmatpush.bf16.msra.mxu0 %v11140_v24  ;;  %v11009_v54 = vld [vmem:[#allocation8 + $0x270] sm:$0xf0] }
 0x576   :  { %7861 = vmatmul.bf16.vlgmr.msrb.gmra.mxu3 %v17639_v47  ;;  %v16159_v57 = vld [vmem:[#allocation8 + $0x634] sm:$0xf]  ;;  %v11012_v9 = vor.u32 %v16031_v59, %v11009_v54 }
 0x577   :  { %7909 = vmatpush.bf16.msra.mxu3 %v12740_v19  ;;  %7882 = vmatpush.bf16.msra.mxu1 %v11652_v6  ;;  %v11521_v25 = vld [vmem:[#allocation8 + $0x670] sm:$0xf0]  ;;  %v7596_v19 = vpop.f32.mrf.mxu0 }
 0x578   :  { %v16287_v14 = vld [vmem:[#allocation8 + $0xa34] sm:$0xf]  ;;  %v7597_v21 = vadd.f32 %v7596_v19, %v17947_v26  ;;  %v11524_v24 = vor.u32 %v16159_v57, %v11521_v25  ;;  %v7624_v25 = vpop.f32.mrf.mxu2 }
 0x579   :  { %7896 = vmatpush.bf16.msra.mxu2 %v12164_v5  ;;  %v12033_v56 = vld [vmem:[#allocation8 + $0xa70] sm:$0xf0]  ;;  %7869 = vmatpush.bf16.msra.mxu0 %v11076_v35  ;;  %v7610_v5 = vpop.f32.mrf.mxu1 }
 0x57a   :  { %v16415_v20 = vld [vmem:[#allocation8 + $0xe34] sm:$0xf]  ;;  %v12036_v6 = vor.u32 %v16287_v14, %v12033_v56  ;;  %v7611_v42 = vadd.f32 %v7610_v5, %v7597_v21  ;;  %v7638_v21 = vpop.f32.mrf.mxu3 }
 0x57b   :  { %7910 = vmatpush.bf16.msra.mxu3 %v12676_v62  ;;  %v12545_v13 = vld [vmem:[#allocation8 + $0xe70] sm:$0xf0]  ;;  %7883 = vmatpush.bf16.msra.mxu1 %v11588_v2 }
 0x57c   :  { %v16015_v27 = vld [vmem:[#allocation8 + $0x1b4] sm:$0xf]  ;;  %v12548_v62 = vor.u32 %v16415_v20, %v12545_v13  ;;  %v7625_v19 = vadd.f32 %v7624_v25, %v7611_v42 }
 0x57d   :  { %7897 = vmatpush.bf16.msra.mxu2 %v12100_v45  ;;  %v10945_v32 = vld [vmem:[#allocation8 + $0x1f0] sm:$0xf0]  ;;  %7870 = vmatpush.bf16.msra.mxu0 %v11012_v9 }
 0x57e   :  { %v16143_v46 = vld [vmem:[#allocation8 + $0x5b4] sm:$0xf]  ;;  %v10948_v35 = vor.u32 %v16015_v27, %v10945_v32 }
 0x57f   :  { %7911 = vmatpush.bf16.msra.mxu3 %v12612_v15  ;;  %v11457_v52 = vld [vmem:[#allocation8 + $0x5f0] sm:$0xf0]  ;;  %7884 = vmatpush.bf16.msra.mxu1 %v11524_v24  ;;  %v17962_v24 = vadd.f32 %v7638_v21, %v7625_v19 }
 0x580   :  { %v16271_v33 = vld [vmem:[#allocation8 + $0x9b4] sm:$0xf]  ;;  %v11460_v26 = vor.u32 %v16143_v46, %v11457_v52 }
 0x581   :  { %v11969_v7 = vld [vmem:[#allocation8 + $0x9f0] sm:$0xf0]  ;;  %7898 = vmatpush.bf16.msra.mxu2 %v12036_v6  ;;  %7871 = vmatpush.bf16.msra.mxu0 %v10948_v35  ;;  %18494 = vst [vmem:[#allocation94_spill] sm:$0xff] %v17962_v24 }
 0x582   :  { %v16399_v41 = vld [vmem:[#allocation8 + $0xdb4] sm:$0xf]  ;;  %v11972_v2 = vor.u32 %v16271_v33, %v11969_v7 }
 0x583   :  { %v12481_v38 = vld [vmem:[#allocation8 + $0xdf0] sm:$0xf0]  ;;  %7912 = vmatpush.bf16.msra.mxu3 %v12548_v62  ;;  %7885 = vmatpush.bf16.msra.mxu1 %v11460_v26 }
 0x584   :  { %v15999_v45 = vld [vmem:[#allocation8 + $0x134] sm:$0xf]  ;;  %v12484_v57 = vor.u32 %v16399_v41, %v12481_v38 }
 0x585   :  { %v10881_v59 = vld [vmem:[#allocation8 + $0x170] sm:$0xf0]  ;;  %7899 = vmatpush.bf16.msra.mxu2 %v11972_v2 }
 0x586   :  { %v16127_v54 = vld [vmem:[#allocation8 + $0x534] sm:$0xf]  ;;  %v10884_v9 = vor.u32 %v15999_v45, %v10881_v59 }
 0x587   :  { %v11393_v15 = vld [vmem:[#allocation8 + $0x570] sm:$0xf0]  ;;  %7913 = vmatpush.bf16.msra.mxu3 %v12484_v57 }
 0x588   :  { %v16255_v14 = vld [vmem:[#allocation8 + $0x934] sm:$0xf]  ;;  %v11396_v6 = vor.u32 %v16127_v54, %v11393_v15  ;;  %7872 = vmatpush.bf16.msra.mxu0 %v10884_v9 }
 0x589   :  { %v11905_v56 = vld [vmem:[#allocation8 + $0x970] sm:$0xf0] }
 0x58a   :  { %v16383_v20 = vld [vmem:[#allocation8 + $0xd34] sm:$0xf]  ;;  %v11908_v5 = vor.u32 %v16255_v14, %v11905_v56  ;;  %7886 = vmatpush.bf16.msra.mxu1 %v11396_v6 }
 0x58b   :  { %v12417_v13 = vld [vmem:[#allocation8 + $0xd70] sm:$0xf0] }
 0x58c   :  { %v15983_v27 = vld [vmem:[#allocation8 + $0xb4] sm:$0xf]  ;;  %v12420_v38 = vor.u32 %v16383_v20, %v12417_v13  ;;  %7900 = vmatpush.bf16.msra.mxu2 %v11908_v5 }
 0x58d   :  { %v10817_v32 = vld [vmem:[#allocation8 + $0xf0] sm:$0xf0] }
 0x58e   :  { %v16111_v46 = vld [vmem:[#allocation8 + $0x4b4] sm:$0xf]  ;;  %v10820_v41 = vor.u32 %v15983_v27, %v10817_v32  ;;  %7914 = vmatpush.bf16.msra.mxu3 %v12420_v38 }
 0x58f   :  { %v11329_v62 = vld [vmem:[#allocation8 + $0x4f0] sm:$0xf0] }
 0x590   :  { %v16239_v52 = vld [vmem:[#allocation8 + $0x8b4] sm:$0xf]  ;;  %v11332_v26 = vor.u32 %v16111_v46, %v11329_v62  ;;  %7873 = vmatpush.bf16.msra.mxu0 %v10820_v41 }
 0x591   :  { %v11841_v33 = vld [vmem:[#allocation8 + $0x8f0] sm:$0xf0] }
 0x592   :  { %v16367_v42 = vld [vmem:[#allocation8 + $0xcb4] sm:$0xf]  ;;  %v11844_v2 = vor.u32 %v16239_v52, %v11841_v33  ;;  %7887 = vmatpush.bf16.msra.mxu1 %v11332_v26 }
 0x593   :  { %v12353_v7 = vld [vmem:[#allocation8 + $0xcf0] sm:$0xf0] }
 0x594   :  { %v15967_v35 = vld [vmem:[#allocation8 + $0x34] sm:$0xf]  ;;  %v12356_v15 = vor.u32 %v16367_v42, %v12353_v7  ;;  %7901 = vmatpush.bf16.msra.mxu2 %v11844_v2 }
 0x595   :  { %v10753_v45 = vld [vmem:[#allocation8 + $0x70] sm:$0xf0] }
 0x596   :  { %v16095_v59 = vld [vmem:[#allocation8 + $0x434] sm:$0xf]  ;;  %v10756_v21 = vor.u32 %v15967_v35, %v10753_v45  ;;  %7915 = vmatpush.bf16.msra.mxu3 %v12356_v15 }
 0x597   :  { %v11265_v54 = vld [vmem:[#allocation8 + $0x470] sm:$0xf0] }
 0x598   :  { %v16223_v25 = vld [vmem:[#allocation8 + $0x834] sm:$0xf]  ;;  %v11268_v6 = vor.u32 %v16095_v59, %v11265_v54  ;;  %7874 = vmatpush.bf16.msra.mxu0 %v10756_v21  ;;  %v17964_v59 = vpop.f32.mrf.mxu0  ;;  %v17966_v54 = vpop.f32.mrf.mxu1 }
 0x599   :  { %v11777_v57 = vld [vmem:[#allocation8 + $0x870] sm:$0xf0]  ;;  %18495 = vst [vmem:[#allocation95_spill] sm:$0xff] %v17964_v59  ;;  %v16072_v59 = vld [vmem:[#allocation8 + $0x374] sm:$0xf0] }
 0x59a   :  { %v16351_v14 = vld [vmem:[#allocation8 + $0xc34] sm:$0xf]  ;;  %v11780_v5 = vor.u32 %v16223_v25, %v11777_v57  ;;  %7888 = vmatpush.bf16.msra.mxu1 %v11268_v6  ;;  %18496 = vst [vmem:[#allocation96_spill] sm:$0xff] %v17966_v54  ;;  %v11143_v54 = vld [vmem:[#allocation8 + $0x338] sm:$0xf] }
 0x59b   :  { %v12289_v56 = vld [vmem:[#allocation8 + $0xc70] sm:$0xf0]  ;;  %7875 = vmatmul.bf16.vlgmr.msra.gmra.mxu0 %v17621_v58 }
 0x59c   :  { %v16591_v19 = vld [vmem:[#allocation8 + $0x13b4] sm:$0xf]  ;;  %v12292_v38 = vor.u32 %v16351_v14, %v12289_v56  ;;  %7902 = vmatpush.bf16.msra.mxu2 %v11780_v5 }
 0x59d   :  { %v13249_v20 = vld [vmem:[#allocation8 + $0x13f0] sm:$0xf0]  ;;  %7889 = vmatmul.bf16.vlgmr.msra.gmra.mxu1 %v17627_v10 }
 0x59e   :  { %v16719_v13 = vld [vmem:[#allocation8 + $0x17b4] sm:$0xf]  ;;  %v13252_v52 = vor.u32 %v16591_v19, %v13249_v20  ;;  %7916 = vmatpush.bf16.msra.mxu3 %v12292_v38 }
 0x59f   :  { %v13761_v9 = vld [vmem:[#allocation8 + $0x17f0] sm:$0xf0]  ;;  %7903 = vmatmul.bf16.vlgmr.msra.gmra.mxu2 %v17623_v1 }
 0x5a0   :  { %v16847_v27 = vld [vmem:[#allocation8 + $0x1bb4] sm:$0xf]  ;;  %v13764_v33 = vor.u32 %v16719_v13, %v13761_v9  ;;  %7923 = vmatpush.bf16.msrb.mxu0 %v13252_v52 }
 0x5a1   :  { %v14273_v32 = vld [vmem:[#allocation8 + $0x1bf0] sm:$0xf0]  ;;  %7917 = vmatmul.bf16.vlgmr.msra.gmra.mxu3 %v17629_v17 }
 0x5a2   :  { %v16975_v46 = vld [vmem:[#allocation8 + $0x1fb4] sm:$0xf]  ;;  %v14276_v42 = vor.u32 %v16847_v27, %v14273_v32  ;;  %7937 = vmatpush.bf16.msrb.mxu1 %v13764_v33 }
 0x5a3   :  { %v14785_v62 = vld [vmem:[#allocation8 + $0x1ff0] sm:$0xf0] }
 0x5a4   :  { %v16575_v7 = vld [vmem:[#allocation8 + $0x1334] sm:$0xf]  ;;  %v14788_v41 = vor.u32 %v16975_v46, %v14785_v62  ;;  %7951 = vmatpush.bf16.msrb.mxu2 %v14276_v42  ;;  %v17972_v62 = vpop.f32.mrf.mxu2 }
 0x5a5   :  { %v13185_v24 = vld [vmem:[#allocation8 + $0x1370] sm:$0xf0]  ;;  %18497 = vst [vmem:[#allocation97_spill] sm:$0xff] %v17972_v62 }
 0x5a6   :  { %v16703_v36 = vld [vmem:[#allocation8 + $0x1734] sm:$0xf]  ;;  %v13188_v25 = vor.u32 %v16575_v7, %v13185_v24  ;;  %7965 = vmatpush.bf16.msrb.mxu3 %v14788_v41  ;;  %v17974_v7 = vpop.f32.mrf.mxu3 }
 0x5a7   :  { %v13697_v35 = vld [vmem:[#allocation8 + $0x1770] sm:$0xf0]  ;;  %18498 = vst [vmem:[#allocation98_spill] sm:$0xff] %v17974_v7 }
 0x5a8   :  { %v16831_v45 = vld [vmem:[#allocation8 + $0x1b34] sm:$0xf]  ;;  %v13700_v15 = vor.u32 %v16703_v36, %v13697_v35  ;;  %7924 = vmatpush.bf16.msrb.mxu0 %v13188_v25 }
 0x5a9   :  { %v14209_v4 = vld [vmem:[#allocation8 + $0x1b70] sm:$0xf0] }
 0x5aa   :  { %v16959_v26 = vld [vmem:[#allocation8 + $0x1f34] sm:$0xf]  ;;  %v14212_v57 = vor.u32 %v16831_v45, %v14209_v4  ;;  %7938 = vmatpush.bf16.msrb.mxu1 %v13700_v15 }
 0x5ab   :  { %v14721_v2 = vld [vmem:[#allocation8 + $0x1f70] sm:$0xf0] }
 0x5ac   :  { %v16559_v14 = vld [vmem:[#allocation8 + $0x12b4] sm:$0xf]  ;;  %v14724_v20 = vor.u32 %v16959_v26, %v14721_v2  ;;  %7952 = vmatpush.bf16.msrb.mxu2 %v14212_v57  ;;  %v7652_v26 = vpop.f32.mrf.mxu0  ;;  %v7666_v2 = vpop.f32.mrf.mxu1 }
 0x5ad   :  { %v13121_v56 = vld [vmem:[#allocation8 + $0x12f0] sm:$0xf0] }
 0x5ae   :  { %v16687_v19 = vld [vmem:[#allocation8 + $0x16b4] sm:$0xf]  ;;  %v13124_v24 = vor.u32 %v16559_v14, %v13121_v56  ;;  %7966 = vmatpush.bf16.msrb.mxu3 %v14724_v20 }
 0x5af   :  { %v13633_v13 = vld [vmem:[#allocation8 + $0x16f0] sm:$0xf0] }
 0x5b0   :  { %v16815_v21 = vld [vmem:[#allocation8 + $0x1ab4] sm:$0xf]  ;;  %v13636_v4 = vor.u32 %v16687_v19, %v13633_v13  ;;  %7925 = vmatpush.bf16.msrb.mxu0 %v13124_v24  ;;  %v7667_v19 = vadd.f32 %v7666_v2, %v7652_v26 }
 0x5b1   :  { %v14145_v9 = vld [vmem:[#allocation8 + $0x1af0] sm:$0xf0] }
 0x5b2   :  { %v16943_v27 = vld [vmem:[#allocation8 + $0x1eb4] sm:$0xf]  ;;  %v14148_v36 = vor.u32 %v16815_v21, %v14145_v9  ;;  %7939 = vmatpush.bf16.msrb.mxu1 %v13636_v4 }
 0x5b3   :  { %v14657_v32 = vld [vmem:[#allocation8 + $0x1ef0] sm:$0xf0] }
 0x5b4   :  { %v16543_v6 = vld [vmem:[#allocation8 + $0x1234] sm:$0xf]  ;;  %v14660_v38 = vor.u32 %v16943_v27, %v14657_v32  ;;  %7953 = vmatpush.bf16.msrb.mxu2 %v14148_v36 }
 0x5b5   :  { %v13057_v5 = vld [vmem:[#allocation8 + $0x1270] sm:$0xf0] }
 0x5b6   :  { %v16671_v46 = vld [vmem:[#allocation8 + $0x1634] sm:$0xf]  ;;  %v13060_v45 = vor.u32 %v16543_v6, %v13057_v5  ;;  %7967 = vmatpush.bf16.msrb.mxu3 %v14660_v38 }
 0x5b7   :  { %v13569_v52 = vld [vmem:[#allocation8 + $0x1670] sm:$0xf0] }
 0x5b8   :  { %v16799_v33 = vld [vmem:[#allocation8 + $0x1a34] sm:$0xf]  ;;  %v13572_v25 = vor.u32 %v16671_v46, %v13569_v52  ;;  %7926 = vmatpush.bf16.msrb.mxu0 %v13060_v45  ;;  %v7694_v45 = vpop.f32.mrf.mxu3 }
 0x5b9   :  { %v14081_v42 = vld [vmem:[#allocation8 + $0x1a70] sm:$0xf0] }
 0x5ba   :  { %v16927_v41 = vld [vmem:[#allocation8 + $0x1e34] sm:$0xf]  ;;  %v14084_v15 = vor.u32 %v16799_v33, %v14081_v42  ;;  %7940 = vmatpush.bf16.msrb.mxu1 %v13572_v25 }
 0x5bb   :  { %v14593_v35 = vld [vmem:[#allocation8 + $0x1e70] sm:$0xf0] }
 0x5bc   :  { %v16527_v57 = vld [vmem:[#allocation8 + $0x11b4] sm:$0xf]  ;;  %v14596_v20 = vor.u32 %v16927_v41, %v14593_v35  ;;  %7954 = vmatpush.bf16.msrb.mxu2 %v14084_v15  ;;  %v7680_v41 = vpop.f32.mrf.mxu2 }
 0x5bd   :  { %v12993_v14 = vld [vmem:[#allocation8 + $0x11f0] sm:$0xf0]  ;;  %v7681_v2 = vadd.f32 %v7680_v41, %v7667_v19 }
 0x5be   :  { %v16655_v56 = vld [vmem:[#allocation8 + $0x15b4] sm:$0xf]  ;;  %v12996_v24 = vor.u32 %v16527_v57, %v12993_v14  ;;  %7968 = vmatpush.bf16.msrb.mxu3 %v14596_v20 }
 0x5bf   :  { %v13505_v13 = vld [vmem:[#allocation8 + $0x15f0] sm:$0xf0] }
 0x5c0   :  { %v16783_v21 = vld [vmem:[#allocation8 + $0x19b4] sm:$0xf]  ;;  %v13508_v6 = vor.u32 %v16655_v56, %v13505_v13  ;;  %7927 = vmatpush.bf16.msrb.mxu0 %v12996_v24  ;;  %v17976_v13 = vadd.f32 %v7694_v45, %v7681_v2  ;;  %v11719_v2 = vld [vmem:[#allocation8 + $0x7b8] sm:$0xf] }
 0x5c1   :  { %v14017_v9 = vld [vmem:[#allocation8 + $0x19f0] sm:$0xf0]  ;;  %v16216_v45 = vld [vmem:[#allocation8 + $0x7f4] sm:$0xf0] }
 0x5c2   :  { %v16911_v27 = vld [vmem:[#allocation8 + $0x1db4] sm:$0xf]  ;;  %v14020_v4 = vor.u32 %v16783_v21, %v14017_v9  ;;  %7941 = vmatpush.bf16.msrb.mxu1 %v13508_v6 }
 0x5c3   :  { %v14529_v32 = vld [vmem:[#allocation8 + $0x1df0] sm:$0xf0] }
 0x5c4   :  { %v16511_v36 = vld [vmem:[#allocation8 + $0x1134] sm:$0xf]  ;;  %v14532_v52 = vor.u32 %v16911_v27, %v14529_v32  ;;  %7955 = vmatpush.bf16.msrb.mxu2 %v14020_v4 }
 0x5c5   :  { %v12929_v5 = vld [vmem:[#allocation8 + $0x1170] sm:$0xf0] }
 0x5c6   :  { %v16639_v46 = vld [vmem:[#allocation8 + $0x1534] sm:$0xf]  ;;  %v12932_v7 = vor.u32 %v16511_v36, %v12929_v5  ;;  %7969 = vmatpush.bf16.msrb.mxu3 %v14532_v52 }
 0x5c7   :  { %v13441_v33 = vld [vmem:[#allocation8 + $0x1570] sm:$0xf0] }
 0x5c8   :  { %v16767_v42 = vld [vmem:[#allocation8 + $0x1934] sm:$0xf]  ;;  %v13444_v25 = vor.u32 %v16639_v46, %v13441_v33  ;;  %7928 = vmatpush.bf16.msrb.mxu0 %v12932_v7 }
 0x5c9   :  { %v13953_v38 = vld [vmem:[#allocation8 + $0x1970] sm:$0xf0] }
 0x5ca   :  { %v16895_v35 = vld [vmem:[#allocation8 + $0x1d34] sm:$0xf]  ;;  %v13956_v15 = vor.u32 %v16767_v42, %v13953_v38  ;;  %7942 = vmatpush.bf16.msrb.mxu1 %v13444_v25 }
 0x5cb   :  { %v14465_v26 = vld [vmem:[#allocation8 + $0x1d70] sm:$0xf0] }
 0x5cc   :  { %v16495_v57 = vld [vmem:[#allocation8 + $0x10b4] sm:$0xf]  ;;  %v14468_v20 = vor.u32 %v16895_v35, %v14465_v26  ;;  %7956 = vmatpush.bf16.msrb.mxu2 %v13956_v15  ;;  %v11207_v35 = vld [vmem:[#allocation8 + $0x3b8] sm:$0xf] }
 0x5cd   :  { %v12865_v14 = vld [vmem:[#allocation8 + $0x10f0] sm:$0xf0]  ;;  %v16088_v26 = vld [vmem:[#allocation8 + $0x3f4] sm:$0xf0] }
 0x5ce   :  { %v16623_v56 = vld [vmem:[#allocation8 + $0x14b4] sm:$0xf]  ;;  %v12868_v19 = vor.u32 %v16495_v57, %v12865_v14  ;;  %7970 = vmatpush.bf16.msrb.mxu3 %v14468_v20  ;;  %v12231_v57 = vld [vmem:[#allocation8 + $0xbb8] sm:$0xf] }
 0x5cf   :  { %v13377_v21 = vld [vmem:[#allocation8 + $0x14f0] sm:$0xf0]  ;;  %v16344_v14 = vld [vmem:[#allocation8 + $0xbf4] sm:$0xf0] }
 0x5d0   :  { %v16751_v9 = vld [vmem:[#allocation8 + $0x18b4] sm:$0xf]  ;;  %v13380_v6 = vor.u32 %v16623_v56, %v13377_v21  ;;  %7929 = vmatpush.bf16.msrb.mxu0 %v12868_v19  ;;  %v12743_v56 = vld [vmem:[#allocation8 + $0xfb8] sm:$0xf] }
 0x5d1   :  { %v13889_v27 = vld [vmem:[#allocation8 + $0x18f0] sm:$0xf0]  ;;  %v16472_v21 = vld [vmem:[#allocation8 + $0xff4] sm:$0xf0] }
 0x5d2   :  { %v16879_v32 = vld [vmem:[#allocation8 + $0x1cb4] sm:$0xf]  ;;  %v13892_v4 = vor.u32 %v16751_v9, %v13889_v27  ;;  %7943 = vmatpush.bf16.msrb.mxu1 %v13380_v6  ;;  %v11720_v9 = vor.u32 %v16216_v45, %v11719_v2  ;;  %v12232_v27 = vor.u32 %v16344_v14, %v12231_v57  ;;  %v11655_v19 = vld [vmem:[#allocation8 + $0x738] sm:$0xf] }
 0x5d3   :  { %v14401_v62 = vld [vmem:[#allocation8 + $0x1cf0] sm:$0xf0]  ;;  %v16328_v6 = vld [vmem:[#allocation8 + $0xb74] sm:$0xf0] }
 0x5d4   :  { %v16479_v24 = vld [vmem:[#allocation8 + $0x1034] sm:$0xf]  ;;  %v14404_v42 = vor.u32 %v16879_v32, %v14401_v62  ;;  %7957 = vmatpush.bf16.msrb.mxu2 %v13892_v4  ;;  %v11208_v62 = vor.u32 %v16088_v26, %v11207_v35  ;;  %v17978_v32 = vpop.f32.mrf.mxu0  ;;  %v12679_v4 = vld [vmem:[#allocation8 + $0xf38] sm:$0xf] }
 0x5d5   :  { %v12801_v36 = vld [vmem:[#allocation8 + $0x1070] sm:$0xf0]  ;;  %18499 = vst [vmem:[#allocation99_spill] sm:$0xff] %v17978_v32  ;;  %v11591_v35 = vld [vmem:[#allocation8 + $0x6b8] sm:$0xf] }
 0x5d6   :  { %v16607_v5 = vld [vmem:[#allocation8 + $0x1434] sm:$0xf]  ;;  %v12804_v7 = vor.u32 %v16479_v24, %v12801_v36  ;;  %7971 = vmatpush.bf16.msrb.mxu3 %v14404_v42  ;;  %v12744_v24 = vor.u32 %v16472_v21, %v12743_v56  ;;  %v16200_v36 = vld [vmem:[#allocation8 + $0x774] sm:$0xf0]  ;;  %v16320_v32 = vld [vmem:[#allocation8 + $0xb3c] sm:$0xf] }
 0x5d7   :  { %v13313_v46 = vld [vmem:[#allocation8 + $0x1470] sm:$0xf0]  ;;  %v11656_v42 = vor.u32 %v16200_v36, %v11655_v19  ;;  %v16184_v2 = vld [vmem:[#allocation8 + $0x6f4] sm:$0xf0] }
 0x5d8   :  { %v16735_v33 = vld [vmem:[#allocation8 + $0x1834] sm:$0xf]  ;;  %v13316_v25 = vor.u32 %v16607_v5, %v13313_v46  ;;  %7930 = vmatpush.bf16.msrb.mxu0 %v12804_v7  ;;  %v16456_v5 = vld [vmem:[#allocation8 + $0xf74] sm:$0xf0]  ;;  %v17980_v46 = vpop.f32.mrf.mxu1  ;;  %v11592_v14 = vor.u32 %v16184_v2, %v11591_v35 }
 0x5d9   :  { %v13825_v52 = vld [vmem:[#allocation8 + $0x1870] sm:$0xf0]  ;;  %18500 = vst [vmem:[#allocation100_spill] sm:$0xff] %v17980_v46  ;;  %v12680_v26 = vor.u32 %v16456_v5, %v12679_v4  ;;  %v12103_v7 = vld [vmem:[#allocation8 + $0xab8] sm:$0xf] }
 0x5da   :  { %v16863_v38 = vld [vmem:[#allocation8 + $0x1c34] sm:$0xf]  ;;  %v13828_v15 = vor.u32 %v16735_v33, %v13825_v52  ;;  %7944 = vmatpush.bf16.msrb.mxu1 %v13316_v25  ;;  %v11144_v33 = vor.u32 %v16072_v59, %v11143_v54  ;;  %v12168_v52 = vor.u32 %v16328_v6, %v12167_v28  ;;  %v16312_v45 = vld [vmem:[#allocation8 + $0xaf4] sm:$0xf0]  ;;  %v17986_v54 = vpop.f32.mrf.mxu2 }
 0x5db   :  { %v14337_v41 = vld [vmem:[#allocation8 + $0x1c70] sm:$0xf0]  ;;  %7931 = vmatmul.bf16.vlgmr.msrb.gmra.mxu0 %v17633_v39  ;;  %v12615_v57 = vld [vmem:[#allocation8 + $0xeb8] sm:$0xf]  ;;  %18501 = vst [vmem:[#allocation101_spill] sm:$0xff] %v17986_v54  ;;  %v12104_v25 = vor.u32 %v16312_v45, %v12103_v7 }
 0x5dc   :  { %v14340_v20 = vor.u32 %v16863_v38, %v14337_v41  ;;  %7958 = vmatpush.bf16.msrb.mxu2 %v13828_v15  ;;  %7979 = vmatpush.bf16.msra.mxu0 %v11208_v62  ;;  %v11079_v38 = vld [vmem:[#allocation8 + $0x2b8] sm:$0xf]  ;;  %v17988_v62 = vpop.f32.mrf.mxu3 }
 0x5dd   :  { %v16056_v41 = vld [vmem:[#allocation8 + $0x2f4] sm:$0xf0]  ;;  %7945 = vmatmul.bf16.vlgmr.msrb.gmra.mxu1 %v17637_v44  ;;  %18502 = vst [vmem:[#allocation102_spill] sm:$0xff] %v17988_v62 }
 0x5de   :  { %7972 = vmatpush.bf16.msrb.mxu3 %v14340_v20  ;;  %7993 = vmatpush.bf16.msra.mxu1 %v11720_v9  ;;  %v16440_v59 = vld [vmem:[#allocation8 + $0xef4] sm:$0xf0]  ;;  %v11080_v28 = vor.u32 %v16056_v41, %v11079_v38 }
 0x5df   :  { %7959 = vmatmul.bf16.vlgmr.msrb.gmra.mxu2 %v17635_v43  ;;  %v11015_v15 = vld [vmem:[#allocation8 + $0x238] sm:$0xf]  ;;  %v12616_v20 = vor.u32 %v16440_v59, %v12615_v57 }
 0x5e0   :  { %8007 = vmatpush.bf16.msra.mxu2 %v12232_v27  ;;  %7980 = vmatpush.bf16.msra.mxu0 %v11144_v33  ;;  %v16040_v56 = vld [vmem:[#allocation8 + $0x274] sm:$0xf0] }
 0x5e1   :  { %7973 = vmatmul.bf16.vlgmr.msrb.gmra.mxu3 %v17639_v47  ;;  %v11527_v21 = vld [vmem:[#allocation8 + $0x638] sm:$0xf]  ;;  %v11016_v5 = vor.u32 %v16040_v56, %v11015_v15 }
 0x5e2   :  { %8021 = vmatpush.bf16.msra.mxu3 %v12744_v24  ;;  %7994 = vmatpush.bf16.msra.mxu1 %v11656_v42  ;;  %v16168_v9 = vld [vmem:[#allocation8 + $0x674] sm:$0xf0]  ;;  %v7708_v24 = vpop.f32.mrf.mxu0 }
 0x5e3   :  { %v12039_v27 = vld [vmem:[#allocation8 + $0xa38] sm:$0xf]  ;;  %v7709_v4 = vadd.f32 %v7708_v24, %v17976_v13  ;;  %v11528_v33 = vor.u32 %v16168_v9, %v11527_v21  ;;  %v7736_v9 = vpop.f32.mrf.mxu2 }
 0x5e4   :  { %8008 = vmatpush.bf16.msra.mxu2 %v12168_v52  ;;  %v16296_v19 = vld [vmem:[#allocation8 + $0xa74] sm:$0xf0]  ;;  %7981 = vmatpush.bf16.msra.mxu0 %v11080_v28  ;;  %v7722_v52 = vpop.f32.mrf.mxu1 }
 0x5e5   :  { %v12551_v36 = vld [vmem:[#allocation8 + $0xe38] sm:$0xf]  ;;  %v12040_v42 = vor.u32 %v16296_v19, %v12039_v27  ;;  %v7723_v2 = vadd.f32 %v7722_v52, %v7709_v4  ;;  %v7750_v4 = vpop.f32.mrf.mxu3 }
 0x5e6   :  { %8022 = vmatpush.bf16.msra.mxu3 %v12680_v26  ;;  %v16424_v6 = vld [vmem:[#allocation8 + $0xe74] sm:$0xf0]  ;;  %7995 = vmatpush.bf16.msra.mxu1 %v11592_v14 }
 0x5e7   :  { %v10951_v38 = vld [vmem:[#allocation8 + $0x1b8] sm:$0xf]  ;;  %v12552_v26 = vor.u32 %v16424_v6, %v12551_v36  ;;  %v7737_v24 = vadd.f32 %v7736_v9, %v7723_v2 }
 0x5e8   :  { %8009 = vmatpush.bf16.msra.mxu2 %v12104_v25  ;;  %v16024_v41 = vld [vmem:[#allocation8 + $0x1f4] sm:$0xf0]  ;;  %7982 = vmatpush.bf16.msra.mxu0 %v11016_v5 }
 0x5e9   :  { %v11463_v35 = vld [vmem:[#allocation8 + $0x5b8] sm:$0xf]  ;;  %v10952_v28 = vor.u32 %v16024_v41, %v10951_v38 }
 0x5ea   :  { %8023 = vmatpush.bf16.msra.mxu3 %v12616_v20  ;;  %v16152_v7 = vld [vmem:[#allocation8 + $0x5f4] sm:$0xf0]  ;;  %7996 = vmatpush.bf16.msra.mxu1 %v11528_v33  ;;  %v17991_v33 = vadd.f32 %v7750_v4, %v7737_v24 }
 0x5eb   :  { %v11975_v45 = vld [vmem:[#allocation8 + $0x9b8] sm:$0xf]  ;;  %v11464_v13 = vor.u32 %v16152_v7, %v11463_v35 }
 0x5ec   :  { %v16280_v57 = vld [vmem:[#allocation8 + $0x9f4] sm:$0xf0]  ;;  %8010 = vmatpush.bf16.msra.mxu2 %v12040_v42  ;;  %7983 = vmatpush.bf16.msra.mxu0 %v10952_v28  ;;  %18503 = vst [vmem:[#allocation103_spill] sm:$0xff] %v17991_v33 }
 0x5ed   :  { %v12487_v59 = vld [vmem:[#allocation8 + $0xdb8] sm:$0xf]  ;;  %v11976_v14 = vor.u32 %v16280_v57, %v11975_v45 }
 0x5ee   :  { %v16408_v62 = vld [vmem:[#allocation8 + $0xdf4] sm:$0xf0]  ;;  %8024 = vmatpush.bf16.msra.mxu3 %v12552_v26  ;;  %7997 = vmatpush.bf16.msra.mxu1 %v11464_v13 }
 0x5ef   :  { %v10887_v25 = vld [vmem:[#allocation8 + $0x138] sm:$0xf]  ;;  %v12488_v21 = vor.u32 %v16408_v62, %v12487_v59 }
 0x5f0   :  { %v16008_v15 = vld [vmem:[#allocation8 + $0x174] sm:$0xf0]  ;;  %8011 = vmatpush.bf16.msra.mxu2 %v11976_v14 }
 0x5f1   :  { %v11399_v56 = vld [vmem:[#allocation8 + $0x538] sm:$0xf]  ;;  %v10888_v5 = vor.u32 %v16008_v15, %v10887_v25 }
 0x5f2   :  { %v16136_v20 = vld [vmem:[#allocation8 + $0x574] sm:$0xf0]  ;;  %8025 = vmatpush.bf16.msra.mxu3 %v12488_v21 }
 0x5f3   :  { %v11911_v27 = vld [vmem:[#allocation8 + $0x938] sm:$0xf]  ;;  %v11400_v42 = vor.u32 %v16136_v20, %v11399_v56  ;;  %7984 = vmatpush.bf16.msra.mxu0 %v10888_v5 }
 0x5f4   :  { %v16264_v19 = vld [vmem:[#allocation8 + $0x974] sm:$0xf0] }
 0x5f5   :  { %v12423_v36 = vld [vmem:[#allocation8 + $0xd38] sm:$0xf]  ;;  %v11912_v52 = vor.u32 %v16264_v19, %v11911_v27  ;;  %7998 = vmatpush.bf16.msra.mxu1 %v11400_v42 }
 0x5f6   :  { %v16392_v6 = vld [vmem:[#allocation8 + $0xd74] sm:$0xf0] }
 0x5f7   :  { %v10823_v38 = vld [vmem:[#allocation8 + $0xb8] sm:$0xf]  ;;  %v12424_v62 = vor.u32 %v16392_v6, %v12423_v36  ;;  %8012 = vmatpush.bf16.msra.mxu2 %v11912_v52 }
 0x5f8   :  { %v15992_v41 = vld [vmem:[#allocation8 + $0xf4] sm:$0xf0] }
 0x5f9   :  { %v11335_v35 = vld [vmem:[#allocation8 + $0x4b8] sm:$0xf]  ;;  %v10824_v59 = vor.u32 %v15992_v41, %v10823_v38  ;;  %8026 = vmatpush.bf16.msra.mxu3 %v12424_v62 }
 0x5fa   :  { %v16120_v26 = vld [vmem:[#allocation8 + $0x4f4] sm:$0xf0] }
 0x5fb   :  { %v11847_v7 = vld [vmem:[#allocation8 + $0x8b8] sm:$0xf]  ;;  %v11336_v13 = vor.u32 %v16120_v26, %v11335_v35  ;;  %7985 = vmatpush.bf16.msra.mxu0 %v10824_v59 }
 0x5fc   :  { %v16248_v45 = vld [vmem:[#allocation8 + $0x8f4] sm:$0xf0] }
 0x5fd   :  { %v12359_v2 = vld [vmem:[#allocation8 + $0xcb8] sm:$0xf]  ;;  %v11848_v14 = vor.u32 %v16248_v45, %v11847_v7  ;;  %7999 = vmatpush.bf16.msra.mxu1 %v11336_v13 }
 0x5fe   :  { %v16376_v57 = vld [vmem:[#allocation8 + $0xcf4] sm:$0xf0] }
 0x5ff   :  { %v10759_v28 = vld [vmem:[#allocation8 + $0x38] sm:$0xf]  ;;  %v12360_v20 = vor.u32 %v16376_v57, %v12359_v2  ;;  %8013 = vmatpush.bf16.msra.mxu2 %v11848_v14 }
 0x600   :  { %v15976_v25 = vld [vmem:[#allocation8 + $0x74] sm:$0xf0] }
 0x601   :  { %v11271_v15 = vld [vmem:[#allocation8 + $0x438] sm:$0xf]  ;;  %v10760_v4 = vor.u32 %v15976_v25, %v10759_v28  ;;  %8027 = vmatpush.bf16.msra.mxu3 %v12360_v20 }
 0x602   :  { %v16104_v56 = vld [vmem:[#allocation8 + $0x474] sm:$0xf0] }
 0x603   :  { %v11783_v9 = vld [vmem:[#allocation8 + $0x838] sm:$0xf]  ;;  %v11272_v42 = vor.u32 %v16104_v56, %v11271_v15  ;;  %7986 = vmatpush.bf16.msra.mxu0 %v10760_v4  ;;  %v17993_v15 = vpop.f32.mrf.mxu0  ;;  %v17995_v56 = vpop.f32.mrf.mxu1 }
 0x604   :  { %v16232_v21 = vld [vmem:[#allocation8 + $0x874] sm:$0xf0]  ;;  %18504 = vst [vmem:[#allocation104_spill] sm:$0xff] %v17993_v15  ;;  %v11145_v15 = vld [vmem:[#allocation8 + $0x378] sm:$0xf0] }
 0x605   :  { %v12295_v27 = vld [vmem:[#allocation8 + $0xc38] sm:$0xf]  ;;  %v11784_v52 = vor.u32 %v16232_v21, %v11783_v9  ;;  %8000 = vmatpush.bf16.msra.mxu1 %v11272_v42  ;;  %18505 = vst [vmem:[#allocation105_spill] sm:$0xff] %v17995_v56  ;;  %v16064_v56 = vld [vmem:[#allocation8 + $0x33c] sm:$0xf] }
 0x606   :  { %v16360_v19 = vld [vmem:[#allocation8 + $0xc74] sm:$0xf0]  ;;  %7987 = vmatmul.bf16.vlgmr.msra.gmra.mxu0 %v17621_v58 }
 0x607   :  { %v13255_v24 = vld [vmem:[#allocation8 + $0x13b8] sm:$0xf]  ;;  %v12296_v62 = vor.u32 %v16360_v19, %v12295_v27  ;;  %8014 = vmatpush.bf16.msra.mxu2 %v11784_v52 }
 0x608   :  { %v16600_v36 = vld [vmem:[#allocation8 + $0x13f4] sm:$0xf0]  ;;  %8001 = vmatmul.bf16.vlgmr.msra.gmra.mxu1 %v17627_v10 }
 0x609   :  { %v13767_v6 = vld [vmem:[#allocation8 + $0x17b8] sm:$0xf]  ;;  %v13256_v7 = vor.u32 %v16600_v36, %v13255_v24  ;;  %8028 = vmatpush.bf16.msra.mxu3 %v12296_v62 }
 0x60a   :  { %v16728_v5 = vld [vmem:[#allocation8 + $0x17f4] sm:$0xf0]  ;;  %8015 = vmatmul.bf16.vlgmr.msra.gmra.mxu2 %v17623_v1 }
 0x60b   :  { %v14279_v38 = vld [vmem:[#allocation8 + $0x1bb8] sm:$0xf]  ;;  %v13768_v45 = vor.u32 %v16728_v5, %v13767_v6  ;;  %8035 = vmatpush.bf16.msrb.mxu0 %v13256_v7 }
 0x60c   :  { %v16856_v41 = vld [vmem:[#allocation8 + $0x1bf4] sm:$0xf0]  ;;  %8029 = vmatmul.bf16.vlgmr.msra.gmra.mxu3 %v17629_v17 }
 0x60d   :  { %v14791_v35 = vld [vmem:[#allocation8 + $0x1fb8] sm:$0xf]  ;;  %v14280_v2 = vor.u32 %v16856_v41, %v14279_v38  ;;  %8049 = vmatpush.bf16.msrb.mxu1 %v13768_v45 }
 0x60e   :  { %v16984_v26 = vld [vmem:[#allocation8 + $0x1ff4] sm:$0xf0] }
 0x60f   :  { %v13191_v57 = vld [vmem:[#allocation8 + $0x1338] sm:$0xf]  ;;  %v14792_v59 = vor.u32 %v16984_v26, %v14791_v35  ;;  %8063 = vmatpush.bf16.msrb.mxu2 %v14280_v2  ;;  %v18001_v26 = vpop.f32.mrf.mxu2 }
 0x610   :  { %v16584_v33 = vld [vmem:[#allocation8 + $0x1374] sm:$0xf0]  ;;  %18506 = vst [vmem:[#allocation106_spill] sm:$0xff] %v18001_v26 }
 0x611   :  { %v13703_v54 = vld [vmem:[#allocation8 + $0x1738] sm:$0xf]  ;;  %v13192_v9 = vor.u32 %v16584_v33, %v13191_v57  ;;  %8077 = vmatpush.bf16.msrb.mxu3 %v14792_v59  ;;  %v18003_v57 = vpop.f32.mrf.mxu3 }
 0x612   :  { %v16712_v28 = vld [vmem:[#allocation8 + $0x1774] sm:$0xf0]  ;;  %18507 = vst [vmem:[#allocation107_spill] sm:$0xff] %v18003_v57 }
 0x613   :  { %v14215_v25 = vld [vmem:[#allocation8 + $0x1b38] sm:$0xf]  ;;  %v13704_v20 = vor.u32 %v16712_v28, %v13703_v54  ;;  %8036 = vmatpush.bf16.msrb.mxu0 %v13192_v9 }
 0x614   :  { %v16840_v46 = vld [vmem:[#allocation8 + $0x1b74] sm:$0xf0] }
 0x615   :  { %v14727_v13 = vld [vmem:[#allocation8 + $0x1f38] sm:$0xf]  ;;  %v14216_v21 = vor.u32 %v16840_v46, %v14215_v25  ;;  %8050 = vmatpush.bf16.msrb.mxu1 %v13704_v20 }
 0x616   :  { %v16968_v14 = vld [vmem:[#allocation8 + $0x1f74] sm:$0xf0] }
 0x617   :  { %v13127_v27 = vld [vmem:[#allocation8 + $0x12b8] sm:$0xf]  ;;  %v14728_v36 = vor.u32 %v16968_v14, %v14727_v13  ;;  %8064 = vmatpush.bf16.msrb.mxu2 %v14216_v21  ;;  %v7764_v13 = vpop.f32.mrf.mxu0  ;;  %v7778_v14 = vpop.f32.mrf.mxu1 }
 0x618   :  { %v16568_v19 = vld [vmem:[#allocation8 + $0x12f4] sm:$0xf0] }
 0x619   :  { %v13639_v24 = vld [vmem:[#allocation8 + $0x16b8] sm:$0xf]  ;;  %v13128_v33 = vor.u32 %v16568_v19, %v13127_v27  ;;  %8078 = vmatpush.bf16.msrb.mxu3 %v14728_v36 }
 0x61a   :  { %v16696_v6 = vld [vmem:[#allocation8 + $0x16f4] sm:$0xf0] }
 0x61b   :  { %v14151_v4 = vld [vmem:[#allocation8 + $0x1ab8] sm:$0xf]  ;;  %v13640_v46 = vor.u32 %v16696_v6, %v13639_v24  ;;  %8037 = vmatpush.bf16.msrb.mxu0 %v13128_v33  ;;  %v7779_v24 = vadd.f32 %v7778_v14, %v7764_v13 }
 0x61c   :  { %v16824_v5 = vld [vmem:[#allocation8 + $0x1af4] sm:$0xf0] }
 0x61d   :  { %v14663_v38 = vld [vmem:[#allocation8 + $0x1eb8] sm:$0xf]  ;;  %v14152_v54 = vor.u32 %v16824_v5, %v14151_v4  ;;  %8051 = vmatpush.bf16.msrb.mxu1 %v13640_v46 }
 0x61e   :  { %v16952_v41 = vld [vmem:[#allocation8 + $0x1ef4] sm:$0xf0] }
 0x61f   :  { %v13063_v42 = vld [vmem:[#allocation8 + $0x1238] sm:$0xf]  ;;  %v14664_v62 = vor.u32 %v16952_v41, %v14663_v38  ;;  %8065 = vmatpush.bf16.msrb.mxu2 %v14152_v54 }
 0x620   :  { %v16552_v52 = vld [vmem:[#allocation8 + $0x1274] sm:$0xf0] }
 0x621   :  { %v13575_v35 = vld [vmem:[#allocation8 + $0x1638] sm:$0xf]  ;;  %v13064_v25 = vor.u32 %v16552_v52, %v13063_v42  ;;  %8079 = vmatpush.bf16.msrb.mxu3 %v14664_v62 }
 0x622   :  { %v16680_v7 = vld [vmem:[#allocation8 + $0x1674] sm:$0xf0] }
 0x623   :  { %v14087_v45 = vld [vmem:[#allocation8 + $0x1a38] sm:$0xf]  ;;  %v13576_v9 = vor.u32 %v16680_v7, %v13575_v35  ;;  %8038 = vmatpush.bf16.msrb.mxu0 %v13064_v25  ;;  %v7806_v25 = vpop.f32.mrf.mxu3 }
 0x624   :  { %v16808_v2 = vld [vmem:[#allocation8 + $0x1a74] sm:$0xf0] }
 0x625   :  { %v14599_v59 = vld [vmem:[#allocation8 + $0x1e38] sm:$0xf]  ;;  %v14088_v20 = vor.u32 %v16808_v2, %v14087_v45  ;;  %8052 = vmatpush.bf16.msrb.mxu1 %v13576_v9 }
 0x626   :  { %v16936_v28 = vld [vmem:[#allocation8 + $0x1e74] sm:$0xf0] }
 0x627   :  { %v12999_v21 = vld [vmem:[#allocation8 + $0x11b8] sm:$0xf]  ;;  %v14600_v36 = vor.u32 %v16936_v28, %v14599_v59  ;;  %8066 = vmatpush.bf16.msrb.mxu2 %v14088_v20  ;;  %v7792_v59 = vpop.f32.mrf.mxu2 }
 0x628   :  { %v16536_v27 = vld [vmem:[#allocation8 + $0x11f4] sm:$0xf0]  ;;  %v7793_v14 = vadd.f32 %v7792_v59, %v7779_v24 }
 0x629   :  { %v13511_v19 = vld [vmem:[#allocation8 + $0x15b8] sm:$0xf]  ;;  %v13000_v33 = vor.u32 %v16536_v27, %v12999_v21  ;;  %8080 = vmatpush.bf16.msrb.mxu3 %v14600_v36 }
 0x62a   :  { %v16664_v6 = vld [vmem:[#allocation8 + $0x15f4] sm:$0xf0] }
 0x62b   :  { %v14023_v4 = vld [vmem:[#allocation8 + $0x19b8] sm:$0xf]  ;;  %v13512_v42 = vor.u32 %v16664_v6, %v13511_v19  ;;  %8039 = vmatpush.bf16.msrb.mxu0 %v13000_v33  ;;  %v18005_v6 = vadd.f32 %v7806_v25, %v7793_v14  ;;  %v16208_v14 = vld [vmem:[#allocation8 + $0x7bc] sm:$0xf] }
 0x62c   :  { %v16792_v5 = vld [vmem:[#allocation8 + $0x19f4] sm:$0xf0]  ;;  %v11721_v25 = vld [vmem:[#allocation8 + $0x7f8] sm:$0xf0] }
 0x62d   :  { %v14535_v38 = vld [vmem:[#allocation8 + $0x1db8] sm:$0xf]  ;;  %v14024_v46 = vor.u32 %v16792_v5, %v14023_v4  ;;  %8053 = vmatpush.bf16.msrb.mxu1 %v13512_v42 }
 0x62e   :  { %v16920_v41 = vld [vmem:[#allocation8 + $0x1df4] sm:$0xf0] }
 0x62f   :  { %v12935_v54 = vld [vmem:[#allocation8 + $0x1138] sm:$0xf]  ;;  %v14536_v7 = vor.u32 %v16920_v41, %v14535_v38  ;;  %8067 = vmatpush.bf16.msrb.mxu2 %v14024_v46 }
 0x630   :  { %v16520_v52 = vld [vmem:[#allocation8 + $0x1174] sm:$0xf0] }
 0x631   :  { %v13447_v35 = vld [vmem:[#allocation8 + $0x1538] sm:$0xf]  ;;  %v12936_v57 = vor.u32 %v16520_v52, %v12935_v54  ;;  %8081 = vmatpush.bf16.msrb.mxu3 %v14536_v7 }
 0x632   :  { %v16648_v45 = vld [vmem:[#allocation8 + $0x1574] sm:$0xf0] }
 0x633   :  { %v13959_v2 = vld [vmem:[#allocation8 + $0x1938] sm:$0xf]  ;;  %v13448_v9 = vor.u32 %v16648_v45, %v13447_v35  ;;  %8040 = vmatpush.bf16.msrb.mxu0 %v12936_v57 }
 0x634   :  { %v16776_v62 = vld [vmem:[#allocation8 + $0x1974] sm:$0xf0] }
 0x635   :  { %v14471_v28 = vld [vmem:[#allocation8 + $0x1d38] sm:$0xf]  ;;  %v13960_v20 = vor.u32 %v16776_v62, %v13959_v2  ;;  %8054 = vmatpush.bf16.msrb.mxu1 %v13448_v9 }
 0x636   :  { %v16904_v13 = vld [vmem:[#allocation8 + $0x1d74] sm:$0xf0] }
 0x637   :  { %v12871_v21 = vld [vmem:[#allocation8 + $0x10b8] sm:$0xf]  ;;  %v14472_v36 = vor.u32 %v16904_v13, %v14471_v28  ;;  %8068 = vmatpush.bf16.msrb.mxu2 %v13960_v20  ;;  %v16080_v28 = vld [vmem:[#allocation8 + $0x3bc] sm:$0xf] }
 0x638   :  { %v16504_v27 = vld [vmem:[#allocation8 + $0x10f4] sm:$0xf0]  ;;  %v11209_v13 = vld [vmem:[#allocation8 + $0x3f8] sm:$0xf0] }
 0x639   :  { %v13383_v19 = vld [vmem:[#allocation8 + $0x14b8] sm:$0xf]  ;;  %v12872_v24 = vor.u32 %v16504_v27, %v12871_v21  ;;  %8082 = vmatpush.bf16.msrb.mxu3 %v14472_v36  ;;  %v16336_v21 = vld [vmem:[#allocation8 + $0xbbc] sm:$0xf] }
 0x63a   :  { %v16632_v4 = vld [vmem:[#allocation8 + $0x14f4] sm:$0xf0]  ;;  %v12233_v27 = vld [vmem:[#allocation8 + $0xbf8] sm:$0xf0] }
 0x63b   :  { %v13895_v5 = vld [vmem:[#allocation8 + $0x18b8] sm:$0xf]  ;;  %v13384_v42 = vor.u32 %v16632_v4, %v13383_v19  ;;  %8041 = vmatpush.bf16.msrb.mxu0 %v12872_v24  ;;  %v16464_v19 = vld [vmem:[#allocation8 + $0xfbc] sm:$0xf] }
 0x63c   :  { %v16760_v38 = vld [vmem:[#allocation8 + $0x18f4] sm:$0xf0]  ;;  %v12745_v4 = vld [vmem:[#allocation8 + $0xff8] sm:$0xf0] }
 0x63d   :  { %v14407_v41 = vld [vmem:[#allocation8 + $0x1cb8] sm:$0xf]  ;;  %v13896_v46 = vor.u32 %v16760_v38, %v13895_v5  ;;  %8055 = vmatpush.bf16.msrb.mxu1 %v13384_v42  ;;  %v11724_v5 = vor.u32 %v16208_v14, %v11721_v25  ;;  %v12236_v38 = vor.u32 %v16336_v21, %v12233_v27  ;;  %v16192_v24 = vld [vmem:[#allocation8 + $0x73c] sm:$0xf] }
 0x63e   :  { %v16888_v26 = vld [vmem:[#allocation8 + $0x1cf4] sm:$0xf0]  ;;  %v12169_v42 = vld [vmem:[#allocation8 + $0xb78] sm:$0xf0] }
 0x63f   :  { %v12807_v33 = vld [vmem:[#allocation8 + $0x1038] sm:$0xf]  ;;  %v14408_v2 = vor.u32 %v16888_v26, %v14407_v41  ;;  %8069 = vmatpush.bf16.msrb.mxu2 %v13896_v46  ;;  %v11212_v26 = vor.u32 %v16080_v28, %v11209_v13  ;;  %v18007_v41 = vpop.f32.mrf.mxu0  ;;  %v16448_v46 = vld [vmem:[#allocation8 + $0xf3c] sm:$0xf] }
 0x640   :  { %v16488_v54 = vld [vmem:[#allocation8 + $0x1074] sm:$0xf0]  ;;  %v16176_v28 = vld [vmem:[#allocation8 + $0x6bc] sm:$0xf] }
 0x641   :  { %v13319_v52 = vld [vmem:[#allocation8 + $0x1438] sm:$0xf]  ;;  %v12808_v57 = vor.u32 %v16488_v54, %v12807_v33  ;;  %8083 = vmatpush.bf16.msrb.mxu3 %v14408_v2  ;;  %v12748_v33 = vor.u32 %v16464_v19, %v12745_v4  ;;  %v11657_v54 = vld [vmem:[#allocation8 + $0x778] sm:$0xf0] }
 0x642   :  { %v16616_v35 = vld [vmem:[#allocation8 + $0x1474] sm:$0xf0]  ;;  %v11660_v2 = vor.u32 %v16192_v24, %v11657_v54  ;;  %v11593_v14 = vld [vmem:[#allocation8 + $0x6f8] sm:$0xf0] }
 0x643   :  { %v13831_v45 = vld [vmem:[#allocation8 + $0x1838] sm:$0xf]  ;;  %v13320_v9 = vor.u32 %v16616_v35, %v13319_v52  ;;  %8042 = vmatpush.bf16.msrb.mxu0 %v12808_v57  ;;  %v12681_v52 = vld [vmem:[#allocation8 + $0xf78] sm:$0xf0]  ;;  %v18009_v35 = vpop.f32.mrf.mxu1  ;;  %v11596_v27 = vor.u32 %v16176_v28, %v11593_v14 }
 0x644   :  { %v16744_v7 = vld [vmem:[#allocation8 + $0x1874] sm:$0xf0]  ;;  %18508 = vst [vmem:[#allocation108_spill] sm:$0xff] %v18009_v35  ;;  %v12684_v13 = vor.u32 %v16448_v46, %v12681_v52  ;;  %v16304_v57 = vld [vmem:[#allocation8 + $0xabc] sm:$0xf] }
 0x645   :  { %v14343_v62 = vld [vmem:[#allocation8 + $0x1c38] sm:$0xf]  ;;  %v13832_v20 = vor.u32 %v16744_v7, %v13831_v45  ;;  %8056 = vmatpush.bf16.msrb.mxu1 %v13320_v9  ;;  %v11148_v45 = vor.u32 %v16064_v56, %v11145_v15  ;;  %v12172_v7 = vor.u32 %v16320_v32, %v12169_v42  ;;  %v12105_v25 = vld [vmem:[#allocation8 + $0xaf8] sm:$0xf0]  ;;  %v18015_v56 = vpop.f32.mrf.mxu2 }
 0x646   :  { %v16872_v59 = vld [vmem:[#allocation8 + $0x1c74] sm:$0xf0]  ;;  %8043 = vmatmul.bf16.vlgmr.msrb.gmra.mxu0 %v17633_v39  ;;  %v16432_v21 = vld [vmem:[#allocation8 + $0xebc] sm:$0xf]  ;;  %18509 = vst [vmem:[#allocation109_spill] sm:$0xff] %v18015_v56  ;;  %v12108_v9 = vor.u32 %v16304_v57, %v12105_v25 }
 0x647   :  { %v14344_v36 = vor.u32 %v16872_v59, %v14343_v62  ;;  %8070 = vmatpush.bf16.msrb.mxu2 %v13832_v20  ;;  %8091 = vmatpush.bf16.msra.mxu0 %v11212_v26  ;;  %v16048_v62 = vld [vmem:[#allocation8 + $0x2bc] sm:$0xf]  ;;  %v18017_v26 = vpop.f32.mrf.mxu3 }
 0x648   :  { %v11081_v59 = vld [vmem:[#allocation8 + $0x2f8] sm:$0xf0]  ;;  %8057 = vmatmul.bf16.vlgmr.msrb.gmra.mxu1 %v17637_v44  ;;  %18510 = vst [vmem:[#allocation110_spill] sm:$0xff] %v18017_v26 }
 0x649   :  { %8084 = vmatpush.bf16.msrb.mxu3 %v14344_v36  ;;  %8105 = vmatpush.bf16.msra.mxu1 %v11724_v5  ;;  %v12617_v15 = vld [vmem:[#allocation8 + $0xef8] sm:$0xf0]  ;;  %v11084_v32 = vor.u32 %v16048_v62, %v11081_v59 }
 0x64a   :  { %8071 = vmatmul.bf16.vlgmr.msrb.gmra.mxu2 %v17635_v43  ;;  %v16032_v20 = vld [vmem:[#allocation8 + $0x23c] sm:$0xf]  ;;  %v12620_v36 = vor.u32 %v16432_v21, %v12617_v15 }
 0x64b   :  { %8119 = vmatpush.bf16.msra.mxu2 %v12236_v38  ;;  %8092 = vmatpush.bf16.msra.mxu0 %v11148_v45  ;;  %v11017_v19 = vld [vmem:[#allocation8 + $0x278] sm:$0xf0] }
 0x64c   :  { %8085 = vmatmul.bf16.vlgmr.msrb.gmra.mxu3 %v17639_v47  ;;  %v16160_v4 = vld [vmem:[#allocation8 + $0x63c] sm:$0xf]  ;;  %v11020_v52 = vor.u32 %v16032_v20, %v11017_v19 }
 0x64d   :  { %8133 = vmatpush.bf16.msra.mxu3 %v12748_v33  ;;  %8106 = vmatpush.bf16.msra.mxu1 %v11660_v2  ;;  %v11529_v5 = vld [vmem:[#allocation8 + $0x678] sm:$0xf0]  ;;  %v7820_v33 = vpop.f32.mrf.mxu0 }
 0x64e   :  { %v16288_v38 = vld [vmem:[#allocation8 + $0xa3c] sm:$0xf]  ;;  %v7821_v46 = vadd.f32 %v7820_v33, %v18005_v6  ;;  %v11532_v45 = vor.u32 %v16160_v4, %v11529_v5  ;;  %v7848_v5 = vpop.f32.mrf.mxu2 }
 0x64f   :  { %8120 = vmatpush.bf16.msra.mxu2 %v12172_v7  ;;  %v12041_v24 = vld [vmem:[#allocation8 + $0xa78] sm:$0xf0]  ;;  %8093 = vmatpush.bf16.msra.mxu0 %v11084_v32  ;;  %v7834_v7 = vpop.f32.mrf.mxu1 }
 0x650   :  { %v16416_v54 = vld [vmem:[#allocation8 + $0xe3c] sm:$0xf]  ;;  %v12044_v2 = vor.u32 %v16288_v38, %v12041_v24  ;;  %v7835_v14 = vadd.f32 %v7834_v7, %v7821_v46  ;;  %v7862_v46 = vpop.f32.mrf.mxu3 }
 0x651   :  { %8134 = vmatpush.bf16.msra.mxu3 %v12684_v13  ;;  %v12553_v42 = vld [vmem:[#allocation8 + $0xe78] sm:$0xf0]  ;;  %8107 = vmatpush.bf16.msra.mxu1 %v11596_v27 }
 0x652   :  { %v16016_v62 = vld [vmem:[#allocation8 + $0x1bc] sm:$0xf]  ;;  %v12556_v13 = vor.u32 %v16416_v54, %v12553_v42  ;;  %v7849_v33 = vadd.f32 %v7848_v5, %v7835_v14 }
 0x653   :  { %8121 = vmatpush.bf16.msra.mxu2 %v12108_v9  ;;  %v10953_v59 = vld [vmem:[#allocation8 + $0x1f8] sm:$0xf0]  ;;  %8094 = vmatpush.bf16.msra.mxu0 %v11020_v52 }
 0x654   :  { %v16144_v28 = vld [vmem:[#allocation8 + $0x5bc] sm:$0xf]  ;;  %v10956_v32 = vor.u32 %v16016_v62, %v10953_v59 }
 0x655   :  { %8135 = vmatpush.bf16.msra.mxu3 %v12620_v36  ;;  %v11465_v57 = vld [vmem:[#allocation8 + $0x5f8] sm:$0xf0]  ;;  %8108 = vmatpush.bf16.msra.mxu1 %v11532_v45  ;;  %v18020_v45 = vadd.f32 %v7862_v46, %v7849_v33 }
 0x656   :  { %v16272_v25 = vld [vmem:[#allocation8 + $0x9bc] sm:$0xf]  ;;  %v11468_v6 = vor.u32 %v16144_v28, %v11465_v57 }
 0x657   :  { %v11977_v21 = vld [vmem:[#allocation8 + $0x9f8] sm:$0xf0]  ;;  %8122 = vmatpush.bf16.msra.mxu2 %v12044_v2  ;;  %8095 = vmatpush.bf16.msra.mxu0 %v10956_v32  ;;  %18511 = vst [vmem:[#allocation111_spill] sm:$0xff] %v18020_v45 }
 0x658   :  { %v16400_v15 = vld [vmem:[#allocation8 + $0xdbc] sm:$0xf]  ;;  %v11980_v27 = vor.u32 %v16272_v25, %v11977_v21 }
 0x659   :  { %v12489_v26 = vld [vmem:[#allocation8 + $0xdf8] sm:$0xf0]  ;;  %8136 = vmatpush.bf16.msra.mxu3 %v12556_v13  ;;  %8109 = vmatpush.bf16.msra.mxu1 %v11468_v6 }
 0x65a   :  { %v16000_v9 = vld [vmem:[#allocation8 + $0x13c] sm:$0xf]  ;;  %v12492_v4 = vor.u32 %v16400_v15, %v12489_v26 }
 0x65b   :  { %v10889_v20 = vld [vmem:[#allocation8 + $0x178] sm:$0xf0]  ;;  %8123 = vmatpush.bf16.msra.mxu2 %v11980_v27 }
 0x65c   :  { %v16128_v19 = vld [vmem:[#allocation8 + $0x53c] sm:$0xf]  ;;  %v10892_v52 = vor.u32 %v16000_v9, %v10889_v20 }
 0x65d   :  { %v11401_v36 = vld [vmem:[#allocation8 + $0x578] sm:$0xf0]  ;;  %8137 = vmatpush.bf16.msra.mxu3 %v12492_v4 }
 0x65e   :  { %v16256_v38 = vld [vmem:[#allocation8 + $0x93c] sm:$0xf]  ;;  %v11404_v2 = vor.u32 %v16128_v19, %v11401_v36  ;;  %8096 = vmatpush.bf16.msra.mxu0 %v10892_v52 }
 0x65f   :  { %v11913_v24 = vld [vmem:[#allocation8 + $0x978] sm:$0xf0] }
 0x660   :  { %v16384_v54 = vld [vmem:[#allocation8 + $0xd3c] sm:$0xf]  ;;  %v11916_v7 = vor.u32 %v16256_v38, %v11913_v24  ;;  %8110 = vmatpush.bf16.msra.mxu1 %v11404_v2 }
 0x661   :  { %v12425_v42 = vld [vmem:[#allocation8 + $0xd78] sm:$0xf0] }
 0x662   :  { %v15984_v62 = vld [vmem:[#allocation8 + $0xbc] sm:$0xf]  ;;  %v12428_v26 = vor.u32 %v16384_v54, %v12425_v42  ;;  %8124 = vmatpush.bf16.msra.mxu2 %v11916_v7 }
 0x663   :  { %v10825_v59 = vld [vmem:[#allocation8 + $0xf8] sm:$0xf0] }
 0x664   :  { %v16112_v28 = vld [vmem:[#allocation8 + $0x4bc] sm:$0xf]  ;;  %v10828_v15 = vor.u32 %v15984_v62, %v10825_v59  ;;  %8138 = vmatpush.bf16.msra.mxu3 %v12428_v26 }
 0x665   :  { %v11337_v13 = vld [vmem:[#allocation8 + $0x4f8] sm:$0xf0] }
 0x666   :  { %v16240_v57 = vld [vmem:[#allocation8 + $0x8bc] sm:$0xf]  ;;  %v11340_v6 = vor.u32 %v16112_v28, %v11337_v13  ;;  %8097 = vmatpush.bf16.msra.mxu0 %v10828_v15 }
 0x667   :  { %v11849_v25 = vld [vmem:[#allocation8 + $0x8f8] sm:$0xf0] }
 0x668   :  { %v16368_v14 = vld [vmem:[#allocation8 + $0xcbc] sm:$0xf]  ;;  %v11852_v27 = vor.u32 %v16240_v57, %v11849_v25  ;;  %8111 = vmatpush.bf16.msra.mxu1 %v11340_v6 }
 0x669   :  { %v12361_v21 = vld [vmem:[#allocation8 + $0xcf8] sm:$0xf0] }
 0x66a   :  { %v15968_v32 = vld [vmem:[#allocation8 + $0x3c] sm:$0xf]  ;;  %v12364_v36 = vor.u32 %v16368_v14, %v12361_v21  ;;  %8125 = vmatpush.bf16.msra.mxu2 %v11852_v27 }
 0x66b   :  { %v10761_v9 = vld [vmem:[#allocation8 + $0x78] sm:$0xf0] }
 0x66c   :  { %v16096_v20 = vld [vmem:[#allocation8 + $0x43c] sm:$0xf]  ;;  %v10764_v46 = vor.u32 %v15968_v32, %v10761_v9  ;;  %8139 = vmatpush.bf16.msra.mxu3 %v12364_v36 }
 0x66d   :  { %v11273_v19 = vld [vmem:[#allocation8 + $0x478] sm:$0xf0] }
 0x66e   :  { %v16224_v5 = vld [vmem:[#allocation8 + $0x83c] sm:$0xf]  ;;  %v11276_v2 = vor.u32 %v16096_v20, %v11273_v19  ;;  %8098 = vmatpush.bf16.msra.mxu0 %v10764_v46 }
 0x66f   :  { %v11785_v4 = vld [vmem:[#allocation8 + $0x878] sm:$0xf0] }
 0x670   :  { %v16352_v38 = vld [vmem:[#allocation8 + $0xc3c] sm:$0xf]  ;;  %v11788_v7 = vor.u32 %v16224_v5, %v11785_v4  ;;  %8112 = vmatpush.bf16.msra.mxu1 %v11276_v2 }
 0x671   :  { %v12297_v24 = vld [vmem:[#allocation8 + $0xc78] sm:$0xf0]  ;;  %8099 = vmatmul.bf16.vlgmr.msra.gmra.mxu0 %v17621_v58 }
 0x672   :  { %v16592_v33 = vld [vmem:[#allocation8 + $0x13bc] sm:$0xf]  ;;  %v12300_v26 = vor.u32 %v16352_v38, %v12297_v24  ;;  %8126 = vmatpush.bf16.msra.mxu2 %v11788_v7 }
 0x673   :  { %v13257_v54 = vld [vmem:[#allocation8 + $0x13f8] sm:$0xf0]  ;;  %8113 = vmatmul.bf16.vlgmr.msra.gmra.mxu1 %v17627_v10 }
 0x674   :  { %v16720_v42 = vld [vmem:[#allocation8 + $0x17bc] sm:$0xf]  ;;  %v13260_v57 = vor.u32 %v16592_v33, %v13257_v54  ;;  %8140 = vmatpush.bf16.msra.mxu3 %v12300_v26 }
 0x675   :  { %v13769_v52 = vld [vmem:[#allocation8 + $0x17f8] sm:$0xf0]  ;;  %8127 = vmatmul.bf16.vlgmr.msra.gmra.mxu2 %v17623_v1 }
 0x676   :  { %v16848_v62 = vld [vmem:[#allocation8 + $0x1bbc] sm:$0xf]  ;;  %v13772_v25 = vor.u32 %v16720_v42, %v13769_v52  ;;  %8147 = vmatpush.bf16.msrb.mxu0 %v13260_v57 }
 0x677   :  { %v14281_v59 = vld [vmem:[#allocation8 + $0x1bf8] sm:$0xf0]  ;;  %8141 = vmatmul.bf16.vlgmr.msra.gmra.mxu3 %v17629_v17 }
 0x678   :  { %v16976_v28 = vld [vmem:[#allocation8 + $0x1fbc] sm:$0xf]  ;;  %v14284_v14 = vor.u32 %v16848_v62, %v14281_v59  ;;  %8161 = vmatpush.bf16.msrb.mxu1 %v13772_v25 }
 0x679   :  { %v14793_v13 = vld [vmem:[#allocation8 + $0x1ff8] sm:$0xf0] }
 0x67a   :  { %v16576_v21 = vld [vmem:[#allocation8 + $0x133c] sm:$0xf]  ;;  %v14796_v15 = vor.u32 %v16976_v28, %v14793_v13  ;;  %8175 = vmatpush.bf16.msrb.mxu2 %v14284_v14 }
 0x67b   :  { %v13193_v45 = vld [vmem:[#allocation8 + $0x1378] sm:$0xf0] }
 0x67c   :  { %v16704_v56 = vld [vmem:[#allocation8 + $0x173c] sm:$0xf]  ;;  %v13196_v20 = vor.u32 %v16576_v21, %v13193_v45  ;;  %8189 = vmatpush.bf16.msrb.mxu3 %v14796_v15 }
 0x67d   :  { %v13705_v32 = vld [vmem:[#allocation8 + $0x1778] sm:$0xf0] }
 0x67e   :  { %v16832_v9 = vld [vmem:[#allocation8 + $0x1b3c] sm:$0xf]  ;;  %v13708_v19 = vor.u32 %v16704_v56, %v13705_v32  ;;  %8148 = vmatpush.bf16.msrb.mxu0 %v13196_v20 }
 0x67f   :  { %v14217_v35 = vld [vmem:[#allocation8 + $0x1b78] sm:$0xf0] }
 0x680   :  { %v16960_v6 = vld [vmem:[#allocation8 + $0x1f3c] sm:$0xf]  ;;  %v14220_v5 = vor.u32 %v16832_v9, %v14217_v35  ;;  %8162 = vmatpush.bf16.msrb.mxu1 %v13708_v19 }
 0x681   :  { %v14729_v27 = vld [vmem:[#allocation8 + $0x1f78] sm:$0xf0] }
 0x682   :  { %v16560_v36 = vld [vmem:[#allocation8 + $0x12bc] sm:$0xf]  ;;  %v14732_v24 = vor.u32 %v16960_v6, %v14729_v27  ;;  %8176 = vmatpush.bf16.msrb.mxu2 %v14220_v5 }
 0x683   :  { %v13129_v4 = vld [vmem:[#allocation8 + $0x12f8] sm:$0xf0] }
 0x684   :  { %v16688_v38 = vld [vmem:[#allocation8 + $0x16bc] sm:$0xf]  ;;  %v13132_v45 = vor.u32 %v16560_v36, %v13129_v4  ;;  %8190 = vmatpush.bf16.msrb.mxu3 %v14732_v24 }
 0x685   :  { %v13641_v33 = vld [vmem:[#allocation8 + $0x16f8] sm:$0xf0] }
 0x686   :  { %v16816_v54 = vld [vmem:[#allocation8 + $0x1abc] sm:$0xf]  ;;  %v13644_v35 = vor.u32 %v16688_v38, %v13641_v33  ;;  %8149 = vmatpush.bf16.msrb.mxu0 %v13132_v45 }
 0x687   :  { %v14153_v42 = vld [vmem:[#allocation8 + $0x1af8] sm:$0xf0] }
 0x688   :  { %v16944_v46 = vld [vmem:[#allocation8 + $0x1ebc] sm:$0xf]  ;;  %v14156_v56 = vor.u32 %v16816_v54, %v14153_v42  ;;  %8163 = vmatpush.bf16.msrb.mxu1 %v13644_v35 }
 0x689   :  { %v14665_v52 = vld [vmem:[#allocation8 + $0x1ef8] sm:$0xf0] }
 0x68a   :  { %v16544_v62 = vld [vmem:[#allocation8 + $0x123c] sm:$0xf]  ;;  %v14668_v7 = vor.u32 %v16944_v46, %v14665_v52  ;;  %8177 = vmatpush.bf16.msrb.mxu2 %v14156_v56 }
 0x68b   :  { %v13065_v59 = vld [vmem:[#allocation8 + $0x1278] sm:$0xf0] }
 0x68c   :  { %v16672_v2 = vld [vmem:[#allocation8 + $0x163c] sm:$0xf]  ;;  %v13068_v10 = vor.u32 %v16544_v62, %v13065_v59  ;;  %8191 = vmatpush.bf16.msrb.mxu3 %v14668_v7 }
 0x68d   :  { %v13577_v58 = vld [vmem:[#allocation8 + $0x1678] sm:$0xf0] }
 0x68e   :  { %v16800_v28 = vld [vmem:[#allocation8 + $0x1a3c] sm:$0xf]  ;;  %v13580_v57 = vor.u32 %v16672_v2, %v13577_v58  ;;  %8150 = vmatpush.bf16.msrb.mxu0 %v13068_v10 }
 0x68f   :  { %v14089_v13 = vld [vmem:[#allocation8 + $0x1a78] sm:$0xf0] }
 0x690   :  { %v16928_v26 = vld [vmem:[#allocation8 + $0x1e3c] sm:$0xf]  ;;  %v14092_v17 = vor.u32 %v16800_v28, %v14089_v13  ;;  %8164 = vmatpush.bf16.msrb.mxu1 %v13580_v57 }
 0x691   :  { %v14601_v1 = vld [vmem:[#allocation8 + $0x1e78] sm:$0xf0] }
 0x692   :  { %v16528_v25 = vld [vmem:[#allocation8 + $0x11bc] sm:$0xf]  ;;  %v14604_v15 = vor.u32 %v16928_v26, %v14601_v1  ;;  %8178 = vmatpush.bf16.msrb.mxu2 %v14092_v17 }
 0x693   :  { %v13001_v14 = vld [vmem:[#allocation8 + $0x11f8] sm:$0xf0] }
 0x694   :  { %v16656_v21 = vld [vmem:[#allocation8 + $0x15bc] sm:$0xf]  ;;  %v13004_v19 = vor.u32 %v16528_v25, %v13001_v14  ;;  %8192 = vmatpush.bf16.msrb.mxu3 %v14604_v15 }
 0x695   :  { %v13513_v32 = vld [vmem:[#allocation8 + $0x15f8] sm:$0xf0] }
 0x696   :  { %v16784_v9 = vld [vmem:[#allocation8 + $0x19bc] sm:$0xf]  ;;  %v13516_v5 = vor.u32 %v16656_v21, %v13513_v32  ;;  %8151 = vmatpush.bf16.msrb.mxu0 %v13004_v19 }
 0x697   :  { %v14025_v6 = vld [vmem:[#allocation8 + $0x19f8] sm:$0xf0] }
 0x698   :  { %v16912_v27 = vld [vmem:[#allocation8 + $0x1dbc] sm:$0xf]  ;;  %v14028_v36 = vor.u32 %v16784_v9, %v14025_v6  ;;  %8165 = vmatpush.bf16.msrb.mxu1 %v13516_v5  ;;  %v14859_v5 = vld [vmem:[#allocation11 + $0x70] sm:$0xf] }
 0x699   :  { %v14537_v20 = vld [vmem:[#allocation8 + $0x1df8] sm:$0xf0] }
 0x69a   :  { %v16512_v4 = vld [vmem:[#allocation8 + $0x113c] sm:$0xf]  ;;  %v14540_v33 = vor.u32 %v16912_v27, %v14537_v20  ;;  %8179 = vmatpush.bf16.msrb.mxu2 %v14028_v36  ;;  %v17257_v36 = vld [vmem:[#allocation11 + $0x74] sm:$0xf0] }
 0x69b   :  { %v12937_v38 = vld [vmem:[#allocation8 + $0x1178] sm:$0xf0] }
 0x69c   :  { %v16640_v24 = vld [vmem:[#allocation8 + $0x153c] sm:$0xf]  ;;  %v12940_v35 = vor.u32 %v16512_v4, %v12937_v38  ;;  %8193 = vmatpush.bf16.msrb.mxu3 %v14540_v33  ;;  %v17256_v4 = vld [vmem:[#allocation11 + $0x74] sm:$0xf]  ;;  %v14923_v33 = vld [vmem:[#allocation9 + $0x70] sm:$0xf] }
 0x69d   :  { %v13449_v54 = vld [vmem:[#allocation8 + $0x1578] sm:$0xf0] }
 0x69e   :  { %v16768_v42 = vld [vmem:[#allocation8 + $0x193c] sm:$0xf]  ;;  %v13452_v56 = vor.u32 %v16640_v24, %v13449_v54  ;;  %8152 = vmatpush.bf16.msrb.mxu0 %v12940_v35  ;;  %v17000_v54 = vld [vmem:[#allocation9 + $0x74] sm:$0xf0] }
 0x69f   :  { %v13961_v46 = vld [vmem:[#allocation8 + $0x1978] sm:$0xf0] }
 0x6a0   :  { %v16896_v52 = vld [vmem:[#allocation8 + $0x1d3c] sm:$0xf]  ;;  %v13964_v62 = vor.u32 %v16768_v42, %v13961_v46  ;;  %8166 = vmatpush.bf16.msrb.mxu1 %v13452_v56  ;;  %v14860_v56 = vor.u32 %v17257_v36, %v14859_v5  ;;  %v16996_v5 = vld [vmem:[#allocation9 + $0x54] sm:$0xf0] }
 0x6a1   :  { %v14473_v45 = vld [vmem:[#allocation8 + $0x1d78] sm:$0xf0] }
 0x6a2   :  { %v16496_v59 = vld [vmem:[#allocation8 + $0x10bc] sm:$0xf]  ;;  %v14476_v58 = vor.u32 %v16896_v52, %v14473_v45  ;;  %8180 = vmatpush.bf16.msrb.mxu2 %v13964_v62  ;;  %v14987_v52 = vld [vmem:[#allocation9 + $0xf0] sm:$0xf]  ;;  %v17016_v45 = vld [vmem:[#allocation9 + $0xf4] sm:$0xf0] }
 0x6a3   :  { %v12873_v2 = vld [vmem:[#allocation8 + $0x10f8] sm:$0xf0] }
 0x6a4   :  { %v16624_v7 = vld [vmem:[#allocation8 + $0x14bc] sm:$0xf]  ;;  %v12876_v57 = vor.u32 %v16496_v59, %v12873_v2  ;;  %8194 = vmatpush.bf16.msrb.mxu3 %v14476_v58  ;;  %v14924_v59 = vor.u32 %v17000_v54, %v14923_v33  ;;  %v14851_v2 = vld [vmem:[#allocation11 + $0x60] sm:$0xf]  ;;  %v17254_v58 = vld [vmem:[#allocation11 + $0x64] sm:$0xf] }
 0x6a5   :  { %v13385_v28 = vld [vmem:[#allocation8 + $0x14f8] sm:$0xf0]  ;;  %v14899_v54 = vld [vmem:[#allocation9 + $0x40] sm:$0xf] }
 0x6a6   :  { %v16752_v13 = vld [vmem:[#allocation8 + $0x18bc] sm:$0xf]  ;;  %v13388_v14 = vor.u32 %v16624_v7, %v13385_v28  ;;  %8153 = vmatpush.bf16.msrb.mxu0 %v12876_v57  ;;  %v17255_v7 = vld [vmem:[#allocation11 + $0x64] sm:$0xf0]  ;;  %v14988_v28 = vor.u32 %v17016_v45, %v14987_v52 }
 0x6a7   :  { %v13897_v26 = vld [vmem:[#allocation8 + $0x18f8] sm:$0xf0]  ;;  %v17014_v57 = vld [vmem:[#allocation9 + $0xe4] sm:$0xf0] }
 0x6a8   :  { %v16880_v1 = vld [vmem:[#allocation8 + $0x1cbc] sm:$0xf]  ;;  %v13900_v21 = vor.u32 %v16752_v13, %v13897_v26  ;;  %8167 = vmatpush.bf16.msrb.mxu1 %v13388_v14  ;;  %v14853_v13 = vld [vmem:[#allocation11 + $0x68] sm:$0xf0]  ;;  %v14915_v26 = vld [vmem:[#allocation9 + $0x60] sm:$0xf] }
 0x6a9   :  { %v14409_v10 = vld [vmem:[#allocation8 + $0x1cf8] sm:$0xf0]  ;;  %v14856_v14 = vor.u32 %v17254_v58, %v14853_v13  ;;  %v14891_v58 = vld [vmem:[#allocation9 + $0x30] sm:$0xf] }
 0x6aa   :  { %v16480_v17 = vld [vmem:[#allocation8 + $0x103c] sm:$0xf]  ;;  %v14412_v6 = vor.u32 %v16880_v1, %v14409_v10  ;;  %8181 = vmatpush.bf16.msrb.mxu2 %v13900_v21  ;;  %v16998_v1 = vld [vmem:[#allocation9 + $0x64] sm:$0xf0]  ;;  %v14979_v10 = vld [vmem:[#allocation9 + $0xe0] sm:$0xf] }
 0x6ab   :  { %v12809_v25 = vld [vmem:[#allocation8 + $0x1078] sm:$0xf0]  ;;  %v14916_v21 = vor.u32 %v16998_v1, %v14915_v26  ;;  %v14955_v26 = vld [vmem:[#allocation9 + $0xb0] sm:$0xf]  ;;  %v17008_v1 = vld [vmem:[#allocation9 + $0xb4] sm:$0xf0] }
 0x6ac   :  { %v16608_v15 = vld [vmem:[#allocation8 + $0x143c] sm:$0xf]  ;;  %v12812_v38 = vor.u32 %v16480_v17, %v12809_v25  ;;  %8195 = vmatpush.bf16.msrb.mxu3 %v14412_v6  ;;  %v14852_v17 = vor.u32 %v17255_v7, %v14851_v2  ;;  %v6437_v25 = vadd.f32 %v17661_v48, %v17659_v34  ;;  %v6549_v6 = vadd.f32 %v17690_v0, %v17688_v51  ;;  %v14971_v34 = vld [vmem:[#allocation9 + $0xd0] sm:$0xf]  ;;  %v17012_v48 = vld [vmem:[#allocation9 + $0xd4] sm:$0xf0] }
 0x6ad   :  { %v13321_v32 = vld [vmem:[#allocation8 + $0x1478] sm:$0xf0]  ;;  %v14835_v0 = vld [vmem:[#allocation11 + $0x40] sm:$0xf] }
 0x6ae   :  { %v16736_v9 = vld [vmem:[#allocation8 + $0x183c] sm:$0xf]  ;;  %v13324_v42 = vor.u32 %v16608_v15, %v13321_v32  ;;  %8154 = vmatpush.bf16.msrb.mxu0 %v12812_v38  ;;  %v14843_v15 = vld [vmem:[#allocation11 + $0x50] sm:$0xf]  ;;  %v17253_v32 = vld [vmem:[#allocation11 + $0x54] sm:$0xf0]  ;;  %v6563_v33 = vadd.f32 %v17696_v22, %v6549_v6 }
 0x6af   :  { %v13833_v27 = vld [vmem:[#allocation8 + $0x1878] sm:$0xf0]  ;;  %v14844_v36 = vor.u32 %v17253_v32, %v14843_v15  ;;  %v17251_v38 = vld [vmem:[#allocation11 + $0x44] sm:$0xf0]  ;;  %v14821_v15 = vld [vmem:[#allocation11 + $0x28] sm:$0xf0] }
 0x6b0   :  { %v16864_v20 = vld [vmem:[#allocation8 + $0x1c3c] sm:$0xf]  ;;  %v13836_v46 = vor.u32 %v16736_v9, %v13833_v27  ;;  %8168 = vmatpush.bf16.msrb.mxu1 %v13324_v42  ;;  %v17252_v9 = vld [vmem:[#allocation11 + $0x54] sm:$0xf]  ;;  %v14980_v27 = vor.u32 %v17014_v57, %v14979_v10  ;;  %v16994_v42 = vld [vmem:[#allocation9 + $0x44] sm:$0xf0]  ;;  %v14836_v52 = vor.u32 %v17251_v38, %v14835_v0  ;;  %v6577_v22 = vadd.f32 %v17698_v29, %v6563_v33 }
 0x6b1   :  { %v14345_v19 = vld [vmem:[#allocation8 + $0x1c78] sm:$0xf0]  ;;  %8155 = vmatmul.bf16.vlgmr.msrb.gmra.mxu0 %v17633_v39  ;;  %v17246_v29 = vld [vmem:[#allocation11 + $0x24] sm:$0xf]  ;;  %v14883_v32 = vld [vmem:[#allocation9 + $0x20] sm:$0xf] }
 0x6b2   :  { %v14861_v24 = vld [vmem:[#allocation11 + $0x78] sm:$0xf0]  ;;  %v14348_v35 = vor.u32 %v16864_v20, %v14345_v19  ;;  %8182 = vmatpush.bf16.msrb.mxu2 %v13836_v46  ;;  %8710 = vmatpush.bf16.msra.mxu0 %v14860_v56  ;;  %v14907_v19 = vld [vmem:[#allocation9 + $0x50] sm:$0xf]  ;;  %v14963_v46 = vld [vmem:[#allocation9 + $0xc0] sm:$0xf] }
 0x6b3   :  { %v14864_v62 = vor.u32 %v17256_v4, %v14861_v24  ;;  %v14845_v20 = vld [vmem:[#allocation11 + $0x58] sm:$0xf0]  ;;  %8169 = vmatmul.bf16.vlgmr.msrb.gmra.mxu1 %v17637_v44  ;;  %v6451_v4 = vadd.f32 %v17667_v63, %v6437_v25  ;;  %v14908_v39 = vor.u32 %v16996_v5, %v14907_v19  ;;  %v17250_v24 = vld [vmem:[#allocation11 + $0x44] sm:$0xf]  ;;  %v14837_v44 = vld [vmem:[#allocation11 + $0x48] sm:$0xf0]  ;;  %v14824_v5 = vor.u32 %v17246_v29, %v14821_v15 }
 0x6b4   :  { %8196 = vmatpush.bf16.msrb.mxu3 %v14348_v35  ;;  %v14848_v51 = vor.u32 %v17252_v9, %v14845_v20  ;;  %v14840_v45 = vor.u32 %v17250_v24, %v14837_v44  ;;  %v14900_v35 = vor.u32 %v16994_v42, %v14899_v54  ;;  %v14827_v56 = vld [vmem:[#allocation11 + $0x30] sm:$0xf]  ;;  %v14829_v7 = vld [vmem:[#allocation11 + $0x38] sm:$0xf0]  ;;  %v14819_v25 = vld [vmem:[#allocation11 + $0x20] sm:$0xf] }
 0x6b5   :  { %8724 = vmatpush.bf16.msra.mxu1 %v14864_v62  ;;  %8183 = vmatmul.bf16.vlgmr.msrb.gmra.mxu2 %v17635_v43  ;;  %v14972_v43 = vor.u32 %v17012_v48, %v14971_v34  ;;  %v6465_v63 = vadd.f32 %v17669_v8, %v6451_v4  ;;  %v17249_v62 = vld [vmem:[#allocation11 + $0x34] sm:$0xf0]  ;;  %v6591_v8 = vadd.f32 %v17703_v30, %v6577_v22  ;;  %v16990_v9 = vld [vmem:[#allocation9 + $0x24] sm:$0xf0]  ;;  %v14947_v6 = vld [vmem:[#allocation9 + $0xa0] sm:$0xf] }
 0x6b6   :  { %10018 = vmatpush.bf16.msra.mxu2 %v14924_v59  ;;  %8711 = vmatpush.bf16.msra.mxu0 %v14852_v17  ;;  %v17248_v59 = vld [vmem:[#allocation11 + $0x34] sm:$0xf]  ;;  %v14828_v10 = vor.u32 %v17249_v62, %v14827_v56  ;;  %v14884_v34 = vor.u32 %v16990_v9, %v14883_v32  ;;  %v14811_v48 = vld [vmem:[#allocation11 + $0x10] sm:$0xf]  ;;  %v16988_v38 = vld [vmem:[#allocation9 + $0x14] sm:$0xf0]  ;;  %v18047_v62 = vpop.f32.mrf.mxu0 }
 0x6b7   :  { %8197 = vmatmul.bf16.vlgmr.msrb.gmra.mxu3 %v17639_v47  ;;  %v17010_v47 = vld [vmem:[#allocation9 + $0xc4] sm:$0xf0]  ;;  %v6479_v13 = vadd.f32 %v17674_v49, %v6465_v63  ;;  %v14832_v57 = vor.u32 %v17248_v59, %v14829_v7  ;;  %v6605_v30 = vadd.f32 %v17705_v31, %v6591_v8  ;;  %v17244_v4 = vld [vmem:[#allocation11 + $0x14] sm:$0xf]  ;;  %v14875_v0 = vld [vmem:[#allocation9 + $0x10] sm:$0xf] }
 0x6b8   :  { %10032 = vmatpush.bf16.msra.mxu3 %v14988_v28  ;;  %v14964_v2 = vor.u32 %v17010_v47, %v14963_v46  ;;  %v16992_v28 = vld [vmem:[#allocation9 + $0x34] sm:$0xf0]  ;;  %v14939_v24 = vld [vmem:[#allocation9 + $0x90] sm:$0xf]  ;;  %v8302_v33 = vmax.f32 %v17672_v53, 0.0  ;;  %v14876_v46 = vor.u32 %v16988_v38, %v14875_v0 }
 0x6b9   :  { %8725 = vmatpush.bf16.msra.mxu1 %v14856_v14  ;;  %v14892_v17 = vor.u32 %v16992_v28, %v14891_v58  ;;  %v17247_v14 = vld [vmem:[#allocation11 + $0x24] sm:$0xf0]  ;;  %v6493_v49 = vadd.f32 %v17676_v50, %v6479_v13  ;;  %v14813_v50 = vld [vmem:[#allocation11 + $0x18] sm:$0xf0]  ;;  %v17004_v31 = vld [vmem:[#allocation9 + $0x94] sm:$0xf0] }
 0x6ba   :  { %10019 = vmatpush.bf16.msra.mxu2 %v14916_v21  ;;  %8712 = vmatpush.bf16.msra.mxu0 %v14844_v36  ;;  %v14956_v21 = vor.u32 %v17008_v1, %v14955_v26  ;;  %v14820_v20 = vor.u32 %v17247_v14, %v14819_v25  ;;  %v17245_v36 = vld [vmem:[#allocation11 + $0x14] sm:$0xf0]  ;;  %v17243_v44 = vld [vmem:[#allocation11 + $0x4] sm:$0xf0]  ;;  %v14816_v42 = vor.u32 %v17244_v4, %v14813_v50  ;;  %v14805_v47 = vld [vmem:[#allocation11 + $0x8] sm:$0xf0] }
 0x6bb   :  { %v6507_v19 = vadd.f32 %v17682_v12, %v6493_v49  ;;  %v14812_v12 = vor.u32 %v17245_v36, %v14811_v48  ;;  %v14931_v56 = vld [vmem:[#allocation9 + $0x80] sm:$0xf]  ;;  %v17002_v53 = vld [vmem:[#allocation9 + $0x84] sm:$0xf0]  ;;  %v15051_v59 = vld [vmem:[#allocation9 + $0x170] sm:$0xf]  ;;  %v6773_v25 = vadd.f32 %v17748_v55, %v17746_v40 }
 0x6bc   :  { %10033 = vmatpush.bf16.msra.mxu3 %v14980_v27  ;;  %v17006_v27 = vld [vmem:[#allocation9 + $0xa4] sm:$0xf0]  ;;  %v17032_v22 = vld [vmem:[#allocation9 + $0x174] sm:$0xf0]  ;;  %v15179_v28 = vld [vmem:[#allocation9 + $0x270] sm:$0xf]  ;;  %v14932_v14 = vor.u32 %v17002_v53, %v14931_v56 }
 0x6bd   :  { %8726 = vmatpush.bf16.msra.mxu1 %v14848_v51  ;;  %v6619_v51 = vadd.f32 %v17711_v60, %v6605_v30  ;;  %v6521_v54 = vadd.f32 %v17684_v18, %v6507_v19  ;;  %v17242_v60 = vld [vmem:[#allocation11 + $0x4] sm:$0xf]  ;;  %v18049_v18 = vpop.f32.mrf.mxu1  ;;  %v17048_v58 = vld [vmem:[#allocation9 + $0x1f4] sm:$0xf0]  ;;  %v15052_v29 = vor.u32 %v17032_v22, %v15051_v59  ;;  %v15043_v32 = vld [vmem:[#allocation9 + $0x160] sm:$0xf] }
 0x6be   :  { %10020 = vmatpush.bf16.msra.mxu2 %v14908_v39  ;;  %8713 = vmatpush.bf16.msra.mxu0 %v14836_v52  ;;  %v14948_v39 = vor.u32 %v17006_v27, %v14947_v6  ;;  %v14867_v52 = vld [vmem:[#allocation9] sm:$0xf]  ;;  %v17064_v13 = vld [vmem:[#allocation9 + $0x274] sm:$0xf0]  ;;  %v14808_v1 = vor.u32 %v17242_v60, %v14805_v47  ;;  %v17030_v9 = vld [vmem:[#allocation9 + $0x164] sm:$0xf0] }
 0x6bf   :  { %v6633_v63 = vadd.f32 %v17713_v3, %v6619_v51  ;;  %v8318_v26 = vmax.f32 %v6521_v54, 0.0  ;;  %v6661_v3 = vadd.f32 %v17719_v16, %v17717_v61  ;;  %v15180_v15 = vor.u32 %v17064_v13, %v15179_v28  ;;  %v15107_v49 = vld [vmem:[#allocation9 + $0x1e0] sm:$0xf]  ;;  %v17046_v16 = vld [vmem:[#allocation9 + $0x1e4] sm:$0xf0]  ;;  %v18513_v48 = vld [vmem:[#allocation36_spill] sm:$0xff]  ;;  %v18062_v51 = vpop.f32.mrf.mxu2 }
 0x6c0   :  { %10034 = vmatpush.bf16.msra.mxu3 %v14972_v43  ;;  %v14803_v43 = vld [vmem:[#allocation11] sm:$0xf]  ;;  %v17062_v27 = vld [vmem:[#allocation9 + $0x264] sm:$0xf0]  ;;  %v15108_v0 = vor.u32 %v17046_v16, %v15107_v49  ;;  %v17060_v60 = vld [vmem:[#allocation9 + $0x254] sm:$0xf0] }
 0x6c1   :  { %8727 = vmatpush.bf16.msra.mxu1 %v14840_v45  ;;  %v14940_v45 = vor.u32 %v17004_v31, %v14939_v24  ;;  %v14804_v7 = vor.u32 %v17243_v44, %v14803_v43  ;;  %v15171_v6 = vld [vmem:[#allocation9 + $0x260] sm:$0xf]  ;;  %v18055_v30 = vpack.c.bf16 %v8318_v26, %v8302_v33  ;;  %v6675_v19 = vadd.f32 %v17725_v37, %v6661_v3  ;;  %v17078_v55 = vld [vmem:[#allocation9 + $0x2e4] sm:$0xf0]  ;;  %v18068_v37 = vpop.f32.mrf.mxu0  ;;  %v15035_v24 = vld [vmem:[#allocation9 + $0x150] sm:$0xf] }
 0x6c2   :  { %10021 = vmatpush.bf16.msra.mxu2 %v14900_v35  ;;  %8714 = vmatpush.bf16.msra.mxu0 %v14828_v10  ;;  %v16986_v35 = vld [vmem:[#allocation9 + $0x4] sm:$0xf0]  ;;  %v15243_v10 = vld [vmem:[#allocation9 + $0x2f0] sm:$0xf]  ;;  %v15235_v40 = vld [vmem:[#allocation9 + $0x2e0] sm:$0xf]  ;;  %v15172_v38 = vor.u32 %v17062_v27, %v15171_v6 }
 0x6c3   :  { %v14868_v8 = vor.u32 %v16986_v35, %v14867_v52  ;;  %18512 = vst [vmem:[#allocation112_spill] sm:$0xff] %v18055_v30  ;;  %v18514_v36 = vld [vmem:[#allocation37_spill] sm:$0xff]  ;;  %v15099_v31 = vld [vmem:[#allocation9 + $0x1d0] sm:$0xf]  ;;  %v15236_v54 = vor.u32 %v17078_v55, %v15235_v40  ;;  %v18518_v47 = vld [vmem:[#allocation24_spill] sm:$0xff] }
 0x6c4   :  { %10035 = vmatpush.bf16.msra.mxu3 %v14964_v2  ;;  %v15115_v2 = vld [vmem:[#allocation9 + $0x1f0] sm:$0xf]  ;;  %v6885_v4 = vadd.f32 %v18514_v36, %v18513_v48  ;;  %v18516_v33 = vld [vmem:[#allocation45_spill] sm:$0xff]  ;;  %v6689_v52 = vadd.f32 %v18518_v47, %v6675_v19  ;;  %v18519_v35 = vld [vmem:[#allocation30_spill] sm:$0xff] }
 0x6c5   :  { %8728 = vmatpush.bf16.msra.mxu1 %v14832_v57  ;;  %v17080_v57 = vld [vmem:[#allocation9 + $0x2f4] sm:$0xf0]  ;;  %v18072_v44 = vpop.f32.mrf.mxu1  ;;  %v18520_v53 = vld [vmem:[#allocation38_spill] sm:$0xff]  ;;  %v15027_v13 = vld [vmem:[#allocation9 + $0x140] sm:$0xf] }
 0x6c6   :  { %10022 = vmatpush.bf16.msra.mxu2 %v14892_v17  ;;  %8715 = vmatpush.bf16.msra.mxu0 %v14820_v20  ;;  %v8319_v17 = vmax.f32 %v6633_v63, 0.0  ;;  %v15244_v61 = vor.u32 %v17080_v57, %v15243_v10  ;;  %v8303_v20 = vmax.f32 %v17701_v23, 0.0  ;;  %v18066_v23 = vpop.f32.mrf.mxu3  ;;  %v15227_v63 = vld [vmem:[#allocation9 + $0x2d0] sm:$0xf]  ;;  %v6899_v59 = vadd.f32 %v18520_v53, %v6885_v4  ;;  %v17026_v26 = vld [vmem:[#allocation9 + $0x144] sm:$0xf0] }
 0x6c7   :  { %v15091_v3 = vld [vmem:[#allocation9 + $0x1c0] sm:$0xf]  ;;  %v18523_v10 = vld [vmem:[#allocation47_spill] sm:$0xff]  ;;  %v18083_v49 = vpop.f32.mrf.mxu2  ;;  %v17024_v55 = vld [vmem:[#allocation9 + $0x134] sm:$0xf0] }
 0x6c8   :  { %10036 = vmatpush.bf16.msra.mxu3 %v14956_v21  ;;  %v15116_v21 = vor.u32 %v17048_v58, %v15115_v2  ;;  %v18064_v50 = vpack.c.bf16 %v8319_v17, %v8303_v20  ;;  %v18521_v2 = vld [vmem:[#allocation26_spill] sm:$0xff]  ;;  %v18525_v16 = vld [vmem:[#allocation27_spill] sm:$0xff]  ;;  %v18527_v36 = vld [vmem:[#allocation41_spill] sm:$0xff] }
 0x6c9   :  { %8729 = vmatpush.bf16.msra.mxu1 %v14824_v5  ;;  %v17241_v5 = vld [vmem:[#allocation6] sm:$0xff]  ;;  %v15019_v40 = vld [vmem:[#allocation9 + $0x130] sm:$0xf]  ;;  %v18531_v47 = vld [vmem:[#allocation50_spill] sm:$0xff] }
 0x6ca   :  { %10023 = vmatpush.bf16.msra.mxu2 %v14884_v34  ;;  %8716 = vmatpush.bf16.msra.mxu0 %v14812_v12  ;;  %v6787_v34 = vadd.f32 %v17754_v11, %v6773_v25  ;;  %18515 = vst [vmem:[#allocation36_spill] sm:$0xff] %v18064_v50  ;;  %v17028_v11 = vld [vmem:[#allocation9 + $0x154] sm:$0xf0]  ;;  %v18517_v12 = vld [vmem:[#allocation46_spill] sm:$0xff]  ;;  %v15011_v53 = vld [vmem:[#allocation9 + $0x120] sm:$0xf] }
 0x6cb   :  { %v6997_v43 = vadd.f32 %v18517_v12, %v18516_v33  ;;  %v15036_v22 = vor.u32 %v17028_v11, %v15035_v24  ;;  %v17042_v25 = vld [vmem:[#allocation9 + $0x1c4] sm:$0xf0]  ;;  %v17040_v24 = vld [vmem:[#allocation9 + $0x1b4] sm:$0xf0]  ;;  %v15147_v11 = vld [vmem:[#allocation9 + $0x230] sm:$0xf] }
 0x6cc   :  { %10037 = vmatpush.bf16.msra.mxu3 %v14948_v39  ;;  %v15044_v39 = vor.u32 %v17030_v9, %v15043_v32  ;;  %v6801_v56 = vadd.f32 %v18519_v35, %v6787_v34  ;;  %v18524_v32 = vld [vmem:[#allocation39_spill] sm:$0xff]  ;;  %v15092_v20 = vor.u32 %v17042_v25, %v15091_v3  ;;  %v18526_v34 = vld [vmem:[#allocation33_spill] sm:$0xff]  ;;  %v18529_v33 = vld [vmem:[#allocation28_spill] sm:$0xff] }
 0x6cd   :  { %8730 = vmatpush.bf16.msra.mxu1 %v14816_v42  ;;  %v17044_v42 = vld [vmem:[#allocation9 + $0x1d4] sm:$0xf0]  ;;  %v7011_v57 = vadd.f32 %v18523_v10, %v6997_v43  ;;  %v6913_v9 = vadd.f32 %v18524_v32, %v6899_v59  ;;  %v18092_v43 = vpop.f32.mrf.mxu0  ;;  %v17022_v59 = vld [vmem:[#allocation9 + $0x124] sm:$0xf0]  ;;  %v18533_v3 = vld [vmem:[#allocation25_spill] sm:$0xff] }
 0x6ce   :  { %10024 = vmatpush.bf16.msra.mxu2 %v14876_v46  ;;  %8717 = vmatpush.bf16.msra.mxu0 %v14804_v7  ;;  %v15163_v46 = vld [vmem:[#allocation9 + $0x250] sm:$0xf]  ;;  %v6703_v7 = vadd.f32 %v18521_v2, %v6689_v52  ;;  %v15100_v58 = vor.u32 %v17044_v42, %v15099_v31  ;;  %v18086_v27 = vpop.f32.mrf.mxu3  ;;  %v17056_v31 = vld [vmem:[#allocation9 + $0x234] sm:$0xf0]  ;;  %v18532_v2 = vld [vmem:[#allocation42_spill] sm:$0xff] }
 0x6cf   :  { %v15164_v28 = vor.u32 %v17060_v60, %v15163_v46  ;;  %v6927_v4 = vadd.f32 %v18527_v36, %v6913_v9  ;;  %v17072_v42 = vld [vmem:[#allocation9 + $0x2b4] sm:$0xf0]  ;;  %v18530_v46 = vld [vmem:[#allocation34_spill] sm:$0xff]  ;;  %v18535_v25 = vld [vmem:[#allocation35_spill] sm:$0xff]  ;;  %v15012_v9 = vor.u32 %v17022_v59, %v15011_v53 }
 0x6d0   :  { %10038 = vmatpush.bf16.msra.mxu3 %v14940_v45  ;;  %v17076_v45 = vld [vmem:[#allocation9 + $0x2d4] sm:$0xf0]  ;;  %v6717_v6 = vadd.f32 %v18525_v16, %v6703_v7  ;;  %v15131_v36 = vld [vmem:[#allocation9 + $0x210] sm:$0xf] }
 0x6d1   :  { %8731 = vmatpush.bf16.msra.mxu1 %v14808_v1  ;;  %8718 = vmatmul.bf16.vlgmr.msra.gmra.mxu0 %v17241_v5  ;;  %v18522_v1 = vld [vmem:[#allocation32_spill] sm:$0xff]  ;;  %v15228_v17 = vor.u32 %v17076_v45, %v15227_v63  ;;  %v18096_v63 = vpop.f32.mrf.mxu1  ;;  %v15020_v45 = vor.u32 %v17024_v55, %v15019_v40  ;;  %v6941_v7 = vadd.f32 %v18532_v2, %v6927_v4  ;;  %v15059_v2 = vld [vmem:[#allocation9 + $0x180] sm:$0xf] }
 0x6d2   :  { %10025 = vmatpush.bf16.msra.mxu2 %v14868_v8  ;;  %10046 = vmatpush.bf16.msrb.mxu0 %v15052_v29  ;;  %v6815_v8 = vadd.f32 %v18522_v1, %v6801_v56  ;;  %v17058_v29 = vld [vmem:[#allocation9 + $0x244] sm:$0xf0]  ;;  %v6731_v12 = vadd.f32 %v18529_v33, %v6717_v6  ;;  %v15148_v56 = vor.u32 %v17056_v31, %v15147_v11  ;;  %v8304_v1 = vmax.f32 %v18533_v3, 0.0  ;;  %v15003_v6 = vld [vmem:[#allocation9 + $0x110] sm:$0xf]  ;;  %v18538_v40 = vld [vmem:[#allocation52_spill] sm:$0xff] }
 0x6d3   :  { %v17052_v4 = vld [vmem:[#allocation9 + $0x214] sm:$0xf0]  ;;  %v15195_v11 = vld [vmem:[#allocation9 + $0x290] sm:$0xf]  ;;  %v15491_v3 = vld [vmem:[#allocation9 + $0x4e0] sm:$0xf] }
 0x6d4   :  { %10039 = vmatpush.bf16.msra.mxu3 %v14932_v14  ;;  %8732 = vmatmul.bf16.vlgmr.msra.gmra.mxu1 %v17241_v5  ;;  %v15155_v14 = vld [vmem:[#allocation9 + $0x240] sm:$0xf]  ;;  %v15083_v5 = vld [vmem:[#allocation9 + $0x1b0] sm:$0xf]  ;;  %v6829_v48 = vadd.f32 %v18526_v34, %v6815_v8  ;;  %v17068_v31 = vld [vmem:[#allocation9 + $0x294] sm:$0xf0] }
 0x6d5   :  { %10060 = vmatpush.bf16.msrb.mxu1 %v15116_v21  ;;  %10026 = vmatmul.bf16.vlgmr.msra.gmra.mxu2 %v18055_v30  ;;  %v15219_v21 = vld [vmem:[#allocation9 + $0x2c0] sm:$0xf]  ;;  %v15156_v19 = vor.u32 %v17058_v29, %v15155_v14  ;;  %v15084_v35 = vor.u32 %v17040_v24, %v15083_v5  ;;  %v18536_v29 = vld [vmem:[#allocation43_spill] sm:$0xff]  ;;  %v18109_v5 = vpop.f32.mrf.mxu2  ;;  %v18120_v53 = vpop.f32.mrf.mxu0 }
 0x6d6   :  { %10074 = vmatpush.bf16.msrb.mxu2 %v15180_v15  ;;  %10047 = vmatpush.bf16.msrb.mxu0 %v15044_v39  ;;  %v17074_v15 = vld [vmem:[#allocation9 + $0x2c4] sm:$0xf0]  ;;  %v18528_v39 = vld [vmem:[#allocation48_spill] sm:$0xff]  ;;  %v6843_v60 = vadd.f32 %v18530_v46, %v6829_v48  ;;  %v18534_v8 = vld [vmem:[#allocation29_spill] sm:$0xff]  ;;  %v18113_v24 = vpop.f32.mrf.mxu3 }
 0x6d7   :  { %10040 = vmatmul.bf16.vlgmr.msra.gmra.mxu3 %v18064_v50  ;;  %v18101_v10 = vadd.f32 %v18534_v8, %v6731_v12  ;;  %v17036_v48 = vld [vmem:[#allocation9 + $0x194] sm:$0xf0]  ;;  %v15196_v8 = vor.u32 %v17068_v31, %v15195_v11  ;;  %v15627_v50 = vld [vmem:[#allocation9 + $0x5f0] sm:$0xf] }
 0x6d8   :  { %10088 = vmatpush.bf16.msrb.mxu3 %v15244_v61  ;;  %v15028_v61 = vor.u32 %v17026_v26, %v15027_v13  ;;  %v15139_v13 = vld [vmem:[#allocation9 + $0x220] sm:$0xf]  ;;  %v17054_v26 = vld [vmem:[#allocation9 + $0x224] sm:$0xf0]  ;;  %v18104_v14 = vadd.f32 %v18535_v25, %v6843_v60  ;;  %v18540_v12 = vld [vmem:[#allocation40_spill] sm:$0xff] }
 0x6d9   :  { %10061 = vmatpush.bf16.msrb.mxu1 %v15108_v0  ;;  %v7025_v0 = vadd.f32 %v18528_v39, %v7011_v57  ;;  %v15203_v57 = vld [vmem:[#allocation9 + $0x2a0] sm:$0xf]  ;;  %v15140_v16 = vor.u32 %v17054_v26, %v15139_v13  ;;  %v8320_v39 = vmax.f32 %v18101_v10, 0.0  ;;  %v18125_v26 = vpop.f32.mrf.mxu1  ;;  %v17050_v10 = vld [vmem:[#allocation9 + $0x204] sm:$0xf0] }
 0x6da   :  { %10075 = vmatpush.bf16.msrb.mxu2 %v15172_v38  ;;  %10048 = vmatpush.bf16.msrb.mxu0 %v15036_v22  ;;  %v15220_v38 = vor.u32 %v17074_v15, %v15219_v21  ;;  %v15075_v22 = vld [vmem:[#allocation9 + $0x1a0] sm:$0xf]  ;;  %v6955_v21 = vadd.f32 %v18536_v29, %v6941_v7  ;;  %v18537_v15 = vld [vmem:[#allocation51_spill] sm:$0xff]  ;;  %v8321_v33 = vmax.f32 %v18104_v14, 0.0  ;;  %v17034_v7 = vld [vmem:[#allocation9 + $0x184] sm:$0xf0] }
 0x6db   :  { %v7039_v52 = vadd.f32 %v18531_v47, %v7025_v0  ;;  %v18539_v0 = vld [vmem:[#allocation31_spill] sm:$0xff]  ;;  %v14995_v47 = vld [vmem:[#allocation9 + $0x100] sm:$0xf]  ;;  %v17096_v14 = vld [vmem:[#allocation9 + $0x374] sm:$0xf0] }
 0x6dc   :  { %10089 = vmatpush.bf16.msrb.mxu3 %v15236_v54  ;;  %v15211_v54 = vld [vmem:[#allocation9 + $0x2b0] sm:$0xf] }
 0x6dd   :  { %10062 = vmatpush.bf16.msrb.mxu1 %v15100_v58  ;;  %v15212_v58 = vor.u32 %v17072_v42, %v15211_v54  ;;  %v7053_v32 = vadd.f32 %v18537_v15, %v7039_v52  ;;  %v8306_v54 = vmax.f32 %v18540_v12, 0.0  ;;  %v18541_v42 = vld [vmem:[#allocation44_spill] sm:$0xff]  ;;  %v17018_v52 = vld [vmem:[#allocation9 + $0x104] sm:$0xf0]  ;;  %v15307_v25 = vld [vmem:[#allocation9 + $0x370] sm:$0xf] }
 0x6de   :  { %10076 = vmatpush.bf16.msrb.mxu2 %v15164_v28  ;;  %10049 = vmatpush.bf16.msrb.mxu0 %v15028_v61  ;;  %v17038_v28 = vld [vmem:[#allocation9 + $0x1a4] sm:$0xf0]  ;;  %v6969_v46 = vadd.f32 %v18541_v42, %v6955_v21  ;;  %v15371_v29 = vld [vmem:[#allocation9 + $0x3f0] sm:$0xf]  ;;  %v14996_v21 = vor.u32 %v17018_v52, %v14995_v47  ;;  %v17112_v15 = vld [vmem:[#allocation9 + $0x3f4] sm:$0xf0]  ;;  %v15308_v11 = vor.u32 %v17096_v14, %v15307_v25  ;;  %v18135_v52 = vpop.f32.mrf.mxu2 }
 0x6df   :  { %v15076_v61 = vor.u32 %v17038_v28, %v15075_v22  ;;  %v7067_v55 = vadd.f32 %v18538_v40, %v7053_v32  ;;  %v15132_v22 = vor.u32 %v17052_v4, %v15131_v36  ;;  %v18544_v28 = vld [vmem:[#allocation53_spill] sm:$0xff]  ;;  %v15435_v32 = vld [vmem:[#allocation9 + $0x470] sm:$0xf]  ;;  %v18547_v36 = vld [vmem:[#allocation64_spill] sm:$0xff]  ;;  %v15372_v31 = vor.u32 %v17112_v15, %v15371_v29  ;;  %v18150_v29 = vpop.f32.mrf.mxu0 }
 0x6e0   :  { %10090 = vmatpush.bf16.msrb.mxu3 %v15228_v17  ;;  %v17070_v17 = vld [vmem:[#allocation9 + $0x2a4] sm:$0xf0]  ;;  %v15499_v40 = vld [vmem:[#allocation9 + $0x4f0] sm:$0xf]  ;;  %v15299_v42 = vld [vmem:[#allocation9 + $0x360] sm:$0xf]  ;;  %v18133_v47 = vpack.c.bf16 %v8320_v39, %v8304_v1 }
 0x6e1   :  { %10063 = vmatpush.bf16.msrb.mxu1 %v15092_v20  ;;  %v17020_v20 = vld [vmem:[#allocation9 + $0x114] sm:$0xf0]  ;;  %v15204_v34 = vor.u32 %v17070_v17, %v15203_v57  ;;  %v18123_v13 = vadd.f32 %v18544_v28, %v7067_v55  ;;  %v15187_v57 = vld [vmem:[#allocation9 + $0x280] sm:$0xf]  ;;  %v17066_v17 = vld [vmem:[#allocation9 + $0x284] sm:$0xf0]  ;;  %v18142_v28 = vpop.f32.mrf.mxu3 }
 0x6e2   :  { %10077 = vmatpush.bf16.msrb.mxu2 %v15156_v19  ;;  %10050 = vmatpush.bf16.msrb.mxu0 %v15020_v45  ;;  %v15067_v19 = vld [vmem:[#allocation9 + $0x190] sm:$0xf]  ;;  %v15004_v60 = vor.u32 %v17020_v20, %v15003_v6  ;;  %v18542_v45 = vld [vmem:[#allocation54_spill] sm:$0xff]  ;;  %v15060_v20 = vor.u32 %v17034_v7, %v15059_v2  ;;  %v17144_v55 = vld [vmem:[#allocation9 + $0x4f4] sm:$0xf0]  ;;  %18548 = vst [vmem:[#allocation37_spill] sm:$0xff] %v18133_v47 }
 0x6e3   :  { %v15068_v59 = vor.u32 %v17036_v48, %v15067_v19  ;;  %v18546_v48 = vld [vmem:[#allocation63_spill] sm:$0xff]  ;;  %v18551_v7 = vld [vmem:[#allocation57_spill] sm:$0xff]  ;;  %v17142_v1 = vld [vmem:[#allocation9 + $0x4e4] sm:$0xf0] }
 0x6e4   :  { %10091 = vmatpush.bf16.msrb.mxu3 %v15220_v38  ;;  %v8305_v38 = vmax.f32 %v18539_v0, 0.0  ;;  %v7221_v4 = vadd.f32 %v18547_v36, %v18546_v48  ;;  %v15188_v0 = vor.u32 %v17066_v17, %v15187_v57  ;;  %v18552_v39 = vld [vmem:[#allocation49_spill] sm:$0xff]  ;;  %v18554_v57 = vld [vmem:[#allocation72_spill] sm:$0xff]  ;;  %v18559_v48 = vld [vmem:[#allocation59_spill] sm:$0xff] }
 0x6e5   :  { %10064 = vmatpush.bf16.msrb.mxu1 %v15084_v35  ;;  %v18543_v35 = vld [vmem:[#allocation55_spill] sm:$0xff]  ;;  %v18555_v17 = vld [vmem:[#allocation73_spill] sm:$0xff] }
 0x6e6   :  { %10078 = vmatpush.bf16.msrb.mxu2 %v15148_v56  ;;  %10051 = vmatpush.bf16.msrb.mxu0 %v15012_v9  ;;  %v7109_v56 = vadd.f32 %v18543_v35, %v18542_v45  ;;  %v17128_v9 = vld [vmem:[#allocation9 + $0x474] sm:$0xf0]  ;;  %v15500_v45 = vor.u32 %v17144_v55, %v15499_v40  ;;  %v17110_v35 = vld [vmem:[#allocation9 + $0x3e4] sm:$0xf0]  ;;  %v7333_v25 = vadd.f32 %v18555_v17, %v18554_v57  ;;  %v15419_v40 = vld [vmem:[#allocation9 + $0x450] sm:$0xf] }
 0x6e7   :  { %v15436_v12 = vor.u32 %v17128_v9, %v15435_v32  ;;  %v15291_v32 = vld [vmem:[#allocation9 + $0x350] sm:$0xf]  ;;  %v17092_v9 = vld [vmem:[#allocation9 + $0x354] sm:$0xf0]  ;;  %v17138_v57 = vld [vmem:[#allocation9 + $0x4c4] sm:$0xf0] }
 0x6e8   :  { %10092 = vmatpush.bf16.msrb.mxu3 %v15212_v58  ;;  %v15123_v58 = vld [vmem:[#allocation9 + $0x200] sm:$0xf]  ;;  %v17124_v55 = vld [vmem:[#allocation9 + $0x454] sm:$0xf0] }
 0x6e9   :  { %10065 = vmatpush.bf16.msrb.mxu1 %v15076_v61  ;;  %v8322_v61 = vmax.f32 %v6969_v46, 0.0  ;;  %v15124_v19 = vor.u32 %v17050_v10, %v15123_v58  ;;  %v17094_v46 = vld [vmem:[#allocation9 + $0x364] sm:$0xf0]  ;;  %v18564_v17 = vld [vmem:[#allocation60_spill] sm:$0xff] }
 0x6ea   :  { %10079 = vmatpush.bf16.msrb.mxu2 %v15140_v16  ;;  %10052 = vmatpush.bf16.msrb.mxu0 %v15004_v60  ;;  %v18545_v16 = vld [vmem:[#allocation56_spill] sm:$0xff]  ;;  %v15363_v60 = vld [vmem:[#allocation9 + $0x3e0] sm:$0xf] }
 0x6eb   :  { %v7123_v6 = vadd.f32 %v18545_v16, %v7109_v56  ;;  %v15427_v56 = vld [vmem:[#allocation9 + $0x460] sm:$0xf]  ;;  %v18139_v2 = vpack.c.bf16 %v8322_v61, %v8306_v54  ;;  %v18557_v54 = vld [vmem:[#allocation82_spill] sm:$0xff]  ;;  %v15355_v61 = vld [vmem:[#allocation9 + $0x3d0] sm:$0xf] }
 0x6ec   :  { %10093 = vmatpush.bf16.msrb.mxu3 %v15204_v34  ;;  %v8323_v34 = vmax.f32 %v18123_v13, 0.0  ;;  %v8307_v13 = vmax.f32 %v18552_v39, 0.0  ;;  %v17106_v39 = vld [vmem:[#allocation9 + $0x3c4] sm:$0xf0] }
 0x6ed   :  { %10066 = vmatpush.bf16.msrb.mxu1 %v15068_v59  ;;  %v17126_v59 = vld [vmem:[#allocation9 + $0x464] sm:$0xf0]  ;;  %18550 = vst [vmem:[#allocation46_spill] sm:$0xff] %v18139_v2  ;;  %v7137_v58 = vadd.f32 %v18551_v7, %v7123_v6  ;;  %v18154_v6 = vpop.f32.mrf.mxu1  ;;  %v15347_v7 = vld [vmem:[#allocation9 + $0x3c0] sm:$0xf] }
 0x6ee   :  { %10080 = vmatpush.bf16.msrb.mxu2 %v15132_v22  ;;  %10053 = vmatpush.bf16.msrb.mxu0 %v14996_v21  ;;  %v18137_v22 = vpack.c.bf16 %v8321_v33, %v8305_v38  ;;  %v15300_v38 = vor.u32 %v17094_v46, %v15299_v42  ;;  %v18556_v33 = vld [vmem:[#allocation81_spill] sm:$0xff]  ;;  %v15364_v21 = vor.u32 %v17110_v35, %v15363_v60  ;;  %v18562_v46 = vld [vmem:[#allocation83_spill] sm:$0xff] }
 0x6ef   :  { %v7445_v14 = vadd.f32 %v18557_v54, %v18556_v33  ;;  %v15428_v15 = vor.u32 %v17126_v59, %v15427_v56  ;;  %v18152_v16 = vpack.c.bf16 %v8323_v34, %v8307_v13  ;;  %v7151_v36 = vadd.f32 %v18559_v48, %v7137_v58  ;;  %v15283_v56 = vld [vmem:[#allocation9 + $0x340] sm:$0xf]  ;;  %v17090_v59 = vld [vmem:[#allocation9 + $0x344] sm:$0xf0]  ;;  %v18563_v58 = vld [vmem:[#allocation68_spill] sm:$0xff]  ;;  %v18167_v54 = vpop.f32.mrf.mxu2 }
 0x6f0   :  { %10094 = vmatpush.bf16.msrb.mxu3 %v15196_v8  ;;  %18549 = vst [vmem:[#allocation45_spill] sm:$0xff] %v18137_v22  ;;  %v18553_v8 = vld [vmem:[#allocation65_spill] sm:$0xff]  ;;  %v15292_v42 = vor.u32 %v17092_v9, %v15291_v32  ;;  %v15420_v35 = vor.u32 %v17124_v55, %v15419_v40  ;;  %v18170_v32 = vpop.f32.mrf.mxu3  ;;  %v18172_v9 = vpop.f32.mrf.mxu0  ;;  %v17088_v40 = vld [vmem:[#allocation9 + $0x334] sm:$0xf0]  ;;  %v15339_v55 = vld [vmem:[#allocation9 + $0x3b0] sm:$0xf] }
 0x6f1   :  { %10067 = vmatpush.bf16.msrb.mxu1 %v15060_v20  ;;  %v7235_v10 = vadd.f32 %v18553_v8, %v7221_v4  ;;  %18558 = vst [vmem:[#allocation24_spill] sm:$0xff] %v18152_v16  ;;  %10054 = vmatmul.bf16.vlgmr.msrb.gmra.mxu0 %v18133_v47  ;;  %v15492_v20 = vor.u32 %v17142_v1, %v15491_v3  ;;  %v15483_v4 = vld [vmem:[#allocation9 + $0x4d0] sm:$0xf]  ;;  %v15411_v13 = vld [vmem:[#allocation9 + $0x440] sm:$0xf] }
 0x6f2   :  { %10081 = vmatpush.bf16.msrb.mxu2 %v15124_v19  ;;  %10102 = vmatpush.bf16.msra.mxu0 %v15308_v11  ;;  %v17108_v19 = vld [vmem:[#allocation9 + $0x3d4] sm:$0xf0]  ;;  %v18560_v11 = vld [vmem:[#allocation66_spill] sm:$0xff]  ;;  %v7459_v60 = vadd.f32 %v18562_v46, %v7445_v14  ;;  %v15284_v14 = vor.u32 %v17090_v59, %v15283_v56  ;;  %v18567_v48 = vld [vmem:[#allocation69_spill] sm:$0xff] }
 0x6f3   :  { %v7249_v34 = vadd.f32 %v18560_v11, %v7235_v10  ;;  %v17122_v8 = vld [vmem:[#allocation9 + $0x444] sm:$0xf0]  ;;  %v15475_v10 = vld [vmem:[#allocation9 + $0x4c0] sm:$0xf]  ;;  %v15467_v56 = vld [vmem:[#allocation9 + $0x4b0] sm:$0xf] }
 0x6f4   :  { %10095 = vmatpush.bf16.msrb.mxu3 %v15188_v0  ;;  %10068 = vmatmul.bf16.vlgmr.msrb.gmra.mxu1 %v18137_v22  ;;  %v17140_v0 = vld [vmem:[#allocation9 + $0x4d4] sm:$0xf0]  ;;  %v18569_v46 = vld [vmem:[#allocation61_spill] sm:$0xff]  ;;  %v18586_v22 = vld [vmem:[#allocation91_spill] sm:$0xff] }
 0x6f5   :  { %10116 = vmatpush.bf16.msra.mxu1 %v15372_v31  ;;  %10082 = vmatmul.bf16.vlgmr.msrb.gmra.mxu2 %v18139_v2  ;;  %v18561_v31 = vld [vmem:[#allocation74_spill] sm:$0xff]  ;;  %v7263_v3 = vadd.f32 %v18563_v58, %v7249_v34  ;;  %v15484_v1 = vor.u32 %v17140_v0, %v15483_v4  ;;  %v18568_v4 = vld [vmem:[#allocation77_spill] sm:$0xff]  ;;  %v18176_v11 = vpop.f32.mrf.mxu1  ;;  %v15476_v34 = vor.u32 %v17138_v57, %v15475_v10  ;;  %v17136_v59 = vld [vmem:[#allocation9 + $0x4b4] sm:$0xf0] }
 0x6f6   :  { %10130 = vmatpush.bf16.msra.mxu2 %v15436_v12  ;;  %v7347_v12 = vadd.f32 %v18561_v31, %v7333_v25  ;;  %10103 = vmatpush.bf16.msra.mxu0 %v15300_v38  ;;  %v7165_v25 = vadd.f32 %v18564_v17, %v7151_v36  ;;  %v18565_v38 = vld [vmem:[#allocation75_spill] sm:$0xff]  ;;  %v17104_v31 = vld [vmem:[#allocation9 + $0x3b4] sm:$0xf0]  ;;  %v15331_v10 = vld [vmem:[#allocation9 + $0x3a0] sm:$0xf] }
 0x6f7   :  { %10096 = vmatmul.bf16.vlgmr.msrb.gmra.mxu3 %v18152_v16  ;;  %v7277_v36 = vadd.f32 %v18567_v48, %v7263_v3  ;;  %v15340_v3 = vor.u32 %v17104_v31, %v15339_v55  ;;  %v18572_v57 = vld [vmem:[#allocation78_spill] sm:$0xff]  ;;  %v18576_v55 = vld [vmem:[#allocation71_spill] sm:$0xff]  ;;  %v15379_v2 = vld [vmem:[#allocation9 + $0x400] sm:$0xf] }
 0x6f8   :  { %10144 = vmatpush.bf16.msra.mxu3 %v15500_v45  ;;  %v15356_v45 = vor.u32 %v17108_v19, %v15355_v61  ;;  %v7361_v33 = vadd.f32 %v18565_v38, %v7347_v12  ;;  %v15348_v61 = vor.u32 %v17106_v39, %v15347_v7  ;;  %v15275_v19 = vld [vmem:[#allocation9 + $0x330] sm:$0xf]  ;;  %v18571_v7 = vld [vmem:[#allocation70_spill] sm:$0xff]  ;;  %v15468_v38 = vor.u32 %v17136_v59, %v15467_v56  ;;  %v17084_v59 = vld [vmem:[#allocation9 + $0x314] sm:$0xf0] }
 0x6f9   :  { %10117 = vmatpush.bf16.msra.mxu1 %v15364_v21  ;;  %v18566_v21 = vld [vmem:[#allocation84_spill] sm:$0xff]  ;;  %v15403_v12 = vld [vmem:[#allocation9 + $0x430] sm:$0xf]  ;;  %v7291_v58 = vadd.f32 %v18571_v7, %v7277_v36  ;;  %v15276_v39 = vor.u32 %v17088_v40, %v15275_v19  ;;  %v15459_v19 = vld [vmem:[#allocation9 + $0x4a0] sm:$0xf] }
 0x6fa   :  { %10131 = vmatpush.bf16.msra.mxu2 %v15428_v15  ;;  %10104 = vmatpush.bf16.msra.mxu0 %v15292_v42  ;;  %v7473_v15 = vadd.f32 %v18566_v21, %v7459_v60  ;;  %v7375_v0 = vadd.f32 %v18568_v4, %v7361_v33  ;;  %v17120_v42 = vld [vmem:[#allocation9 + $0x434] sm:$0xf0]  ;;  %v7179_v60 = vadd.f32 %v18569_v46, %v7165_v25  ;;  %v17102_v25 = vld [vmem:[#allocation9 + $0x3a4] sm:$0xf0]  ;;  %v15395_v33 = vld [vmem:[#allocation9 + $0x420] sm:$0xf] }
 0x6fb   :  { %v17118_v21 = vld [vmem:[#allocation9 + $0x424] sm:$0xf0]  ;;  %v18574_v36 = vld [vmem:[#allocation87_spill] sm:$0xff]  ;;  %v18188_v4 = vadd.f32 %v18576_v55, %v7291_v58  ;;  %v17132_v55 = vld [vmem:[#allocation9 + $0x494] sm:$0xf0] }
 0x6fc   :  { %10145 = vmatpush.bf16.msra.mxu3 %v15492_v20  ;;  %v15412_v20 = vor.u32 %v17122_v8, %v15411_v13  ;;  %v15404_v13 = vor.u32 %v17120_v42, %v15403_v12  ;;  %v15267_v8 = vld [vmem:[#allocation9 + $0x320] sm:$0xf]  ;;  %v7389_v17 = vadd.f32 %v18572_v57, %v7375_v0  ;;  %v18577_v31 = vld [vmem:[#allocation79_spill] sm:$0xff]  ;;  %v18191_v0 = vpop.f32.mrf.mxu2  ;;  %v18579_v42 = vld [vmem:[#allocation88_spill] sm:$0xff] }
 0x6fd   :  { %10118 = vmatpush.bf16.msra.mxu1 %v15356_v45  ;;  %v18570_v45 = vld [vmem:[#allocation86_spill] sm:$0xff]  ;;  %18578 = vst [vmem:[#allocation30_spill] sm:$0xff] %v18191_v0  ;;  %v15259_v56 = vld [vmem:[#allocation9 + $0x310] sm:$0xf]  ;;  %v17100_v57 = vld [vmem:[#allocation9 + $0x394] sm:$0xf0] }
 0x6fe   :  { %10132 = vmatpush.bf16.msra.mxu2 %v15420_v35  ;;  %v7487_v35 = vadd.f32 %v18570_v45, %v7473_v15  ;;  %10105 = vmatpush.bf16.msra.mxu0 %v15284_v14  ;;  %v18573_v15 = vld [vmem:[#allocation62_spill] sm:$0xff]  ;;  %v7403_v12 = vadd.f32 %v18577_v31, %v7389_v17  ;;  %v18194_v45 = vpop.f32.mrf.mxu3  ;;  %v15323_v7 = vld [vmem:[#allocation9 + $0x390] sm:$0xf]  ;;  %v17116_v17 = vld [vmem:[#allocation9 + $0x414] sm:$0xf0] }
 0x6ff   :  { %v18183_v48 = vadd.f32 %v18573_v15, %v7179_v60  ;;  %18580 = vst [vmem:[#allocation38_spill] sm:$0xff] %v18194_v45  ;;  %v15332_v60 = vor.u32 %v17102_v25, %v15331_v10  ;;  %v15387_v15 = vld [vmem:[#allocation9 + $0x410] sm:$0xf]  ;;  %v18583_v25 = vld [vmem:[#allocation80_spill] sm:$0xff]  ;;  %v18584_v31 = vld [vmem:[#allocation89_spill] sm:$0xff] }
 0x700   :  { %10146 = vmatpush.bf16.msra.mxu3 %v15484_v1  ;;  %v17086_v1 = vld [vmem:[#allocation9 + $0x324] sm:$0xf0]  ;;  %v7501_v14 = vadd.f32 %v18574_v36, %v7487_v35  ;;  %v15396_v35 = vor.u32 %v17118_v21, %v15395_v33  ;;  %v7417_v33 = vadd.f32 %v18583_v25, %v7403_v12  ;;  %v18203_v21 = vpop.f32.mrf.mxu1  ;;  %v15315_v40 = vld [vmem:[#allocation9 + $0x380] sm:$0xf] }
 0x701   :  { %10119 = vmatpush.bf16.msra.mxu1 %v15348_v61  ;;  %v17134_v61 = vld [vmem:[#allocation9 + $0x4a4] sm:$0xf0]  ;;  %v8324_v36 = vmax.f32 %v18183_v48, 0.0  ;;  %v15443_v47 = vld [vmem:[#allocation9 + $0x480] sm:$0xf] }
 0x702   :  { %10133 = vmatpush.bf16.msra.mxu2 %v15412_v20  ;;  %v18575_v20 = vld [vmem:[#allocation58_spill] sm:$0xff]  ;;  %10106 = vmatpush.bf16.msra.mxu0 %v15276_v39  ;;  %v7515_v46 = vadd.f32 %v18579_v42, %v7501_v14  ;;  %v15460_v58 = vor.u32 %v17134_v61, %v15459_v19  ;;  %v18581_v39 = vld [vmem:[#allocation67_spill] sm:$0xff]  ;;  %v15251_v19 = vld [vmem:[#allocation9 + $0x300] sm:$0xf]  ;;  %v15324_v42 = vor.u32 %v17100_v57, %v15323_v7  ;;  %v8326_v57 = vmax.f32 %v7417_v33, 0.0 }
 0x703   :  { %v15451_v14 = vld [vmem:[#allocation9 + $0x490] sm:$0xf]  ;;  %v17082_v61 = vld [vmem:[#allocation9 + $0x304] sm:$0xf0]  ;;  %v17192_v7 = vld [vmem:[#allocation9 + $0x674] sm:$0xf0] }
 0x704   :  { %10147 = vmatpush.bf16.msra.mxu3 %v15476_v34  ;;  %v15268_v34 = vor.u32 %v17086_v1, %v15267_v8  ;;  %v8309_v8 = vmax.f32 %v18581_v39, 0.0  ;;  %v18198_v1 = vpop.f32.mrf.mxu0  ;;  %v7529_v48 = vadd.f32 %v18584_v31, %v7515_v46  ;;  %v15388_v39 = vor.u32 %v17116_v17, %v15387_v15  ;;  %v17098_v16 = vld [vmem:[#allocation9 + $0x384] sm:$0xf0]  ;;  %v18210_v45 = vpop.f32.mrf.mxu2 }
 0x705   :  { %10120 = vmatpush.bf16.msra.mxu1 %v15340_v3  ;;  %v8325_v3 = vmax.f32 %v18188_v4, 0.0  ;;  %v18585_v4 = vld [vmem:[#allocation90_spill] sm:$0xff]  ;;  %v15452_v12 = vor.u32 %v17132_v55, %v15451_v14  ;;  %v15252_v46 = vor.u32 %v17082_v61, %v15251_v19  ;;  %v15316_v17 = vor.u32 %v17098_v16, %v15315_v40  ;;  %v18587_v14 = vld [vmem:[#allocation85_spill] sm:$0xff] }
 0x706   :  { %10134 = vmatpush.bf16.msra.mxu2 %v15404_v13  ;;  %v18582_v13 = vld [vmem:[#allocation76_spill] sm:$0xff]  ;;  %10107 = vmatpush.bf16.msra.mxu0 %v15268_v34  ;;  %v17114_v25 = vld [vmem:[#allocation9 + $0x404] sm:$0xf0]  ;;  %v8327_v15 = vmax.f32 %v7529_v48, 0.0  ;;  %v8311_v55 = vmax.f32 %v18587_v14, 0.0  ;;  %v18212_v61 = vpop.f32.mrf.mxu3 }
 0x707   :  { %v8310_v10 = vmax.f32 %v18582_v13, 0.0  ;;  %v7557_v13 = vadd.f32 %v18586_v22, %v18585_v4  ;;  %v17130_v34 = vld [vmem:[#allocation9 + $0x484] sm:$0xf0]  ;;  %v15380_v31 = vor.u32 %v17114_v25, %v15379_v2  ;;  %v15755_v22 = vld [vmem:[#allocation9 + $0x6f0] sm:$0xf]  ;;  %v18588_v4 = vld [vmem:[#allocation92_spill] sm:$0xff] }
 0x708   :  { %10148 = vmatpush.bf16.msra.mxu3 %v15468_v38  ;;  %v15260_v38 = vor.u32 %v17084_v59, %v15259_v56  ;;  %v15563_v56 = vld [vmem:[#allocation9 + $0x570] sm:$0xf]  ;;  %v17160_v59 = vld [vmem:[#allocation9 + $0x574] sm:$0xf0]  ;;  %v15555_v48 = vld [vmem:[#allocation9 + $0x560] sm:$0xf] }
 0x709   :  { %10121 = vmatpush.bf16.msra.mxu1 %v15332_v60  ;;  %v17176_v60 = vld [vmem:[#allocation9 + $0x5f4] sm:$0xf0]  ;;  %v7571_v30 = vadd.f32 %v18588_v4, %v7557_v13  ;;  %v15564_v19 = vor.u32 %v17160_v59, %v15563_v56  ;;  %v18589_v2 = vmax.f32 %v18575_v20, 0.0  ;;  %v17174_v25 = vld [vmem:[#allocation9 + $0x5e4] sm:$0xf0]  ;;  %v18218_v4 = vpack.c.bf16 %v8325_v3, %v8309_v8  ;;  %v18590_v20 = vld [vmem:[#allocation93_spill] sm:$0xff] }
 0x70a   :  { %10135 = vmatpush.bf16.msra.mxu2 %v15396_v35  ;;  %10108 = vmatpush.bf16.msra.mxu0 %v15260_v38  ;;  %v15691_v35 = vld [vmem:[#allocation9 + $0x670] sm:$0xf]  ;;  %v15444_v38 = vor.u32 %v17130_v34, %v15443_v47  ;;  %v15628_v0 = vor.u32 %v17176_v60, %v15627_v50  ;;  %v15683_v13 = vld [vmem:[#allocation9 + $0x660] sm:$0xf]  ;;  %v17190_v14 = vld [vmem:[#allocation9 + $0x664] sm:$0xf0]  ;;  %v18220_v47 = vpack.c.bf16 %v8326_v57, %v8310_v10 }
 0x70b   :  { %v15692_v33 = vor.u32 %v17192_v7, %v15691_v35  ;;  %v18216_v16 = vpack.c.bf16 %v8324_v36, %v18589_v2  ;;  %v15747_v34 = vld [vmem:[#allocation9 + $0x6e0] sm:$0xf]  ;;  %v17206_v56 = vld [vmem:[#allocation9 + $0x6e4] sm:$0xf0]  ;;  %v7585_v36 = vadd.f32 %v18590_v20, %v7571_v30  ;;  %v18591_v59 = vld [vmem:[#allocation99_spill] sm:$0xff]  ;;  %v18229_v35 = vpop.f32.mrf.mxu1  ;;  %v15684_v57 = vor.u32 %v17190_v14, %v15683_v13 }
 0x70c   :  { %10149 = vmatpush.bf16.msra.mxu3 %v15460_v58  ;;  %v17208_v58 = vld [vmem:[#allocation9 + $0x6f4] sm:$0xf0]  ;;  %v18224_v50 = vpop.f32.mrf.mxu0  ;;  %v7891_v30 = vadd.f32 %v18072_v44, %v18068_v37  ;;  %v15603_v13 = vld [vmem:[#allocation9 + $0x5c0] sm:$0xf] }
 0x70d   :  { %10122 = vmatpush.bf16.msra.mxu1 %v15324_v42  ;;  %v17158_v42 = vld [vmem:[#allocation9 + $0x564] sm:$0xf0]  ;;  %v15756_v40 = vor.u32 %v17208_v58, %v15755_v22  ;;  %v18593_v3 = vld [vmem:[#allocation108_spill] sm:$0xff]  ;;  %v7893_v22 = vadd.f32 %v18096_v63, %v18092_v43  ;;  %v15748_v58 = vor.u32 %v17206_v56, %v15747_v34  ;;  %v18596_v43 = vld [vmem:[#allocation109_spill] sm:$0xff]  ;;  %v18246_v56 = vpop.f32.mrf.mxu2 }
 0x70e   :  { %10136 = vmatpush.bf16.msra.mxu2 %v15388_v39  ;;  %v15619_v39 = vld [vmem:[#allocation9 + $0x5e0] sm:$0xf]  ;;  %10109 = vmatpush.bf16.msra.mxu0 %v15252_v46  ;;  %v18592_v46 = vld [vmem:[#allocation100_spill] sm:$0xff]  ;;  %v15556_v8 = vor.u32 %v17158_v42, %v15555_v48  ;;  %v7781_v10 = vadd.f32 %v18593_v3, %v18007_v41  ;;  %v7905_v14 = vadd.f32 %v18083_v49, %v7891_v30  ;;  %v17202_v3 = vld [vmem:[#allocation9 + $0x6c4] sm:$0xf0] }
 0x70f   :  { %v7669_v60 = vadd.f32 %v18592_v46, %v18591_v59  ;;  %v15620_v7 = vor.u32 %v17174_v25, %v15619_v39  ;;  %v17188_v41 = vld [vmem:[#allocation9 + $0x654] sm:$0xf0]  ;;  %v18595_v42 = vld [vmem:[#allocation101_spill] sm:$0xff]  ;;  %v17154_v25 = vld [vmem:[#allocation9 + $0x544] sm:$0xf0]  ;;  %v7907_v34 = vadd.f32 %v18109_v5, %v7893_v22 }
 0x710   :  { %10150 = vmatpush.bf16.msra.mxu3 %v15452_v12  ;;  %v18222_v12 = vpack.c.bf16 %v8327_v15, %v8311_v55  ;;  %v15547_v15 = vld [vmem:[#allocation9 + $0x550] sm:$0xf]  ;;  %v17172_v55 = vld [vmem:[#allocation9 + $0x5d4] sm:$0xf0]  ;;  %v7795_v63 = vadd.f32 %v18596_v43, %v7781_v10  ;;  %v15667_v59 = vld [vmem:[#allocation9 + $0x640] sm:$0xf] }
 0x711   :  { %10123 = vmatpush.bf16.msra.mxu1 %v15316_v17  ;;  %v17156_v17 = vld [vmem:[#allocation9 + $0x554] sm:$0xf0]  ;;  %10110 = vmatmul.bf16.vlgmr.msra.gmra.mxu0 %v18216_v16  ;;  %v7683_v37 = vadd.f32 %v18595_v42, %v7669_v60  ;;  %v17186_v46 = vld [vmem:[#allocation9 + $0x644] sm:$0xf0]  ;;  %v18248_v60 = vpop.f32.mrf.mxu3 }
 0x712   :  { %10137 = vmatpush.bf16.msra.mxu2 %v15380_v31  ;;  %10158 = vmatpush.bf16.msrb.mxu0 %v15564_v19  ;;  %v15611_v31 = vld [vmem:[#allocation9 + $0x5d0] sm:$0xf]  ;;  %v17204_v19 = vld [vmem:[#allocation9 + $0x6d4] sm:$0xf0]  ;;  %v15548_v44 = vor.u32 %v17156_v17, %v15547_v15  ;;  %v18599_v49 = vld [vmem:[#allocation110_spill] sm:$0xff]  ;;  %v15668_v22 = vor.u32 %v17186_v46, %v15667_v59 }
 0x713   :  { %v15612_v39 = vor.u32 %v17172_v55, %v15611_v31  ;;  %v18597_v10 = vld [vmem:[#allocation96_spill] sm:$0xff]  ;;  %v7809_v31 = vadd.f32 %v18599_v49, %v7795_v63  ;;  %v18602_v59 = vld [vmem:[#allocation105_spill] sm:$0xff] }
 0x714   :  { %10151 = vmatpush.bf16.msra.mxu3 %v15444_v38  ;;  %v15675_v38 = vld [vmem:[#allocation9 + $0x650] sm:$0xf]  ;;  %10124 = vmatmul.bf16.vlgmr.msra.gmra.mxu1 %v18218_v4  ;;  %v18253_v5 = vpop.f32.mrf.mxu0  ;;  %v17152_v55 = vld [vmem:[#allocation9 + $0x534] sm:$0xf0] }
 0x715   :  { %10172 = vmatpush.bf16.msrb.mxu1 %v15628_v0  ;;  %10138 = vmatmul.bf16.vlgmr.msra.gmra.mxu2 %v18220_v47  ;;  %v15739_v0 = vld [vmem:[#allocation9 + $0x6d0] sm:$0xf]  ;;  %v15676_v2 = vor.u32 %v17188_v41, %v15675_v38  ;;  %v18600_v41 = vld [vmem:[#allocation104_spill] sm:$0xff]  ;;  %v7823_v63 = vadd.f32 %v18047_v62, %v7809_v31  ;;  %v18604_v31 = vld [vmem:[#allocation106_spill] sm:$0xff] }
 0x716   :  { %10186 = vmatpush.bf16.msrb.mxu2 %v15692_v33  ;;  %v18594_v33 = vld [vmem:[#allocation95_spill] sm:$0xff]  ;;  %10159 = vmatpush.bf16.msrb.mxu0 %v15556_v8  ;;  %v15740_v20 = vor.u32 %v17204_v19, %v15739_v0  ;;  %v15731_v8 = vld [vmem:[#allocation9 + $0x6c0] sm:$0xf]  ;;  %v7919_v19 = vadd.f32 %v18086_v27, %v7905_v14  ;;  %v17184_v43 = vld [vmem:[#allocation9 + $0x634] sm:$0xf0] }
 0x717   :  { %v7599_v48 = vadd.f32 %v18594_v33, %v7585_v36  ;;  %10152 = vmatmul.bf16.vlgmr.msra.gmra.mxu3 %v18222_v12  ;;  %v17170_v36 = vld [vmem:[#allocation9 + $0x5c4] sm:$0xf0]  ;;  %v15595_v38 = vld [vmem:[#allocation9 + $0x5b0] sm:$0xf]  ;;  %v7921_v33 = vadd.f32 %v18113_v24, %v7907_v34  ;;  %v15732_v42 = vor.u32 %v17202_v3, %v15731_v8  ;;  %v15523_v14 = vld [vmem:[#allocation9 + $0x520] sm:$0xf] }
 0x718   :  { %10200 = vmatpush.bf16.msrb.mxu3 %v15756_v40  ;;  %v15539_v40 = vld [vmem:[#allocation9 + $0x540] sm:$0xf]  ;;  %v15604_v30 = vor.u32 %v17170_v36, %v15603_v13  ;;  %v17150_v34 = vld [vmem:[#allocation9 + $0x524] sm:$0xf0]  ;;  %v7933_v8 = vadd.f32 %v18120_v53, %v7919_v19  ;;  %v15515_v19 = vld [vmem:[#allocation9 + $0x510] sm:$0xf] }
 0x719   :  { %10173 = vmatpush.bf16.msrb.mxu1 %v15620_v7  ;;  %v7613_v7 = vadd.f32 %v18597_v10, %v7599_v48  ;;  %v15540_v17 = vor.u32 %v17154_v25, %v15539_v40  ;;  %v18258_v48 = vpop.f32.mrf.mxu1  ;;  %v18601_v40 = vld [vmem:[#allocation97_spill] sm:$0xff]  ;;  %v7935_v13 = vadd.f32 %v18150_v29, %v7921_v33  ;;  %v17166_v3 = vld [vmem:[#allocation9 + $0x5a4] sm:$0xf0]  ;;  %v7837_v29 = vadd.f32 %v18049_v18, %v7823_v63  ;;  %v17148_v33 = vld [vmem:[#allocation9 + $0x514] sm:$0xf0] }
 0x71a   :  { %10187 = vmatpush.bf16.msrb.mxu2 %v15684_v57  ;;  %v18598_v57 = vld [vmem:[#allocation102_spill] sm:$0xff]  ;;  %10160 = vmatpush.bf16.msrb.mxu0 %v15548_v44  ;;  %v15659_v44 = vld [vmem:[#allocation9 + $0x630] sm:$0xf]  ;;  %v15651_v10 = vld [vmem:[#allocation9 + $0x620] sm:$0xf]  ;;  %v15524_v53 = vor.u32 %v17150_v34, %v15523_v14 }
 0x71b   :  { %v7697_v15 = vadd.f32 %v18598_v57, %v7683_v37  ;;  %v17168_v37 = vld [vmem:[#allocation9 + $0x5b4] sm:$0xf0]  ;;  %v7627_v25 = vadd.f32 %v18601_v40, %v7613_v7  ;;  %v15660_v24 = vor.u32 %v17184_v43, %v15659_v44  ;;  %v17182_v7 = vld [vmem:[#allocation9 + $0x624] sm:$0xf0]  ;;  %v15715_v57 = vld [vmem:[#allocation9 + $0x6a0] sm:$0xf] }
 0x71c   :  { %10201 = vmatpush.bf16.msrb.mxu3 %v15748_v58  ;;  %v15531_v58 = vld [vmem:[#allocation9 + $0x530] sm:$0xf]  ;;  %v15596_v27 = vor.u32 %v17168_v37, %v15595_v38  ;;  %v18274_v38 = vpop.f32.mrf.mxu3  ;;  %v7947_v37 = vadd.f32 %v18125_v26, %v7933_v8  ;;  %v17164_v43 = vld [vmem:[#allocation9 + $0x594] sm:$0xf0]  ;;  %v15516_v26 = vor.u32 %v17148_v33, %v15515_v19 }
 0x71d   :  { %10174 = vmatpush.bf16.msrb.mxu1 %v15612_v39  ;;  %v7711_v0 = vadd.f32 %v18600_v41, %v7697_v15  ;;  %v15723_v39 = vld [vmem:[#allocation9 + $0x6b0] sm:$0xf]  ;;  %v15532_v36 = vor.u32 %v17152_v55, %v15531_v58  ;;  %v17198_v15 = vld [vmem:[#allocation9 + $0x6a4] sm:$0xf0]  ;;  %v18271_v58 = vpop.f32.mrf.mxu2  ;;  %v7851_v55 = vadd.f32 %v18062_v51, %v7837_v29  ;;  %v15652_v41 = vor.u32 %v17182_v7, %v15651_v10  ;;  %v17180_v51 = vld [vmem:[#allocation9 + $0x614] sm:$0xf0] }
 0x71e   :  { %10188 = vmatpush.bf16.msrb.mxu2 %v15676_v2  ;;  %v17200_v2 = vld [vmem:[#allocation9 + $0x6b4] sm:$0xf0]  ;;  %10161 = vmatpush.bf16.msrb.mxu0 %v15540_v17  ;;  %v18603_v17 = vld [vmem:[#allocation98_spill] sm:$0xff]  ;;  %v15716_v44 = vor.u32 %v17198_v15, %v15715_v57  ;;  %v15643_v63 = vld [vmem:[#allocation9 + $0x610] sm:$0xf]  ;;  %v7961_v7 = vadd.f32 %v18135_v52, %v7947_v37 }
 0x71f   :  { %v7725_v46 = vadd.f32 %v18602_v59, %v7711_v0  ;;  %v15724_v62 = vor.u32 %v17200_v2, %v15723_v39  ;;  %v18267_v49 = vadd.f32 %v18603_v17, %v7627_v25  ;;  %v18276_v0 = vpop.f32.mrf.mxu0  ;;  %v18605_v2 = vld [vmem:[#allocation94_spill] sm:$0xff]  ;;  %v15707_v25 = vld [vmem:[#allocation9 + $0x690] sm:$0xf]  ;;  %v18287_v59 = vadd.f32 %v18066_v23, %v7851_v55  ;;  %v15635_v10 = vld [vmem:[#allocation9 + $0x600] sm:$0xf] }
 0x720   :  { %10202 = vmatpush.bf16.msrb.mxu3 %v15740_v20  ;;  %v15587_v20 = vld [vmem:[#allocation9 + $0x5a0] sm:$0xf]  ;;  %v8312_v40 = vmax.f32 %v18605_v2, 0.0  ;;  %v18607_v14 = vld [vmem:[#allocation107_spill] sm:$0xff]  ;;  %v15644_v8 = vor.u32 %v17180_v51, %v15643_v63  ;;  %v17178_v15 = vld [vmem:[#allocation9 + $0x604] sm:$0xf0] }
 0x721   :  { %10175 = vmatpush.bf16.msrb.mxu1 %v15604_v30  ;;  %v7739_v30 = vadd.f32 %v18604_v31, %v7725_v46  ;;  %v15588_v18 = vor.u32 %v17166_v3, %v15587_v20  ;;  %v18280_v39 = vpop.f32.mrf.mxu1  ;;  %v17146_v20 = vld [vmem:[#allocation9 + $0x504] sm:$0xf0]  ;;  %v15699_v17 = vld [vmem:[#allocation9 + $0x680] sm:$0xf]  ;;  %v15819_v31 = vld [vmem:[#allocation9 + $0x770] sm:$0xf]  ;;  %v15636_v33 = vor.u32 %v17178_v15, %v15635_v10 }
 0x722   :  { %10189 = vmatpush.bf16.msrb.mxu2 %v15668_v22  ;;  %v7949_v22 = vadd.f32 %v18154_v6, %v7935_v13  ;;  %10162 = vmatpush.bf16.msrb.mxu0 %v15532_v36  ;;  %v17196_v13 = vld [vmem:[#allocation9 + $0x694] sm:$0xf0]  ;;  %v8328_v36 = vmax.f32 %v18267_v49, 0.0  ;;  %v17162_v3 = vld [vmem:[#allocation9 + $0x584] sm:$0xf0]  ;;  %v8330_v52 = vmax.f32 %v18287_v59, 0.0  ;;  %v8115_v15 = vadd.f32 %v18280_v39, %v18276_v0 }
 0x723   :  { %v7753_v34 = vadd.f32 %v18607_v14, %v7739_v30  ;;  %v15708_v57 = vor.u32 %v17196_v13, %v15707_v25  ;;  %v17194_v49 = vld [vmem:[#allocation9 + $0x684] sm:$0xf0]  ;;  %v17224_v23 = vld [vmem:[#allocation9 + $0x774] sm:$0xf0]  ;;  %v15883_v30 = vld [vmem:[#allocation9 + $0x7f0] sm:$0xf] }
 0x724   :  { %10203 = vmatpush.bf16.msrb.mxu3 %v15732_v42  ;;  %v15579_v42 = vld [vmem:[#allocation9 + $0x590] sm:$0xf]  ;;  %v7963_v6 = vadd.f32 %v18167_v54, %v7949_v22  ;;  %v15507_v54 = vld [vmem:[#allocation9 + $0x500] sm:$0xf]  ;;  %v16999_v55 = vld [vmem:[#allocation9 + $0x74] sm:$0xf]  ;;  %v15700_v63 = vor.u32 %v17194_v49, %v15699_v17  ;;  %v15820_v51 = vor.u32 %v17224_v23, %v15819_v31 }
 0x725   :  { %10176 = vmatpush.bf16.msrb.mxu1 %v15596_v27  ;;  %v18606_v27 = vld [vmem:[#allocation103_spill] sm:$0xff]  ;;  %v15580_v46 = vor.u32 %v17164_v43, %v15579_v42  ;;  %v15508_v22 = vor.u32 %v17146_v20, %v15507_v54  ;;  %v8329_v19 = vmax.f32 %v7753_v34, 0.0  ;;  %v17015_v42 = vld [vmem:[#allocation9 + $0xf4] sm:$0xf]  ;;  %v14989_v37 = vld [vmem:[#allocation9 + $0xf8] sm:$0xf0] }
 0x726   :  { %10190 = vmatpush.bf16.msrb.mxu2 %v15660_v24  ;;  %v8313_v24 = vmax.f32 %v18606_v27, 0.0  ;;  %10163 = vmatpush.bf16.msrb.mxu0 %v15524_v53  ;;  %v18291_v29 = vadd.f32 %v18170_v32, %v7963_v6  ;;  %v17240_v53 = vld [vmem:[#allocation9 + $0x7f4] sm:$0xf0]  ;;  %v18294_v6 = vpop.f32.mrf.mxu3  ;;  %v15811_v27 = vld [vmem:[#allocation9 + $0x760] sm:$0xf] }
 0x727   :  { %v15884_v2 = vor.u32 %v17240_v53, %v15883_v30  ;;  %v18298_v13 = vpop.f32.mrf.mxu0  ;;  %v17222_v14 = vld [vmem:[#allocation9 + $0x764] sm:$0xf0]  ;;  %v15875_v34 = vld [vmem:[#allocation9 + $0x7e0] sm:$0xf]  ;;  %v16997_v20 = vld [vmem:[#allocation9 + $0x64] sm:$0xf] }
 0x728   :  { %10204 = vmatpush.bf16.msrb.mxu3 %v15724_v62  ;;  %v15571_v62 = vld [vmem:[#allocation9 + $0x580] sm:$0xf]  ;;  %v8331_v43 = vmax.f32 %v18291_v29, 0.0  ;;  %v17238_v54 = vld [vmem:[#allocation9 + $0x7e4] sm:$0xf0]  ;;  %v15812_v17 = vor.u32 %v17222_v14, %v15811_v27 }
 0x729   :  { %10177 = vmatpush.bf16.msrb.mxu1 %v15588_v18  ;;  %v14925_v18 = vld [vmem:[#allocation9 + $0x78] sm:$0xf0]  ;;  %v15572_v32 = vor.u32 %v17162_v3, %v15571_v62  ;;  %v14917_v59 = vld [vmem:[#allocation9 + $0x68] sm:$0xf0]  ;;  %v17013_v10 = vld [vmem:[#allocation9 + $0xe4] sm:$0xf] }
 0x72a   :  { %10191 = vmatpush.bf16.msrb.mxu2 %v15652_v41  ;;  %10164 = vmatpush.bf16.msrb.mxu0 %v15516_v26  ;;  %v8128_v41 = vpop.f32.mrf.mxu2  ;;  %v14928_v25 = vor.u32 %v16999_v55, %v14925_v18  ;;  %v14992_v26 = vor.u32 %v17015_v42, %v14989_v37  ;;  %v18608_v62 = vld [vmem:[#allocation111_spill] sm:$0xff]  ;;  %v17220_v31 = vld [vmem:[#allocation9 + $0x754] sm:$0xf0]  ;;  %v16995_v39 = vld [vmem:[#allocation9 + $0x54] sm:$0xf] }
 0x72b   :  { %v8314_v3 = vmax.f32 %v18608_v62, 0.0  ;;  %v15803_v49 = vld [vmem:[#allocation9 + $0x750] sm:$0xf]  ;;  %v17236_v0 = vld [vmem:[#allocation9 + $0x7d4] sm:$0xf0]  ;;  %v18609_v18 = vld [vmem:[#allocation30_spill] sm:$0xff] }
 0x72c   :  { %10205 = vmatpush.bf16.msrb.mxu3 %v15716_v44  ;;  %v7975_v44 = vadd.f32 %v18142_v28, %v7961_v7  ;;  %v18302_v28 = vpack.c.bf16 %v8329_v19, %v8313_v24  ;;  %v14981_v7 = vld [vmem:[#allocation9 + $0xe8] sm:$0xf0]  ;;  %v14920_v24 = vor.u32 %v16997_v20, %v14917_v59  ;;  %v15867_v23 = vld [vmem:[#allocation9 + $0x7d0] sm:$0xf]  ;;  %v17011_v53 = vld [vmem:[#allocation9 + $0xd4] sm:$0xf] }
 0x72d   :  { %10178 = vmatpush.bf16.msrb.mxu1 %v15580_v46  ;;  %v8116_v46 = vpop.f32.mrf.mxu1  ;;  %v14973_v55 = vld [vmem:[#allocation9 + $0xd8] sm:$0xf0]  ;;  %v15795_v37 = vld [vmem:[#allocation9 + $0x740] sm:$0xf] }
 0x72e   :  { %10192 = vmatpush.bf16.msrb.mxu2 %v15644_v8  ;;  %10165 = vmatpush.bf16.msrb.mxu0 %v15508_v22  ;;  %v18300_v8 = vpack.c.bf16 %v8328_v36, %v8312_v40  ;;  %v8315_v29 = vmax.f32 %v7975_v44, 0.0  ;;  %v18309_v40 = vpack.c.bf16 %v8330_v52, %v8314_v3  ;;  %v15876_v36 = vor.u32 %v17238_v54, %v15875_v34  ;;  %v14909_v22 = vld [vmem:[#allocation9 + $0x58] sm:$0xf0]  ;;  %v8144_v42 = vpop.f32.mrf.mxu3  ;;  %v17218_v44 = vld [vmem:[#allocation9 + $0x744] sm:$0xf0] }
 0x72f   :  { %v8129_v52 = vadd.f32 %v8128_v41, %v8115_v15  ;;  %v14901_v41 = vld [vmem:[#allocation9 + $0x48] sm:$0xf0]  ;;  %v8117_v27 = vadd.f32 %v8116_v46, %v18298_v13  ;;  %v8156_v14 = vpop.f32.mrf.mxu0  ;;  %v17009_v34 = vld [vmem:[#allocation9 + $0xc4] sm:$0xf]  ;;  %v15796_v62 = vor.u32 %v17218_v44, %v15795_v37  ;;  %v17232_v46 = vld [vmem:[#allocation9 + $0x7b4] sm:$0xf0] }
 0x730   :  { %10206 = vmatpush.bf16.msrb.mxu3 %v15708_v57  ;;  %v8003_v57 = vadd.f32 %v18176_v11, %v18172_v9  ;;  %v18311_v30 = vpack.c.bf16 %v8331_v43, %v8315_v29  ;;  %v8005_v9 = vadd.f32 %v18203_v21, %v18198_v1  ;;  %v14984_v11 = vor.u32 %v17013_v10, %v14981_v7  ;;  %v15859_v43 = vld [vmem:[#allocation9 + $0x7c0] sm:$0xf]  ;;  %v18610_v54 = vld [vmem:[#allocation38_spill] sm:$0xff]  ;;  %v15787_v7 = vld [vmem:[#allocation9 + $0x730] sm:$0xf] }
 0x731   :  { %10179 = vmatpush.bf16.msrb.mxu1 %v15572_v32  ;;  %10166 = vmatmul.bf16.vlgmr.msrb.gmra.mxu0 %v18300_v8  ;;  %v15804_v1 = vor.u32 %v17220_v31, %v15803_v49  ;;  %v15868_v32 = vor.u32 %v17236_v0, %v15867_v23  ;;  %v8143_v59 = vadd.f32 %v18294_v6, %v8129_v52  ;;  %v17216_v29 = vld [vmem:[#allocation9 + $0x734] sm:$0xf0]  ;;  %v17007_v49 = vld [vmem:[#allocation9 + $0xb4] sm:$0xf]  ;;  %v14957_v6 = vld [vmem:[#allocation9 + $0xb8] sm:$0xf0] }
 0x732   :  { %10193 = vmatpush.bf16.msrb.mxu2 %v15636_v33  ;;  %10214 = vmatpush.bf16.msra.mxu0 %v15820_v51  ;;  %v8017_v19 = vadd.f32 %v18609_v18, %v8003_v57  ;;  %v8130_v21 = vpop.f32.mrf.mxu2  ;;  %v14912_v33 = vor.u32 %v16995_v39, %v14909_v22  ;;  %v14976_v51 = vor.u32 %v17011_v53, %v14973_v55  ;;  %v15851_v57 = vld [vmem:[#allocation9 + $0x7b0] sm:$0xf]  ;;  %v17214_v22 = vld [vmem:[#allocation9 + $0x724] sm:$0xf0]  ;;  %v15843_v53 = vld [vmem:[#allocation9 + $0x7a0] sm:$0xf] }
 0x733   :  { %v15852_v0 = vor.u32 %v17232_v46, %v15851_v57  ;;  %v14960_v55 = vor.u32 %v17007_v49, %v14957_v6  ;;  %v16989_v52 = vld [vmem:[#allocation9 + $0x24] sm:$0xf]  ;;  %v14869_v49 = vld [vmem:[#allocation9 + $0x8] sm:$0xf0] }
 0x734   :  { %10207 = vmatpush.bf16.msrb.mxu3 %v15700_v63  ;;  %10180 = vmatmul.bf16.vlgmr.msrb.gmra.mxu1 %v18302_v28  ;;  %v8019_v63 = vadd.f32 %v18210_v45, %v8005_v9  ;;  %v8031_v20 = vadd.f32 %v18610_v54, %v8017_v19  ;;  %v8157_v9 = vadd.f32 %v8156_v14, %v8143_v59  ;;  %v17230_v19 = vld [vmem:[#allocation9 + $0x7a4] sm:$0xf0]  ;;  %v15835_v14 = vld [vmem:[#allocation9 + $0x790] sm:$0xf]  ;;  %v17228_v54 = vld [vmem:[#allocation9 + $0x794] sm:$0xf0] }
 0x735   :  { %10228 = vmatpush.bf16.msra.mxu1 %v15884_v2  ;;  %10194 = vmatmul.bf16.vlgmr.msrb.gmra.mxu2 %v18309_v40  ;;  %v17234_v2 = vld [vmem:[#allocation9 + $0x7c4] sm:$0xf0]  ;;  %v8170_v3 = vpop.f32.mrf.mxu1  ;;  %v14941_v59 = vld [vmem:[#allocation9 + $0x98] sm:$0xf0]  ;;  %v15836_v57 = vor.u32 %v17228_v54, %v15835_v14  ;;  %v16985_v46 = vld [vmem:[#allocation9 + $0x4] sm:$0xf] }
 0x736   :  { %10242 = vmatpush.bf16.msra.mxu2 %v14928_v25  ;;  %10215 = vmatpush.bf16.msra.mxu0 %v15812_v17  ;;  %v16993_v25 = vld [vmem:[#allocation9 + $0x44] sm:$0xf]  ;;  %v15860_v45 = vor.u32 %v17234_v2, %v15859_v43  ;;  %v8033_v15 = vadd.f32 %v18212_v61, %v8019_v63  ;;  %v16991_v17 = vld [vmem:[#allocation9 + $0x34] sm:$0xf]  ;;  %v8045_v31 = vadd.f32 %v18224_v50, %v8031_v20  ;;  %v15779_v61 = vld [vmem:[#allocation9 + $0x720] sm:$0xf] }
 0x737   :  { %10208 = vmatmul.bf16.vlgmr.msrb.gmra.mxu3 %v18311_v30  ;;  %v14904_v10 = vor.u32 %v16993_v25, %v14901_v41  ;;  %v8158_v50 = vpop.f32.mrf.mxu0  ;;  %v8171_v43 = vadd.f32 %v8170_v3, %v8157_v9  ;;  %v15780_v63 = vor.u32 %v17214_v22, %v15779_v61  ;;  %v15844_v2 = vor.u32 %v17230_v19, %v15843_v53  ;;  %v15771_v41 = vld [vmem:[#allocation9 + $0x710] sm:$0xf]  ;;  %v14877_v20 = vld [vmem:[#allocation9 + $0x18] sm:$0xf0]  ;;  %v14933_v6 = vld [vmem:[#allocation9 + $0x88] sm:$0xf0] }
 0x738   :  { %10256 = vmatpush.bf16.msra.mxu3 %v14992_v26  ;;  %v14965_v26 = vld [vmem:[#allocation9 + $0xc8] sm:$0xf0]  ;;  %v8047_v23 = vadd.f32 %v18253_v5, %v8033_v15  ;;  %v17005_v5 = vld [vmem:[#allocation9 + $0xa4] sm:$0xf]  ;;  %v8059_v37 = vadd.f32 %v18229_v35, %v8045_v31  ;;  %v16987_v35 = vld [vmem:[#allocation9 + $0x14] sm:$0xf] }
 0x739   :  { %10229 = vmatpush.bf16.msra.mxu1 %v15876_v36  ;;  %v14968_v13 = vor.u32 %v17009_v34, %v14965_v26  ;;  %v14893_v36 = vld [vmem:[#allocation9 + $0x38] sm:$0xf0]  ;;  %v15827_v15 = vld [vmem:[#allocation9 + $0x780] sm:$0xf]  ;;  %v17031_v9 = vld [vmem:[#allocation9 + $0x174] sm:$0xf] }
 0x73a   :  { %10243 = vmatpush.bf16.msra.mxu2 %v14920_v24  ;;  %10216 = vmatpush.bf16.msra.mxu0 %v15804_v1  ;;  %v8131_v24 = vadd.f32 %v8130_v21, %v8117_v27  ;;  %v14896_v39 = vor.u32 %v16991_v17, %v14893_v36  ;;  %v8184_v18 = vpop.f32.mrf.mxu2  ;;  %v14885_v1 = vld [vmem:[#allocation9 + $0x28] sm:$0xf0]  ;;  %v8061_v44 = vadd.f32 %v18258_v48, %v8047_v23  ;;  %v17212_v27 = vld [vmem:[#allocation9 + $0x714] sm:$0xf0]  ;;  %v17003_v48 = vld [vmem:[#allocation9 + $0x94] sm:$0xf] }
 0x73b   :  { %v14888_v25 = vor.u32 %v16989_v52, %v14885_v1  ;;  %v8185_v3 = vadd.f32 %v8184_v18, %v8171_v43  ;;  %v14944_v36 = vor.u32 %v17003_v48, %v14941_v59  ;;  %v15117_v53 = vld [vmem:[#allocation9 + $0x1f8] sm:$0xf0]  ;;  %v14872_v52 = vor.u32 %v16985_v46, %v14869_v49  ;;  %v17079_v1 = vld [vmem:[#allocation9 + $0x2f4] sm:$0xf]  ;;  %v15173_v14 = vld [vmem:[#allocation9 + $0x268] sm:$0xf0] }
 0x73c   :  { %10257 = vmatpush.bf16.msra.mxu3 %v14984_v11  ;;  %v15788_v11 = vor.u32 %v17216_v29, %v15787_v7  ;;  %v8145_v21 = vadd.f32 %v8144_v42, %v8131_v24  ;;  %v8075_v42 = vadd.f32 %v18271_v58, %v8061_v44  ;;  %v17210_v7 = vld [vmem:[#allocation9 + $0x704] sm:$0xf0]  ;;  %v14880_v58 = vor.u32 %v16987_v35, %v14877_v20  ;;  %v15181_v18 = vld [vmem:[#allocation9 + $0x278] sm:$0xf0]  ;;  %v15045_v44 = vld [vmem:[#allocation9 + $0x168] sm:$0xf0] }
 0x73d   :  { %10230 = vmatpush.bf16.msra.mxu1 %v15868_v32  ;;  %v8198_v32 = vpop.f32.mrf.mxu3  ;;  %v8172_v26 = vpop.f32.mrf.mxu1  ;;  %v17027_v59 = vld [vmem:[#allocation9 + $0x154] sm:$0xf]  ;;  %v15029_v49 = vld [vmem:[#allocation9 + $0x148] sm:$0xf0] }
 0x73e   :  { %10244 = vmatpush.bf16.msra.mxu2 %v14912_v33  ;;  %10217 = vmatpush.bf16.msra.mxu0 %v15796_v62  ;;  %v14949_v33 = vld [vmem:[#allocation9 + $0xa8] sm:$0xf0]  ;;  %v8073_v62 = vadd.f32 %v18246_v56, %v8059_v37  ;;  %v8089_v17 = vadd.f32 %v18274_v38, %v8075_v42  ;;  %v17001_v56 = vld [vmem:[#allocation9 + $0x84] sm:$0xf]  ;;  %v8199_v61 = vadd.f32 %v8198_v32, %v8185_v3  ;;  %v17043_v3 = vld [vmem:[#allocation9 + $0x1d4] sm:$0xf] }
 0x73f   :  { %v14952_v34 = vor.u32 %v17005_v5, %v14949_v33  ;;  %v14936_v5 = vor.u32 %v17001_v56, %v14933_v6  ;;  %v17029_v37 = vld [vmem:[#allocation9 + $0x164] sm:$0xf] }
 0x740   :  { %10258 = vmatpush.bf16.msra.mxu3 %v14976_v51  ;;  %v8159_v51 = vadd.f32 %v8158_v50, %v8145_v21  ;;  %v15245_v21 = vld [vmem:[#allocation9 + $0x2f8] sm:$0xf0]  ;;  %v8332_v50 = vmax.f32 %v8089_v17, 0.0  ;;  %v17077_v42 = vld [vmem:[#allocation9 + $0x2e4] sm:$0xf]  ;;  %v15048_v35 = vor.u32 %v17029_v37, %v15045_v44 }
 0x741   :  { %10231 = vmatpush.bf16.msra.mxu1 %v15860_v45  ;;  %v15772_v45 = vor.u32 %v17212_v27, %v15771_v41  ;;  %v15248_v41 = vor.u32 %v17079_v1, %v15245_v21  ;;  %v17061_v27 = vld [vmem:[#allocation9 + $0x264] sm:$0xf]  ;;  %v15149_v1 = vld [vmem:[#allocation9 + $0x238] sm:$0xf0]  ;;  %v17071_v21 = vld [vmem:[#allocation9 + $0x2b4] sm:$0xf] }
 0x742   :  { %10245 = vmatpush.bf16.msra.mxu2 %v14904_v10  ;;  %10218 = vmatpush.bf16.msra.mxu0 %v15788_v11  ;;  %v15763_v10 = vld [vmem:[#allocation9 + $0x700] sm:$0xf]  ;;  %v8173_v29 = vadd.f32 %v8172_v26, %v8159_v51  ;;  %v8186_v24 = vpop.f32.mrf.mxu2  ;;  %v15053_v11 = vld [vmem:[#allocation9 + $0x178] sm:$0xf0]  ;;  %v15109_v51 = vld [vmem:[#allocation9 + $0x1e8] sm:$0xf0]  ;;  %v15176_v48 = vor.u32 %v17061_v27, %v15173_v14 }
 0x743   :  { %v15764_v22 = vor.u32 %v17210_v7, %v15763_v10  ;;  %v15056_v33 = vor.u32 %v17031_v9, %v15053_v11  ;;  %v15101_v10 = vld [vmem:[#allocation9 + $0x1d8] sm:$0xf0]  ;;  %v17059_v7 = vld [vmem:[#allocation9 + $0x254] sm:$0xf]  ;;  %v17041_v56 = vld [vmem:[#allocation9 + $0x1c4] sm:$0xf] }
 0x744   :  { %10259 = vmatpush.bf16.msra.mxu3 %v14968_v13  ;;  %v17226_v13 = vld [vmem:[#allocation9 + $0x784] sm:$0xf0]  ;;  %v8187_v31 = vadd.f32 %v8186_v24, %v8173_v29  ;;  %v15165_v29 = vld [vmem:[#allocation9 + $0x258] sm:$0xf0]  ;;  %v15104_v17 = vor.u32 %v17043_v3, %v15101_v10  ;;  %v17025_v24 = vld [vmem:[#allocation9 + $0x144] sm:$0xf] }
 0x745   :  { %10232 = vmatpush.bf16.msra.mxu1 %v15852_v0  ;;  %v8200_v23 = vpop.f32.mrf.mxu3  ;;  %v17047_v0 = vld [vmem:[#allocation9 + $0x1f4] sm:$0xf]  ;;  %v15828_v19 = vor.u32 %v17226_v13, %v15827_v15  ;;  %v15229_v13 = vld [vmem:[#allocation9 + $0x2d8] sm:$0xf0]  ;;  %v15157_v9 = vld [vmem:[#allocation9 + $0x248] sm:$0xf0] }
 0x746   :  { %10246 = vmatpush.bf16.msra.mxu2 %v14896_v39  ;;  %10219 = vmatpush.bf16.msra.mxu0 %v15780_v63  ;;  %v8087_v39 = vadd.f32 %v18248_v60, %v8073_v62  ;;  %v8201_v38 = vadd.f32 %v8200_v23, %v8187_v31  ;;  %v15120_v32 = vor.u32 %v17047_v0, %v15117_v53  ;;  %v17045_v63 = vld [vmem:[#allocation9 + $0x1e4] sm:$0xf]  ;;  %v15037_v62 = vld [vmem:[#allocation9 + $0x158] sm:$0xf0]  ;;  %v17075_v15 = vld [vmem:[#allocation9 + $0x2d4] sm:$0xf] }
 0x747   :  { %v15112_v20 = vor.u32 %v17045_v63, %v15109_v51  ;;  %v15040_v46 = vor.u32 %v17027_v59, %v15037_v62  ;;  %v15232_v6 = vor.u32 %v17075_v15, %v15229_v13  ;;  %v15093_v31 = vld [vmem:[#allocation9 + $0x1c8] sm:$0xf0]  ;;  %v17057_v23 = vld [vmem:[#allocation9 + $0x244] sm:$0xf]  ;;  %v17023_v53 = vld [vmem:[#allocation9 + $0x134] sm:$0xf] }
 0x748   :  { %10260 = vmatpush.bf16.msra.mxu3 %v14960_v55  ;;  %v17063_v55 = vld [vmem:[#allocation9 + $0x274] sm:$0xf]  ;;  %v8333_v60 = vmax.f32 %v8201_v38, 0.0  ;;  %v17073_v11 = vld [vmem:[#allocation9 + $0x2c4] sm:$0xf] }
 0x749   :  { %10233 = vmatpush.bf16.msra.mxu1 %v15844_v2  ;;  %v15184_v43 = vor.u32 %v17063_v55, %v15181_v18  ;;  %v8316_v2 = vmax.f32 %v8087_v39, 0.0  ;;  %v15221_v0 = vld [vmem:[#allocation9 + $0x2c8] sm:$0xf0]  ;;  %v15032_v39 = vor.u32 %v17025_v24, %v15029_v49  ;;  %v15021_v55 = vld [vmem:[#allocation9 + $0x138] sm:$0xf0] }
 0x74a   :  { %10247 = vmatpush.bf16.msra.mxu2 %v14888_v25  ;;  %10220 = vmatpush.bf16.msra.mxu0 %v15772_v45  ;;  %v8317_v25 = vmax.f32 %v8199_v61, 0.0  ;;  %v15096_v61 = vor.u32 %v17041_v56, %v15093_v31  ;;  %v17039_v18 = vld [vmem:[#allocation9 + $0x1b4] sm:$0xf]  ;;  %v15224_v38 = vor.u32 %v17073_v11, %v15221_v0  ;;  %v17021_v44 = vld [vmem:[#allocation9 + $0x124] sm:$0xf] }
 0x74b   :  { %v18333_v26 = vpack.c.bf16 %v8332_v50, %v8316_v2  ;;  %v15213_v50 = vld [vmem:[#allocation9 + $0x2b8] sm:$0xf0]  ;;  %v15077_v63 = vld [vmem:[#allocation9 + $0x1a8] sm:$0xf0]  ;;  %v17053_v51 = vld [vmem:[#allocation9 + $0x224] sm:$0xf] }
 0x74c   :  { %10261 = vmatpush.bf16.msra.mxu3 %v14952_v34  ;;  %v15237_v34 = vld [vmem:[#allocation9 + $0x2e8] sm:$0xf0]  ;;  %v18335_v54 = vpack.c.bf16 %v8333_v60, %v8317_v25  ;;  %v17069_v25 = vld [vmem:[#allocation9 + $0x2a4] sm:$0xf]  ;;  %v15069_v59 = vld [vmem:[#allocation9 + $0x198] sm:$0xf0] }
 0x74d   :  { %10234 = vmatpush.bf16.msra.mxu1 %v15836_v57  ;;  %v15240_v45 = vor.u32 %v17077_v42, %v15237_v34  ;;  %v18611_v57 = vld [vmem:[#allocation112_spill] sm:$0xff]  ;;  %v15013_v60 = vld [vmem:[#allocation9 + $0x128] sm:$0xf0]  ;;  %v15133_v3 = vld [vmem:[#allocation9 + $0x218] sm:$0xf0] }
 0x74e   :  { %10248 = vmatpush.bf16.msra.mxu2 %v14880_v58  ;;  %10221 = vmatpush.bf16.msra.mxu0 %v15764_v22  ;;  %v18612_v58 = vld [vmem:[#allocation36_spill] sm:$0xff]  ;;  %v15160_v22 = vor.u32 %v17057_v23, %v15157_v9  ;;  %v15141_v2 = vld [vmem:[#allocation9 + $0x228] sm:$0xf0]  ;;  %v15016_v27 = vor.u32 %v17021_v44, %v15013_v60  ;;  %v15197_v10 = vld [vmem:[#allocation9 + $0x298] sm:$0xf0] }
 0x74f   :  { %v15144_v42 = vor.u32 %v17053_v51, %v15141_v2  ;;  %v17019_v34 = vld [vmem:[#allocation9 + $0x114] sm:$0xf]  ;;  %v17033_v13 = vld [vmem:[#allocation9 + $0x184] sm:$0xf]  ;;  %v15125_v24 = vld [vmem:[#allocation9 + $0x208] sm:$0xf0] }
 0x750   :  { %10262 = vmatpush.bf16.msra.mxu3 %v14944_v36  ;;  %v15168_v36 = vor.u32 %v17059_v7, %v15165_v29  ;;  %v17051_v62 = vld [vmem:[#allocation9 + $0x214] sm:$0xf]  ;;  %v17017_v29 = vld [vmem:[#allocation9 + $0x104] sm:$0xf]  ;;  %v15189_v56 = vld [vmem:[#allocation9 + $0x288] sm:$0xf0] }
 0x751   :  { %10235 = vmatpush.bf16.msra.mxu1 %v15828_v19  ;;  %10222 = vmatmul.bf16.vlgmr.msra.gmra.mxu0 %v18333_v26  ;;  %v15085_v19 = vld [vmem:[#allocation9 + $0x1b8] sm:$0xf0]  ;;  %v15136_v15 = vor.u32 %v17051_v62, %v15133_v3  ;;  %v17065_v49 = vld [vmem:[#allocation9 + $0x284] sm:$0xf]  ;;  %v17111_v23 = vld [vmem:[#allocation9 + $0x3f4] sm:$0xf] }
 0x752   :  { %10249 = vmatpush.bf16.msra.mxu2 %v14872_v52  ;;  %10270 = vmatpush.bf16.msrb.mxu0 %v15056_v33  ;;  %v17055_v52 = vld [vmem:[#allocation9 + $0x234] sm:$0xf]  ;;  %v15088_v33 = vor.u32 %v17039_v18, %v15085_v19  ;;  %v15309_v31 = vld [vmem:[#allocation9 + $0x378] sm:$0xf0]  ;;  %v15192_v18 = vor.u32 %v17065_v49, %v15189_v56  ;;  %v15429_v44 = vld [vmem:[#allocation9 + $0x468] sm:$0xf0] }
 0x753   :  { %v15152_v37 = vor.u32 %v17055_v52, %v15149_v1  ;;  %v15373_v11 = vld [vmem:[#allocation9 + $0x3f8] sm:$0xf0]  ;;  %v17127_v0 = vld [vmem:[#allocation9 + $0x474] sm:$0xf]  ;;  %v17093_v1 = vld [vmem:[#allocation9 + $0x364] sm:$0xf] }
 0x754   :  { %10263 = vmatpush.bf16.msra.mxu3 %v14936_v5  ;;  %10236 = vmatmul.bf16.vlgmr.msra.gmra.mxu1 %v18335_v54  ;;  %v15024_v5 = vor.u32 %v17023_v53, %v15021_v55  ;;  %v17143_v53 = vld [vmem:[#allocation9 + $0x4f4] sm:$0xf]  ;;  %v15501_v55 = vld [vmem:[#allocation9 + $0x4f8] sm:$0xf0]  ;;  %v15376_v19 = vor.u32 %v17111_v23, %v15373_v11  ;;  %v17141_v60 = vld [vmem:[#allocation9 + $0x4e4] sm:$0xf] }
 0x755   :  { %10284 = vmatpush.bf16.msrb.mxu1 %v15120_v32  ;;  %10250 = vmatmul.bf16.vlgmr.msra.gmra.mxu2 %v18611_v57  ;;  %v17037_v32 = vld [vmem:[#allocation9 + $0x1a4] sm:$0xf]  ;;  %v14997_v57 = vld [vmem:[#allocation9 + $0x108] sm:$0xf0]  ;;  %v17091_v2 = vld [vmem:[#allocation9 + $0x354] sm:$0xf] }
 0x756   :  { %10298 = vmatpush.bf16.msrb.mxu2 %v15184_v43  ;;  %10271 = vmatpush.bf16.msrb.mxu0 %v15048_v35  ;;  %v15216_v43 = vor.u32 %v17071_v21, %v15213_v50  ;;  %v15080_v14 = vor.u32 %v17037_v32, %v15077_v63  ;;  %v15005_v35 = vld [vmem:[#allocation9 + $0x118] sm:$0xf0]  ;;  %v15000_v9 = vor.u32 %v17017_v29, %v14997_v57  ;;  %v15301_v21 = vld [vmem:[#allocation9 + $0x368] sm:$0xf0]  ;;  %v17109_v50 = vld [vmem:[#allocation9 + $0x3e4] sm:$0xf] }
 0x757   :  { %10264 = vmatmul.bf16.vlgmr.msra.gmra.mxu3 %v18612_v58  ;;  %v15008_v7 = vor.u32 %v17019_v34, %v15005_v35  ;;  %v15493_v32 = vld [vmem:[#allocation9 + $0x4e8] sm:$0xf0]  ;;  %v17123_v34 = vld [vmem:[#allocation9 + $0x454] sm:$0xf]  ;;  %v15421_v35 = vld [vmem:[#allocation9 + $0x458] sm:$0xf0] }
 0x758   :  { %10312 = vmatpush.bf16.msrb.mxu3 %v15248_v41  ;;  %v15205_v41 = vld [vmem:[#allocation9 + $0x2a8] sm:$0xf0]  ;;  %v15485_v62 = vld [vmem:[#allocation9 + $0x4d8] sm:$0xf0]  ;;  %v18616_v3 = vld [vmem:[#allocation24_spill] sm:$0xff] }
 0x759   :  { %10285 = vmatpush.bf16.msrb.mxu1 %v15112_v20  ;;  %v17035_v20 = vld [vmem:[#allocation9 + $0x194] sm:$0xf]  ;;  %v17089_v29 = vld [vmem:[#allocation9 + $0x344] sm:$0xf]  ;;  %v15285_v57 = vld [vmem:[#allocation9 + $0x348] sm:$0xf0] }
 0x75a   :  { %10299 = vmatpush.bf16.msrb.mxu2 %v15176_v48  ;;  %10272 = vmatpush.bf16.msrb.mxu0 %v15040_v46  ;;  %v15208_v48 = vor.u32 %v17069_v25, %v15205_v41  ;;  %v15072_v58 = vor.u32 %v17035_v20, %v15069_v59  ;;  %v15061_v46 = vld [vmem:[#allocation9 + $0x188] sm:$0xf0]  ;;  %v15293_v25 = vld [vmem:[#allocation9 + $0x358] sm:$0xf0]  ;;  %v17107_v41 = vld [vmem:[#allocation9 + $0x3d4] sm:$0xf]  ;;  %v15288_v49 = vor.u32 %v17089_v29, %v15285_v57 }
 0x75b   :  { %v18614_v20 = vld [vmem:[#allocation45_spill] sm:$0xff]  ;;  %v17139_v59 = vld [vmem:[#allocation9 + $0x4d4] sm:$0xf]  ;;  %v15381_v29 = vld [vmem:[#allocation9 + $0x408] sm:$0xf0] }
 0x75c   :  { %10313 = vmatpush.bf16.msrb.mxu3 %v15240_v45  ;;  %v17067_v45 = vld [vmem:[#allocation9 + $0x294] sm:$0xf]  ;;  %v15277_v23 = vld [vmem:[#allocation9 + $0x338] sm:$0xf0]  ;;  %v17129_v57 = vld [vmem:[#allocation9 + $0x484] sm:$0xf] }
 0x75d   :  { %10286 = vmatpush.bf16.msrb.mxu1 %v15104_v17  ;;  %v17049_v17 = vld [vmem:[#allocation9 + $0x204] sm:$0xf] }
 0x75e   :  { %10300 = vmatpush.bf16.msrb.mxu2 %v15168_v36  ;;  %10273 = vmatpush.bf16.msrb.mxu0 %v15032_v39  ;;  %v15200_v36 = vor.u32 %v17067_v45, %v15197_v10  ;;  %v15437_v39 = vld [vmem:[#allocation9 + $0x478] sm:$0xf0]  ;;  %v15296_v45 = vor.u32 %v17091_v2, %v15293_v25  ;;  %v17099_v2 = vld [vmem:[#allocation9 + $0x394] sm:$0xf] }
 0x75f   :  { %v15440_v52 = vor.u32 %v17127_v0, %v15437_v39  ;;  %v15341_v0 = vld [vmem:[#allocation9 + $0x3b8] sm:$0xf0]  ;;  %v17119_v39 = vld [vmem:[#allocation9 + $0x434] sm:$0xf] }
 0x760   :  { %10314 = vmatpush.bf16.msrb.mxu3 %v15232_v6  ;;  %v17095_v6 = vld [vmem:[#allocation9 + $0x374] sm:$0xf] }
 0x761   :  { %10287 = vmatpush.bf16.msrb.mxu1 %v15096_v61  ;;  %v15064_v61 = vor.u32 %v17033_v13, %v15061_v46  ;;  %v15349_v13 = vld [vmem:[#allocation9 + $0x3c8] sm:$0xf0]  ;;  %v17121_v46 = vld [vmem:[#allocation9 + $0x444] sm:$0xf] }
 0x762   :  { %10301 = vmatpush.bf16.msrb.mxu2 %v15160_v22  ;;  %10274 = vmatpush.bf16.msrb.mxu0 %v15024_v5  ;;  %v15128_v22 = vor.u32 %v17049_v17, %v15125_v24  ;;  %v15504_v5 = vor.u32 %v17143_v53, %v15501_v55  ;;  %v15413_v17 = vld [vmem:[#allocation9 + $0x448] sm:$0xf0]  ;;  %v15469_v53 = vld [vmem:[#allocation9 + $0x4b8] sm:$0xf0] }
 0x763   :  { %v15477_v24 = vld [vmem:[#allocation9 + $0x4c8] sm:$0xf0] }
 0x764   :  { %10315 = vmatpush.bf16.msrb.mxu3 %v15224_v38  ;;  %v15312_v38 = vor.u32 %v17095_v6, %v15309_v31  ;;  %v15416_v6 = vor.u32 %v17121_v46, %v15413_v17  ;;  %v17087_v31 = vld [vmem:[#allocation9 + $0x334] sm:$0xf] }
 0x765   :  { %10288 = vmatpush.bf16.msrb.mxu1 %v15088_v33  ;;  %v15365_v33 = vld [vmem:[#allocation9 + $0x3e8] sm:$0xf0]  ;;  %v15280_v55 = vor.u32 %v17087_v31, %v15277_v23  ;;  %v17175_v46 = vld [vmem:[#allocation9 + $0x5f4] sm:$0xf] }
 0x766   :  { %10302 = vmatpush.bf16.msrb.mxu2 %v15152_v37  ;;  %10275 = vmatpush.bf16.msrb.mxu0 %v15016_v27  ;;  %v17125_v37 = vld [vmem:[#allocation9 + $0x464] sm:$0xf]  ;;  %v15368_v63 = vor.u32 %v17109_v50, %v15365_v33  ;;  %v18613_v27 = vld [vmem:[#allocation37_spill] sm:$0xff]  ;;  %v15333_v50 = vld [vmem:[#allocation9 + $0x3a8] sm:$0xf0] }
 0x767   :  { %v15432_v51 = vor.u32 %v17125_v37, %v15429_v44  ;;  %v15397_v33 = vld [vmem:[#allocation9 + $0x428] sm:$0xf0]  ;;  %v17133_v37 = vld [vmem:[#allocation9 + $0x4a4] sm:$0xf] }
 0x768   :  { %10316 = vmatpush.bf16.msrb.mxu3 %v15216_v43  ;;  %v15304_v43 = vor.u32 %v17093_v1, %v15301_v21  ;;  %v17101_v1 = vld [vmem:[#allocation9 + $0x3a4] sm:$0xf]  ;;  %v15461_v44 = vld [vmem:[#allocation9 + $0x4a8] sm:$0xf0] }
 0x769   :  { %10289 = vmatpush.bf16.msrb.mxu1 %v15080_v14  ;;  %v15496_v14 = vor.u32 %v17141_v60, %v15493_v32  ;;  %v15336_v32 = vor.u32 %v17101_v1, %v15333_v50  ;;  %v15464_v25 = vor.u32 %v17133_v37, %v15461_v44  ;;  %v15685_v1 = vld [vmem:[#allocation9 + $0x668] sm:$0xf0]  ;;  %v17155_v44 = vld [vmem:[#allocation9 + $0x554] sm:$0xf] }
 0x76a   :  { %10303 = vmatpush.bf16.msrb.mxu2 %v15144_v42  ;;  %10276 = vmatpush.bf16.msrb.mxu0 %v15008_v7  ;;  %v15357_v42 = vld [vmem:[#allocation9 + $0x3d8] sm:$0xf0]  ;;  %v15424_v7 = vor.u32 %v17123_v34, %v15421_v35  ;;  %v15749_v50 = vld [vmem:[#allocation9 + $0x6e8] sm:$0xf0] }
 0x76b   :  { %v15360_v10 = vor.u32 %v17107_v41, %v15357_v42  ;;  %v15325_v41 = vld [vmem:[#allocation9 + $0x398] sm:$0xf0]  ;;  %v17131_v42 = vld [vmem:[#allocation9 + $0x494] sm:$0xf] }
 0x76c   :  { %10317 = vmatpush.bf16.msrb.mxu3 %v15208_v48  ;;  %v18615_v48 = vld [vmem:[#allocation46_spill] sm:$0xff]  ;;  %v15453_v34 = vld [vmem:[#allocation9 + $0x498] sm:$0xf0] }
 0x76d   :  { %10290 = vmatpush.bf16.msrb.mxu1 %v15072_v58  ;;  %v17105_v58 = vld [vmem:[#allocation9 + $0x3c4] sm:$0xf] }
 0x76e   :  { %10304 = vmatpush.bf16.msrb.mxu2 %v15136_v15  ;;  %10277 = vmatpush.bf16.msrb.mxu0 %v15000_v9  ;;  %v15488_v15 = vor.u32 %v17139_v59, %v15485_v62  ;;  %v15352_v56 = vor.u32 %v17105_v58, %v15349_v13  ;;  %v17103_v9 = vld [vmem:[#allocation9 + $0x3b4] sm:$0xf]  ;;  %v15328_v59 = vor.u32 %v17099_v2, %v15325_v41  ;;  %v15445_v58 = vld [vmem:[#allocation9 + $0x488] sm:$0xf0]  ;;  %v15565_v13 = vld [vmem:[#allocation9 + $0x578] sm:$0xf0] }
 0x76f   :  { %v15677_v2 = vld [vmem:[#allocation9 + $0x658] sm:$0xf0]  ;;  %v17203_v41 = vld [vmem:[#allocation9 + $0x6d4] sm:$0xf] }
 0x770   :  { %10318 = vmatpush.bf16.msrb.mxu3 %v15200_v36  ;;  %v17137_v36 = vld [vmem:[#allocation9 + $0x4c4] sm:$0xf] }
 0x771   :  { %10291 = vmatpush.bf16.msrb.mxu1 %v15064_v61  ;;  %10278 = vmatmul.bf16.vlgmr.msrb.gmra.mxu0 %v18613_v27  ;;  %v15480_v11 = vor.u32 %v17137_v36, %v15477_v24  ;;  %v15405_v61 = vld [vmem:[#allocation9 + $0x438] sm:$0xf0]  ;;  %v17115_v27 = vld [vmem:[#allocation9 + $0x414] sm:$0xf] }
 0x772   :  { %10305 = vmatpush.bf16.msrb.mxu2 %v15128_v22  ;;  %10326 = vmatpush.bf16.msra.mxu0 %v15312_v38  ;;  %v17135_v22 = vld [vmem:[#allocation9 + $0x4b4] sm:$0xf]  ;;  %v15408_v38 = vor.u32 %v17119_v39, %v15405_v61  ;;  %v15629_v36 = vld [vmem:[#allocation9 + $0x5f8] sm:$0xf0] }
 0x773   :  { %v15472_v21 = vor.u32 %v17135_v22, %v15469_v53  ;;  %v17191_v24 = vld [vmem:[#allocation9 + $0x674] sm:$0xf]  ;;  %v15632_v61 = vor.u32 %v17175_v46, %v15629_v36  ;;  %v17157_v53 = vld [vmem:[#allocation9 + $0x564] sm:$0xf] }
 0x774   :  { %10319 = vmatpush.bf16.msrb.mxu3 %v15192_v18  ;;  %10292 = vmatmul.bf16.vlgmr.msrb.gmra.mxu1 %v18614_v20  ;;  %v15344_v18 = vor.u32 %v17103_v9, %v15341_v0  ;;  %v17081_v20 = vld [vmem:[#allocation9 + $0x304] sm:$0xf]  ;;  %v17207_v9 = vld [vmem:[#allocation9 + $0x6f4] sm:$0xf]  ;;  %v15448_v0 = vor.u32 %v17129_v57, %v15445_v58 }
 0x775   :  { %10340 = vmatpush.bf16.msra.mxu1 %v15376_v19  ;;  %10306 = vmatmul.bf16.vlgmr.msrb.gmra.mxu2 %v18615_v48  ;;  %v17085_v19 = vld [vmem:[#allocation9 + $0x324] sm:$0xf]  ;;  %v15253_v48 = vld [vmem:[#allocation9 + $0x308] sm:$0xf0]  ;;  %v17151_v58 = vld [vmem:[#allocation9 + $0x534] sm:$0xf] }
 0x776   :  { %10354 = vmatpush.bf16.msra.mxu2 %v15440_v52  ;;  %10327 = vmatpush.bf16.msra.mxu0 %v15304_v43  ;;  %v15269_v52 = vld [vmem:[#allocation9 + $0x328] sm:$0xf0]  ;;  %v15256_v17 = vor.u32 %v17081_v20, %v15253_v48  ;;  %v17153_v20 = vld [vmem:[#allocation9 + $0x544] sm:$0xf]  ;;  %v17183_v36 = vld [vmem:[#allocation9 + $0x634] sm:$0xf] }
 0x777   :  { %10320 = vmatmul.bf16.vlgmr.msrb.gmra.mxu3 %v18616_v3  ;;  %v15272_v60 = vor.u32 %v17085_v19, %v15269_v52  ;;  %v17097_v3 = vld [vmem:[#allocation9 + $0x384] sm:$0xf]  ;;  %v15621_v19 = vld [vmem:[#allocation9 + $0x5e8] sm:$0xf0] }
 0x778   :  { %10368 = vmatpush.bf16.msra.mxu3 %v15504_v5  ;;  %v17117_v5 = vld [vmem:[#allocation9 + $0x424] sm:$0xf]  ;;  %v15541_v48 = vld [vmem:[#allocation9 + $0x548] sm:$0xf0] }
 0x779   :  { %10341 = vmatpush.bf16.msra.mxu1 %v15368_v63  ;;  %v15400_v43 = vor.u32 %v17117_v5, %v15397_v33  ;;  %v17083_v63 = vld [vmem:[#allocation9 + $0x314] sm:$0xf]  ;;  %v17189_v52 = vld [vmem:[#allocation9 + $0x664] sm:$0xf] }
 0x77a   :  { %10355 = vmatpush.bf16.msra.mxu2 %v15432_v51  ;;  %10328 = vmatpush.bf16.msra.mxu0 %v15296_v45  ;;  %v15261_v51 = vld [vmem:[#allocation9 + $0x318] sm:$0xf0]  ;;  %v15317_v45 = vld [vmem:[#allocation9 + $0x388] sm:$0xf0]  ;;  %v15688_v37 = vor.u32 %v17189_v52, %v15685_v1  ;;  %v17197_v1 = vld [vmem:[#allocation9 + $0x6a4] sm:$0xf] }
 0x77b   :  { %v15264_v35 = vor.u32 %v17083_v63, %v15261_v51  ;;  %v15320_v31 = vor.u32 %v17097_v3, %v15317_v45  ;;  %v15613_v63 = vld [vmem:[#allocation9 + $0x5d8] sm:$0xf0]  ;;  %v17187_v51 = vld [vmem:[#allocation9 + $0x654] sm:$0xf]  ;;  %v15669_v3 = vld [vmem:[#allocation9 + $0x648] sm:$0xf0] }
 0x77c   :  { %10369 = vmatpush.bf16.msra.mxu3 %v15496_v14  ;;  %v15389_v14 = vld [vmem:[#allocation9 + $0x418] sm:$0xf0]  ;;  %v17201_v45 = vld [vmem:[#allocation9 + $0x6c4] sm:$0xf] }
 0x77d   :  { %10342 = vmatpush.bf16.msra.mxu1 %v15360_v10  ;;  %v15392_v62 = vor.u32 %v17115_v27, %v15389_v14  ;;  %v17113_v10 = vld [vmem:[#allocation9 + $0x404] sm:$0xf]  ;;  %v15741_v27 = vld [vmem:[#allocation9 + $0x6d8] sm:$0xf0] }
 0x77e   :  { %10356 = vmatpush.bf16.msra.mxu2 %v15424_v7  ;;  %10329 = vmatpush.bf16.msra.mxu0 %v15288_v49  ;;  %v15456_v7 = vor.u32 %v17131_v42, %v15453_v34  ;;  %v15693_v49 = vld [vmem:[#allocation9 + $0x678] sm:$0xf0]  ;;  %v15384_v23 = vor.u32 %v17113_v10, %v15381_v29  ;;  %v15544_v10 = vor.u32 %v17153_v20, %v15541_v48 }
 0x77f   :  { %v15696_v22 = vor.u32 %v17191_v24, %v15693_v49  ;;  %v15661_v24 = vld [vmem:[#allocation9 + $0x638] sm:$0xf0]  ;;  %v17199_v49 = vld [vmem:[#allocation9 + $0x6b4] sm:$0xf] }
 0x780   :  { %10370 = vmatpush.bf16.msra.mxu3 %v15488_v15  ;;  %v17159_v15 = vld [vmem:[#allocation9 + $0x574] sm:$0xf] }
 0x781   :  { %10343 = vmatpush.bf16.msra.mxu1 %v15352_v56  ;;  %v18345_v56 = vpop.f32.mrf.mxu0  ;;  %v15568_v39 = vor.u32 %v17159_v15, %v15565_v13  ;;  %v15533_v15 = vld [vmem:[#allocation9 + $0x538] sm:$0xf0]  ;;  %v17167_v13 = vld [vmem:[#allocation9 + $0x5b4] sm:$0xf] }
 0x782   :  { %10357 = vmatpush.bf16.msra.mxu2 %v15416_v6  ;;  %10330 = vmatpush.bf16.msra.mxu0 %v15280_v55  ;;  %v18347_v6 = vpop.f32.mrf.mxu1  ;;  %v15557_v55 = vld [vmem:[#allocation9 + $0x568] sm:$0xf0] }
 0x783   :  { %v15560_v5 = vor.u32 %v17157_v53, %v15557_v55  ;;  %v17165_v53 = vld [vmem:[#allocation9 + $0x5a4] sm:$0xf] }
 0x784   :  { %10371 = vmatpush.bf16.msra.mxu3 %v15480_v11  ;;  %v15757_v11 = vld [vmem:[#allocation9 + $0x6f8] sm:$0xf0] }
 0x785   :  { %10344 = vmatpush.bf16.msra.mxu1 %v15344_v18  ;;  %v17173_v18 = vld [vmem:[#allocation9 + $0x5e4] sm:$0xf] }
 0x786   :  { %10358 = vmatpush.bf16.msra.mxu2 %v15408_v38  ;;  %10331 = vmatpush.bf16.msra.mxu0 %v15272_v60  ;;  %v15760_v38 = vor.u32 %v17207_v9, %v15757_v11  ;;  %v15624_v33 = vor.u32 %v17173_v18, %v15621_v19  ;;  %v15549_v60 = vld [vmem:[#allocation9 + $0x558] sm:$0xf0]  ;;  %v15589_v18 = vld [vmem:[#allocation9 + $0x5a8] sm:$0xf0] }
 0x787   :  { %v15552_v14 = vor.u32 %v17155_v44, %v15549_v60  ;;  %v15653_v19 = vld [vmem:[#allocation9 + $0x628] sm:$0xf0]  ;;  %v15517_v44 = vld [vmem:[#allocation9 + $0x518] sm:$0xf0]  ;;  %v17163_v60 = vld [vmem:[#allocation9 + $0x594] sm:$0xf] }
 0x788   :  { %10372 = vmatpush.bf16.msra.mxu3 %v15472_v21  ;;  %v17205_v21 = vld [vmem:[#allocation9 + $0x6e4] sm:$0xf] }
 0x789   :  { %10345 = vmatpush.bf16.msra.mxu1 %v15336_v32  ;;  %v17171_v32 = vld [vmem:[#allocation9 + $0x5d4] sm:$0xf]  ;;  %v18355_v42 = vpop.f32.mrf.mxu0 }
 0x78a   :  { %10359 = vmatpush.bf16.msra.mxu2 %v15400_v43  ;;  %10332 = vmatpush.bf16.msra.mxu0 %v15264_v35  ;;  %v15752_v43 = vor.u32 %v17205_v21, %v15749_v50  ;;  %v18357_v34 = vpop.f32.mrf.mxu1  ;;  %v15680_v35 = vor.u32 %v17187_v51, %v15677_v2  ;;  %v15717_v21 = vld [vmem:[#allocation9 + $0x6a8] sm:$0xf0]  ;;  %v15645_v51 = vld [vmem:[#allocation9 + $0x618] sm:$0xf0] }
 0x78c   :  { %10373 = vmatpush.bf16.msra.mxu3 %v15464_v25  ;;  %v18350_v25 = vpop.f32.mrf.mxu2 }
 0x78d   :  { %10346 = vmatpush.bf16.msra.mxu1 %v15328_v59  ;;  %v17169_v59 = vld [vmem:[#allocation9 + $0x5c4] sm:$0xf] }
 0x78e   :  { %10360 = vmatpush.bf16.msra.mxu2 %v15392_v62  ;;  %10333 = vmatpush.bf16.msra.mxu0 %v15256_v17  ;;  %v17185_v62 = vld [vmem:[#allocation9 + $0x644] sm:$0xf]  ;;  %v15597_v17 = vld [vmem:[#allocation9 + $0x5b8] sm:$0xf0] }
 0x78f   :  { %v15672_v57 = vor.u32 %v17185_v62, %v15669_v3  ;;  %v17177_v3 = vld [vmem:[#allocation9 + $0x604] sm:$0xf] }
 0x790   :  { %10374 = vmatpush.bf16.msra.mxu3 %v15456_v7  ;;  %v18359_v7 = vpop.f32.mrf.mxu3 }
 0x791   :  { %10347 = vmatpush.bf16.msra.mxu1 %v15320_v31  ;;  %10334 = vmatmul.bf16.vlgmr.msra.gmra.mxu0 %v18216_v16  ;;  %v15616_v16 = vor.u32 %v17171_v32, %v15613_v63  ;;  %v15725_v31 = vld [vmem:[#allocation9 + $0x6b8] sm:$0xf0]  ;;  %v18363_v11 = vpop.f32.mrf.mxu0  ;;  %v15720_v32 = vor.u32 %v17197_v1, %v15717_v21  ;;  %v17179_v63 = vld [vmem:[#allocation9 + $0x614] sm:$0xf] }
 0x792   :  { %10361 = vmatpush.bf16.msra.mxu2 %v15384_v23  ;;  %10382 = vmatpush.bf16.msrb.mxu0 %v15568_v39  ;;  %v15536_v23 = vor.u32 %v17151_v58, %v15533_v15  ;;  %v15664_v39 = vor.u32 %v17183_v36, %v15661_v24  ;;  %v15728_v55 = vor.u32 %v17199_v49, %v15725_v31  ;;  %v18365_v52 = vpop.f32.mrf.mxu1  ;;  %v15821_v58 = vld [vmem:[#allocation9 + $0x778] sm:$0xf0] }
 0x793   :  { %v15648_v48 = vor.u32 %v17179_v63, %v15645_v51  ;;  %v17233_v63 = vld [vmem:[#allocation9 + $0x7c4] sm:$0xf] }
 0x794   :  { %10375 = vmatpush.bf16.msra.mxu3 %v15448_v0  ;;  %10348 = vmatmul.bf16.vlgmr.msra.gmra.mxu1 %v18218_v4  ;;  %v15744_v4 = vor.u32 %v17203_v41, %v15741_v27  ;;  %v18361_v9 = vpop.f32.mrf.mxu2  ;;  %v15600_v0 = vor.u32 %v17167_v13, %v15597_v17  ;;  %v17195_v41 = vld [vmem:[#allocation9 + $0x694] sm:$0xf]  ;;  %v15709_v27 = vld [vmem:[#allocation9 + $0x698] sm:$0xf0] }
 0x795   :  { %10396 = vmatpush.bf16.msrb.mxu1 %v15632_v61  ;;  %10362 = vmatmul.bf16.vlgmr.msra.gmra.mxu2 %v18220_v47  ;;  %v15605_v47 = vld [vmem:[#allocation9 + $0x5c8] sm:$0xf0]  ;;  %v17149_v61 = vld [vmem:[#allocation9 + $0x524] sm:$0xf]  ;;  %v15712_v62 = vor.u32 %v17195_v41, %v15709_v27  ;;  %v17239_v13 = vld [vmem:[#allocation9 + $0x7f4] sm:$0xf] }
 0x796   :  { %10410 = vmatpush.bf16.msrb.mxu2 %v15696_v22  ;;  %10383 = vmatpush.bf16.msrb.mxu0 %v15560_v5  ;;  %v15608_v29 = vor.u32 %v17169_v59, %v15605_v47  ;;  %v15525_v22 = vld [vmem:[#allocation9 + $0x528] sm:$0xf0]  ;;  %v15592_v5 = vor.u32 %v17165_v53, %v15589_v18  ;;  %v17237_v53 = vld [vmem:[#allocation9 + $0x7e4] sm:$0xf]  ;;  %v17265_v18 = vld [vmem:[#allocation14 + $0x38] sm:$0xff] }
 0x797   :  { %10376 = vmatmul.bf16.vlgmr.msra.gmra.mxu3 %v18222_v12  ;;  %v15733_v12 = vld [vmem:[#allocation9 + $0x6c8] sm:$0xf0]  ;;  %v15528_v50 = vor.u32 %v17149_v61, %v15525_v22  ;;  %v10028_v22 = vadd.f32 %v18350_v25, %v18345_v56  ;;  %v17235_v56 = vld [vmem:[#allocation9 + $0x7d4] sm:$0xf]  ;;  %v15869_v25 = vld [vmem:[#allocation9 + $0x7d8] sm:$0xf0] }
 0x798   :  { %10424 = vmatpush.bf16.msrb.mxu3 %v15760_v38  ;;  %v15736_v46 = vor.u32 %v17201_v45, %v15733_v12  ;;  %v17181_v38 = vld [vmem:[#allocation9 + $0x624] sm:$0xf]  ;;  %v18367_v2 = vpop.f32.mrf.mxu3  ;;  %v15509_v59 = vld [vmem:[#allocation9 + $0x508] sm:$0xf0] }
 0x799   :  { %10397 = vmatpush.bf16.msrb.mxu1 %v15624_v33  ;;  %v15656_v33 = vor.u32 %v17181_v38, %v15653_v19  ;;  %v15573_v47 = vld [vmem:[#allocation9 + $0x588] sm:$0xf0]  ;;  %v17193_v12 = vld [vmem:[#allocation9 + $0x684] sm:$0xf] }
 0x79a   :  { %10411 = vmatpush.bf16.msrb.mxu2 %v15688_v37  ;;  %10384 = vmatpush.bf16.msrb.mxu0 %v15552_v14  ;;  %v17147_v37 = vld [vmem:[#allocation9 + $0x514] sm:$0xf]  ;;  %v15637_v45 = vld [vmem:[#allocation9 + $0x608] sm:$0xf0]  ;;  %v18373_v17 = vpop.f32.mrf.mxu1 }
 0x79b   :  { %v15520_v14 = vor.u32 %v17147_v37, %v15517_v44  ;;  %v15640_v24 = vor.u32 %v17177_v3, %v15637_v45  ;;  %v15813_v61 = vld [vmem:[#allocation9 + $0x768] sm:$0xf0]  ;;  %v17264_v44 = vld [vmem:[#allocation14 + $0x30] sm:$0xff]  ;;  %v17213_v45 = vld [vmem:[#allocation9 + $0x724] sm:$0xf] }
 0x79c   :  { %10425 = vmatpush.bf16.msrb.mxu3 %v15752_v43  ;;  %v15581_v43 = vld [vmem:[#allocation9 + $0x598] sm:$0xf0]  ;;  %v17263_v41 = vld [vmem:[#allocation14 + $0x28] sm:$0xff] }
 0x79d   :  { %10398 = vmatpush.bf16.msrb.mxu1 %v15616_v16  ;;  %v17145_v16 = vld [vmem:[#allocation9 + $0x504] sm:$0xf]  ;;  %v15584_v20 = vor.u32 %v17163_v60, %v15581_v43  ;;  %v10030_v60 = vadd.f32 %v18361_v9, %v18355_v42 }
 0x79e   :  { %10412 = vmatpush.bf16.msrb.mxu2 %v15680_v35  ;;  %10385 = vmatpush.bf16.msrb.mxu0 %v15544_v10  ;;  %v18369_v35 = vpop.f32.mrf.mxu2  ;;  %v18371_v10 = vpop.f32.mrf.mxu0  ;;  %v15512_v15 = vor.u32 %v17145_v16, %v15509_v59  ;;  %v17217_v43 = vld [vmem:[#allocation9 + $0x744] sm:$0xf]  ;;  %v15789_v16 = vld [vmem:[#allocation9 + $0x738] sm:$0xf0]  ;;  %v17231_v59 = vld [vmem:[#allocation9 + $0x7b4] sm:$0xf] }
 0x7a0   :  { %10426 = vmatpush.bf16.msrb.mxu3 %v15744_v4  ;;  %v17161_v4 = vld [vmem:[#allocation9 + $0x584] sm:$0xf] }
 0x7a1   :  { %10399 = vmatpush.bf16.msrb.mxu1 %v15608_v29  ;;  %v15701_v29 = vld [vmem:[#allocation9 + $0x688] sm:$0xf0]  ;;  %v15576_v36 = vor.u32 %v17161_v4, %v15573_v47  ;;  %v15853_v4 = vld [vmem:[#allocation9 + $0x7b8] sm:$0xf0] }
 0x7a2   :  { %10413 = vmatpush.bf16.msrb.mxu2 %v15672_v57  ;;  %10386 = vmatpush.bf16.msrb.mxu0 %v15536_v23  ;;  %v17223_v57 = vld [vmem:[#allocation9 + $0x774] sm:$0xf]  ;;  %v15704_v49 = vor.u32 %v17193_v12, %v15701_v29  ;;  %v18375_v23 = vpop.f32.mrf.mxu3  ;;  %v10125_v37 = vpop.f32.mrf.mxu1  ;;  %v15781_v12 = vld [vmem:[#allocation9 + $0x728] sm:$0xf0] }
 0x7a3   :  { %v15824_v31 = vor.u32 %v17223_v57, %v15821_v58  ;;  %v17229_v58 = vld [vmem:[#allocation9 + $0x7a4] sm:$0xf] }
 0x7a4   :  { %10427 = vmatpush.bf16.msrb.mxu3 %v15736_v46  ;;  %v15885_v46 = vld [vmem:[#allocation9 + $0x7f8] sm:$0xf0] }
 0x7a5   :  { %10400 = vmatpush.bf16.msrb.mxu1 %v15600_v0  ;;  %v15888_v0 = vor.u32 %v17239_v13, %v15885_v46 }
 0x7a6   :  { %10414 = vmatpush.bf16.msrb.mxu2 %v15664_v39  ;;  %10387 = vmatpush.bf16.msrb.mxu0 %v15528_v50  ;;  %v17221_v39 = vld [vmem:[#allocation9 + $0x764] sm:$0xf]  ;;  %v10085_v19 = vpop.f32.mrf.mxu2  ;;  %v10111_v1 = vpop.f32.mrf.mxu0  ;;  %v17219_v50 = vld [vmem:[#allocation9 + $0x754] sm:$0xf] }
 0x7a7   :  { %v15816_v38 = vor.u32 %v17221_v39, %v15813_v61  ;;  %v15837_v39 = vld [vmem:[#allocation9 + $0x798] sm:$0xf0] }
 0x7a8   :  { %10428 = vmatpush.bf16.msrb.mxu3 %v15728_v55  ;;  %v15877_v55 = vld [vmem:[#allocation9 + $0x7e8] sm:$0xf0] }
 0x7a9   :  { %10401 = vmatpush.bf16.msrb.mxu1 %v15592_v5  ;;  %v15880_v21 = vor.u32 %v17237_v53, %v15877_v55  ;;  %v15805_v5 = vld [vmem:[#allocation9 + $0x758] sm:$0xf0] }
 0x7aa   :  { %10415 = vmatpush.bf16.msrb.mxu2 %v15656_v33  ;;  %10388 = vmatpush.bf16.msrb.mxu0 %v15520_v14  ;;  %v10042_v33 = vadd.f32 %v18359_v7, %v10028_v22  ;;  %v15872_v7 = vor.u32 %v17235_v56, %v15869_v25  ;;  %v10099_v51 = vpop.f32.mrf.mxu3  ;;  %v10127_v3 = vpop.f32.mrf.mxu1  ;;  %v17259_v56 = vld [vmem:[#allocation14 + $0x8] sm:$0xff] }
 0x7ac   :  { %10429 = vmatpush.bf16.msrb.mxu3 %v15720_v32  ;;  %v15808_v32 = vor.u32 %v17219_v50, %v15805_v5  ;;  %v17225_v5 = vld [vmem:[#allocation9 + $0x784] sm:$0xf] }
 0x7ad   :  { %10402 = vmatpush.bf16.msrb.mxu1 %v15584_v20 }
 0x7ae   :  { %10416 = vmatpush.bf16.msrb.mxu2 %v15648_v48  ;;  %10389 = vmatpush.bf16.msrb.mxu0 %v15512_v15  ;;  %v10139_v42 = vpop.f32.mrf.mxu2  ;;  %v10113_v47 = vpop.f32.mrf.mxu0 }
 0x7b0   :  { %10430 = vmatpush.bf16.msrb.mxu3 %v15712_v62  ;;  %v17262_v62 = vld [vmem:[#allocation14 + $0x20] sm:$0xff] }
 0x7b1   :  { %10403 = vmatpush.bf16.msrb.mxu1 %v15576_v36  ;;  %10390 = vmatmul.bf16.vlgmr.msrb.gmra.mxu0 %v18300_v8  ;;  %v10056_v8 = vadd.f32 %v18363_v11, %v10042_v33  ;;  %v17215_v11 = vld [vmem:[#allocation9 + $0x734] sm:$0xf]  ;;  %v15784_v36 = vor.u32 %v17213_v45, %v15781_v12  ;;  %v15829_v33 = vld [vmem:[#allocation9 + $0x788] sm:$0xf0] }
 0x7b2   :  { %10417 = vmatpush.bf16.msrb.mxu2 %v15640_v24  ;;  %10438 = vmatpush.bf16.msra.mxu0 %v15824_v31  ;;  %v10153_v15 = vpop.f32.mrf.mxu3  ;;  %v15773_v31 = vld [vmem:[#allocation9 + $0x718] sm:$0xf0] }
 0x7b3   :  { %v10070_v27 = vadd.f32 %v18365_v52, %v10056_v8  ;;  %v15856_v52 = vor.u32 %v17231_v59, %v15853_v4  ;;  %v18395_v4 = vld [vmem:[#allocation12] sm:$0x3] }
 0x7b4   :  { %10431 = vmatpush.bf16.msrb.mxu3 %v15704_v49  ;;  %10404 = vmatmul.bf16.vlgmr.msrb.gmra.mxu1 %v18302_v28  ;;  %v15797_v28 = vld [vmem:[#allocation9 + $0x748] sm:$0xf0]  ;;  %v17211_v49 = vld [vmem:[#allocation9 + $0x714] sm:$0xf] }
 0x7b5   :  { %10452 = vmatpush.bf16.msra.mxu1 %v15888_v0  ;;  %10418 = vmatmul.bf16.vlgmr.msrb.gmra.mxu2 %v18309_v40  ;;  %v15861_v40 = vld [vmem:[#allocation9 + $0x7c8] sm:$0xf0]  ;;  %v15800_v14 = vor.u32 %v17217_v43, %v15797_v28  ;;  %v10084_v20 = vadd.f32 %v18369_v35, %v10070_v27  ;;  %v17227_v0 = vld [vmem:[#allocation9 + $0x794] sm:$0xf]  ;;  %v15776_v55 = vor.u32 %v17211_v49, %v15773_v31  ;;  %v17273_v31 = vld [vmem:[#allocation14 + $0x78] sm:$0xff] }
 0x7b6   :  { %10614 = vmatpush.bf16.msra.mxu2 %v17265_v18  ;;  %10439 = vmatpush.bf16.msra.mxu0 %v15816_v38  ;;  %v15864_v9 = vor.u32 %v17233_v63, %v15861_v40  ;;  %v15845_v35 = vld [vmem:[#allocation9 + $0x7a8] sm:$0xf0]  ;;  %v10141_v61 = vpop.f32.mrf.mxu2  ;;  %v10167_v22 = vpop.f32.mrf.mxu0  ;;  %v15840_v38 = vor.u32 %v17227_v0, %v15837_v39 }
 0x7b7   :  { %10432 = vmatmul.bf16.vlgmr.msrb.gmra.mxu3 %v18311_v30  ;;  %v10044_v30 = vadd.f32 %v18367_v2, %v10030_v60  ;;  %v15792_v2 = vor.u32 %v17215_v11, %v15789_v16  ;;  %v10098_v29 = vadd.f32 %v18375_v23, %v10084_v20  ;;  %v15848_v24 = vor.u32 %v17229_v58, %v15845_v35  ;;  %v17260_v23 = vld [vmem:[#allocation14 + $0x10] sm:$0xff]  ;;  %v10181_v18 = vpop.f32.mrf.mxu1 }
 0x7b8   :  { %v15832_v60 = vor.u32 %v17225_v5, %v15829_v33  ;;  %10628 = vmatpush.bf16.msra.mxu3 %v17273_v31 }
 0x7b9   :  { %10453 = vmatpush.bf16.msra.mxu1 %v15880_v21  ;;  %v10058_v48 = vadd.f32 %v18371_v10, %v10044_v30  ;;  %v17261_v10 = vld [vmem:[#allocation14 + $0x18] sm:$0xff]  ;;  %v10112_v46 = vadd.f32 %v10111_v1, %v10098_v29  ;;  %v15765_v1 = vld [vmem:[#allocation9 + $0x708] sm:$0xf0] }
 0x7ba   :  { %10615 = vmatpush.bf16.msra.mxu2 %v17264_v44  ;;  %10440 = vmatpush.bf16.msra.mxu0 %v15808_v32  ;;  %v10155_v44 = vpop.f32.mrf.mxu3 }
 0x7bb   :  { %v10072_v57 = vadd.f32 %v18373_v17, %v10058_v48  ;;  %v10126_v53 = vadd.f32 %v10125_v37, %v10112_v46 }
 0x7bd   :  { %10454 = vmatpush.bf16.msra.mxu1 %v15872_v7  ;;  %v10086_v13 = vadd.f32 %v10085_v19, %v10072_v57  ;;  %v17209_v19 = vld [vmem:[#allocation9 + $0x704] sm:$0xf]  ;;  %v10140_v21 = vadd.f32 %v10139_v42, %v10126_v53 }
 0x7be   :  { %10616 = vmatpush.bf16.msra.mxu2 %v17263_v41  ;;  %10441 = vmatpush.bf16.msra.mxu0 %v15800_v14  ;;  %v15768_v25 = vor.u32 %v17209_v19, %v15765_v1  ;;  %v10195_v32 = vpop.f32.mrf.mxu2  ;;  %v17258_v7 = vld [vmem:[#allocation14] sm:$0xff]  ;;  %v10169_v63 = vpop.f32.mrf.mxu0 }
 0x7bf   :  { %v10100_v17 = vadd.f32 %v10099_v51, %v10086_v13  ;;  %v10154_v8 = vadd.f32 %v10153_v15, %v10140_v21  ;;  %v10183_v40 = vpop.f32.mrf.mxu1  ;;  %v17270_v21 = vld [vmem:[#allocation14 + $0x60] sm:$0xff] }
 0x7c1   :  { %10455 = vmatpush.bf16.msra.mxu1 %v15864_v9  ;;  %v10114_v50 = vadd.f32 %v10113_v47, %v10100_v17  ;;  %v10168_v28 = vadd.f32 %v10167_v22, %v10154_v8  ;;  %v17271_v17 = vld [vmem:[#allocation14 + $0x68] sm:$0xff] }
 0x7c2   :  { %10617 = vmatpush.bf16.msra.mxu2 %v17262_v62  ;;  %10442 = vmatpush.bf16.msra.mxu0 %v15792_v2  ;;  %v10209_v30 = vpop.f32.mrf.mxu3  ;;  %v10468_v2 = vperm.slane %v18395_v4, 0 }
 0x7c3   :  { %v10128_v37 = vadd.f32 %v10127_v3, %v10114_v50  ;;  %v10182_v41 = vadd.f32 %v10181_v18, %v10168_v28 }
 0x7c5   :  { %10456 = vmatpush.bf16.msra.mxu1 %v15856_v52  ;;  %v10142_v43 = vadd.f32 %v10141_v61, %v10128_v37  ;;  %v10196_v27 = vadd.f32 %v10195_v32, %v10182_v41  ;;  %v17272_v61 = vld [vmem:[#allocation14 + $0x70] sm:$0xff] }
 0x7c6   :  { %10618 = vmatpush.bf16.msra.mxu2 %v17261_v10  ;;  %10443 = vmatpush.bf16.msra.mxu0 %v15784_v36  ;;  %v10197_v42 = vpop.f32.mrf.mxu2  ;;  %v17268_v37 = vld [vmem:[#allocation14 + $0x50] sm:$0xff] }
 0x7c7   :  { %v10156_v51 = vadd.f32 %v10155_v44, %v10142_v43  ;;  %v10210_v11 = vadd.f32 %v10209_v30, %v10196_v27  ;;  %10629 = vmatpush.bf16.msra.mxu3 %v17272_v61 }
 0x7c9   :  { %10457 = vmatpush.bf16.msra.mxu1 %v15848_v24  ;;  %v10170_v14 = vadd.f32 %v10169_v63, %v10156_v51  ;;  %v17267_v63 = vld [vmem:[#allocation14 + $0x48] sm:$0xff] }
 0x7ca   :  { %10619 = vmatpush.bf16.msra.mxu2 %v17260_v23  ;;  %10444 = vmatpush.bf16.msra.mxu0 %v15776_v55  ;;  %v10211_v47 = vpop.f32.mrf.mxu3 }
 0x7cb   :  { %v10184_v16 = vadd.f32 %v10183_v40, %v10170_v14  ;;  %10630 = vmatpush.bf16.msra.mxu3 %v17271_v17  ;;  %v17266_v14 = vld [vmem:[#allocation14 + $0x40] sm:$0xff] }
 0x7cd   :  { %10458 = vmatpush.bf16.msra.mxu1 %v15840_v38  ;;  %v10198_v48 = vadd.f32 %v10197_v42, %v10184_v16 }
 0x7ce   :  { %10620 = vmatpush.bf16.msra.mxu2 %v17259_v56  ;;  %10445 = vmatpush.bf16.msra.mxu0 %v15768_v25  ;;  %v10223_v9 = vpop.f32.mrf.mxu0  ;;  %v17269_v56 = vld [vmem:[#allocation14 + $0x58] sm:$0xff] }
 0x7cf   :  { %v10224_v59 = vadd.f32 %v10223_v9, %v10210_v11  ;;  %v10212_v62 = vadd.f32 %v10211_v47, %v10198_v48  ;;  %10631 = vmatpush.bf16.msra.mxu3 %v17270_v21 }
 0x7d1   :  { %10459 = vmatpush.bf16.msra.mxu1 %v15832_v60  ;;  %10446 = vmatmul.bf16.vlgmr.msra.gmra.mxu0 %v18333_v26  ;;  %v10237_v20 = vpop.f32.mrf.mxu1 }
 0x7d2   :  { %10621 = vmatpush.bf16.msra.mxu2 %v17258_v7  ;;  %v10238_v26 = vadd.f32 %v10237_v20, %v10224_v59 }
 0x7d3   :  { %10632 = vmatpush.bf16.msra.mxu3 %v17269_v56 }
 0x7d4   :  { %10460 = vmatmul.bf16.vlgmr.msra.gmra.mxu1 %v18335_v54  ;;  %v10472_v45 = vadd.f32 %v10468_v2, %v10238_v26 }
 0x7d6   :  { %v10225_v3 = vpop.f32.mrf.mxu0  ;;  %v10476_v57 = vmax.f32 %v10472_v45, 0.0 }
 0x7d7   :  { %v10226_v52 = vadd.f32 %v10225_v3, %v10212_v62  ;;  %10633 = vmatpush.bf16.msra.mxu3 %v17268_v37 }
 0x7d8   :  { %v10251_v15 = vpop.f32.mrf.mxu2 }
 0x7d9   :  { %v10239_v54 = vpop.f32.mrf.mxu1  ;;  %v10252_v23 = vadd.f32 %v10251_v15, %v18347_v6 }
 0x7da   :  { %v10240_v12 = vadd.f32 %v10239_v54, %v10226_v52  ;;  %v10265_v10 = vpop.f32.mrf.mxu3 }
 0x7db   :  { %v10266_v18 = vadd.f32 %v10265_v10, %v10252_v23  ;;  %10634 = vmatpush.bf16.msra.mxu3 %v17267_v63 }
 0x7dc   :  { %v10474_v29 = vadd.f32 %v10468_v2, %v10240_v12 }
 0x7de   :  { %v10478_v58 = vmax.f32 %v10474_v29, 0.0 }
 0x7df   :  { %10635 = vmatpush.bf16.msra.mxu3 %v17266_v14 }
 0x7e0   :  { %v10480_v35 = vpack.c.bf16 %v10478_v58, %v10476_v57  ;;  %v10253_v13 = vpop.f32.mrf.mxu2 }
 0x7e1   :  { %v10254_v19 = vadd.f32 %v10253_v13, %v18357_v34 }
 0x7e2   :  { %10622 = vmatmul.bf16.vlgmr.msra.gmra.mxu2 %v10480_v35  ;;  %v10267_v24 = vpop.f32.mrf.mxu3 }
 0x7e3   :  { %v10268_v5 = vadd.f32 %v10267_v24, %v10254_v19  ;;  %v10469_v24 = vperm.slane %v18395_v4, 1 }
 0x7ee   :  { %v10279_v46 = vpop.f32.mrf.mxu0 }
 0x7ef   :  { %v10280_v1 = vadd.f32 %v10279_v46, %v10266_v18  ;;  %v17290_v18 = vld [vmem:[#allocation15] ss:$0 sm:$0xff] }
 0x7f1   :  { %v10293_v36 = vpop.f32.mrf.mxu1 }
 0x7f2   :  { %v10294_v33 = vadd.f32 %v10293_v36, %v10280_v1 }
 0x7f6   :  { %v10281_v0 = vpop.f32.mrf.mxu0 }
 0x7f7   :  { %v10282_v60 = vadd.f32 %v10281_v0, %v10268_v5 }
 0x7f8   :  { %v10307_v49 = vpop.f32.mrf.mxu2 }
 0x7f9   :  { %v10295_v39 = vpop.f32.mrf.mxu1  ;;  %v10308_v44 = vadd.f32 %v10307_v49, %v10294_v33 }
 0x7fa   :  { %v10321_v22 = vpop.f32.mrf.mxu3  ;;  %v10296_v7 = vadd.f32 %v10295_v39, %v10282_v60 }
 0x7fb   :  { %v10322_v32 = vadd.f32 %v10321_v22, %v10308_v44 }
 0x800   :  { %v10309_v53 = vpop.f32.mrf.mxu2 }
 0x801   :  { %v10310_v28 = vadd.f32 %v10309_v53, %v10296_v7 }
 0x802   :  { %v10323_v50 = vpop.f32.mrf.mxu3 }
 0x803   :  { %v10324_v41 = vadd.f32 %v10323_v50, %v10310_v28 }
 0x80e   :  { %v10335_v55 = vpop.f32.mrf.mxu0 }
 0x80f   :  { %v10336_v34 = vadd.f32 %v10335_v55, %v10322_v32 }
 0x811   :  { %v10349_v38 = vpop.f32.mrf.mxu1 }
 0x812   :  { %v10350_v30 = vadd.f32 %v10349_v38, %v10336_v34 }
 0x816   :  { %v10337_v6 = vpop.f32.mrf.mxu0 }
 0x817   :  { %v10338_v9 = vadd.f32 %v10337_v6, %v10324_v41 }
 0x818   :  { %v10363_v25 = vpop.f32.mrf.mxu2 }
 0x819   :  { %v10351_v8 = vpop.f32.mrf.mxu1  ;;  %v10364_v42 = vadd.f32 %v10363_v25, %v10350_v30 }
 0x81a   :  { %v10377_v43 = vpop.f32.mrf.mxu3  ;;  %v10352_v20 = vadd.f32 %v10351_v8, %v10338_v9 }
 0x81b   :  { %v10378_v16 = vadd.f32 %v10377_v43, %v10364_v42 }
 0x820   :  { %v10365_v40 = vpop.f32.mrf.mxu2 }
 0x821   :  { %v10366_v59 = vadd.f32 %v10365_v40, %v10352_v20 }
 0x822   :  { %v10379_v11 = vpop.f32.mrf.mxu3 }
 0x823   :  { %v10380_v2 = vadd.f32 %v10379_v11, %v10366_v59 }
 0x82e   :  { %v10391_v51 = vpop.f32.mrf.mxu0 }
 0x82f   :  { %v10392_v47 = vadd.f32 %v10391_v51, %v10378_v16 }
 0x831   :  { %v10405_v27 = vpop.f32.mrf.mxu1 }
 0x832   :  { %v10406_v3 = vadd.f32 %v10405_v27, %v10392_v47 }
 0x836   :  { %v10393_v62 = vpop.f32.mrf.mxu0 }
 0x837   :  { %v10394_v45 = vadd.f32 %v10393_v62, %v10380_v2 }
 0x838   :  { %v10419_v48 = vpop.f32.mrf.mxu2 }
 0x839   :  { %v10407_v26 = vpop.f32.mrf.mxu1  ;;  %v10420_v54 = vadd.f32 %v10419_v48, %v10406_v3 }
 0x83a   :  { %v10433_v52 = vpop.f32.mrf.mxu3  ;;  %v10408_v58 = vadd.f32 %v10407_v26, %v10394_v45 }
 0x83b   :  { %v10434_v57 = vadd.f32 %v10433_v52, %v10420_v54 }
 0x840   :  { %v10421_v12 = vpop.f32.mrf.mxu2 }
 0x841   :  { %v10422_v15 = vadd.f32 %v10421_v12, %v10408_v58 }
 0x842   :  { %v10435_v13 = vpop.f32.mrf.mxu3 }
 0x843   :  { %v10436_v46 = vadd.f32 %v10435_v13, %v10422_v15 }
 0x84e   :  { %v10447_v29 = vpop.f32.mrf.mxu0 }
 0x84f   :  { %v10448_v10 = vadd.f32 %v10447_v29, %v10434_v57 }
 0x851   :  { %v10461_v35 = vpop.f32.mrf.mxu1 }
 0x852   :  { %v10462_v36 = vadd.f32 %v10461_v35, %v10448_v10 }
 0x854   :  { %v10473_v39 = vadd.f32 %v10469_v24, %v10462_v36 }
 0x856   :  { %v10449_v49 = vpop.f32.mrf.mxu0  ;;  %v10477_v23 = vmax.f32 %v10473_v39, 0.0 }
 0x857   :  { %v10450_v31 = vadd.f32 %v10449_v49, %v10436_v46 }
 0x859   :  { %v10463_v0 = vpop.f32.mrf.mxu1 }
 0x85a   :  { %v10464_v61 = vadd.f32 %v10463_v0, %v10450_v31 }
 0x85c   :  { %v10475_v22 = vadd.f32 %v10469_v24, %v10464_v61 }
 0x85e   :  { %v10479_v17 = vmax.f32 %v10475_v22, 0.0 }
 0x860   :  { %v10481_v53 = vpack.c.bf16 %v10479_v17, %v10477_v23 }
 0x862   :  { %10636 = vmatmul.bf16.vlgmr.msra.gmra.mxu3 %v10481_v53 }
 0x865   :  { %v10623_v55 = vpop.f32.mrf.mxu2 }
 0x866   :  { %v10624_v38 = vadd.f32 %v17290_v18, %v10623_v55 }
 0x86d   :  { %v10625_v21 = vpop.f32.mrf.mxu2 }
 0x86e   :  { %v10626_v50 = vadd.f32 %v17290_v18, %v10625_v21 }
 0x8e5   :  { %v10637_v19 = vpop.f32.mrf.mxu3 }
 0x8e6   :  { %v10638_v1 = vadd.f32 %v10637_v19, %v10624_v38 }
 0x8e8   :  { %17291 = vtanh.f32 %v10638_v1 }
 0x8ed   :  { %v10639_v5 = vpop.f32.mrf.mxu3 }
 0x8ee   :  { %v17292_v4 = vpop.eup %17291  ;;  %v10640_v33 = vadd.f32 %v10639_v5, %v10626_v50 }
 0x8ef   :  { %10644 = vst [vmem:[#allocation17] sm:$0xff] %v17292_v4 }
 0x8f0   :  { %17293 = vtanh.f32 %v10640_v33 }
 0x8f6   :  { %v17294_v56 = vpop.eup %17293 }
 0x8f7   :  { %10645 = vst [vmem:[#allocation17 + $0x8] sm:$0xff] %v17294_v56 }
 0x8f8   :  { %10658 = dma.vmem_to_hbm [thread:$0]  %s10651_s7, 256, %s10653_s26, [#allocation5], %s17527_s1, %s17527_s1, %s17528_s17  }
 0x8f9   :  { %17521 = dma.done.wait [#allocation5], 256  }
 0x8fa   :  { %17522 = vsyncadd [#allocation5], 4294967040 }
 0x8fb   :  { %10663 = vsyncpa [#allocation4], 1 }
 0x8fc   :  { %10664 = vsyncpa [#allocation7], 1 }
 0x8fd   :  { %10665 = vsyncpa [#allocation10], 1 }
 0x8fe   :  { %10666 = vsyncpa [#allocation13], 1 }
 0x8ff   :  { %10667 = vsyncpa [#allocation16], 1 }
 0x900   :  { %10668 = vsyncpa [#allocation5], 1 }

</bundles_post_ra>
